<compile_context>
chip_gen: v7x
topology: tpu7x:2x2x1
jax: 0.10.0
libtpu: 0.0.40
codegen_flags: <defaults>
</compile_context>

<pallas_src>
import functools

import jax
import jax.numpy as jnp
from jax import lax
from jax.experimental import pallas as pl
from jax.experimental.pallas import tpu as pltpu


def _round_up(n, m):
    return ((n + m - 1) // m) * m


# --------------------------- fused whole-model kernel ---------------------------
def _fused_lstm_fc_kernel(*refs, num_layers, seq_len, batch_block, hidden_p,
                          compute_dtype):
    """All LSTM layers + ReLU + FC in one kernel.

    refs layout (inputs, outputs, scratch):
      refs[0]                      x_ref   (seq, bb, in_size)   time-major, UNPADDED
      refs[1+3l .. 3+3l]           layer l: wih (K_l, 4Hp), whh (Hp, 4Hp), b (1, 4Hp)
      refs[1+3L], refs[2+3L]       fcw (Hp, NCp), fcb (1, NCp)
      refs[3+3L]                   out_ref (bb, seq, NCp)       batch-major
      refs[4+3L]                   h_buf  (seq, bb, Hp)   VMEM scratch
      refs[5+3L]                   gx_buf (seq, bb, 4Hp)  VMEM scratch (hoisted proj.)
    Gate order matches PyTorch: i, f, g, o (each padded to Hp lanes).
    """
    Hp = hidden_p
    bb = batch_block
    L = num_layers
    N = seq_len * bb

    x_ref = refs[0]
    layer_refs = [(refs[1 + 3 * l], refs[2 + 3 * l], refs[3 + 3 * l])
                  for l in range(L)]
    fcw_ref = refs[1 + 3 * L]
    fcb_ref = refs[2 + 3 * L]
    out_ref = refs[3 + 3 * L]
    h_buf = refs[4 + 3 * L]
    gx_buf = refs[5 + 3 * L]

    for layer, (wih_ref, whh_ref, b_ref) in enumerate(layer_refs):
        # ---- Hoisted input projection: one shot per layer, off the serial path ----
        if layer == 0:
            k_in = wih_ref.shape[0]                     # true (unpadded) input size
            xin = x_ref[...].reshape(N, k_in)
            if k_in <= 8:
                # Tiny-K projection as K rank-1 VPU updates: exact, avoids an
                # MXU pass with tiny contraction utilization.
                wih = wih_ref[...].astype(jnp.float32)
                xf = xin.astype(jnp.float32)
                gx = xf[:, 0:1] * wih[0:1, :]
                for kk in range(1, k_in):
                    gx = gx + xf[:, kk:kk + 1] * wih[kk:kk + 1, :]
            else:
                gx = jnp.dot(xin.astype(compute_dtype), wih_ref[...],
                             preferred_element_type=jnp.float32)
        else:
            xin = h_buf[...].reshape(N, Hp)
            gx = jnp.dot(xin.astype(compute_dtype), wih_ref[...],
                         preferred_element_type=jnp.float32)
        gx_buf[...] = (gx + b_ref[...]).reshape(seq_len, bb,
                                                4 * Hp).astype(gx_buf.dtype)

        # ---- Serial recurrence: only h @ W_hh + gate nonlinearities ----
        def step(t, carry):
            h, c = carry
            # W_hh is re-read from VMEM every step (vld slots are free) rather
            # than pinned as a 64-vreg register value across the whole loop.
            g = gx_buf[t].astype(jnp.float32) + jnp.dot(
                h.astype(compute_dtype), whh_ref[...],
                preferred_element_type=jnp.float32)
            # Gate slices are whole 128-lane tiles (Hp multiple of 128).
            i = jax.nn.sigmoid(g[:, 0 * Hp:1 * Hp])
            f = jax.nn.sigmoid(g[:, 1 * Hp:2 * Hp])
            gg = jnp.tanh(g[:, 2 * Hp:3 * Hp])
            o = jax.nn.sigmoid(g[:, 3 * Hp:4 * Hp])
            c_new = f * c + i * gg
            h_new = o * jnp.tanh(c_new)
            h_buf[t] = h_new.astype(h_buf.dtype)        # lane-dense (bb, Hp) store
            return h_new, c_new

        h0 = jnp.zeros((bb, Hp), jnp.float32)
        c0 = jnp.zeros((bb, Hp), jnp.float32)
        lax.fori_loop(0, seq_len, step, (h0, c0), unroll=min(8, seq_len))

    # ---- Fused ReLU + FC epilogue (lane-dense, batch-major output) ----
    h_all = jnp.maximum(h_buf[...].reshape(N, Hp), 0).astype(compute_dtype)
    logits = jnp.dot(h_all, fcw_ref[...],
                     preferred_element_type=jnp.float32) + fcb_ref[...]
    logits = logits.reshape(seq_len, bb, -1).astype(out_ref.dtype)
    # Re-lay the time-major logits into the batch-major output block with cheap
    # per-timestep sublane stores in VMEM (no post-kernel HBM transpose pass).
    # TODO(synk): for very long sequences switch this to a fori_loop with pl.ds.
    for t in range(seq_len):
        out_ref[:, t, :] = logits[t]


# ------------------------- parameter preparation (once) -------------------------
def _pad_gate_cols(w_t, H, Hp, rows, rows_p):
    """(rows, 4H) -> (rows_p, 4Hp); gate k occupies columns [k*Hp, k*Hp+H)."""
    out = jnp.zeros((rows_p, 4 * Hp), jnp.float32)
    for k in range(4):
        out = out.at[:rows, k * Hp:k * Hp + H].set(w_t[:, k * H:(k + 1) * H])
    return out


def _pad_gate_bias(b, H, Hp):
    out = jnp.zeros((1, 4 * Hp), jnp.float32)
    for k in range(4):
        out = out.at[0, k * Hp:k * Hp + H].set(b[k * H:(k + 1) * H])
    return out


def prepare_params(params, *, compute_dtype=jnp.float32):
    """Transpose + pad weights ONCE (not per forward call)."""
    lstm = params["lstm"]
    H = lstm[0]["w_hh"].shape[1]
    in_size = lstm[0]["w_ih"].shape[1]
    NC = params["fc_w"].shape[0]
    Hp = _round_up(H, 128)
    NCp = _round_up(NC, 128)

    layers = []
    for li, lp in enumerate(lstm):
        rows = lp["w_ih"].shape[1]            # in_size for layer 0, H otherwise
        rows_p = rows if li == 0 else Hp      # layer 0 keeps its true (small) K
        wih = _pad_gate_cols(lp["w_ih"].T, H, Hp, rows, rows_p).astype(compute_dtype)
        whh = _pad_gate_cols(lp["w_hh"].T, H, Hp, H, Hp).astype(compute_dtype)
        b = _pad_gate_bias(lp["b_ih"] + lp["b_hh"], H, Hp)       # bias stays f32
        layers.append((wih, whh, b))

    fcw = jnp.zeros((Hp, NCp), jnp.float32).at[:H, :NC].set(params["fc_w"].T)
    fcw = fcw.astype(compute_dtype)
    fcb = jnp.zeros((1, NCp), jnp.float32).at[0, :NC].set(params["fc_b"])

    weights = dict(layers=tuple(layers), fcw=fcw, fcb=fcb)
    cfg = dict(H=H, Hp=Hp, NC=NC, NCp=NCp, in_size=in_size,
               num_layers=len(lstm), compute_dtype=compute_dtype)
    return weights, cfg


# ----------------------------------- forward ------------------------------------
def build_forward(params, *, compute_dtype=jnp.float32, batch_block=None):
    """Returns f(x) for x of shape (batch, seq, input_size), batch-first.

    batch_block: per-grid-step batch tile.  Default (None) uses the whole batch
    -> grid=(1,), which is optimal for single-TensorCore chips (v5e/v6e).  On
    v7x pass batch_block = batch // 2 (must be a multiple of 8) so the two grid
    steps shard across the two TensorCores via "parallel" semantics.
    """
    weights, cfg = prepare_params(params, compute_dtype=compute_dtype)
    Hp, NC, NCp = cfg["Hp"], cfg["NC"], cfg["NCp"]
    L, cdt = cfg["num_layers"], cfg["compute_dtype"]

    @jax.jit
    def forward(x, weights):
        batch, seq, feat = x.shape
        bb = batch_block if batch_block is not None else batch
        assert batch % bb == 0, "batch must be divisible by batch_block"
        grid = (batch // bb,)

        # Time-major, UNPADDED features: no 32x HBM inflation, no XLA pad op.
        x_tm = jnp.transpose(x.astype(jnp.float32), (1, 0, 2))   # (seq, batch, in)

        flat_inputs = [x_tm]
        in_specs = [pl.BlockSpec((seq, bb, feat), lambda i: (0, i, 0))]
        for (wih, whh, b) in weights["layers"]:
            flat_inputs += [wih, whh, b]
            in_specs += [pl.BlockSpec(wih.shape, lambda i: (0, 0)),
                         pl.BlockSpec(whh.shape, lambda i: (0, 0)),
                         pl.BlockSpec(b.shape, lambda i: (0, 0))]
        flat_inputs += [weights["fcw"], weights["fcb"]]
        in_specs += [pl.BlockSpec(weights["fcw"].shape, lambda i: (0, 0)),
                     pl.BlockSpec(weights["fcb"].shape, lambda i: (0, 0))]

        kernel = functools.partial(
            _fused_lstm_fc_kernel, num_layers=L, seq_len=seq,
            batch_block=bb, hidden_p=Hp, compute_dtype=cdt)

        # Output & scratch in compute_dtype: halves HBM write-back of the
        # lane-padded logits and the VMEM scratch on the bf16 path.
        out = pl.pallas_call(
            kernel,
            grid=grid,
            out_shape=jax.ShapeDtypeStruct((batch, seq, NCp), cdt),
            in_specs=in_specs,
            out_specs=pl.BlockSpec((bb, seq, NCp), lambda i: (i, 0, 0)),
            scratch_shapes=[pltpu.VMEM((seq, bb, Hp), cdt),
                            pltpu.VMEM((seq, bb, 4 * Hp), cdt)],
            compiler_params=pltpu.CompilerParams(
                dimension_semantics=("parallel",),
                # TODO(synk): scale this with seq*bb*Hp for large shapes
                # (cap below physical: 128 MiB v5e/v6e, 64 MiB v7x).
                vmem_limit_bytes=32 * 1024 * 1024),
        )(*flat_inputs)

        # Output is already batch-major: hn.view(-1, hidden) row order b*seq+t.
        out = out.reshape(batch * seq, NCp)[:, :NC]
        return out.astype(jnp.float32)

    return lambda x: forward(x, weights)


# ----------------------- pure-JAX reference (for checking) ----------------------
def lstm_model_reference(x, params):
    h_seq = jnp.transpose(x, (1, 0, 2))
    batch = x.shape[0]
    for lp in params["lstm"]:
        H = lp["w_hh"].shape[1]

        def step(carry, x_t, lp=lp, H=H):
            h, c = carry
            gates = x_t @ lp["w_ih"].T + h @ lp["w_hh"].T + lp["b_ih"] + lp["b_hh"]
            i = jax.nn.sigmoid(gates[:, :H])
            f = jax.nn.sigmoid(gates[:, H:2 * H])
            g = jnp.tanh(gates[:, 2 * H:3 * H])
            o = jax.nn.sigmoid(gates[:, 3 * H:])
            c = f * c + i * g
            h = o * jnp.tanh(c)
            return (h, c), h

        init = (jnp.zeros((batch, H), jnp.float32), jnp.zeros((batch, H), jnp.float32))
        _, h_seq = lax.scan(step, init, h_seq)
    out = jnp.transpose(h_seq, (1, 0, 2)).reshape(-1, h_seq.shape[-1])
    out = jnp.maximum(out, 0.0)
    return out @ params["fc_w"].T + params["fc_b"]


# -------------------------------- parameter init --------------------------------
def init_params(key, num_classes, input_size, hidden_size, num_layers):
    k = 1.0 / (hidden_size ** 0.5)
    keys = jax.random.split(key, num_layers * 4 + 2)
    idx = 0
    params = {"lstm": []}
    for layer in range(num_layers):
        in_dim = input_size if layer == 0 else hidden_size
        w_ih = jax.random.uniform(keys[idx], (4 * hidden_size, in_dim), jnp.float32, -k, k); idx += 1
        w_hh = jax.random.uniform(keys[idx], (4 * hidden_size, hidden_size), jnp.float32, -k, k); idx += 1
        b_ih = jax.random.uniform(keys[idx], (4 * hidden_size,), jnp.float32, -k, k); idx += 1
        b_hh = jax.random.uniform(keys[idx], (4 * hidden_size,), jnp.float32, -k, k); idx += 1
        params["lstm"].append({"w_ih": w_ih, "w_hh": w_hh, "b_ih": b_ih, "b_hh": b_hh})
    params["fc_w"] = jax.random.uniform(keys[idx], (num_classes, hidden_size), jnp.float32, -k, k); idx += 1
    params["fc_b"] = jax.random.uniform(keys[idx], (num_classes,), jnp.float32, -k, k)
    return params


if __name__ == "__main__":
    num_classes, input_size, hidden_size, num_layers = 4, 4, 32, 2
    batch, seq_len = 16, 8

    key = jax.random.PRNGKey(0)
    pkey, xkey = jax.random.split(key)
    params = init_params(pkey, num_classes, input_size, hidden_size, num_layers)
    x = jax.random.normal(xkey, (batch, seq_len, input_size), jnp.float32)

    ref = jax.block_until_ready(lstm_model_reference(x, params))

    # f32 path, grid=(1,) (single-TC optimum): tight correctness check.
    fwd_f32 = build_forward(params, compute_dtype=jnp.float32)
    out = jax.block_until_ready(fwd_f32(x))
    assert out.shape == (batch * seq_len, num_classes), out.shape
    assert jnp.allclose(out, ref, atol=2e-3, rtol=2e-3), "f32 kernel mismatch vs reference"

    # bf16 MXU operands + bf16 scratch/output, f32 accumulate & state: loose check.
    # (On v7x, also pass batch_block=batch//2 to shard across the two TCs.)
    fwd_bf16 = build_forward(params, compute_dtype=jnp.bfloat16)
    out_bf16 = jax.block_until_ready(fwd_bf16(x))
    assert out_bf16.shape == (batch * seq_len, num_classes), out_bf16.shape
    assert jnp.allclose(out_bf16, ref, atol=1e-1, rtol=1e-1), "bf16 kernel mismatch vs reference"

    print("KERNEL_OK")
</pallas_src>

<mosaic_0001>
module attributes {stable_mosaic.version = 11 : i64} {
  func.func @_fused_lstm_fc_kernel(%arg0: i32, %arg1: memref<8x16x4xf32, #tpu.memory_space<vmem>>, %arg2: memref<4x512xf32, #tpu.memory_space<vmem>>, %arg3: memref<128x512xf32, #tpu.memory_space<vmem>>, %arg4: memref<1x512xf32, #tpu.memory_space<vmem>>, %arg5: memref<128x512xf32, #tpu.memory_space<vmem>>, %arg6: memref<128x512xf32, #tpu.memory_space<vmem>>, %arg7: memref<1x512xf32, #tpu.memory_space<vmem>>, %arg8: memref<128x128xf32, #tpu.memory_space<vmem>>, %arg9: memref<1x128xf32, #tpu.memory_space<vmem>>, %arg10: memref<16x8x128xf32, #tpu.memory_space<vmem>>, %arg11: memref<8x16x128xf32, #tpu.memory_space<vmem>>, %arg12: memref<8x16x512xf32, #tpu.memory_space<vmem>>) attributes {dimension_semantics = [#tpu.dimension_semantics<parallel>], iteration_bounds = array<i64: 1>, scalar_prefetch = 0 : i64, scratch_operands = 2 : i64, tpu.core_type = #tpu.core_type<tc>, window_params = [{transform_indices = @transform_0, window_bounds = array<i64: 8, 16, 4>}, {pipeline_mode = #tpu.pipeline_mode<synchronous>, transform_indices = @transform_1, window_bounds = array<i64: 4, 512>}, {pipeline_mode = #tpu.pipeline_mode<synchronous>, transform_indices = @transform_2, window_bounds = array<i64: 128, 512>}, {pipeline_mode = #tpu.pipeline_mode<synchronous>, transform_indices = @transform_3, window_bounds = array<i64: 1, 512>}, {pipeline_mode = #tpu.pipeline_mode<synchronous>, transform_indices = @transform_4, window_bounds = array<i64: 128, 512>}, {pipeline_mode = #tpu.pipeline_mode<synchronous>, transform_indices = @transform_5, window_bounds = array<i64: 128, 512>}, {pipeline_mode = #tpu.pipeline_mode<synchronous>, transform_indices = @transform_6, window_bounds = array<i64: 1, 512>}, {pipeline_mode = #tpu.pipeline_mode<synchronous>, transform_indices = @transform_7, window_bounds = array<i64: 128, 128>}, {pipeline_mode = #tpu.pipeline_mode<synchronous>, transform_indices = @transform_8, window_bounds = array<i64: 1, 128>}, {transform_indices = @transform_9, window_bounds = array<i64: 16, 8, 128>}]} {
    %c0 = arith.constant 0 : index
    %c0_0 = arith.constant 0 : index
    %c0_1 = arith.constant 0 : index
    %0 = vector.load %arg1[%c0, %c0_0, %c0_1] : memref<8x16x4xf32, #tpu.memory_space<vmem>>, vector<8x16x4xf32>
    %1 = vector.shape_cast %0 : vector<8x16x4xf32> to vector<128x4xf32>
    %c0_2 = arith.constant 0 : index
    %c0_3 = arith.constant 0 : index
    %2 = vector.load %arg2[%c0_2, %c0_3] : memref<4x512xf32, #tpu.memory_space<vmem>>, vector<4x512xf32>
    %3 = vector.extract_strided_slice %1 {offsets = [0, 0], sizes = [128, 1], strides = [1, 1]} : vector<128x4xf32> to vector<128x1xf32>
    %4 = vector.extract_strided_slice %2 {offsets = [0, 0], sizes = [1, 512], strides = [1, 1]} : vector<4x512xf32> to vector<1x512xf32>
    %5 = vector.broadcast %3 : vector<128x1xf32> to vector<128x512xf32>
    %6 = vector.broadcast %4 : vector<1x512xf32> to vector<128x512xf32>
    %7 = arith.mulf %5, %6 : vector<128x512xf32>
    %8 = vector.extract_strided_slice %1 {offsets = [0, 1], sizes = [128, 1], strides = [1, 1]} : vector<128x4xf32> to vector<128x1xf32>
    %9 = vector.extract_strided_slice %2 {offsets = [1, 0], sizes = [1, 512], strides = [1, 1]} : vector<4x512xf32> to vector<1x512xf32>
    %10 = vector.broadcast %8 : vector<128x1xf32> to vector<128x512xf32>
    %11 = vector.broadcast %9 : vector<1x512xf32> to vector<128x512xf32>
    %12 = arith.mulf %10, %11 : vector<128x512xf32>
    %13 = arith.addf %7, %12 : vector<128x512xf32>
    %14 = vector.extract_strided_slice %1 {offsets = [0, 2], sizes = [128, 1], strides = [1, 1]} : vector<128x4xf32> to vector<128x1xf32>
    %15 = vector.extract_strided_slice %2 {offsets = [2, 0], sizes = [1, 512], strides = [1, 1]} : vector<4x512xf32> to vector<1x512xf32>
    %16 = vector.broadcast %14 : vector<128x1xf32> to vector<128x512xf32>
    %17 = vector.broadcast %15 : vector<1x512xf32> to vector<128x512xf32>
    %18 = arith.mulf %16, %17 : vector<128x512xf32>
    %19 = arith.addf %13, %18 : vector<128x512xf32>
    %20 = vector.extract_strided_slice %1 {offsets = [0, 3], sizes = [128, 1], strides = [1, 1]} : vector<128x4xf32> to vector<128x1xf32>
    %21 = vector.extract_strided_slice %2 {offsets = [3, 0], sizes = [1, 512], strides = [1, 1]} : vector<4x512xf32> to vector<1x512xf32>
    %22 = vector.broadcast %20 : vector<128x1xf32> to vector<128x512xf32>
    %23 = vector.broadcast %21 : vector<1x512xf32> to vector<128x512xf32>
    %24 = arith.mulf %22, %23 : vector<128x512xf32>
    %25 = arith.addf %19, %24 : vector<128x512xf32>
    %c0_4 = arith.constant 0 : index
    %c0_5 = arith.constant 0 : index
    %26 = vector.load %arg4[%c0_4, %c0_5] : memref<1x512xf32, #tpu.memory_space<vmem>>, vector<1x512xf32>
    %27 = vector.broadcast %26 : vector<1x512xf32> to vector<128x512xf32>
    %28 = arith.addf %25, %27 : vector<128x512xf32>
    %29 = vector.shape_cast %28 : vector<128x512xf32> to vector<8x16x512xf32>
    %c0_6 = arith.constant 0 : index
    %c0_7 = arith.constant 0 : index
    %c0_8 = arith.constant 0 : index
    %30 = vector.load %arg12[%c0_6, %c0_7, %c0_8] : memref<8x16x512xf32, #tpu.memory_space<vmem>>, vector<8x16x512xf32>
    tpu.vector_store %arg12[%c0_6, %c0_7, %c0_8], %29 {strides = array<i32>} : memref<8x16x512xf32, #tpu.memory_space<vmem>>, vector<8x16x512xf32>,
    %cst = arith.constant 0.000000e+00 : f32
    %31 = vector.broadcast %cst : f32 to vector<16x128xf32>
    %cst_9 = arith.constant 0.000000e+00 : f32
    %32 = vector.broadcast %cst_9 : f32 to vector<16x128xf32>
    %c0_i32 = arith.constant 0 : i32
    %33 = arith.index_cast %c0_i32 : i32 to index
    %c0_10 = arith.constant 0 : index
    %c0_11 = arith.constant 0 : index
    %34 = vector.load %arg12[%33, %c0_10, %c0_11] : memref<8x16x512xf32, #tpu.memory_space<vmem>>, vector<1x16x512xf32>
    %35 = vector.shape_cast %34 : vector<1x16x512xf32> to vector<16x512xf32>
    %c0_12 = arith.constant 0 : index
    %c0_13 = arith.constant 0 : index
    %36 = vector.load %arg3[%c0_12, %c0_13] : memref<128x512xf32, #tpu.memory_space<vmem>>, vector<128x512xf32>
    %cst_14 = arith.constant dense<0.000000e+00> : vector<16x512xf32>
    %37 = tpu.matmul %31, %36, %cst_14 {dimension_numbers = #tpu.dot_dimension_numbers<[1], [0], [0], [1], [0, 0, 1, 1], [], []>} : vector<16x128xf32>, vector<128x512xf32>, vector<16x512xf32> -> vector<16x512xf32>
    %38 = arith.addf %35, %37 : vector<16x512xf32>
    %39 = vector.extract_strided_slice %38 {offsets = [0, 0], sizes = [16, 128], strides = [1, 1]} : vector<16x512xf32> to vector<16x128xf32>
    %40 = arith.negf %39 : vector<16x128xf32>
    %41 = math.exp %40 : vector<16x128xf32>
    %cst_15 = arith.constant 1.000000e+00 : f32
    %42 = vector.broadcast %cst_15 : f32 to vector<16x128xf32>
    %43 = arith.addf %42, %41 : vector<16x128xf32>
    %44 = arith.divf %42, %43 : vector<16x128xf32>
    %45 = vector.extract_strided_slice %38 {offsets = [0, 128], sizes = [16, 128], strides = [1, 1]} : vector<16x512xf32> to vector<16x128xf32>
    %46 = arith.negf %45 : vector<16x128xf32>
    %47 = math.exp %46 : vector<16x128xf32>
    %cst_16 = arith.constant 1.000000e+00 : f32
    %48 = vector.broadcast %cst_16 : f32 to vector<16x128xf32>
    %49 = arith.addf %48, %47 : vector<16x128xf32>
    %50 = arith.divf %48, %49 : vector<16x128xf32>
    %51 = vector.extract_strided_slice %38 {offsets = [0, 256], sizes = [16, 128], strides = [1, 1]} : vector<16x512xf32> to vector<16x128xf32>
    %52 = math.tanh %51 : vector<16x128xf32>
    %53 = vector.extract_strided_slice %38 {offsets = [0, 384], sizes = [16, 128], strides = [1, 1]} : vector<16x512xf32> to vector<16x128xf32>
    %54 = arith.negf %53 : vector<16x128xf32>
    %55 = math.exp %54 : vector<16x128xf32>
    %cst_17 = arith.constant 1.000000e+00 : f32
    %56 = vector.broadcast %cst_17 : f32 to vector<16x128xf32>
    %57 = arith.addf %56, %55 : vector<16x128xf32>
    %58 = arith.divf %56, %57 : vector<16x128xf32>
    %59 = arith.mulf %50, %32 : vector<16x128xf32>
    %60 = arith.mulf %44, %52 : vector<16x128xf32>
    %61 = arith.addf %59, %60 : vector<16x128xf32>
    %62 = math.tanh %61 : vector<16x128xf32>
    %63 = arith.mulf %58, %62 : vector<16x128xf32>
    %64 = arith.index_cast %c0_i32 : i32 to index
    %c0_18 = arith.constant 0 : index
    %c0_19 = arith.constant 0 : index
    %65 = vector.load %arg11[%64, %c0_18, %c0_19] : memref<8x16x128xf32, #tpu.memory_space<vmem>>, vector<1x16x128xf32>
    %66 = vector.shape_cast %65 : vector<1x16x128xf32> to vector<16x128xf32>
    %67 = vector.shape_cast %63 : vector<16x128xf32> to vector<1x16x128xf32>
    tpu.vector_store %arg11[%64, %c0_18, %c0_19], %67 {strides = array<i32>} : memref<8x16x128xf32, #tpu.memory_space<vmem>>, vector<1x16x128xf32>,
    %c1_i32 = arith.constant 1 : i32
    %68 = arith.index_cast %c1_i32 : i32 to index
    %c0_20 = arith.constant 0 : index
    %c0_21 = arith.constant 0 : index
    %69 = vector.load %arg12[%68, %c0_20, %c0_21] : memref<8x16x512xf32, #tpu.memory_space<vmem>>, vector<1x16x512xf32>
    %70 = vector.shape_cast %69 : vector<1x16x512xf32> to vector<16x512xf32>
    %c0_22 = arith.constant 0 : index
    %c0_23 = arith.constant 0 : index
    %71 = vector.load %arg3[%c0_22, %c0_23] : memref<128x512xf32, #tpu.memory_space<vmem>>, vector<128x512xf32>
    %cst_24 = arith.constant dense<0.000000e+00> : vector<16x512xf32>
    %72 = tpu.matmul %63, %71, %cst_24 {dimension_numbers = #tpu.dot_dimension_numbers<[1], [0], [0], [1], [0, 0, 1, 1], [], []>} : vector<16x128xf32>, vector<128x512xf32>, vector<16x512xf32> -> vector<16x512xf32>
    %73 = arith.addf %70, %72 : vector<16x512xf32>
    %74 = vector.extract_strided_slice %73 {offsets = [0, 0], sizes = [16, 128], strides = [1, 1]} : vector<16x512xf32> to vector<16x128xf32>
    %75 = arith.negf %74 : vector<16x128xf32>
    %76 = math.exp %75 : vector<16x128xf32>
    %cst_25 = arith.constant 1.000000e+00 : f32
    %77 = vector.broadcast %cst_25 : f32 to vector<16x128xf32>
    %78 = arith.addf %77, %76 : vector<16x128xf32>
    %79 = arith.divf %77, %78 : vector<16x128xf32>
    %80 = vector.extract_strided_slice %73 {offsets = [0, 128], sizes = [16, 128], strides = [1, 1]} : vector<16x512xf32> to vector<16x128xf32>
    %81 = arith.negf %80 : vector<16x128xf32>
    %82 = math.exp %81 : vector<16x128xf32>
    %cst_26 = arith.constant 1.000000e+00 : f32
    %83 = vector.broadcast %cst_26 : f32 to vector<16x128xf32>
    %84 = arith.addf %83, %82 : vector<16x128xf32>
    %85 = arith.divf %83, %84 : vector<16x128xf32>
    %86 = vector.extract_strided_slice %73 {offsets = [0, 256], sizes = [16, 128], strides = [1, 1]} : vector<16x512xf32> to vector<16x128xf32>
    %87 = math.tanh %86 : vector<16x128xf32>
    %88 = vector.extract_strided_slice %73 {offsets = [0, 384], sizes = [16, 128], strides = [1, 1]} : vector<16x512xf32> to vector<16x128xf32>
    %89 = arith.negf %88 : vector<16x128xf32>
    %90 = math.exp %89 : vector<16x128xf32>
    %cst_27 = arith.constant 1.000000e+00 : f32
    %91 = vector.broadcast %cst_27 : f32 to vector<16x128xf32>
    %92 = arith.addf %91, %90 : vector<16x128xf32>
    %93 = arith.divf %91, %92 : vector<16x128xf32>
    %94 = arith.mulf %85, %61 : vector<16x128xf32>
    %95 = arith.mulf %79, %87 : vector<16x128xf32>
    %96 = arith.addf %94, %95 : vector<16x128xf32>
    %97 = math.tanh %96 : vector<16x128xf32>
    %98 = arith.mulf %93, %97 : vector<16x128xf32>
    %99 = arith.index_cast %c1_i32 : i32 to index
    %c0_28 = arith.constant 0 : index
    %c0_29 = arith.constant 0 : index
    %100 = vector.load %arg11[%99, %c0_28, %c0_29] : memref<8x16x128xf32, #tpu.memory_space<vmem>>, vector<1x16x128xf32>
    %101 = vector.shape_cast %100 : vector<1x16x128xf32> to vector<16x128xf32>
    %102 = vector.shape_cast %98 : vector<16x128xf32> to vector<1x16x128xf32>
    tpu.vector_store %arg11[%99, %c0_28, %c0_29], %102 {strides = array<i32>} : memref<8x16x128xf32, #tpu.memory_space<vmem>>, vector<1x16x128xf32>,
    %c2_i32 = arith.constant 2 : i32
    %103 = arith.index_cast %c2_i32 : i32 to index
    %c0_30 = arith.constant 0 : index
    %c0_31 = arith.constant 0 : index
    %104 = vector.load %arg12[%103, %c0_30, %c0_31] : memref<8x16x512xf32, #tpu.memory_space<vmem>>, vector<1x16x512xf32>
    %105 = vector.shape_cast %104 : vector<1x16x512xf32> to vector<16x512xf32>
    %c0_32 = arith.constant 0 : index
    %c0_33 = arith.constant 0 : index
    %106 = vector.load %arg3[%c0_32, %c0_33] : memref<128x512xf32, #tpu.memory_space<vmem>>, vector<128x512xf32>
    %cst_34 = arith.constant dense<0.000000e+00> : vector<16x512xf32>
    %107 = tpu.matmul %98, %106, %cst_34 {dimension_numbers = #tpu.dot_dimension_numbers<[1], [0], [0], [1], [0, 0, 1, 1], [], []>} : vector<16x128xf32>, vector<128x512xf32>, vector<16x512xf32> -> vector<16x512xf32>
    %108 = arith.addf %105, %107 : vector<16x512xf32>
    %109 = vector.extract_strided_slice %108 {offsets = [0, 0], sizes = [16, 128], strides = [1, 1]} : vector<16x512xf32> to vector<16x128xf32>
    %110 = arith.negf %109 : vector<16x128xf32>
    %111 = math.exp %110 : vector<16x128xf32>
    %cst_35 = arith.constant 1.000000e+00 : f32
    %112 = vector.broadcast %cst_35 : f32 to vector<16x128xf32>
    %113 = arith.addf %112, %111 : vector<16x128xf32>
    %114 = arith.divf %112, %113 : vector<16x128xf32>
    %115 = vector.extract_strided_slice %108 {offsets = [0, 128], sizes = [16, 128], strides = [1, 1]} : vector<16x512xf32> to vector<16x128xf32>
    %116 = arith.negf %115 : vector<16x128xf32>
    %117 = math.exp %116 : vector<16x128xf32>
    %cst_36 = arith.constant 1.000000e+00 : f32
    %118 = vector.broadcast %cst_36 : f32 to vector<16x128xf32>
    %119 = arith.addf %118, %117 : vector<16x128xf32>
    %120 = arith.divf %118, %119 : vector<16x128xf32>
    %121 = vector.extract_strided_slice %108 {offsets = [0, 256], sizes = [16, 128], strides = [1, 1]} : vector<16x512xf32> to vector<16x128xf32>
    %122 = math.tanh %121 : vector<16x128xf32>
    %123 = vector.extract_strided_slice %108 {offsets = [0, 384], sizes = [16, 128], strides = [1, 1]} : vector<16x512xf32> to vector<16x128xf32>
    %124 = arith.negf %123 : vector<16x128xf32>
    %125 = math.exp %124 : vector<16x128xf32>
    %cst_37 = arith.constant 1.000000e+00 : f32
    %126 = vector.broadcast %cst_37 : f32 to vector<16x128xf32>
    %127 = arith.addf %126, %125 : vector<16x128xf32>
    %128 = arith.divf %126, %127 : vector<16x128xf32>
    %129 = arith.mulf %120, %96 : vector<16x128xf32>
    %130 = arith.mulf %114, %122 : vector<16x128xf32>
    %131 = arith.addf %129, %130 : vector<16x128xf32>
    %132 = math.tanh %131 : vector<16x128xf32>
    %133 = arith.mulf %128, %132 : vector<16x128xf32>
    %134 = arith.index_cast %c2_i32 : i32 to index
    %c0_38 = arith.constant 0 : index
    %c0_39 = arith.constant 0 : index
    %135 = vector.load %arg11[%134, %c0_38, %c0_39] : memref<8x16x128xf32, #tpu.memory_space<vmem>>, vector<1x16x128xf32>
    %136 = vector.shape_cast %135 : vector<1x16x128xf32> to vector<16x128xf32>
    %137 = vector.shape_cast %133 : vector<16x128xf32> to vector<1x16x128xf32>
    tpu.vector_store %arg11[%134, %c0_38, %c0_39], %137 {strides = array<i32>} : memref<8x16x128xf32, #tpu.memory_space<vmem>>, vector<1x16x128xf32>,
    %c3_i32 = arith.constant 3 : i32
    %138 = arith.index_cast %c3_i32 : i32 to index
    %c0_40 = arith.constant 0 : index
    %c0_41 = arith.constant 0 : index
    %139 = vector.load %arg12[%138, %c0_40, %c0_41] : memref<8x16x512xf32, #tpu.memory_space<vmem>>, vector<1x16x512xf32>
    %140 = vector.shape_cast %139 : vector<1x16x512xf32> to vector<16x512xf32>
    %c0_42 = arith.constant 0 : index
    %c0_43 = arith.constant 0 : index
    %141 = vector.load %arg3[%c0_42, %c0_43] : memref<128x512xf32, #tpu.memory_space<vmem>>, vector<128x512xf32>
    %cst_44 = arith.constant dense<0.000000e+00> : vector<16x512xf32>
    %142 = tpu.matmul %133, %141, %cst_44 {dimension_numbers = #tpu.dot_dimension_numbers<[1], [0], [0], [1], [0, 0, 1, 1], [], []>} : vector<16x128xf32>, vector<128x512xf32>, vector<16x512xf32> -> vector<16x512xf32>
    %143 = arith.addf %140, %142 : vector<16x512xf32>
    %144 = vector.extract_strided_slice %143 {offsets = [0, 0], sizes = [16, 128], strides = [1, 1]} : vector<16x512xf32> to vector<16x128xf32>
    %145 = arith.negf %144 : vector<16x128xf32>
    %146 = math.exp %145 : vector<16x128xf32>
    %cst_45 = arith.constant 1.000000e+00 : f32
    %147 = vector.broadcast %cst_45 : f32 to vector<16x128xf32>
    %148 = arith.addf %147, %146 : vector<16x128xf32>
    %149 = arith.divf %147, %148 : vector<16x128xf32>
    %150 = vector.extract_strided_slice %143 {offsets = [0, 128], sizes = [16, 128], strides = [1, 1]} : vector<16x512xf32> to vector<16x128xf32>
    %151 = arith.negf %150 : vector<16x128xf32>
    %152 = math.exp %151 : vector<16x128xf32>
    %cst_46 = arith.constant 1.000000e+00 : f32
    %153 = vector.broadcast %cst_46 : f32 to vector<16x128xf32>
    %154 = arith.addf %153, %152 : vector<16x128xf32>
    %155 = arith.divf %153, %154 : vector<16x128xf32>
    %156 = vector.extract_strided_slice %143 {offsets = [0, 256], sizes = [16, 128], strides = [1, 1]} : vector<16x512xf32> to vector<16x128xf32>
    %157 = math.tanh %156 : vector<16x128xf32>
    %158 = vector.extract_strided_slice %143 {offsets = [0, 384], sizes = [16, 128], strides = [1, 1]} : vector<16x512xf32> to vector<16x128xf32>
    %159 = arith.negf %158 : vector<16x128xf32>
    %160 = math.exp %159 : vector<16x128xf32>
    %cst_47 = arith.constant 1.000000e+00 : f32
    %161 = vector.broadcast %cst_47 : f32 to vector<16x128xf32>
    %162 = arith.addf %161, %160 : vector<16x128xf32>
    %163 = arith.divf %161, %162 : vector<16x128xf32>
    %164 = arith.mulf %155, %131 : vector<16x128xf32>
    %165 = arith.mulf %149, %157 : vector<16x128xf32>
    %166 = arith.addf %164, %165 : vector<16x128xf32>
    %167 = math.tanh %166 : vector<16x128xf32>
    %168 = arith.mulf %163, %167 : vector<16x128xf32>
    %169 = arith.index_cast %c3_i32 : i32 to index
    %c0_48 = arith.constant 0 : index
    %c0_49 = arith.constant 0 : index
    %170 = vector.load %arg11[%169, %c0_48, %c0_49] : memref<8x16x128xf32, #tpu.memory_space<vmem>>, vector<1x16x128xf32>
    %171 = vector.shape_cast %170 : vector<1x16x128xf32> to vector<16x128xf32>
    %172 = vector.shape_cast %168 : vector<16x128xf32> to vector<1x16x128xf32>
    tpu.vector_store %arg11[%169, %c0_48, %c0_49], %172 {strides = array<i32>} : memref<8x16x128xf32, #tpu.memory_space<vmem>>, vector<1x16x128xf32>,
    %c4_i32 = arith.constant 4 : i32
    %173 = arith.index_cast %c4_i32 : i32 to index
    %c0_50 = arith.constant 0 : index
    %c0_51 = arith.constant 0 : index
    %174 = vector.load %arg12[%173, %c0_50, %c0_51] : memref<8x16x512xf32, #tpu.memory_space<vmem>>, vector<1x16x512xf32>
    %175 = vector.shape_cast %174 : vector<1x16x512xf32> to vector<16x512xf32>
    %c0_52 = arith.constant 0 : index
    %c0_53 = arith.constant 0 : index
    %176 = vector.load %arg3[%c0_52, %c0_53] : memref<128x512xf32, #tpu.memory_space<vmem>>, vector<128x512xf32>
    %cst_54 = arith.constant dense<0.000000e+00> : vector<16x512xf32>
    %177 = tpu.matmul %168, %176, %cst_54 {dimension_numbers = #tpu.dot_dimension_numbers<[1], [0], [0], [1], [0, 0, 1, 1], [], []>} : vector<16x128xf32>, vector<128x512xf32>, vector<16x512xf32> -> vector<16x512xf32>
    %178 = arith.addf %175, %177 : vector<16x512xf32>
    %179 = vector.extract_strided_slice %178 {offsets = [0, 0], sizes = [16, 128], strides = [1, 1]} : vector<16x512xf32> to vector<16x128xf32>
    %180 = arith.negf %179 : vector<16x128xf32>
    %181 = math.exp %180 : vector<16x128xf32>
    %cst_55 = arith.constant 1.000000e+00 : f32
    %182 = vector.broadcast %cst_55 : f32 to vector<16x128xf32>
    %183 = arith.addf %182, %181 : vector<16x128xf32>
    %184 = arith.divf %182, %183 : vector<16x128xf32>
    %185 = vector.extract_strided_slice %178 {offsets = [0, 128], sizes = [16, 128], strides = [1, 1]} : vector<16x512xf32> to vector<16x128xf32>
    %186 = arith.negf %185 : vector<16x128xf32>
    %187 = math.exp %186 : vector<16x128xf32>
    %cst_56 = arith.constant 1.000000e+00 : f32
    %188 = vector.broadcast %cst_56 : f32 to vector<16x128xf32>
    %189 = arith.addf %188, %187 : vector<16x128xf32>
    %190 = arith.divf %188, %189 : vector<16x128xf32>
    %191 = vector.extract_strided_slice %178 {offsets = [0, 256], sizes = [16, 128], strides = [1, 1]} : vector<16x512xf32> to vector<16x128xf32>
    %192 = math.tanh %191 : vector<16x128xf32>
    %193 = vector.extract_strided_slice %178 {offsets = [0, 384], sizes = [16, 128], strides = [1, 1]} : vector<16x512xf32> to vector<16x128xf32>
    %194 = arith.negf %193 : vector<16x128xf32>
    %195 = math.exp %194 : vector<16x128xf32>
    %cst_57 = arith.constant 1.000000e+00 : f32
    %196 = vector.broadcast %cst_57 : f32 to vector<16x128xf32>
    %197 = arith.addf %196, %195 : vector<16x128xf32>
    %198 = arith.divf %196, %197 : vector<16x128xf32>
    %199 = arith.mulf %190, %166 : vector<16x128xf32>
    %200 = arith.mulf %184, %192 : vector<16x128xf32>
    %201 = arith.addf %199, %200 : vector<16x128xf32>
    %202 = math.tanh %201 : vector<16x128xf32>
    %203 = arith.mulf %198, %202 : vector<16x128xf32>
    %204 = arith.index_cast %c4_i32 : i32 to index
    %c0_58 = arith.constant 0 : index
    %c0_59 = arith.constant 0 : index
    %205 = vector.load %arg11[%204, %c0_58, %c0_59] : memref<8x16x128xf32, #tpu.memory_space<vmem>>, vector<1x16x128xf32>
    %206 = vector.shape_cast %205 : vector<1x16x128xf32> to vector<16x128xf32>
    %207 = vector.shape_cast %203 : vector<16x128xf32> to vector<1x16x128xf32>
    tpu.vector_store %arg11[%204, %c0_58, %c0_59], %207 {strides = array<i32>} : memref<8x16x128xf32, #tpu.memory_space<vmem>>, vector<1x16x128xf32>,
    %c5_i32 = arith.constant 5 : i32
    %208 = arith.index_cast %c5_i32 : i32 to index
    %c0_60 = arith.constant 0 : index
    %c0_61 = arith.constant 0 : index
    %209 = vector.load %arg12[%208, %c0_60, %c0_61] : memref<8x16x512xf32, #tpu.memory_space<vmem>>, vector<1x16x512xf32>
    %210 = vector.shape_cast %209 : vector<1x16x512xf32> to vector<16x512xf32>
    %c0_62 = arith.constant 0 : index
    %c0_63 = arith.constant 0 : index
    %211 = vector.load %arg3[%c0_62, %c0_63] : memref<128x512xf32, #tpu.memory_space<vmem>>, vector<128x512xf32>
    %cst_64 = arith.constant dense<0.000000e+00> : vector<16x512xf32>
    %212 = tpu.matmul %203, %211, %cst_64 {dimension_numbers = #tpu.dot_dimension_numbers<[1], [0], [0], [1], [0, 0, 1, 1], [], []>} : vector<16x128xf32>, vector<128x512xf32>, vector<16x512xf32> -> vector<16x512xf32>
    %213 = arith.addf %210, %212 : vector<16x512xf32>
    %214 = vector.extract_strided_slice %213 {offsets = [0, 0], sizes = [16, 128], strides = [1, 1]} : vector<16x512xf32> to vector<16x128xf32>
    %215 = arith.negf %214 : vector<16x128xf32>
    %216 = math.exp %215 : vector<16x128xf32>
    %cst_65 = arith.constant 1.000000e+00 : f32
    %217 = vector.broadcast %cst_65 : f32 to vector<16x128xf32>
    %218 = arith.addf %217, %216 : vector<16x128xf32>
    %219 = arith.divf %217, %218 : vector<16x128xf32>
    %220 = vector.extract_strided_slice %213 {offsets = [0, 128], sizes = [16, 128], strides = [1, 1]} : vector<16x512xf32> to vector<16x128xf32>
    %221 = arith.negf %220 : vector<16x128xf32>
    %222 = math.exp %221 : vector<16x128xf32>
    %cst_66 = arith.constant 1.000000e+00 : f32
    %223 = vector.broadcast %cst_66 : f32 to vector<16x128xf32>
    %224 = arith.addf %223, %222 : vector<16x128xf32>
    %225 = arith.divf %223, %224 : vector<16x128xf32>
    %226 = vector.extract_strided_slice %213 {offsets = [0, 256], sizes = [16, 128], strides = [1, 1]} : vector<16x512xf32> to vector<16x128xf32>
    %227 = math.tanh %226 : vector<16x128xf32>
    %228 = vector.extract_strided_slice %213 {offsets = [0, 384], sizes = [16, 128], strides = [1, 1]} : vector<16x512xf32> to vector<16x128xf32>
    %229 = arith.negf %228 : vector<16x128xf32>
    %230 = math.exp %229 : vector<16x128xf32>
    %cst_67 = arith.constant 1.000000e+00 : f32
    %231 = vector.broadcast %cst_67 : f32 to vector<16x128xf32>
    %232 = arith.addf %231, %230 : vector<16x128xf32>
    %233 = arith.divf %231, %232 : vector<16x128xf32>
    %234 = arith.mulf %225, %201 : vector<16x128xf32>
    %235 = arith.mulf %219, %227 : vector<16x128xf32>
    %236 = arith.addf %234, %235 : vector<16x128xf32>
    %237 = math.tanh %236 : vector<16x128xf32>
    %238 = arith.mulf %233, %237 : vector<16x128xf32>
    %239 = arith.index_cast %c5_i32 : i32 to index
    %c0_68 = arith.constant 0 : index
    %c0_69 = arith.constant 0 : index
    %240 = vector.load %arg11[%239, %c0_68, %c0_69] : memref<8x16x128xf32, #tpu.memory_space<vmem>>, vector<1x16x128xf32>
    %241 = vector.shape_cast %240 : vector<1x16x128xf32> to vector<16x128xf32>
    %242 = vector.shape_cast %238 : vector<16x128xf32> to vector<1x16x128xf32>
    tpu.vector_store %arg11[%239, %c0_68, %c0_69], %242 {strides = array<i32>} : memref<8x16x128xf32, #tpu.memory_space<vmem>>, vector<1x16x128xf32>,
    %c6_i32 = arith.constant 6 : i32
    %243 = arith.index_cast %c6_i32 : i32 to index
    %c0_70 = arith.constant 0 : index
    %c0_71 = arith.constant 0 : index
    %244 = vector.load %arg12[%243, %c0_70, %c0_71] : memref<8x16x512xf32, #tpu.memory_space<vmem>>, vector<1x16x512xf32>
    %245 = vector.shape_cast %244 : vector<1x16x512xf32> to vector<16x512xf32>
    %c0_72 = arith.constant 0 : index
    %c0_73 = arith.constant 0 : index
    %246 = vector.load %arg3[%c0_72, %c0_73] : memref<128x512xf32, #tpu.memory_space<vmem>>, vector<128x512xf32>
    %cst_74 = arith.constant dense<0.000000e+00> : vector<16x512xf32>
    %247 = tpu.matmul %238, %246, %cst_74 {dimension_numbers = #tpu.dot_dimension_numbers<[1], [0], [0], [1], [0, 0, 1, 1], [], []>} : vector<16x128xf32>, vector<128x512xf32>, vector<16x512xf32> -> vector<16x512xf32>
    %248 = arith.addf %245, %247 : vector<16x512xf32>
    %249 = vector.extract_strided_slice %248 {offsets = [0, 0], sizes = [16, 128], strides = [1, 1]} : vector<16x512xf32> to vector<16x128xf32>
    %250 = arith.negf %249 : vector<16x128xf32>
    %251 = math.exp %250 : vector<16x128xf32>
    %cst_75 = arith.constant 1.000000e+00 : f32
    %252 = vector.broadcast %cst_75 : f32 to vector<16x128xf32>
    %253 = arith.addf %252, %251 : vector<16x128xf32>
    %254 = arith.divf %252, %253 : vector<16x128xf32>
    %255 = vector.extract_strided_slice %248 {offsets = [0, 128], sizes = [16, 128], strides = [1, 1]} : vector<16x512xf32> to vector<16x128xf32>
    %256 = arith.negf %255 : vector<16x128xf32>
    %257 = math.exp %256 : vector<16x128xf32>
    %cst_76 = arith.constant 1.000000e+00 : f32
    %258 = vector.broadcast %cst_76 : f32 to vector<16x128xf32>
    %259 = arith.addf %258, %257 : vector<16x128xf32>
    %260 = arith.divf %258, %259 : vector<16x128xf32>
    %261 = vector.extract_strided_slice %248 {offsets = [0, 256], sizes = [16, 128], strides = [1, 1]} : vector<16x512xf32> to vector<16x128xf32>
    %262 = math.tanh %261 : vector<16x128xf32>
    %263 = vector.extract_strided_slice %248 {offsets = [0, 384], sizes = [16, 128], strides = [1, 1]} : vector<16x512xf32> to vector<16x128xf32>
    %264 = arith.negf %263 : vector<16x128xf32>
    %265 = math.exp %264 : vector<16x128xf32>
    %cst_77 = arith.constant 1.000000e+00 : f32
    %266 = vector.broadcast %cst_77 : f32 to vector<16x128xf32>
    %267 = arith.addf %266, %265 : vector<16x128xf32>
    %268 = arith.divf %266, %267 : vector<16x128xf32>
    %269 = arith.mulf %260, %236 : vector<16x128xf32>
    %270 = arith.mulf %254, %262 : vector<16x128xf32>
    %271 = arith.addf %269, %270 : vector<16x128xf32>
    %272 = math.tanh %271 : vector<16x128xf32>
    %273 = arith.mulf %268, %272 : vector<16x128xf32>
    %274 = arith.index_cast %c6_i32 : i32 to index
    %c0_78 = arith.constant 0 : index
    %c0_79 = arith.constant 0 : index
    %275 = vector.load %arg11[%274, %c0_78, %c0_79] : memref<8x16x128xf32, #tpu.memory_space<vmem>>, vector<1x16x128xf32>
    %276 = vector.shape_cast %275 : vector<1x16x128xf32> to vector<16x128xf32>
    %277 = vector.shape_cast %273 : vector<16x128xf32> to vector<1x16x128xf32>
    tpu.vector_store %arg11[%274, %c0_78, %c0_79], %277 {strides = array<i32>} : memref<8x16x128xf32, #tpu.memory_space<vmem>>, vector<1x16x128xf32>,
    %c7_i32 = arith.constant 7 : i32
    %278 = arith.index_cast %c7_i32 : i32 to index
    %c0_80 = arith.constant 0 : index
    %c0_81 = arith.constant 0 : index
    %279 = vector.load %arg12[%278, %c0_80, %c0_81] : memref<8x16x512xf32, #tpu.memory_space<vmem>>, vector<1x16x512xf32>
    %280 = vector.shape_cast %279 : vector<1x16x512xf32> to vector<16x512xf32>
    %c0_82 = arith.constant 0 : index
    %c0_83 = arith.constant 0 : index
    %281 = vector.load %arg3[%c0_82, %c0_83] : memref<128x512xf32, #tpu.memory_space<vmem>>, vector<128x512xf32>
    %cst_84 = arith.constant dense<0.000000e+00> : vector<16x512xf32>
    %282 = tpu.matmul %273, %281, %cst_84 {dimension_numbers = #tpu.dot_dimension_numbers<[1], [0], [0], [1], [0, 0, 1, 1], [], []>} : vector<16x128xf32>, vector<128x512xf32>, vector<16x512xf32> -> vector<16x512xf32>
    %283 = arith.addf %280, %282 : vector<16x512xf32>
    %284 = vector.extract_strided_slice %283 {offsets = [0, 0], sizes = [16, 128], strides = [1, 1]} : vector<16x512xf32> to vector<16x128xf32>
    %285 = arith.negf %284 : vector<16x128xf32>
    %286 = math.exp %285 : vector<16x128xf32>
    %cst_85 = arith.constant 1.000000e+00 : f32
    %287 = vector.broadcast %cst_85 : f32 to vector<16x128xf32>
    %288 = arith.addf %287, %286 : vector<16x128xf32>
    %289 = arith.divf %287, %288 : vector<16x128xf32>
    %290 = vector.extract_strided_slice %283 {offsets = [0, 128], sizes = [16, 128], strides = [1, 1]} : vector<16x512xf32> to vector<16x128xf32>
    %291 = arith.negf %290 : vector<16x128xf32>
    %292 = math.exp %291 : vector<16x128xf32>
    %cst_86 = arith.constant 1.000000e+00 : f32
    %293 = vector.broadcast %cst_86 : f32 to vector<16x128xf32>
    %294 = arith.addf %293, %292 : vector<16x128xf32>
    %295 = arith.divf %293, %294 : vector<16x128xf32>
    %296 = vector.extract_strided_slice %283 {offsets = [0, 256], sizes = [16, 128], strides = [1, 1]} : vector<16x512xf32> to vector<16x128xf32>
    %297 = math.tanh %296 : vector<16x128xf32>
    %298 = vector.extract_strided_slice %283 {offsets = [0, 384], sizes = [16, 128], strides = [1, 1]} : vector<16x512xf32> to vector<16x128xf32>
    %299 = arith.negf %298 : vector<16x128xf32>
    %300 = math.exp %299 : vector<16x128xf32>
    %cst_87 = arith.constant 1.000000e+00 : f32
    %301 = vector.broadcast %cst_87 : f32 to vector<16x128xf32>
    %302 = arith.addf %301, %300 : vector<16x128xf32>
    %303 = arith.divf %301, %302 : vector<16x128xf32>
    %304 = arith.mulf %295, %271 : vector<16x128xf32>
    %305 = arith.mulf %289, %297 : vector<16x128xf32>
    %306 = arith.addf %304, %305 : vector<16x128xf32>
    %307 = math.tanh %306 : vector<16x128xf32>
    %308 = arith.mulf %303, %307 : vector<16x128xf32>
    %309 = arith.index_cast %c7_i32 : i32 to index
    %c0_88 = arith.constant 0 : index
    %c0_89 = arith.constant 0 : index
    %310 = vector.load %arg11[%309, %c0_88, %c0_89] : memref<8x16x128xf32, #tpu.memory_space<vmem>>, vector<1x16x128xf32>
    %311 = vector.shape_cast %310 : vector<1x16x128xf32> to vector<16x128xf32>
    %312 = vector.shape_cast %308 : vector<16x128xf32> to vector<1x16x128xf32>
    tpu.vector_store %arg11[%309, %c0_88, %c0_89], %312 {strides = array<i32>} : memref<8x16x128xf32, #tpu.memory_space<vmem>>, vector<1x16x128xf32>,
    %c8_i32 = arith.constant 8 : i32
    %c0_90 = arith.constant 0 : index
    %c0_91 = arith.constant 0 : index
    %c0_92 = arith.constant 0 : index
    %313 = vector.load %arg11[%c0_90, %c0_91, %c0_92] : memref<8x16x128xf32, #tpu.memory_space<vmem>>, vector<8x16x128xf32>
    %314 = vector.shape_cast %313 : vector<8x16x128xf32> to vector<128x128xf32>
    %c0_93 = arith.constant 0 : index
    %c0_94 = arith.constant 0 : index
    %315 = vector.load %arg5[%c0_93, %c0_94] : memref<128x512xf32, #tpu.memory_space<vmem>>, vector<128x512xf32>
    %cst_95 = arith.constant dense<0.000000e+00> : vector<128x512xf32>
    %316 = tpu.matmul %314, %315, %cst_95 {dimension_numbers = #tpu.dot_dimension_numbers<[1], [0], [0], [1], [0, 0, 1, 1], [], []>} : vector<128x128xf32>, vector<128x512xf32>, vector<128x512xf32> -> vector<128x512xf32>
    %c0_96 = arith.constant 0 : index
    %c0_97 = arith.constant 0 : index
    %317 = vector.load %arg7[%c0_96, %c0_97] : memref<1x512xf32, #tpu.memory_space<vmem>>, vector<1x512xf32>
    %318 = vector.broadcast %317 : vector<1x512xf32> to vector<128x512xf32>
    %319 = arith.addf %316, %318 : vector<128x512xf32>
    %320 = vector.shape_cast %319 : vector<128x512xf32> to vector<8x16x512xf32>
    %c0_98 = arith.constant 0 : index
    %c0_99 = arith.constant 0 : index
    %c0_100 = arith.constant 0 : index
    %321 = vector.load %arg12[%c0_98, %c0_99, %c0_100] : memref<8x16x512xf32, #tpu.memory_space<vmem>>, vector<8x16x512xf32>
    tpu.vector_store %arg12[%c0_98, %c0_99, %c0_100], %320 {strides = array<i32>} : memref<8x16x512xf32, #tpu.memory_space<vmem>>, vector<8x16x512xf32>,
    %cst_101 = arith.constant 0.000000e+00 : f32
    %322 = vector.broadcast %cst_101 : f32 to vector<16x128xf32>
    %cst_102 = arith.constant 0.000000e+00 : f32
    %323 = vector.broadcast %cst_102 : f32 to vector<16x128xf32>
    %c0_i32_103 = arith.constant 0 : i32
    %324 = arith.index_cast %c0_i32_103 : i32 to index
    %c0_104 = arith.constant 0 : index
    %c0_105 = arith.constant 0 : index
    %325 = vector.load %arg12[%324, %c0_104, %c0_105] : memref<8x16x512xf32, #tpu.memory_space<vmem>>, vector<1x16x512xf32>
    %326 = vector.shape_cast %325 : vector<1x16x512xf32> to vector<16x512xf32>
    %c0_106 = arith.constant 0 : index
    %c0_107 = arith.constant 0 : index
    %327 = vector.load %arg6[%c0_106, %c0_107] : memref<128x512xf32, #tpu.memory_space<vmem>>, vector<128x512xf32>
    %cst_108 = arith.constant dense<0.000000e+00> : vector<16x512xf32>
    %328 = tpu.matmul %322, %327, %cst_108 {dimension_numbers = #tpu.dot_dimension_numbers<[1], [0], [0], [1], [0, 0, 1, 1], [], []>} : vector<16x128xf32>, vector<128x512xf32>, vector<16x512xf32> -> vector<16x512xf32>
    %329 = arith.addf %326, %328 : vector<16x512xf32>
    %330 = vector.extract_strided_slice %329 {offsets = [0, 0], sizes = [16, 128], strides = [1, 1]} : vector<16x512xf32> to vector<16x128xf32>
    %331 = arith.negf %330 : vector<16x128xf32>
    %332 = math.exp %331 : vector<16x128xf32>
    %cst_109 = arith.constant 1.000000e+00 : f32
    %333 = vector.broadcast %cst_109 : f32 to vector<16x128xf32>
    %334 = arith.addf %333, %332 : vector<16x128xf32>
    %335 = arith.divf %333, %334 : vector<16x128xf32>
    %336 = vector.extract_strided_slice %329 {offsets = [0, 128], sizes = [16, 128], strides = [1, 1]} : vector<16x512xf32> to vector<16x128xf32>
    %337 = arith.negf %336 : vector<16x128xf32>
    %338 = math.exp %337 : vector<16x128xf32>
    %cst_110 = arith.constant 1.000000e+00 : f32
    %339 = vector.broadcast %cst_110 : f32 to vector<16x128xf32>
    %340 = arith.addf %339, %338 : vector<16x128xf32>
    %341 = arith.divf %339, %340 : vector<16x128xf32>
    %342 = vector.extract_strided_slice %329 {offsets = [0, 256], sizes = [16, 128], strides = [1, 1]} : vector<16x512xf32> to vector<16x128xf32>
    %343 = math.tanh %342 : vector<16x128xf32>
    %344 = vector.extract_strided_slice %329 {offsets = [0, 384], sizes = [16, 128], strides = [1, 1]} : vector<16x512xf32> to vector<16x128xf32>
    %345 = arith.negf %344 : vector<16x128xf32>
    %346 = math.exp %345 : vector<16x128xf32>
    %cst_111 = arith.constant 1.000000e+00 : f32
    %347 = vector.broadcast %cst_111 : f32 to vector<16x128xf32>
    %348 = arith.addf %347, %346 : vector<16x128xf32>
    %349 = arith.divf %347, %348 : vector<16x128xf32>
    %350 = arith.mulf %341, %323 : vector<16x128xf32>
    %351 = arith.mulf %335, %343 : vector<16x128xf32>
    %352 = arith.addf %350, %351 : vector<16x128xf32>
    %353 = math.tanh %352 : vector<16x128xf32>
    %354 = arith.mulf %349, %353 : vector<16x128xf32>
    %355 = arith.index_cast %c0_i32_103 : i32 to index
    %c0_112 = arith.constant 0 : index
    %c0_113 = arith.constant 0 : index
    %356 = vector.load %arg11[%355, %c0_112, %c0_113] : memref<8x16x128xf32, #tpu.memory_space<vmem>>, vector<1x16x128xf32>
    %357 = vector.shape_cast %356 : vector<1x16x128xf32> to vector<16x128xf32>
    %358 = vector.shape_cast %354 : vector<16x128xf32> to vector<1x16x128xf32>
    tpu.vector_store %arg11[%355, %c0_112, %c0_113], %358 {strides = array<i32>} : memref<8x16x128xf32, #tpu.memory_space<vmem>>, vector<1x16x128xf32>,
    %c1_i32_114 = arith.constant 1 : i32
    %359 = arith.index_cast %c1_i32_114 : i32 to index
    %c0_115 = arith.constant 0 : index
    %c0_116 = arith.constant 0 : index
    %360 = vector.load %arg12[%359, %c0_115, %c0_116] : memref<8x16x512xf32, #tpu.memory_space<vmem>>, vector<1x16x512xf32>
    %361 = vector.shape_cast %360 : vector<1x16x512xf32> to vector<16x512xf32>
    %c0_117 = arith.constant 0 : index
    %c0_118 = arith.constant 0 : index
    %362 = vector.load %arg6[%c0_117, %c0_118] : memref<128x512xf32, #tpu.memory_space<vmem>>, vector<128x512xf32>
    %cst_119 = arith.constant dense<0.000000e+00> : vector<16x512xf32>
    %363 = tpu.matmul %354, %362, %cst_119 {dimension_numbers = #tpu.dot_dimension_numbers<[1], [0], [0], [1], [0, 0, 1, 1], [], []>} : vector<16x128xf32>, vector<128x512xf32>, vector<16x512xf32> -> vector<16x512xf32>
    %364 = arith.addf %361, %363 : vector<16x512xf32>
    %365 = vector.extract_strided_slice %364 {offsets = [0, 0], sizes = [16, 128], strides = [1, 1]} : vector<16x512xf32> to vector<16x128xf32>
    %366 = arith.negf %365 : vector<16x128xf32>
    %367 = math.exp %366 : vector<16x128xf32>
    %cst_120 = arith.constant 1.000000e+00 : f32
    %368 = vector.broadcast %cst_120 : f32 to vector<16x128xf32>
    %369 = arith.addf %368, %367 : vector<16x128xf32>
    %370 = arith.divf %368, %369 : vector<16x128xf32>
    %371 = vector.extract_strided_slice %364 {offsets = [0, 128], sizes = [16, 128], strides = [1, 1]} : vector<16x512xf32> to vector<16x128xf32>
    %372 = arith.negf %371 : vector<16x128xf32>
    %373 = math.exp %372 : vector<16x128xf32>
    %cst_121 = arith.constant 1.000000e+00 : f32
    %374 = vector.broadcast %cst_121 : f32 to vector<16x128xf32>
    %375 = arith.addf %374, %373 : vector<16x128xf32>
    %376 = arith.divf %374, %375 : vector<16x128xf32>
    %377 = vector.extract_strided_slice %364 {offsets = [0, 256], sizes = [16, 128], strides = [1, 1]} : vector<16x512xf32> to vector<16x128xf32>
    %378 = math.tanh %377 : vector<16x128xf32>
    %379 = vector.extract_strided_slice %364 {offsets = [0, 384], sizes = [16, 128], strides = [1, 1]} : vector<16x512xf32> to vector<16x128xf32>
    %380 = arith.negf %379 : vector<16x128xf32>
    %381 = math.exp %380 : vector<16x128xf32>
    %cst_122 = arith.constant 1.000000e+00 : f32
    %382 = vector.broadcast %cst_122 : f32 to vector<16x128xf32>
    %383 = arith.addf %382, %381 : vector<16x128xf32>
    %384 = arith.divf %382, %383 : vector<16x128xf32>
    %385 = arith.mulf %376, %352 : vector<16x128xf32>
    %386 = arith.mulf %370, %378 : vector<16x128xf32>
    %387 = arith.addf %385, %386 : vector<16x128xf32>
    %388 = math.tanh %387 : vector<16x128xf32>
    %389 = arith.mulf %384, %388 : vector<16x128xf32>
    %390 = arith.index_cast %c1_i32_114 : i32 to index
    %c0_123 = arith.constant 0 : index
    %c0_124 = arith.constant 0 : index
    %391 = vector.load %arg11[%390, %c0_123, %c0_124] : memref<8x16x128xf32, #tpu.memory_space<vmem>>, vector<1x16x128xf32>
    %392 = vector.shape_cast %391 : vector<1x16x128xf32> to vector<16x128xf32>
    %393 = vector.shape_cast %389 : vector<16x128xf32> to vector<1x16x128xf32>
    tpu.vector_store %arg11[%390, %c0_123, %c0_124], %393 {strides = array<i32>} : memref<8x16x128xf32, #tpu.memory_space<vmem>>, vector<1x16x128xf32>,
    %c2_i32_125 = arith.constant 2 : i32
    %394 = arith.index_cast %c2_i32_125 : i32 to index
    %c0_126 = arith.constant 0 : index
    %c0_127 = arith.constant 0 : index
    %395 = vector.load %arg12[%394, %c0_126, %c0_127] : memref<8x16x512xf32, #tpu.memory_space<vmem>>, vector<1x16x512xf32>
    %396 = vector.shape_cast %395 : vector<1x16x512xf32> to vector<16x512xf32>
    %c0_128 = arith.constant 0 : index
    %c0_129 = arith.constant 0 : index
    %397 = vector.load %arg6[%c0_128, %c0_129] : memref<128x512xf32, #tpu.memory_space<vmem>>, vector<128x512xf32>
    %cst_130 = arith.constant dense<0.000000e+00> : vector<16x512xf32>
    %398 = tpu.matmul %389, %397, %cst_130 {dimension_numbers = #tpu.dot_dimension_numbers<[1], [0], [0], [1], [0, 0, 1, 1], [], []>} : vector<16x128xf32>, vector<128x512xf32>, vector<16x512xf32> -> vector<16x512xf32>
    %399 = arith.addf %396, %398 : vector<16x512xf32>
    %400 = vector.extract_strided_slice %399 {offsets = [0, 0], sizes = [16, 128], strides = [1, 1]} : vector<16x512xf32> to vector<16x128xf32>
    %401 = arith.negf %400 : vector<16x128xf32>
    %402 = math.exp %401 : vector<16x128xf32>
    %cst_131 = arith.constant 1.000000e+00 : f32
    %403 = vector.broadcast %cst_131 : f32 to vector<16x128xf32>
    %404 = arith.addf %403, %402 : vector<16x128xf32>
    %405 = arith.divf %403, %404 : vector<16x128xf32>
    %406 = vector.extract_strided_slice %399 {offsets = [0, 128], sizes = [16, 128], strides = [1, 1]} : vector<16x512xf32> to vector<16x128xf32>
    %407 = arith.negf %406 : vector<16x128xf32>
    %408 = math.exp %407 : vector<16x128xf32>
    %cst_132 = arith.constant 1.000000e+00 : f32
    %409 = vector.broadcast %cst_132 : f32 to vector<16x128xf32>
    %410 = arith.addf %409, %408 : vector<16x128xf32>
    %411 = arith.divf %409, %410 : vector<16x128xf32>
    %412 = vector.extract_strided_slice %399 {offsets = [0, 256], sizes = [16, 128], strides = [1, 1]} : vector<16x512xf32> to vector<16x128xf32>
    %413 = math.tanh %412 : vector<16x128xf32>
    %414 = vector.extract_strided_slice %399 {offsets = [0, 384], sizes = [16, 128], strides = [1, 1]} : vector<16x512xf32> to vector<16x128xf32>
    %415 = arith.negf %414 : vector<16x128xf32>
    %416 = math.exp %415 : vector<16x128xf32>
    %cst_133 = arith.constant 1.000000e+00 : f32
    %417 = vector.broadcast %cst_133 : f32 to vector<16x128xf32>
    %418 = arith.addf %417, %416 : vector<16x128xf32>
    %419 = arith.divf %417, %418 : vector<16x128xf32>
    %420 = arith.mulf %411, %387 : vector<16x128xf32>
    %421 = arith.mulf %405, %413 : vector<16x128xf32>
    %422 = arith.addf %420, %421 : vector<16x128xf32>
    %423 = math.tanh %422 : vector<16x128xf32>
    %424 = arith.mulf %419, %423 : vector<16x128xf32>
    %425 = arith.index_cast %c2_i32_125 : i32 to index
    %c0_134 = arith.constant 0 : index
    %c0_135 = arith.constant 0 : index
    %426 = vector.load %arg11[%425, %c0_134, %c0_135] : memref<8x16x128xf32, #tpu.memory_space<vmem>>, vector<1x16x128xf32>
    %427 = vector.shape_cast %426 : vector<1x16x128xf32> to vector<16x128xf32>
    %428 = vector.shape_cast %424 : vector<16x128xf32> to vector<1x16x128xf32>
    tpu.vector_store %arg11[%425, %c0_134, %c0_135], %428 {strides = array<i32>} : memref<8x16x128xf32, #tpu.memory_space<vmem>>, vector<1x16x128xf32>,
    %c3_i32_136 = arith.constant 3 : i32
    %429 = arith.index_cast %c3_i32_136 : i32 to index
    %c0_137 = arith.constant 0 : index
    %c0_138 = arith.constant 0 : index
    %430 = vector.load %arg12[%429, %c0_137, %c0_138] : memref<8x16x512xf32, #tpu.memory_space<vmem>>, vector<1x16x512xf32>
    %431 = vector.shape_cast %430 : vector<1x16x512xf32> to vector<16x512xf32>
    %c0_139 = arith.constant 0 : index
    %c0_140 = arith.constant 0 : index
    %432 = vector.load %arg6[%c0_139, %c0_140] : memref<128x512xf32, #tpu.memory_space<vmem>>, vector<128x512xf32>
    %cst_141 = arith.constant dense<0.000000e+00> : vector<16x512xf32>
    %433 = tpu.matmul %424, %432, %cst_141 {dimension_numbers = #tpu.dot_dimension_numbers<[1], [0], [0], [1], [0, 0, 1, 1], [], []>} : vector<16x128xf32>, vector<128x512xf32>, vector<16x512xf32> -> vector<16x512xf32>
    %434 = arith.addf %431, %433 : vector<16x512xf32>
    %435 = vector.extract_strided_slice %434 {offsets = [0, 0], sizes = [16, 128], strides = [1, 1]} : vector<16x512xf32> to vector<16x128xf32>
    %436 = arith.negf %435 : vector<16x128xf32>
    %437 = math.exp %436 : vector<16x128xf32>
    %cst_142 = arith.constant 1.000000e+00 : f32
    %438 = vector.broadcast %cst_142 : f32 to vector<16x128xf32>
    %439 = arith.addf %438, %437 : vector<16x128xf32>
    %440 = arith.divf %438, %439 : vector<16x128xf32>
    %441 = vector.extract_strided_slice %434 {offsets = [0, 128], sizes = [16, 128], strides = [1, 1]} : vector<16x512xf32> to vector<16x128xf32>
    %442 = arith.negf %441 : vector<16x128xf32>
    %443 = math.exp %442 : vector<16x128xf32>
    %cst_143 = arith.constant 1.000000e+00 : f32
    %444 = vector.broadcast %cst_143 : f32 to vector<16x128xf32>
    %445 = arith.addf %444, %443 : vector<16x128xf32>
    %446 = arith.divf %444, %445 : vector<16x128xf32>
    %447 = vector.extract_strided_slice %434 {offsets = [0, 256], sizes = [16, 128], strides = [1, 1]} : vector<16x512xf32> to vector<16x128xf32>
    %448 = math.tanh %447 : vector<16x128xf32>
    %449 = vector.extract_strided_slice %434 {offsets = [0, 384], sizes = [16, 128], strides = [1, 1]} : vector<16x512xf32> to vector<16x128xf32>
    %450 = arith.negf %449 : vector<16x128xf32>
    %451 = math.exp %450 : vector<16x128xf32>
    %cst_144 = arith.constant 1.000000e+00 : f32
    %452 = vector.broadcast %cst_144 : f32 to vector<16x128xf32>
    %453 = arith.addf %452, %451 : vector<16x128xf32>
    %454 = arith.divf %452, %453 : vector<16x128xf32>
    %455 = arith.mulf %446, %422 : vector<16x128xf32>
    %456 = arith.mulf %440, %448 : vector<16x128xf32>
    %457 = arith.addf %455, %456 : vector<16x128xf32>
    %458 = math.tanh %457 : vector<16x128xf32>
    %459 = arith.mulf %454, %458 : vector<16x128xf32>
    %460 = arith.index_cast %c3_i32_136 : i32 to index
    %c0_145 = arith.constant 0 : index
    %c0_146 = arith.constant 0 : index
    %461 = vector.load %arg11[%460, %c0_145, %c0_146] : memref<8x16x128xf32, #tpu.memory_space<vmem>>, vector<1x16x128xf32>
    %462 = vector.shape_cast %461 : vector<1x16x128xf32> to vector<16x128xf32>
    %463 = vector.shape_cast %459 : vector<16x128xf32> to vector<1x16x128xf32>
    tpu.vector_store %arg11[%460, %c0_145, %c0_146], %463 {strides = array<i32>} : memref<8x16x128xf32, #tpu.memory_space<vmem>>, vector<1x16x128xf32>,
    %c4_i32_147 = arith.constant 4 : i32
    %464 = arith.index_cast %c4_i32_147 : i32 to index
    %c0_148 = arith.constant 0 : index
    %c0_149 = arith.constant 0 : index
    %465 = vector.load %arg12[%464, %c0_148, %c0_149] : memref<8x16x512xf32, #tpu.memory_space<vmem>>, vector<1x16x512xf32>
    %466 = vector.shape_cast %465 : vector<1x16x512xf32> to vector<16x512xf32>
    %c0_150 = arith.constant 0 : index
    %c0_151 = arith.constant 0 : index
    %467 = vector.load %arg6[%c0_150, %c0_151] : memref<128x512xf32, #tpu.memory_space<vmem>>, vector<128x512xf32>
    %cst_152 = arith.constant dense<0.000000e+00> : vector<16x512xf32>
    %468 = tpu.matmul %459, %467, %cst_152 {dimension_numbers = #tpu.dot_dimension_numbers<[1], [0], [0], [1], [0, 0, 1, 1], [], []>} : vector<16x128xf32>, vector<128x512xf32>, vector<16x512xf32> -> vector<16x512xf32>
    %469 = arith.addf %466, %468 : vector<16x512xf32>
    %470 = vector.extract_strided_slice %469 {offsets = [0, 0], sizes = [16, 128], strides = [1, 1]} : vector<16x512xf32> to vector<16x128xf32>
    %471 = arith.negf %470 : vector<16x128xf32>
    %472 = math.exp %471 : vector<16x128xf32>
    %cst_153 = arith.constant 1.000000e+00 : f32
    %473 = vector.broadcast %cst_153 : f32 to vector<16x128xf32>
    %474 = arith.addf %473, %472 : vector<16x128xf32>
    %475 = arith.divf %473, %474 : vector<16x128xf32>
    %476 = vector.extract_strided_slice %469 {offsets = [0, 128], sizes = [16, 128], strides = [1, 1]} : vector<16x512xf32> to vector<16x128xf32>
    %477 = arith.negf %476 : vector<16x128xf32>
    %478 = math.exp %477 : vector<16x128xf32>
    %cst_154 = arith.constant 1.000000e+00 : f32
    %479 = vector.broadcast %cst_154 : f32 to vector<16x128xf32>
    %480 = arith.addf %479, %478 : vector<16x128xf32>
    %481 = arith.divf %479, %480 : vector<16x128xf32>
    %482 = vector.extract_strided_slice %469 {offsets = [0, 256], sizes = [16, 128], strides = [1, 1]} : vector<16x512xf32> to vector<16x128xf32>
    %483 = math.tanh %482 : vector<16x128xf32>
    %484 = vector.extract_strided_slice %469 {offsets = [0, 384], sizes = [16, 128], strides = [1, 1]} : vector<16x512xf32> to vector<16x128xf32>
    %485 = arith.negf %484 : vector<16x128xf32>
    %486 = math.exp %485 : vector<16x128xf32>
    %cst_155 = arith.constant 1.000000e+00 : f32
    %487 = vector.broadcast %cst_155 : f32 to vector<16x128xf32>
    %488 = arith.addf %487, %486 : vector<16x128xf32>
    %489 = arith.divf %487, %488 : vector<16x128xf32>
    %490 = arith.mulf %481, %457 : vector<16x128xf32>
    %491 = arith.mulf %475, %483 : vector<16x128xf32>
    %492 = arith.addf %490, %491 : vector<16x128xf32>
    %493 = math.tanh %492 : vector<16x128xf32>
    %494 = arith.mulf %489, %493 : vector<16x128xf32>
    %495 = arith.index_cast %c4_i32_147 : i32 to index
    %c0_156 = arith.constant 0 : index
    %c0_157 = arith.constant 0 : index
    %496 = vector.load %arg11[%495, %c0_156, %c0_157] : memref<8x16x128xf32, #tpu.memory_space<vmem>>, vector<1x16x128xf32>
    %497 = vector.shape_cast %496 : vector<1x16x128xf32> to vector<16x128xf32>
    %498 = vector.shape_cast %494 : vector<16x128xf32> to vector<1x16x128xf32>
    tpu.vector_store %arg11[%495, %c0_156, %c0_157], %498 {strides = array<i32>} : memref<8x16x128xf32, #tpu.memory_space<vmem>>, vector<1x16x128xf32>,
    %c5_i32_158 = arith.constant 5 : i32
    %499 = arith.index_cast %c5_i32_158 : i32 to index
    %c0_159 = arith.constant 0 : index
    %c0_160 = arith.constant 0 : index
    %500 = vector.load %arg12[%499, %c0_159, %c0_160] : memref<8x16x512xf32, #tpu.memory_space<vmem>>, vector<1x16x512xf32>
    %501 = vector.shape_cast %500 : vector<1x16x512xf32> to vector<16x512xf32>
    %c0_161 = arith.constant 0 : index
    %c0_162 = arith.constant 0 : index
    %502 = vector.load %arg6[%c0_161, %c0_162] : memref<128x512xf32, #tpu.memory_space<vmem>>, vector<128x512xf32>
    %cst_163 = arith.constant dense<0.000000e+00> : vector<16x512xf32>
    %503 = tpu.matmul %494, %502, %cst_163 {dimension_numbers = #tpu.dot_dimension_numbers<[1], [0], [0], [1], [0, 0, 1, 1], [], []>} : vector<16x128xf32>, vector<128x512xf32>, vector<16x512xf32> -> vector<16x512xf32>
    %504 = arith.addf %501, %503 : vector<16x512xf32>
    %505 = vector.extract_strided_slice %504 {offsets = [0, 0], sizes = [16, 128], strides = [1, 1]} : vector<16x512xf32> to vector<16x128xf32>
    %506 = arith.negf %505 : vector<16x128xf32>
    %507 = math.exp %506 : vector<16x128xf32>
    %cst_164 = arith.constant 1.000000e+00 : f32
    %508 = vector.broadcast %cst_164 : f32 to vector<16x128xf32>
    %509 = arith.addf %508, %507 : vector<16x128xf32>
    %510 = arith.divf %508, %509 : vector<16x128xf32>
    %511 = vector.extract_strided_slice %504 {offsets = [0, 128], sizes = [16, 128], strides = [1, 1]} : vector<16x512xf32> to vector<16x128xf32>
    %512 = arith.negf %511 : vector<16x128xf32>
    %513 = math.exp %512 : vector<16x128xf32>
    %cst_165 = arith.constant 1.000000e+00 : f32
    %514 = vector.broadcast %cst_165 : f32 to vector<16x128xf32>
    %515 = arith.addf %514, %513 : vector<16x128xf32>
    %516 = arith.divf %514, %515 : vector<16x128xf32>
    %517 = vector.extract_strided_slice %504 {offsets = [0, 256], sizes = [16, 128], strides = [1, 1]} : vector<16x512xf32> to vector<16x128xf32>
    %518 = math.tanh %517 : vector<16x128xf32>
    %519 = vector.extract_strided_slice %504 {offsets = [0, 384], sizes = [16, 128], strides = [1, 1]} : vector<16x512xf32> to vector<16x128xf32>
    %520 = arith.negf %519 : vector<16x128xf32>
    %521 = math.exp %520 : vector<16x128xf32>
    %cst_166 = arith.constant 1.000000e+00 : f32
    %522 = vector.broadcast %cst_166 : f32 to vector<16x128xf32>
    %523 = arith.addf %522, %521 : vector<16x128xf32>
    %524 = arith.divf %522, %523 : vector<16x128xf32>
    %525 = arith.mulf %516, %492 : vector<16x128xf32>
    %526 = arith.mulf %510, %518 : vector<16x128xf32>
    %527 = arith.addf %525, %526 : vector<16x128xf32>
    %528 = math.tanh %527 : vector<16x128xf32>
    %529 = arith.mulf %524, %528 : vector<16x128xf32>
    %530 = arith.index_cast %c5_i32_158 : i32 to index
    %c0_167 = arith.constant 0 : index
    %c0_168 = arith.constant 0 : index
    %531 = vector.load %arg11[%530, %c0_167, %c0_168] : memref<8x16x128xf32, #tpu.memory_space<vmem>>, vector<1x16x128xf32>
    %532 = vector.shape_cast %531 : vector<1x16x128xf32> to vector<16x128xf32>
    %533 = vector.shape_cast %529 : vector<16x128xf32> to vector<1x16x128xf32>
    tpu.vector_store %arg11[%530, %c0_167, %c0_168], %533 {strides = array<i32>} : memref<8x16x128xf32, #tpu.memory_space<vmem>>, vector<1x16x128xf32>,
    %c6_i32_169 = arith.constant 6 : i32
    %534 = arith.index_cast %c6_i32_169 : i32 to index
    %c0_170 = arith.constant 0 : index
    %c0_171 = arith.constant 0 : index
    %535 = vector.load %arg12[%534, %c0_170, %c0_171] : memref<8x16x512xf32, #tpu.memory_space<vmem>>, vector<1x16x512xf32>
    %536 = vector.shape_cast %535 : vector<1x16x512xf32> to vector<16x512xf32>
    %c0_172 = arith.constant 0 : index
    %c0_173 = arith.constant 0 : index
    %537 = vector.load %arg6[%c0_172, %c0_173] : memref<128x512xf32, #tpu.memory_space<vmem>>, vector<128x512xf32>
    %cst_174 = arith.constant dense<0.000000e+00> : vector<16x512xf32>
    %538 = tpu.matmul %529, %537, %cst_174 {dimension_numbers = #tpu.dot_dimension_numbers<[1], [0], [0], [1], [0, 0, 1, 1], [], []>} : vector<16x128xf32>, vector<128x512xf32>, vector<16x512xf32> -> vector<16x512xf32>
    %539 = arith.addf %536, %538 : vector<16x512xf32>
    %540 = vector.extract_strided_slice %539 {offsets = [0, 0], sizes = [16, 128], strides = [1, 1]} : vector<16x512xf32> to vector<16x128xf32>
    %541 = arith.negf %540 : vector<16x128xf32>
    %542 = math.exp %541 : vector<16x128xf32>
    %cst_175 = arith.constant 1.000000e+00 : f32
    %543 = vector.broadcast %cst_175 : f32 to vector<16x128xf32>
    %544 = arith.addf %543, %542 : vector<16x128xf32>
    %545 = arith.divf %543, %544 : vector<16x128xf32>
    %546 = vector.extract_strided_slice %539 {offsets = [0, 128], sizes = [16, 128], strides = [1, 1]} : vector<16x512xf32> to vector<16x128xf32>
    %547 = arith.negf %546 : vector<16x128xf32>
    %548 = math.exp %547 : vector<16x128xf32>
    %cst_176 = arith.constant 1.000000e+00 : f32
    %549 = vector.broadcast %cst_176 : f32 to vector<16x128xf32>
    %550 = arith.addf %549, %548 : vector<16x128xf32>
    %551 = arith.divf %549, %550 : vector<16x128xf32>
    %552 = vector.extract_strided_slice %539 {offsets = [0, 256], sizes = [16, 128], strides = [1, 1]} : vector<16x512xf32> to vector<16x128xf32>
    %553 = math.tanh %552 : vector<16x128xf32>
    %554 = vector.extract_strided_slice %539 {offsets = [0, 384], sizes = [16, 128], strides = [1, 1]} : vector<16x512xf32> to vector<16x128xf32>
    %555 = arith.negf %554 : vector<16x128xf32>
    %556 = math.exp %555 : vector<16x128xf32>
    %cst_177 = arith.constant 1.000000e+00 : f32
    %557 = vector.broadcast %cst_177 : f32 to vector<16x128xf32>
    %558 = arith.addf %557, %556 : vector<16x128xf32>
    %559 = arith.divf %557, %558 : vector<16x128xf32>
    %560 = arith.mulf %551, %527 : vector<16x128xf32>
    %561 = arith.mulf %545, %553 : vector<16x128xf32>
    %562 = arith.addf %560, %561 : vector<16x128xf32>
    %563 = math.tanh %562 : vector<16x128xf32>
    %564 = arith.mulf %559, %563 : vector<16x128xf32>
    %565 = arith.index_cast %c6_i32_169 : i32 to index
    %c0_178 = arith.constant 0 : index
    %c0_179 = arith.constant 0 : index
    %566 = vector.load %arg11[%565, %c0_178, %c0_179] : memref<8x16x128xf32, #tpu.memory_space<vmem>>, vector<1x16x128xf32>
    %567 = vector.shape_cast %566 : vector<1x16x128xf32> to vector<16x128xf32>
    %568 = vector.shape_cast %564 : vector<16x128xf32> to vector<1x16x128xf32>
    tpu.vector_store %arg11[%565, %c0_178, %c0_179], %568 {strides = array<i32>} : memref<8x16x128xf32, #tpu.memory_space<vmem>>, vector<1x16x128xf32>,
    %c7_i32_180 = arith.constant 7 : i32
    %569 = arith.index_cast %c7_i32_180 : i32 to index
    %c0_181 = arith.constant 0 : index
    %c0_182 = arith.constant 0 : index
    %570 = vector.load %arg12[%569, %c0_181, %c0_182] : memref<8x16x512xf32, #tpu.memory_space<vmem>>, vector<1x16x512xf32>
    %571 = vector.shape_cast %570 : vector<1x16x512xf32> to vector<16x512xf32>
    %c0_183 = arith.constant 0 : index
    %c0_184 = arith.constant 0 : index
    %572 = vector.load %arg6[%c0_183, %c0_184] : memref<128x512xf32, #tpu.memory_space<vmem>>, vector<128x512xf32>
    %cst_185 = arith.constant dense<0.000000e+00> : vector<16x512xf32>
    %573 = tpu.matmul %564, %572, %cst_185 {dimension_numbers = #tpu.dot_dimension_numbers<[1], [0], [0], [1], [0, 0, 1, 1], [], []>} : vector<16x128xf32>, vector<128x512xf32>, vector<16x512xf32> -> vector<16x512xf32>
    %574 = arith.addf %571, %573 : vector<16x512xf32>
    %575 = vector.extract_strided_slice %574 {offsets = [0, 0], sizes = [16, 128], strides = [1, 1]} : vector<16x512xf32> to vector<16x128xf32>
    %576 = arith.negf %575 : vector<16x128xf32>
    %577 = math.exp %576 : vector<16x128xf32>
    %cst_186 = arith.constant 1.000000e+00 : f32
    %578 = vector.broadcast %cst_186 : f32 to vector<16x128xf32>
    %579 = arith.addf %578, %577 : vector<16x128xf32>
    %580 = arith.divf %578, %579 : vector<16x128xf32>
    %581 = vector.extract_strided_slice %574 {offsets = [0, 128], sizes = [16, 128], strides = [1, 1]} : vector<16x512xf32> to vector<16x128xf32>
    %582 = arith.negf %581 : vector<16x128xf32>
    %583 = math.exp %582 : vector<16x128xf32>
    %cst_187 = arith.constant 1.000000e+00 : f32
    %584 = vector.broadcast %cst_187 : f32 to vector<16x128xf32>
    %585 = arith.addf %584, %583 : vector<16x128xf32>
    %586 = arith.divf %584, %585 : vector<16x128xf32>
    %587 = vector.extract_strided_slice %574 {offsets = [0, 256], sizes = [16, 128], strides = [1, 1]} : vector<16x512xf32> to vector<16x128xf32>
    %588 = math.tanh %587 : vector<16x128xf32>
    %589 = vector.extract_strided_slice %574 {offsets = [0, 384], sizes = [16, 128], strides = [1, 1]} : vector<16x512xf32> to vector<16x128xf32>
    %590 = arith.negf %589 : vector<16x128xf32>
    %591 = math.exp %590 : vector<16x128xf32>
    %cst_188 = arith.constant 1.000000e+00 : f32
    %592 = vector.broadcast %cst_188 : f32 to vector<16x128xf32>
    %593 = arith.addf %592, %591 : vector<16x128xf32>
    %594 = arith.divf %592, %593 : vector<16x128xf32>
    %595 = arith.mulf %586, %562 : vector<16x128xf32>
    %596 = arith.mulf %580, %588 : vector<16x128xf32>
    %597 = arith.addf %595, %596 : vector<16x128xf32>
    %598 = math.tanh %597 : vector<16x128xf32>
    %599 = arith.mulf %594, %598 : vector<16x128xf32>
    %600 = arith.index_cast %c7_i32_180 : i32 to index
    %c0_189 = arith.constant 0 : index
    %c0_190 = arith.constant 0 : index
    %601 = vector.load %arg11[%600, %c0_189, %c0_190] : memref<8x16x128xf32, #tpu.memory_space<vmem>>, vector<1x16x128xf32>
    %602 = vector.shape_cast %601 : vector<1x16x128xf32> to vector<16x128xf32>
    %603 = vector.shape_cast %599 : vector<16x128xf32> to vector<1x16x128xf32>
    tpu.vector_store %arg11[%600, %c0_189, %c0_190], %603 {strides = array<i32>} : memref<8x16x128xf32, #tpu.memory_space<vmem>>, vector<1x16x128xf32>,
    %c8_i32_191 = arith.constant 8 : i32
    %c0_192 = arith.constant 0 : index
    %c0_193 = arith.constant 0 : index
    %c0_194 = arith.constant 0 : index
    %604 = vector.load %arg11[%c0_192, %c0_193, %c0_194] : memref<8x16x128xf32, #tpu.memory_space<vmem>>, vector<8x16x128xf32>
    %605 = vector.shape_cast %604 : vector<8x16x128xf32> to vector<128x128xf32>
    %cst_195 = arith.constant 0.000000e+00 : f32
    %606 = vector.broadcast %cst_195 : f32 to vector<128x128xf32>
    %607 = arith.maximumf %605, %606 : vector<128x128xf32>
    %c0_196 = arith.constant 0 : index
    %c0_197 = arith.constant 0 : index
    %608 = vector.load %arg8[%c0_196, %c0_197] : memref<128x128xf32, #tpu.memory_space<vmem>>, vector<128x128xf32>
    %cst_198 = arith.constant dense<0.000000e+00> : vector<128x128xf32>
    %609 = tpu.matmul %607, %608, %cst_198 {dimension_numbers = #tpu.dot_dimension_numbers<[1], [0], [0], [1], [0, 0, 1, 1], [], []>} : vector<128x128xf32>, vector<128x128xf32>, vector<128x128xf32> -> vector<128x128xf32>
    %c0_199 = arith.constant 0 : index
    %c0_200 = arith.constant 0 : index
    %610 = vector.load %arg9[%c0_199, %c0_200] : memref<1x128xf32, #tpu.memory_space<vmem>>, vector<1x128xf32>
    %611 = vector.broadcast %610 : vector<1x128xf32> to vector<128x128xf32>
    %612 = arith.addf %609, %611 : vector<128x128xf32>
    %613 = vector.shape_cast %612 : vector<128x128xf32> to vector<8x16x128xf32>
    %614 = vector.extract_strided_slice %613 {offsets = [0, 0, 0], sizes = [1, 16, 128], strides = [1, 1, 1]} : vector<8x16x128xf32> to vector<1x16x128xf32>
    %615 = vector.shape_cast %614 : vector<1x16x128xf32> to vector<16x128xf32>
    %c0_201 = arith.constant 0 : index
    %c0_202 = arith.constant 0 : index
    %c0_203 = arith.constant 0 : index
    %616 = vector.load %arg10[%c0_201, %c0_202, %c0_203] : memref<16x8x128xf32, #tpu.memory_space<vmem>>, vector<16x1x128xf32>
    %617 = vector.shape_cast %616 : vector<16x1x128xf32> to vector<16x128xf32>
    %618 = vector.shape_cast %615 : vector<16x128xf32> to vector<16x1x128xf32>
    tpu.vector_store %arg10[%c0_201, %c0_202, %c0_203], %618 {strides = array<i32>} : memref<16x8x128xf32, #tpu.memory_space<vmem>>, vector<16x1x128xf32>,
    %619 = vector.extract_strided_slice %613 {offsets = [1, 0, 0], sizes = [1, 16, 128], strides = [1, 1, 1]} : vector<8x16x128xf32> to vector<1x16x128xf32>
    %620 = vector.shape_cast %619 : vector<1x16x128xf32> to vector<16x128xf32>
    %c0_204 = arith.constant 0 : index
    %c1 = arith.constant 1 : index
    %c0_205 = arith.constant 0 : index
    %621 = vector.load %arg10[%c0_204, %c1, %c0_205] : memref<16x8x128xf32, #tpu.memory_space<vmem>>, vector<16x1x128xf32>
    %622 = vector.shape_cast %621 : vector<16x1x128xf32> to vector<16x128xf32>
    %623 = vector.shape_cast %620 : vector<16x128xf32> to vector<16x1x128xf32>
    tpu.vector_store %arg10[%c0_204, %c1, %c0_205], %623 {strides = array<i32>} : memref<16x8x128xf32, #tpu.memory_space<vmem>>, vector<16x1x128xf32>,
    %624 = vector.extract_strided_slice %613 {offsets = [2, 0, 0], sizes = [1, 16, 128], strides = [1, 1, 1]} : vector<8x16x128xf32> to vector<1x16x128xf32>
    %625 = vector.shape_cast %624 : vector<1x16x128xf32> to vector<16x128xf32>
    %c0_206 = arith.constant 0 : index
    %c2 = arith.constant 2 : index
    %c0_207 = arith.constant 0 : index
    %626 = vector.load %arg10[%c0_206, %c2, %c0_207] : memref<16x8x128xf32, #tpu.memory_space<vmem>>, vector<16x1x128xf32>
    %627 = vector.shape_cast %626 : vector<16x1x128xf32> to vector<16x128xf32>
    %628 = vector.shape_cast %625 : vector<16x128xf32> to vector<16x1x128xf32>
    tpu.vector_store %arg10[%c0_206, %c2, %c0_207], %628 {strides = array<i32>} : memref<16x8x128xf32, #tpu.memory_space<vmem>>, vector<16x1x128xf32>,
    %629 = vector.extract_strided_slice %613 {offsets = [3, 0, 0], sizes = [1, 16, 128], strides = [1, 1, 1]} : vector<8x16x128xf32> to vector<1x16x128xf32>
    %630 = vector.shape_cast %629 : vector<1x16x128xf32> to vector<16x128xf32>
    %c0_208 = arith.constant 0 : index
    %c3 = arith.constant 3 : index
    %c0_209 = arith.constant 0 : index
    %631 = vector.load %arg10[%c0_208, %c3, %c0_209] : memref<16x8x128xf32, #tpu.memory_space<vmem>>, vector<16x1x128xf32>
    %632 = vector.shape_cast %631 : vector<16x1x128xf32> to vector<16x128xf32>
    %633 = vector.shape_cast %630 : vector<16x128xf32> to vector<16x1x128xf32>
    tpu.vector_store %arg10[%c0_208, %c3, %c0_209], %633 {strides = array<i32>} : memref<16x8x128xf32, #tpu.memory_space<vmem>>, vector<16x1x128xf32>,
    %634 = vector.extract_strided_slice %613 {offsets = [4, 0, 0], sizes = [1, 16, 128], strides = [1, 1, 1]} : vector<8x16x128xf32> to vector<1x16x128xf32>
    %635 = vector.shape_cast %634 : vector<1x16x128xf32> to vector<16x128xf32>
    %c0_210 = arith.constant 0 : index
    %c4 = arith.constant 4 : index
    %c0_211 = arith.constant 0 : index
    %636 = vector.load %arg10[%c0_210, %c4, %c0_211] : memref<16x8x128xf32, #tpu.memory_space<vmem>>, vector<16x1x128xf32>
    %637 = vector.shape_cast %636 : vector<16x1x128xf32> to vector<16x128xf32>
    %638 = vector.shape_cast %635 : vector<16x128xf32> to vector<16x1x128xf32>
    tpu.vector_store %arg10[%c0_210, %c4, %c0_211], %638 {strides = array<i32>} : memref<16x8x128xf32, #tpu.memory_space<vmem>>, vector<16x1x128xf32>,
    %639 = vector.extract_strided_slice %613 {offsets = [5, 0, 0], sizes = [1, 16, 128], strides = [1, 1, 1]} : vector<8x16x128xf32> to vector<1x16x128xf32>
    %640 = vector.shape_cast %639 : vector<1x16x128xf32> to vector<16x128xf32>
    %c0_212 = arith.constant 0 : index
    %c5 = arith.constant 5 : index
    %c0_213 = arith.constant 0 : index
    %641 = vector.load %arg10[%c0_212, %c5, %c0_213] : memref<16x8x128xf32, #tpu.memory_space<vmem>>, vector<16x1x128xf32>
    %642 = vector.shape_cast %641 : vector<16x1x128xf32> to vector<16x128xf32>
    %643 = vector.shape_cast %640 : vector<16x128xf32> to vector<16x1x128xf32>
    tpu.vector_store %arg10[%c0_212, %c5, %c0_213], %643 {strides = array<i32>} : memref<16x8x128xf32, #tpu.memory_space<vmem>>, vector<16x1x128xf32>,
    %644 = vector.extract_strided_slice %613 {offsets = [6, 0, 0], sizes = [1, 16, 128], strides = [1, 1, 1]} : vector<8x16x128xf32> to vector<1x16x128xf32>
    %645 = vector.shape_cast %644 : vector<1x16x128xf32> to vector<16x128xf32>
    %c0_214 = arith.constant 0 : index
    %c6 = arith.constant 6 : index
    %c0_215 = arith.constant 0 : index
    %646 = vector.load %arg10[%c0_214, %c6, %c0_215] : memref<16x8x128xf32, #tpu.memory_space<vmem>>, vector<16x1x128xf32>
    %647 = vector.shape_cast %646 : vector<16x1x128xf32> to vector<16x128xf32>
    %648 = vector.shape_cast %645 : vector<16x128xf32> to vector<16x1x128xf32>
    tpu.vector_store %arg10[%c0_214, %c6, %c0_215], %648 {strides = array<i32>} : memref<16x8x128xf32, #tpu.memory_space<vmem>>, vector<16x1x128xf32>,
    %649 = vector.extract_strided_slice %613 {offsets = [7, 0, 0], sizes = [1, 16, 128], strides = [1, 1, 1]} : vector<8x16x128xf32> to vector<1x16x128xf32>
    %650 = vector.shape_cast %649 : vector<1x16x128xf32> to vector<16x128xf32>
    %c0_216 = arith.constant 0 : index
    %c7 = arith.constant 7 : index
    %c0_217 = arith.constant 0 : index
    %651 = vector.load %arg10[%c0_216, %c7, %c0_217] : memref<16x8x128xf32, #tpu.memory_space<vmem>>, vector<16x1x128xf32>
    %652 = vector.shape_cast %651 : vector<16x1x128xf32> to vector<16x128xf32>
    %653 = vector.shape_cast %650 : vector<16x128xf32> to vector<16x1x128xf32>
    tpu.vector_store %arg10[%c0_216, %c7, %c0_217], %653 {strides = array<i32>} : memref<16x8x128xf32, #tpu.memory_space<vmem>>, vector<16x1x128xf32>,
    return
  }
  func.func @transform_0(%arg0: i32) -> (i32, i32, i32) {
    %c0_i32 = arith.constant 0 : i32
    %c0_i32_0 = arith.constant 0 : i32
    %c0_i32_1 = arith.constant 0 : i32
    return %c0_i32, %arg0, %c0_i32_0 : i32, i32, i32
  }
  func.func @transform_1(%arg0: i32) -> (i32, i32) {
    %c0_i32 = arith.constant 0 : i32
    %c0_i32_0 = arith.constant 0 : i32
    %c0_i32_1 = arith.constant 0 : i32
    return %c0_i32, %c0_i32_0 : i32, i32
  }
  func.func @transform_2(%arg0: i32) -> (i32, i32) {
    %c0_i32 = arith.constant 0 : i32
    %c0_i32_0 = arith.constant 0 : i32
    %c0_i32_1 = arith.constant 0 : i32
    return %c0_i32, %c0_i32_0 : i32, i32
  }
  func.func @transform_3(%arg0: i32) -> (i32, i32) {
    %c0_i32 = arith.constant 0 : i32
    %c0_i32_0 = arith.constant 0 : i32
    %c0_i32_1 = arith.constant 0 : i32
    return %c0_i32, %c0_i32_0 : i32, i32
  }
  func.func @transform_4(%arg0: i32) -> (i32, i32) {
    %c0_i32 = arith.constant 0 : i32
    %c0_i32_0 = arith.constant 0 : i32
    %c0_i32_1 = arith.constant 0 : i32
    return %c0_i32, %c0_i32_0 : i32, i32
  }
  func.func @transform_5(%arg0: i32) -> (i32, i32) {
    %c0_i32 = arith.constant 0 : i32
    %c0_i32_0 = arith.constant 0 : i32
    %c0_i32_1 = arith.constant 0 : i32
    return %c0_i32, %c0_i32_0 : i32, i32
  }
  func.func @transform_6(%arg0: i32) -> (i32, i32) {
    %c0_i32 = arith.constant 0 : i32
    %c0_i32_0 = arith.constant 0 : i32
    %c0_i32_1 = arith.constant 0 : i32
    return %c0_i32, %c0_i32_0 : i32, i32
  }
  func.func @transform_7(%arg0: i32) -> (i32, i32) {
    %c0_i32 = arith.constant 0 : i32
    %c0_i32_0 = arith.constant 0 : i32
    %c0_i32_1 = arith.constant 0 : i32
    return %c0_i32, %c0_i32_0 : i32, i32
  }
  func.func @transform_8(%arg0: i32) -> (i32, i32) {
    %c0_i32 = arith.constant 0 : i32
    %c0_i32_0 = arith.constant 0 : i32
    %c0_i32_1 = arith.constant 0 : i32
    return %c0_i32, %c0_i32_0 : i32, i32
  }
  func.func @transform_9(%arg0: i32) -> (i32, i32, i32) {
    %c0_i32 = arith.constant 0 : i32
    %c0_i32_0 = arith.constant 0 : i32
    %c0_i32_1 = arith.constant 0 : i32
    return %arg0, %c0_i32, %c0_i32_0 : i32, i32, i32
  }
}

</mosaic_0001>

<bundles_post_ra>
// kernel: forward.1
= control target key start
LH: loop header
LB: loop body
LE: loop exit
PB: predicated region body
PF: predicated region fallthrough
CT: control target
= control target key end

     0   :  { %14 = vsyncpa [#allocation5], 0  ;;  %s12153_s0 = inlined_call_operand.vmem [shape: f32[8,16,4], index: 0, kind: input, shape index: {}]   ;;  %s12154_s1 = inlined_call_operand.vmem [shape: f32[4,512], index: 1, kind: input, shape index: {}]   ;;  %s12155_s2 = inlined_call_operand.hbm [shape: f32[128,512], index: 2, kind: input, shape index: {}]   ;;  %s12156_s3 = inlined_call_operand.vmem [shape: f32[1,512], index: 3, kind: input, shape index: {}]   ;;  %s12157_s4 = inlined_call_operand.hbm [shape: f32[128,512], index: 4, kind: input, shape index: {}]   ;;  %s12158_s5 = inlined_call_operand.hbm [shape: f32[128,512], index: 5, kind: input, shape index: {}]   ;;  %s12159_s6 = inlined_call_operand.vmem [shape: f32[1,512], index: 6, kind: input, shape index: {}]   ;;  %s12160_s7 = inlined_call_operand.vmem [shape: f32[128,128], index: 7, kind: input, shape index: {}]   ;;  %s12161_s8 = inlined_call_operand.vmem [shape: f32[1,128], index: 8, kind: input, shape index: {}]   ;;  %s12162_s9 = inlined_call_operand.vmem [shape: f32[16,8,128], index: 9, kind: output, shape index: {}]  }
   0x1   :  { %15 = vsyncpa [#allocation7], 0  ;;  %s9562_s30 = smov [#allocation6]   ;;  %s9563_s11 = smov [#allocation4]  }
   0x2   :  { %s39_s10 = sshll.u32 %s9562_s30, 4  ;;  %s25_s12 = sshll.u32 %s9563_s11, 4  ;;  %s40_s10 = int_to_ptr.vmem [resolvable:$true] %s39_s10  ;;  %s9623_s12 = int_to_ptr.vmem [resolvable:$true] %s25_s12 }
   0x3   :  { %s9492_s15 = scalar_lea.hbm %s12157_s4, 8192 }
   0x4   :  { %p9493_p0 = scmp.ne.s32.totalorder %s12157_s4, %s9492_s15  ;;  %p9496_p1 = scmp.lt.u32.totalorder %s9492_s15, %s12157_s4 }
   0x6   :  { %p9498_p2 = pnand %p9496_p1, %p9493_p0 }
   0x8   :  { %9501 = shalt.err (!%p9498_p2)
}
   0x9   :  { %s9502_s20 = scalar_lea.vmem %s40_s10, 8192  ;;  %p9507_p4 = scmp.lt.s32.totalorder %s40_s10, %s40_s10 }
   0xa   :  { %p9503_p3 = scmp.ne.s32.totalorder %s40_s10, %s9502_s20  ;;  %p9508_p5 = scmp.lt.s32.totalorder %s9502_s20, %s9502_s20 }
   0xc   :  { %p9509_p6 = por %p9508_p5, %p9507_p4 }
   0xe   :  { %p9510_p7 = pnand %p9509_p6, %p9503_p3 }
  0x10   :  { %9513 = shalt.err (!%p9510_p7)
}
  0x11   :  { %s9564_s21 = smov 512   ;;  %s9565_s22 = smov 32  }
  0x12   :  { %45 = dma.hbm_to_vmem [thread:$0]  %s12157_s4, 8192, %s40_s10, [#allocation7], %s9564_s21, %s9564_s21, %s9565_s22  }
  0x13   :  { %s9514_s27 = scalar_lea.hbm %s12155_s2, 8192 }
  0x14   :  { %p9515_p8 = scmp.ne.s32.totalorder %s12155_s2, %s9514_s27  ;;  %p9518_p9 = scmp.lt.u32.totalorder %s9514_s27, %s12155_s2 }
  0x16   :  { %p9520_p10 = pnand %p9518_p9, %p9515_p8 }
  0x18   :  { %9523 = shalt.err (!%p9520_p10)
}
  0x19   :  { %s9524_s13 = scalar_lea.vmem %s9623_s12, 8192  ;;  %p9529_p12 = scmp.lt.s32.totalorder %s9623_s12, %s9623_s12 }
  0x1a   :  { %p9525_p11 = scmp.ne.s32.totalorder %s9623_s12, %s9524_s13  ;;  %p9530_p13 = scmp.lt.s32.totalorder %s9524_s13, %s9524_s13 }
  0x1c   :  { %p9531_p0 = por %p9530_p13, %p9529_p12 }
  0x1e   :  { %p9532_p1 = pnand %p9531_p0, %p9525_p11 }
  0x20   :  { %9535 = shalt.err (!%p9532_p1)
}
  0x21   :  { %31 = dma.hbm_to_vmem [thread:$0]  %s12155_s2, 8192, %s9623_s12, [#allocation5], %s9564_s21, %s9564_s21, %s9565_s22  }
  0x22   :  { %s9566_s14 = smov [#allocation8]   ;;  %s9536_s18 = scalar_lea.hbm %s12158_s5, 8192 }
  0x23   :  { %s51_s15 = sshll.u32 %s9566_s14, 4  ;;  %p9537_p2 = scmp.ne.s32.totalorder %s12158_s5, %s9536_s18  ;;  %s52_s15 = int_to_ptr.vmem [resolvable:$true] %s51_s15 }
  0x24   :  { %p9540_p3 = scmp.lt.u32.totalorder %s9536_s18, %s12158_s5 }
  0x26   :  { %p9542_p4 = pnand %p9540_p3, %p9537_p2 }
  0x28   :  { %9545 = shalt.err (!%p9542_p4)
}
  0x29   :  { %s9546_s25 = scalar_lea.vmem %s52_s15, 8192  ;;  %p9551_p6 = scmp.lt.s32.totalorder %s52_s15, %s52_s15 }
  0x2a   :  { %p9547_p5 = scmp.ne.s32.totalorder %s52_s15, %s9546_s25  ;;  %p9552_p7 = scmp.lt.s32.totalorder %s9546_s25, %s9546_s25 }
  0x2c   :  { %p9553_p8 = por %p9552_p7, %p9551_p6 }
  0x2e   :  { %p9554_p9 = pnand %p9553_p8, %p9547_p5 }
  0x30   :  { %9557 = shalt.err (!%p9554_p9)
}
  0x31   :  { %57 = dma.hbm_to_vmem [thread:$0]  %s12158_s5, 8192, %s52_s15, [#allocation7], %s9564_s21, %s9564_s21, %s9565_s22  }
  0x32   :  { %9558 = dma.done.wait [#allocation5], 8192  }
  0x33   :  { %9559 = vsyncadd [#allocation5], 4294959104 }
  0x34   :  { %9560 = dma.done.wait [#allocation7], 16384  }
  0x35   :  { %9561 = vsyncadd [#allocation7], 4294950912  ;;  %v12163_v0 = vmov 0.0   ;;  %v12171_v1 = vmov 2   ;;  %v12165_v2 = vmov 0   ;;  %v1116_v3 = vld [vmem:[#allocation4 + $0x8] sm:$0xff] }
  0x36   :  { %1243 = vmatprep.mubr.f32.mxu1 %v12163_v0  ;;  %8925 = vset.pattern.permute.xlu1 %v12171_v1  ;;  %v1120_v4 = vld [vmem:[#allocation4 + $0x28] sm:$0xff]  ;;  %v1115_v5 = vld [vmem:[#allocation4] sm:$0xff]  ;;  %v1118_v52 = vld [vmem:[#allocation4 + $0x18] sm:$0xff]  ;;  %v12167_v54 = vmov 1   ;;  %v12169_v61 = vmov 3  }
  0x37   :  { %8923 = vset.pattern.permute.xlu0 %v12165_v2  ;;  %1528 = vmatprep.mubr.f32.mxu0 %v12163_v0  ;;  %v7664_v6 = vpack.c.bf16 %v1120_v4, %v1116_v3  ;;  %v1119_v7 = vld [vmem:[#allocation4 + $0x20] sm:$0xff]  ;;  %v1124_v8 = vld [vmem:[#allocation4 + $0x48] sm:$0xff]  ;;  %v1122_v53 = vld [vmem:[#allocation4 + $0x38] sm:$0xff] }
  0x38   :  { %v1128_v9 = vld [vmem:[#allocation4 + $0x68] sm:$0xff]  ;;  %v7666_v10 = vpack.c.bf16 %v1119_v7, %v1115_v5  ;;  %v1123_v12 = vld [vmem:[#allocation4 + $0x40] sm:$0xff]  ;;  %v9687_v56 = vpack.c.bf16 %v1122_v53, %v1118_v52  ;;  %v1117_v57 = vld [vmem:[#allocation4 + $0x10] sm:$0xff] }
  0x39   :  { %v7668_v11 = vpack.c.bf16 %v1128_v9, %v1124_v8  ;;  %v1127_v13 = vld [vmem:[#allocation4 + $0x60] sm:$0xff]  ;;  %v1132_v14 = vld [vmem:[#allocation4 + $0x88] sm:$0xff]  ;;  %7665 = vmatprep.subr.bf16.mxu1 %v7664_v6  ;;  %7729 = vmatprep.subr.bf16.mxu0 %v7664_v6  ;;  %v1121_v58 = vld [vmem:[#allocation4 + $0x30] sm:$0xff] }
  0x3a   :  { %v1136_v15 = vld [vmem:[#allocation4 + $0xa8] sm:$0xff]  ;;  %7667 = vmatpush1.bf16.msra.mxu1 %v7666_v10  ;;  %v7670_v16 = vpack.c.bf16 %v1127_v13, %v1123_v12  ;;  %7731 = vmatpush1.bf16.msra.mxu0 %v7666_v10  ;;  %v1131_v18 = vld [vmem:[#allocation4 + $0x80] sm:$0xff]  ;;  %v1126_v59 = vld [vmem:[#allocation4 + $0x58] sm:$0xff]  ;;  %v9691_v62 = vpack.c.bf16 %v1121_v58, %v1117_v57 }
  0x3b   :  { %7669 = vmatprep.subr.bf16.mxu1 %v7668_v11  ;;  %v7672_v17 = vpack.c.bf16 %v1136_v15, %v1132_v14  ;;  %v1135_v19 = vld [vmem:[#allocation4 + $0xa0] sm:$0xff]  ;;  %7733 = vmatprep.subr.bf16.mxu0 %v7668_v11  ;;  %v1140_v20 = vld [vmem:[#allocation4 + $0xc8] sm:$0xff]  ;;  %v1130_v60 = vld [vmem:[#allocation4 + $0x78] sm:$0xff] }
  0x3c   :  { %v1144_v21 = vld [vmem:[#allocation4 + $0xe8] sm:$0xff]  ;;  %v7674_v22 = vpack.c.bf16 %v1135_v19, %v1131_v18  ;;  %v1139_v24 = vld [vmem:[#allocation4 + $0xc0] sm:$0xff]  ;;  %v9694_v63 = vpack.c.bf16 %v1130_v60, %v1126_v59  ;;  %v1125_v3 = vld [vmem:[#allocation4 + $0x50] sm:$0xff] }
  0x3d   :  { %v7676_v23 = vpack.c.bf16 %v1144_v21, %v1140_v20  ;;  %v1143_v25 = vld [vmem:[#allocation4 + $0xe0] sm:$0xff]  ;;  %v1148_v26 = vld [vmem:[#allocation4 + $0x108] sm:$0xff]  ;;  %v1129_v4 = vld [vmem:[#allocation4 + $0x70] sm:$0xff] }
  0x3e   :  { %7671 = vmatpush1.bf16.msra.mxu1 %v7670_v16  ;;  %7735 = vmatpush1.bf16.msra.mxu0 %v7670_v16  ;;  %v1152_v27 = vld [vmem:[#allocation4 + $0x128] sm:$0xff]  ;;  %v7678_v28 = vpack.c.bf16 %v1143_v25, %v1139_v24  ;;  %v1147_v30 = vld [vmem:[#allocation4 + $0x100] sm:$0xff]  ;;  %v1134_v5 = vld [vmem:[#allocation4 + $0x98] sm:$0xff]  ;;  %v9698_v7 = vpack.c.bf16 %v1129_v4, %v1125_v3 }
  0x3f   :  { %7673 = vmatprep.subr.bf16.mxu1 %v7672_v17  ;;  %7737 = vmatprep.subr.bf16.mxu0 %v7672_v17  ;;  %v7680_v29 = vpack.c.bf16 %v1152_v27, %v1148_v26  ;;  %v1151_v31 = vld [vmem:[#allocation4 + $0x120] sm:$0xff]  ;;  %v1156_v32 = vld [vmem:[#allocation4 + $0x148] sm:$0xff]  ;;  %v1138_v6 = vld [vmem:[#allocation4 + $0xb8] sm:$0xff] }
  0x40   :  { %v1160_v33 = vld [vmem:[#allocation4 + $0x168] sm:$0xff]  ;;  %v7682_v34 = vpack.c.bf16 %v1151_v31, %v1147_v30  ;;  %v1155_v36 = vld [vmem:[#allocation4 + $0x140] sm:$0xff]  ;;  %v9702_v8 = vpack.c.bf16 %v1138_v6, %v1134_v5  ;;  %v1133_v9 = vld [vmem:[#allocation4 + $0x90] sm:$0xff] }
  0x41   :  { %v7684_v35 = vpack.c.bf16 %v1160_v33, %v1156_v32  ;;  %v1159_v37 = vld [vmem:[#allocation4 + $0x160] sm:$0xff]  ;;  %v1164_v38 = vld [vmem:[#allocation4 + $0x188] sm:$0xff]  ;;  %v1137_v10 = vld [vmem:[#allocation4 + $0xb0] sm:$0xff] }
  0x42   :  { %7675 = vmatpush1.bf16.msra.mxu1 %v7674_v22  ;;  %7739 = vmatpush1.bf16.msra.mxu0 %v7674_v22  ;;  %v1168_v39 = vld [vmem:[#allocation4 + $0x1a8] sm:$0xff]  ;;  %v7686_v40 = vpack.c.bf16 %v1159_v37, %v1155_v36  ;;  %v1163_v42 = vld [vmem:[#allocation4 + $0x180] sm:$0xff]  ;;  %v1142_v11 = vld [vmem:[#allocation4 + $0xd8] sm:$0xff]  ;;  %v7706_v13 = vpack.c.bf16 %v1137_v10, %v1133_v9 }
  0x43   :  { %7677 = vmatprep.subr.bf16.mxu1 %v7676_v23  ;;  %7741 = vmatprep.subr.bf16.mxu0 %v7676_v23  ;;  %v7688_v41 = vpack.c.bf16 %v1168_v39, %v1164_v38  ;;  %v1167_v43 = vld [vmem:[#allocation4 + $0x1a0] sm:$0xff]  ;;  %v1172_v45 = vld [vmem:[#allocation4 + $0x1c8] sm:$0xff]  ;;  %v1146_v12 = vld [vmem:[#allocation4 + $0xf8] sm:$0xff] }
  0x44   :  { %v73_v44 = vld [vmem:[%s12153_s0] sm:$0xff]  ;;  %v1176_v46 = vld [vmem:[#allocation4 + $0x1e8] sm:$0xff]  ;;  %v7690_v47 = vpack.c.bf16 %v1167_v43, %v1163_v42  ;;  %v7708_v14 = vpack.c.bf16 %v1146_v12, %v1142_v11  ;;  %v1141_v15 = vld [vmem:[#allocation4 + $0xd0] sm:$0xff] }
  0x45   :  { %502 = vperm.xlu1 %8925, %v73_v44   ;;  %93 = vperm.xlu0 %8923, %v73_v44   ;;  %v74_v48 = vld [vmem:[%s12153_s0 + $0x8] sm:$0xff]  ;;  %v7692_v49 = vpack.c.bf16 %v1176_v46, %v1172_v45  ;;  %v1171_v50 = vld [vmem:[#allocation4 + $0x1c0] sm:$0xff]  ;;  %v1145_v16 = vld [vmem:[#allocation4 + $0xf0] sm:$0xff] }
  0x46   :  { %7679 = vmatpush1.bf16.msra.mxu1 %v7678_v28  ;;  %7743 = vmatpush1.bf16.msra.mxu0 %v7678_v28  ;;  %v1175_v51 = vld [vmem:[#allocation4 + $0x1e0] sm:$0xff]  ;;  %v1150_v17 = vld [vmem:[#allocation4 + $0x118] sm:$0xff]  ;;  %v7710_v19 = vpack.c.bf16 %v1145_v16, %v1141_v15  ;;  %v1149_v21 = vld [vmem:[#allocation4 + $0x110] sm:$0xff] }
  0x47   :  { %7681 = vmatprep.subr.bf16.mxu1 %v7680_v29  ;;  %7745 = vmatprep.subr.bf16.mxu0 %v7680_v29  ;;  %v7694_v55 = vpack.c.bf16 %v1175_v51, %v1171_v50  ;;  %v1154_v18 = vld [vmem:[#allocation4 + $0x138] sm:$0xff]  ;;  %v1153_v22 = vld [vmem:[#allocation4 + $0x130] sm:$0xff] }
  0x48   :  { %v7712_v20 = vpack.c.bf16 %v1154_v18, %v1150_v17  ;;  %v1158_v23 = vld [vmem:[#allocation4 + $0x158] sm:$0xff]  ;;  %v7714_v25 = vpack.c.bf16 %v1153_v22, %v1149_v21  ;;  %v1157_v27 = vld [vmem:[#allocation4 + $0x150] sm:$0xff] }
  0x49   :  { %8926 = vset.pattern.permute.xlu1 %v12165_v2  ;;  %8924 = vset.pattern.permute.xlu0 %v12167_v54  ;;  %v1162_v24 = vld [vmem:[#allocation4 + $0x178] sm:$0xff]  ;;  %v1161_v28 = vld [vmem:[#allocation4 + $0x170] sm:$0xff] }
  0x4a   :  { %7683 = vmatpush1.bf16.msra.mxu1 %v7682_v34  ;;  %7747 = vmatpush1.bf16.msra.mxu0 %v7682_v34  ;;  %v7716_v26 = vpack.c.bf16 %v1162_v24, %v1158_v23  ;;  %v1166_v29 = vld [vmem:[#allocation4 + $0x198] sm:$0xff]  ;;  %v7718_v31 = vpack.c.bf16 %v1161_v28, %v1157_v27  ;;  %v1165_v33 = vld [vmem:[#allocation4 + $0x190] sm:$0xff] }
  0x4b   :  { %7685 = vmatprep.subr.bf16.mxu1 %v7684_v35  ;;  %7749 = vmatprep.subr.bf16.mxu0 %v7684_v35  ;;  %v1170_v30 = vld [vmem:[#allocation4 + $0x1b8] sm:$0xff]  ;;  %v1169_v34 = vld [vmem:[#allocation4 + $0x1b0] sm:$0xff] }
  0x4c   :  { %98 = vperm.xlu1 %8926, %v74_v48   ;;  %274 = vperm.xlu0 %8924, %v73_v44   ;;  %v7720_v32 = vpack.c.bf16 %v1170_v30, %v1166_v29  ;;  %v1174_v35 = vld [vmem:[#allocation4 + $0x1d8] sm:$0xff]  ;;  %v7722_v37 = vpack.c.bf16 %v1169_v34, %v1165_v33  ;;  %v1173_v39 = vld [vmem:[#allocation4 + $0x1d0] sm:$0xff] }
  0x4d   :  { %v1178_v36 = vld [vmem:[#allocation4 + $0x1f8] sm:$0xff]  ;;  %v75_v42 = vld [vmem:[%s12153_s0 + $0x10] sm:$0xff] }
  0x4e   :  { %7687 = vmatpush1.bf16.msra.mxu1 %v7686_v40  ;;  %7751 = vmatpush1.bf16.msra.mxu0 %v7686_v40  ;;  %v7724_v38 = vpack.c.bf16 %v1178_v36, %v1174_v35  ;;  %v1177_v40 = vld [vmem:[#allocation4 + $0x1f0] sm:$0xff]  ;;  %v76_v43 = vld [vmem:[%s12153_s0 + $0x18] sm:$0xff] }
  0x4f   :  { %7689 = vmatprep.subr.bf16.mxu1 %v7688_v41  ;;  %7753 = vmatprep.subr.bf16.mxu0 %v7688_v41  ;;  %v7726_v41 = vpack.c.bf16 %v1177_v40, %v1173_v39  ;;  %v9838_v40 = vld [vmem:[%s12156_s3] sm:$0xf] }
  0x50   :  { %8927 = vset.pattern.permute.xlu1 %v12167_v54  ;;  %8928 = vset.pattern.permute.xlu0 %v12169_v61 }
  0x51   :  { %278 = vperm.xlu1 %8927, %v74_v48   ;;  %730 = vperm.xlu0 %8928, %v73_v44   ;;  %v173_v44 = vlaneseq }
  0x52   :  { %7691 = vmatpush1.bf16.msra.mxu1 %v7690_v47  ;;  %7755 = vmatpush1.bf16.msra.mxu0 %v7690_v47 }
  0x53   :  { %7693 = vmatprep.subr.bf16.mxu1 %v7692_v49  ;;  %7757 = vmatprep.subr.bf16.mxu0 %v7692_v49  ;;  %v9734_v45 = vshrl.u32 %v173_v44, 7  ;;  %v89_v49 = vld [vmem:[%s12154_s1] sm:$0xff] }
  0x55   :  { %8929 = vset.pattern.permute.xlu1 %v12171_v1  ;;  %8931 = vset.pattern.permute.xlu0 %v12165_v2  ;;  %12317 = vst [vmem:[#allocation11_spill] sm:$0xff] %v9734_v45  ;;  %v179_v47 = vsub.s32 4, %v9734_v45  ;;  %v9744_v50 = vsub.s32 0, %v9734_v45  ;;  %v9747_v51 = vsub.s32 1, %v9734_v45  ;;  %v9760_v59 = vsub.s32 2, %v9734_v45 }
  0x56   :  { %7695 = vmatpush1.bf16.msra.mxu1 %v7694_v55  ;;  %506 = vperm.xlu1 %8929, %v74_v48   ;;  %v9784_v10 = vsub.s32 3, %v9734_v45 }
  0x57   :  { %7697 = vmatprep.subr.bf16.mxu1 %v9687_v56  ;;  %7759 = vmatpush1.bf16.msra.mxu0 %v7694_v55  ;;  %12318 = vst [vmem:[#allocation12_spill] sm:$0xff] %v9744_v50  ;;  %12319 = vst [vmem:[#allocation13_spill] sm:$0xff] %v9747_v51  ;;  %v180_v55 = vrot.slane %v89_v49, %v179_v47  ;;  %v176_v58 = vrot.slane %v89_v49, %v9744_v50 }
  0x58   :  { %103 = vperm.xlu0 %8931, %v75_v42   ;;  %12320 = vst [vmem:[#allocation14_spill] sm:$0xff] %v9760_v59  ;;  %v340_v60 = vrot.slane %v89_v49, %v9747_v51  ;;  %12325 = vst [vmem:[#allocation19_spill] sm:$0xff] %v9784_v10  ;;  %v796_v18 = vrot.slane %v89_v49, %v9784_v10 }
  0x59   :  { %1244 = vmatmul.mubr.f32.vlgmr.msra.gmra.mrb[0].mxu1 %v12163_v0  ;;  %v9775_v6 = vrot.slane %v176_v58, %v9744_v50 }
  0x5a   :  { %7699 = vmatpush1.bf16.msra.mxu1 %v9691_v62  ;;  %1249 = vmatprep.mubr.f32.mxu1 %v12163_v0  ;;  %v9821_v29 = vrot.slane %v796_v18, %v9784_v10 }
  0x5b   :  { %7701 = vmatprep.subr.bf16.mxu1 %v9694_v63  ;;  %8930 = vset.pattern.permute.xlu1 %v12169_v61  ;;  %12323 = vst [vmem:[#allocation17_spill] sm:$0xff] %v9775_v6 }
  0x5c   :  { %734 = vperm.xlu1 %8930, %v74_v48   ;;  %108 = vperm.xlu0 %8931, %v76_v43   ;;  %v343_v48 = vsub.s32 5, %v9734_v45 }
  0x5d   :  { %1250 = vmatmul.mubr.f32.gmra.mrb[2].mxu1 %v12163_v0 }
  0x5e   :  { %7703 = vmatpush1.bf16.msra.mxu1 %v9698_v7  ;;  %1320 = vmatprep.mubr.f32.mxu1 %v12163_v0  ;;  %v344_v57 = vrot.slane %v89_v49, %v343_v48 }
  0x5f   :  { %7705 = vmatprep.subr.bf16.mxu1 %v9702_v8 }
  0x60   :  { %8932 = vset.pattern.permute.xlu1 %v12167_v54  ;;  %8935 = vset.pattern.permute.xlu0 %v12169_v61  ;;  %v9770_v4 = vrot.slane %v344_v57, %v9747_v51 }
  0x61   :  { %282 = vperm.xlu1 %8932, %v75_v42   ;;  %738 = vperm.xlu0 %8935, %v75_v42  }
  0x62   :  { %7707 = vmatpush1.bf16.msra.mxu1 %v7706_v13  ;;  %12322 = vst [vmem:[#allocation16_spill] sm:$0xff] %v9770_v4 }
  0x63   :  { %7709 = vmatprep.subr.bf16.mxu1 %v7708_v14 }
  0x65   :  { %8933 = vset.pattern.permute.xlu1 %v12171_v1  ;;  %8938 = vset.pattern.permute.xlu0 %v12165_v2 }
  0x66   :  { %7711 = vmatpush1.bf16.msra.mxu1 %v7710_v19  ;;  %510 = vperm.xlu1 %8933, %v75_v42  }
  0x67   :  { %7713 = vmatprep.subr.bf16.mxu1 %v7712_v20 }
  0x6a   :  { %7715 = vmatpush1.bf16.msra.mxu1 %v7714_v25  ;;  %8934 = vset.pattern.permute.xlu1 %v12167_v54 }
  0x6b   :  { %7717 = vmatprep.subr.bf16.mxu1 %v7716_v26  ;;  %286 = vperm.xlu1 %8934, %v76_v43  }
  0x6e   :  { %7719 = vmatpush1.bf16.msra.mxu1 %v7718_v31 }
  0x6f   :  { %7721 = vmatprep.subr.bf16.mxu1 %v7720_v32  ;;  %8936 = vset.pattern.permute.xlu1 %v12171_v1  ;;  %v1737_v1 = vld [vmem:[#allocation4 + $0x198] sm:$0xff] }
  0x70   :  { %514 = vperm.xlu1 %8936, %v76_v43  }
  0x72   :  { %7723 = vmatpush1.bf16.msra.mxu1 %v7722_v37 }
  0x73   :  { %7725 = vmatprep.subr.bf16.mxu1 %v7724_v38 }
  0x74   :  { %8937 = vset.pattern.permute.xlu1 %v12169_v61  ;;  %v1739_v61 = vld [vmem:[#allocation4 + $0x1a8] sm:$0xff] }
  0x75   :  { %742 = vperm.xlu1 %8937, %v76_v43  }
  0x76   :  { %7727 = vmatpush1.bf16.msra.mxu1 %v7726_v41 }
  0x77   :  { %7761 = vmatprep.subr.bf16.mxu1 %v9687_v56  ;;  %v571_v56 = vsub.s32 6, %v9734_v45 }
  0x79   :  { %1321 = vmatmul.mubr.f32.vlgmr.msra.gmra.mrb[4].mxu1 %v12163_v0  ;;  %8939 = vset.pattern.permute.xlu1 %v12167_v54  ;;  %v572_v3 = vrot.slane %v89_v49, %v571_v56  ;;  %v1735_v54 = vld [vmem:[#allocation4 + $0x188] sm:$0xff] }
  0x7a   :  { %1326 = vmatprep.mubr.f32.mxu1 %v12163_v0  ;;  %7763 = vmatpush1.bf16.msra.mxu1 %v9691_v62  ;;  %v799_v62 = vsub.s32 7, %v9734_v45  ;;  %v1743_v45 = vld [vmem:[#allocation4 + $0x1c8] sm:$0xff] }
  0x7b   :  { %7765 = vmatprep.subr.bf16.mxu1 %v9694_v63  ;;  %v9765_v63 = vrot.slane %v180_v55, %v9744_v50 }
  0x7c   :  { %v800_v11 = vrot.slane %v89_v49, %v799_v62 }
  0x7d   :  { %1327 = vmatmul.mubr.f32.gmra.mrb[6].mxu1 %v12163_v0  ;;  %12321 = vst [vmem:[#allocation15_spill] sm:$0xff] %v9765_v63 }
  0x7e   :  { %7767 = vmatpush1.bf16.msra.mxu1 %v9698_v7  ;;  %1605 = vmatprep.mubr.f32.mxu1 %v12163_v0  ;;  %v568_v7 = vrot.slane %v89_v49, %v9760_v59  ;;  %v9808_v21 = vrot.slane %v800_v11, %v9784_v10  ;;  %v9844_v49 = vrot.slane %v9838_v40, %v9747_v51  ;;  %v90_v11 = vld [vmem:[%s12154_s1 + $0x8] sm:$0xff] }
  0x7f   :  { %7769 = vmatprep.subr.bf16.mxu1 %v9702_v8  ;;  %v9779_v8 = vrot.slane %v340_v60, %v9747_v51  ;;  %v9850_v60 = vrot.slane %v9838_v40, %v9744_v50 }
  0x80   :  { %v9798_v16 = vrot.slane %v568_v7, %v9760_v59 }
  0x81   :  { %12324 = vst [vmem:[#allocation18_spill] sm:$0xff] %v9779_v8 }
  0x82   :  { %7771 = vmatpush1.bf16.msra.mxu1 %v7706_v13  ;;  %v9791_v13 = vrot.slane %v572_v3, %v9760_v59  ;;  %12327 = vst [vmem:[#allocation21_spill] sm:$0xff] %v9798_v16 }
  0x83   :  { %7773 = vmatprep.subr.bf16.mxu1 %v7708_v14 }
  0x84   :  { %12326 = vst [vmem:[#allocation20_spill] sm:$0xff] %v9791_v13 }
  0x86   :  { %7775 = vmatpush1.bf16.msra.mxu1 %v7710_v19 }
  0x87   :  { %7777 = vmatprep.subr.bf16.mxu1 %v7712_v20 }
  0x8a   :  { %7779 = vmatpush1.bf16.msra.mxu1 %v7714_v25 }
  0x8b   :  { %7781 = vmatprep.subr.bf16.mxu1 %v7716_v26 }
  0x8e   :  { %7783 = vmatpush1.bf16.msra.mxu1 %v7718_v31 }
  0x8f   :  { %7785 = vmatprep.subr.bf16.mxu1 %v7720_v32 }
  0x92   :  { %7787 = vmatpush1.bf16.msra.mxu1 %v7722_v37 }
  0x93   :  { %7789 = vmatprep.subr.bf16.mxu1 %v7724_v38 }
  0x96   :  { %7791 = vmatpush1.bf16.msra.mxu1 %v7726_v41 }
  0xc4   :  { %v9736_v46 = vpop.permute.xlu1 %502  ;;  %v9751_v53 = vpop.permute.xlu0 %93 }
  0xc5   :  { %v210_v12 = vmul.f32 %v9765_v63, %v9751_v53  ;;  %v209_v15 = vmul.f32 %v9775_v6, %v9751_v53  ;;  %v602_v23 = vmul.f32 %v9791_v13, %v9736_v46  ;;  %v601_v27 = vmul.f32 %v9798_v16, %v9736_v46 }
  0xcb   :  { %v9749_v52 = vpop.permute.xlu1 %98  ;;  %v9781_v9 = vpop.permute.xlu0 %274 }
  0xcc   :  { %v374_v14 = vmul.f32 %v9770_v4, %v9781_v9  ;;  %v373_v17 = vmul.f32 %v9779_v8, %v9781_v9  ;;  %v213_v20 = vmul.f32 %v9775_v6, %v9749_v52  ;;  %v214_v25 = vmul.f32 %v9765_v63, %v9749_v52 }
  0xce   :  { %v438_v24 = vadd.f32 %v374_v14, %v210_v12  ;;  %v437_v28 = vadd.f32 %v373_v17, %v209_v15 }
  0xd0   :  { %v9772_v5 = vpop.permute.xlu1 %278  ;;  %v9823_v30 = vpop.permute.xlu0 %730  ;;  %v666_v35 = vadd.f32 %v602_v23, %v438_v24  ;;  %v665_v39 = vadd.f32 %v601_v27, %v437_v28  ;;  %v188_v24 = vrot.slane %v90_v11, %v179_v47 }
  0xd1   :  { %v377_v22 = vmul.f32 %v9779_v8, %v9772_v5  ;;  %v378_v26 = vmul.f32 %v9770_v4, %v9772_v5  ;;  %v830_v33 = vmul.f32 %v9808_v21, %v9823_v30  ;;  %v829_v38 = vmul.f32 %v9821_v29, %v9823_v30 }
  0xd2   :  { %v9875_v47 = vrot.slane %v188_v24, %v9744_v50 }
  0xd3   :  { %v441_v31 = vadd.f32 %v377_v22, %v213_v20  ;;  %v442_v34 = vadd.f32 %v378_v26, %v214_v25  ;;  %v894_v44 = vadd.f32 %v830_v33, %v666_v35  ;;  %v893_v58 = vadd.f32 %v829_v38, %v665_v39 }
  0xd4   :  { %v184_v20 = vrot.slane %v90_v11, %v9744_v50  ;;  %v348_v22 = vrot.slane %v90_v11, %v9747_v51  ;;  %v352_v25 = vrot.slane %v90_v11, %v343_v48  ;;  %12328 = vst [vmem:[#allocation22_spill] sm:$0xff] %v9875_v47 }
  0xd5   :  { %v9803_v19 = vpop.permute.xlu1 %506  ;;  %v980_v12 = vadd.f32 %v9844_v49, %v894_v44  ;;  %v979_v17 = vadd.f32 %v9850_v60, %v893_v58  ;;  %v212_v58 = vmul.f32 %v9875_v47, %v9751_v53 }
  0xd6   :  { %v605_v32 = vmul.f32 %v9798_v16, %v9803_v19  ;;  %v606_v36 = vmul.f32 %v9791_v13, %v9803_v19  ;;  %v9869_v33 = vrot.slane %v184_v20, %v9744_v50  ;;  %v9878_v48 = vrot.slane %v352_v25, %v9747_v51 }
  0xd8   :  { %v669_v42 = vadd.f32 %v605_v32, %v441_v31  ;;  %v670_v57 = vadd.f32 %v606_v36, %v442_v34  ;;  %v576_v31 = vrot.slane %v90_v11, %v9760_v59  ;;  %v580_v32 = vrot.slane %v90_v11, %v571_v56  ;;  %12329 = vst [vmem:[#allocation23_spill] sm:$0xff] %v9878_v48 }
  0xd9   :  { %v9872_v34 = vrot.slane %v348_v22, %v9747_v51  ;;  %v211_v44 = vmul.f32 %v9869_v33, %v9751_v53  ;;  %v215_v53 = vmul.f32 %v9869_v33, %v9749_v52  ;;  %v1745_v51 = vld [vmem:[#allocation4 + $0x1d8] sm:$0xff] }
  0xda   :  { %v9884_v56 = vrot.slane %v580_v32, %v9760_v59 }
  0xdb   :  { %v9831_v37 = vpop.permute.xlu1 %734 }
  0xdc   :  { %v833_v41 = vmul.f32 %v9821_v29, %v9831_v37  ;;  %v834_v55 = vmul.f32 %v9808_v21, %v9831_v37 }
  0xde   :  { %v897_v7 = vadd.f32 %v833_v41, %v669_v42  ;;  %v898_v15 = vadd.f32 %v834_v55, %v670_v57  ;;  %v9881_v41 = vrot.slane %v576_v31, %v9760_v59  ;;  %v804_v42 = vrot.slane %v90_v11, %v9784_v10 }
  0xdf   :  { %v375_v55 = vmul.f32 %v9872_v34, %v9781_v9 }
  0xe0   :  { %v983_v23 = vadd.f32 %v9850_v60, %v897_v7  ;;  %v984_v27 = vadd.f32 %v9844_v49, %v898_v15 }
  0xe1   :  { %v439_v15 = vadd.f32 %v375_v55, %v211_v44 }
 0x12c   :  { %v1245_v43 = vpop.f32.mrb[0].mxu1 }
 0x12d   :  { %v1247_v3 = vpop.f32.mrb[1].mxu1  ;;  %v1333_v28 = vadd.f32 %v1245_v43, %v979_v17  ;;  %v808_v43 = vrot.slane %v90_v11, %v799_v62  ;;  %v604_v62 = vmul.f32 %v9884_v56, %v9736_v46  ;;  %v9902_v11 = vrot.slane %v804_v42, %v9784_v10 }
 0x12e   :  { %v1334_v26 = vadd.f32 %v1247_v3, %v980_v12  ;;  %v376_v3 = vmul.f32 %v9878_v48, %v9781_v9  ;;  %v603_v12 = vmul.f32 %v9881_v41, %v9736_v46  ;;  %v379_v9 = vmul.f32 %v9872_v34, %v9772_v5 }
 0x12f   :  { %v7415_v39 = vmul.f32 -1.442695, %v1333_v28  ;;  %v380_v46 = vmul.f32 %v9878_v48, %v9772_v5  ;;  %v831_v20 = vmul.f32 %v9902_v11, %v9823_v30  ;;  %v835_v5 = vmul.f32 %v9902_v11, %v9831_v37 }
 0x130   :  { %v1251_v14 = vpop.f32.mrb[2].mxu1  ;;  %v7417_v36 = vmul.f32 -1.442695, %v1334_v26  ;;  %v440_v17 = vadd.f32 %v376_v3, %v212_v58  ;;  %v443_v22 = vadd.f32 %v379_v9, %v215_v53  ;;  %v667_v24 = vadd.f32 %v603_v12, %v439_v15 }
 0x131   :  { %v1253_v18 = vpop.f32.mrb[3].mxu1  ;;  %v1337_v35 = vadd.f32 %v1251_v14, %v983_v23  ;;  %v9905_v14 = vrot.slane %v808_v43, %v9784_v10  ;;  %v607_v23 = vmul.f32 %v9881_v41, %v9803_v19 }
 0x132   :  { %v1338_v38 = vadd.f32 %v1253_v18, %v984_v27  ;;  %8980 = vpow2.f32 %v7417_v36  ;;  %v216_v18 = vmul.f32 %v9875_v47, %v9749_v52  ;;  %v608_v27 = vmul.f32 %v9884_v56, %v9803_v19 }
 0x133   :  { %v7416_v57 = vmul.f32 -1.442695, %v1337_v35  ;;  %8982 = vpow2.f32 %v7415_v39  ;;  %v832_v25 = vmul.f32 %v9905_v14, %v9823_v30  ;;  %v668_v52 = vadd.f32 %v604_v62, %v440_v17 }
 0x134   :  { %v7418_v7 = vmul.f32 -1.442695, %v1338_v38  ;;  %v444_v26 = vadd.f32 %v380_v46, %v216_v18  ;;  %v895_v32 = vadd.f32 %v831_v20, %v667_v24  ;;  %v9927_v35 = vrot.slane %v9838_v40, %v9760_v59 }
 0x135   :  { %8984 = vpow2.f32 %v7416_v57  ;;  %v671_v36 = vadd.f32 %v607_v23, %v443_v22  ;;  %v836_v38 = vmul.f32 %v9905_v14, %v9831_v37  ;;  %v896_v30 = vadd.f32 %v832_v25, %v668_v52 }
 0x136   :  { %8986 = vpow2.f32 %v7418_v7  ;;  %v9933_v39 = vrot.slane %v9838_v40, %v9784_v10  ;;  %v672_v19 = vadd.f32 %v608_v27, %v444_v26  ;;  %v981_v57 = vadd.f32 %v9927_v35, %v895_v32  ;;  %v1747_v10 = vld [vmem:[#allocation4 + $0x1e8] sm:$0xff] }
 0x137   :  { %v899_v58 = vadd.f32 %v835_v5, %v671_v36 }
 0x138   :  { %v982_v12 = vadd.f32 %v9933_v39, %v896_v30  ;;  %v900_v62 = vadd.f32 %v836_v38, %v672_v19 }
 0x139   :  { %v985_v9 = vadd.f32 %v9927_v35, %v899_v58 }
 0x13a   :  { %v986_v46 = vadd.f32 %v9933_v39, %v900_v62 }
 0x13c   :  { %v8981_v28 = vpop.eup %8980 }
 0x13d   :  { %v8983_v31 = vpop.eup %8982  ;;  %v1359_v43 = vadd.f32 1.0, %v8981_v28 }
 0x13e   :  { %v1347_v55 = vadd.f32 1.0, %v8983_v31 }
 0x13f   :  { %v8985_v42 = vpop.eup %8984  ;;  %8988 = vrcp.f32 %v1359_v43 }
 0x140   :  { %v8987_v44 = vpop.eup %8986  ;;  %v1348_v3 = vadd.f32 1.0, %v8985_v42  ;;  %8990 = vrcp.f32 %v1347_v55 }
 0x141   :  { %v1360_v37 = vadd.f32 1.0, %v8987_v44 }
 0x149   :  { %v8989_v25 = vpop.eup %8988 }
 0x14a   :  { %v8991_v26 = vpop.eup %8990  ;;  %v1379_v28 = vmul.f32 0.0, %v8989_v25  ;;  %v1695_v25 = vld [vmem:[#allocation4 + $0x48] sm:$0xff] }
 0x14c   :  { %v1322_v7 = vpop.f32.mrb[4].mxu1 }
 0x14d   :  { %v1335_v15 = vadd.f32 %v1322_v7, %v981_v57  ;;  %v1324_v53 = vpop.f32.mrb[5].mxu1 }
 0x14e   :  { %v1336_v40 = vadd.f32 %v1324_v53, %v982_v12  ;;  %v1689_v53 = vld [vmem:[#allocation4 + $0x18] sm:$0xff] }
 0x14f   :  { %8992 = vtanh.f32 %v1335_v15  ;;  %v1691_v15 = vld [vmem:[#allocation4 + $0x28] sm:$0xff] }
 0x150   :  { %8994 = vrcp.f32 %v1348_v3  ;;  %v7419_v17 = vmul.f32 -1.442695, %v1336_v40  ;;  %v1328_v18 = vpop.f32.mrb[6].mxu1 }
 0x151   :  { %8996 = vrcp.f32 %v1360_v37  ;;  %v1339_v20 = vadd.f32 %v1328_v18, %v985_v9  ;;  %v1330_v22 = vpop.f32.mrb[7].mxu1  ;;  %v1687_v37 = vld [vmem:[#allocation4 + $0x8] sm:$0xff]  ;;  %v1693_v9 = vld [vmem:[#allocation4 + $0x38] sm:$0xff]  ;;  %v1690_v18 = vld [vmem:[#allocation4 + $0x20] sm:$0xff] }
 0x152   :  { %8998 = vpow2.f32 %v7419_v17  ;;  %v1340_v23 = vadd.f32 %v1330_v22, %v986_v46  ;;  %v9957_v40 = vpack.c.bf16 %v1691_v15, %v1687_v37  ;;  %v1686_v17 = vld [vmem:[#allocation4] sm:$0xff]  ;;  %v9959_v46 = vpack.c.bf16 %v1693_v9, %v1689_v53  ;;  %v1688_v22 = vld [vmem:[#allocation4 + $0x10] sm:$0xff] }
 0x153   :  { %9000 = vtanh.f32 %v1339_v20  ;;  %v9961_v20 = vpack.c.bf16 %v1690_v18, %v1686_v17  ;;  %v1706_v37 = vld [vmem:[#allocation4 + $0xa0] sm:$0xff]  ;;  %v1704_v9 = vld [vmem:[#allocation4 + $0x90] sm:$0xff] }
 0x154   :  { %v7420_v24 = vmul.f32 -1.442695, %v1340_v23  ;;  %v1692_v23 = vld [vmem:[#allocation4 + $0x30] sm:$0xff]  ;;  %7793 = vmatprep.subr.bf16.mxu0 %v9957_v40  ;;  %7825 = vmatprep.subr.bf16.mxu1 %v9959_v46 }
 0x155   :  { %v1708_v17 = vld [vmem:[#allocation4 + $0xb0] sm:$0xff] }
 0x156   :  { %9002 = vpow2.f32 %v7420_v24  ;;  %v9964_v24 = vpack.c.bf16 %v1692_v23, %v1688_v22  ;;  %v9988_v18 = vpack.c.bf16 %v1708_v17, %v1704_v9  ;;  %v1711_v22 = vld [vmem:[#allocation4 + $0xc8] sm:$0xff]  ;;  %v1725_v9 = vld [vmem:[#allocation4 + $0x138] sm:$0xff]  ;;  %v1718_v17 = vld [vmem:[#allocation4 + $0x100] sm:$0xff] }
 0x157   :  { %v1715_v23 = vld [vmem:[#allocation4 + $0xe8] sm:$0xff] }
 0x159   :  { %v8993_v27 = vpop.eup %8992 }
 0x15a   :  { %v8995_v52 = vpop.eup %8994  ;;  %v1381_v31 = vmul.f32 %v8993_v27, %v8991_v26  ;;  %v1699_v26 = vld [vmem:[#allocation4 + $0x68] sm:$0xff]  ;;  %v1697_v27 = vld [vmem:[#allocation4 + $0x58] sm:$0xff] }
 0x15b   :  { %v8997_v5 = vpop.eup %8996 }
 0x15c   :  { %v8999_v32 = vpop.eup %8998  ;;  %v9939_v36 = vadd.f32 %v1381_v31, %v1379_v28  ;;  %v1380_v19 = vmul.f32 0.0, %v8997_v5  ;;  %v1701_v28 = vld [vmem:[#allocation4 + $0x78] sm:$0xff]  ;;  %v1694_v31 = vld [vmem:[#allocation4 + $0x40] sm:$0xff] }
 0x15d   :  { %v9001_v38 = vpop.eup %9000  ;;  %v1373_v30 = vadd.f32 1.0, %v8999_v32  ;;  %v1698_v5 = vld [vmem:[#allocation4 + $0x60] sm:$0xff]  ;;  %v9971_v32 = vpack.c.bf16 %v1701_v28, %v1697_v27  ;;  %v1717_v27 = vld [vmem:[#allocation4 + $0xf8] sm:$0xff] }
 0x15e   :  { %9004 = vtanh.f32 %v9939_v36  ;;  %v1382_v42 = vmul.f32 %v9001_v38, %v8995_v52  ;;  %v9969_v52 = vpack.c.bf16 %v1699_v26, %v1695_v25  ;;  %v9973_v38 = vpack.c.bf16 %v1698_v5, %v1694_v31  ;;  %v1713_v25 = vld [vmem:[#allocation4 + $0xd8] sm:$0xff]  ;;  %v1710_v28 = vld [vmem:[#allocation4 + $0xc0] sm:$0xff] }
 0x15f   :  { %9006 = vrcp.f32 %v1373_v30  ;;  %v1696_v30 = vld [vmem:[#allocation4 + $0x50] sm:$0xff]  ;;  %v9993_v26 = vpack.c.bf16 %v1715_v23, %v1711_v22  ;;  %v1714_v31 = vld [vmem:[#allocation4 + $0xe0] sm:$0xff]  ;;  %v9995_v5 = vpack.c.bf16 %v1717_v27, %v1713_v25 }
 0x160   :  { %v9003_v43 = vpop.eup %9002  ;;  %v9942_v44 = vadd.f32 %v1382_v42, %v1380_v19  ;;  %v1700_v19 = vld [vmem:[#allocation4 + $0x70] sm:$0xff]  ;;  %v1722_v22 = vld [vmem:[#allocation4 + $0x120] sm:$0xff] }
 0x161   :  { %v1374_v55 = vadd.f32 1.0, %v9003_v43  ;;  %v9976_v42 = vpack.c.bf16 %v1700_v19, %v1696_v30  ;;  %v1703_v43 = vld [vmem:[#allocation4 + $0x88] sm:$0xff]  ;;  %v9997_v30 = vpack.c.bf16 %v1714_v31, %v1710_v28  ;;  %v1712_v19 = vld [vmem:[#allocation4 + $0xd0] sm:$0xff]  ;;  %v10009_v25 = vpack.c.bf16 %v1722_v22, %v1718_v17  ;;  %v1730_v17 = vld [vmem:[#allocation4 + $0x160] sm:$0xff] }
 0x162   :  { %9008 = vtanh.f32 %v9942_v44  ;;  %v1720_v27 = vld [vmem:[#allocation4 + $0x110] sm:$0xff] }
 0x163   :  { %9010 = vrcp.f32 %v1374_v55  ;;  %v1707_v55 = vld [vmem:[#allocation4 + $0xa8] sm:$0xff]  ;;  %12332 = vst [vmem:[#allocation26_spill] sm:$0xff] %v10009_v25  ;;  %v1724_v28 = vld [vmem:[#allocation4 + $0x130] sm:$0xff] }
 0x164   :  { %v10012_v31 = vpack.c.bf16 %v1724_v28, %v1720_v27  ;;  %v1728_v27 = vld [vmem:[#allocation4 + $0x150] sm:$0xff] }
 0x165   :  { %v1732_v28 = vld [vmem:[#allocation4 + $0x170] sm:$0xff] }
 0x166   :  { %12333 = vst [vmem:[#allocation27_spill] sm:$0xff] %v10012_v31  ;;  %v10024_v2 = vpack.c.bf16 %v1732_v28, %v1728_v27  ;;  %v1736_v27 = vld [vmem:[#allocation4 + $0x190] sm:$0xff] }
 0x167   :  { %v1740_v28 = vld [vmem:[#allocation4 + $0x1b0] sm:$0xff] }
 0x168   :  { %v9005_v57 = vpop.eup %9004  ;;  %12337 = vst [vmem:[#allocation31_spill] sm:$0xff] %v10024_v2  ;;  %v10036_v59 = vpack.c.bf16 %v1740_v28, %v1736_v27  ;;  %v12348_v28 = vmov 1  }
 0x169   :  { %v9007_v58 = vpop.eup %9006 }
 0x16a   :  { %v9945_v3 = vmul.f32 %v9007_v58, %v9005_v57  ;;  %v1705_v57 = vld [vmem:[#allocation4 + $0x98] sm:$0xff]  ;;  %v9981_v58 = vpack.c.bf16 %v1707_v55, %v1703_v43  ;;  %v1716_v43 = vld [vmem:[#allocation4 + $0xf0] sm:$0xff]  ;;  %12341 = vst [vmem:[#allocation35_spill] sm:$0xff] %v10036_v59 }
 0x16b   :  { %v10000_v55 = vpack.c.bf16 %v1716_v43, %v1712_v19  ;;  %v1727_v19 = vld [vmem:[#allocation4 + $0x148] sm:$0xff] }
 0x16c   :  { %12330 = vst [vmem:[#allocation24_spill] sm:$0xff] %v9945_v3  ;;  %v9009_v7 = vpop.eup %9008  ;;  %1529 = vmatmul.mubr.f32.vlgmr.msra.gmra.mrb[0].mxu0 %v9945_v3  ;;  %1606 = vmatmul.mubr.f32.vlgmr.msra.gmra.mrb[8].mxu1 %v9945_v3  ;;  %v1731_v43 = vld [vmem:[#allocation4 + $0x168] sm:$0xff] }
 0x16d   :  { %v9011_v12 = vpop.eup %9010  ;;  %1534 = vmatprep.mubr.f32.mxu0 %v12163_v0  ;;  %1611 = vmatprep.mubr.f32.mxu1 %v12163_v0 }
 0x16e   :  { %v9951_v62 = vmul.f32 %v9011_v12, %v9009_v7  ;;  %7795 = vmatpush1.bf16.msra.mxu0 %v9961_v20  ;;  %7827 = vmatpush1.bf16.msra.mxu1 %v9964_v24  ;;  %v1709_v7 = vld [vmem:[#allocation4 + $0xb8] sm:$0xff]  ;;  %v1702_v12 = vld [vmem:[#allocation4 + $0x80] sm:$0xff] }
 0x16f   :  { %7797 = vmatprep.subr.bf16.mxu0 %v9969_v52  ;;  %7829 = vmatprep.subr.bf16.mxu1 %v9971_v32  ;;  %v9983_v15 = vpack.c.bf16 %v1709_v7, %v1705_v57  ;;  %v9985_v53 = vpack.c.bf16 %v1706_v37, %v1702_v12  ;;  %v1719_v57 = vld [vmem:[#allocation4 + $0x108] sm:$0xff]  ;;  %v1721_v12 = vld [vmem:[#allocation4 + $0x118] sm:$0xff] }
 0x170   :  { %12331 = vst [vmem:[#allocation25_spill] sm:$0xff] %v9951_v62  ;;  %1535 = vmatmul.mubr.f32.gmra.mrb[2].mxu0 %v9951_v62  ;;  %1612 = vmatmul.mubr.f32.gmra.mrb[10].mxu1 %v9951_v62  ;;  %v1723_v7 = vld [vmem:[#allocation4 + $0x128] sm:$0xff]  ;;  %v10007_v23 = vpack.c.bf16 %v1725_v9, %v1721_v12  ;;  %v1733_v12 = vld [vmem:[#allocation4 + $0x178] sm:$0xff]  ;;  %v1726_v9 = vld [vmem:[#allocation4 + $0x140] sm:$0xff] }
 0x171   :  { %1814 = vmatprep.mubr.f32.mxu0 %v12163_v0  ;;  %1891 = vmatprep.mubr.f32.mxu1 %v12163_v0  ;;  %v10005_v37 = vpack.c.bf16 %v1723_v7, %v1719_v57  ;;  %v1729_v57 = vld [vmem:[#allocation4 + $0x158] sm:$0xff]  ;;  %v10017_v7 = vpack.c.bf16 %v1731_v43, %v1727_v19  ;;  %v10021_v0 = vpack.c.bf16 %v1730_v17, %v1726_v9  ;;  %v1748_v62 = vld [vmem:[#allocation4 + $0x1f0] sm:$0xff] }
 0x172   :  { %7799 = vmatpush1.bf16.msra.mxu0 %v9973_v38  ;;  %7831 = vmatpush1.bf16.msra.mxu1 %v9976_v42  ;;  %v10019_v22 = vpack.c.bf16 %v1733_v12, %v1729_v57  ;;  %v10028_v19 = vpack.c.bf16 %v1739_v61, %v1735_v54  ;;  %v1741_v43 = vld [vmem:[#allocation4 + $0x1b8] sm:$0xff]  ;;  %v1734_v57 = vld [vmem:[#allocation4 + $0x180] sm:$0xff]  ;;  %v10039_v61 = vpack.c.bf16 %v1747_v10, %v1743_v45  ;;  %v12346_v10 = vmov 2  }
 0x173   :  { %7801 = vmatprep.subr.bf16.mxu0 %v9981_v58  ;;  %7833 = vmatprep.subr.bf16.mxu1 %v9983_v15  ;;  %12334 = vst [vmem:[#allocation28_spill] sm:$0xff] %v10017_v7  ;;  %12336 = vst [vmem:[#allocation30_spill] sm:$0xff] %v10021_v0  ;;  %v1738_v12 = vld [vmem:[#allocation4 + $0x1a0] sm:$0xff]  ;;  %v10031_v9 = vpack.c.bf16 %v1741_v43, %v1737_v1  ;;  %v1749_v54 = vld [vmem:[#allocation4 + $0x1f8] sm:$0xff] }
 0x174   :  { %12335 = vst [vmem:[#allocation29_spill] sm:$0xff] %v10019_v22  ;;  %12338 = vst [vmem:[#allocation32_spill] sm:$0xff] %v10028_v19  ;;  %v10033_v17 = vpack.c.bf16 %v1738_v12, %v1734_v57  ;;  %v10041_v50 = vpack.c.bf16 %v1749_v54, %v1745_v51  ;;  %v1742_v1 = vld [vmem:[#allocation4 + $0x1c0] sm:$0xff]  ;;  %v1744_v57 = vld [vmem:[#allocation4 + $0x1d0] sm:$0xff] }
 0x175   :  { %12339 = vst [vmem:[#allocation33_spill] sm:$0xff] %v10031_v9  ;;  %12342 = vst [vmem:[#allocation36_spill] sm:$0xff] %v10039_v61  ;;  %v1746_v43 = vld [vmem:[#allocation4 + $0x1e0] sm:$0xff]  ;;  %v10048_v27 = vpack.c.bf16 %v1748_v62, %v1744_v57  ;;  %v78_v51 = vld [vmem:[%s12153_s0 + $0x28] sm:$0xff]  ;;  %v12347_v62 = vmov 3  }
 0x176   :  { %7803 = vmatpush1.bf16.msra.mxu0 %v9985_v53  ;;  %7835 = vmatpush1.bf16.msra.mxu1 %v9988_v18  ;;  %12340 = vst [vmem:[#allocation34_spill] sm:$0xff] %v10033_v17  ;;  %12343 = vst [vmem:[#allocation37_spill] sm:$0xff] %v10041_v50  ;;  %v10044_v12 = vpack.c.bf16 %v1746_v43, %v1742_v1  ;;  %v77_v45 = vld [vmem:[%s12153_s0 + $0x20] sm:$0xff]  ;;  %v104_v1 = vpop.permute.xlu0 %103 }
 0x177   :  { %7805 = vmatprep.subr.bf16.mxu0 %v9993_v26  ;;  %7837 = vmatprep.subr.bf16.mxu1 %v9995_v5  ;;  %12345 = vst [vmem:[#allocation39_spill] sm:$0xff] %v10048_v27 }
 0x178   :  { %12344 = vst [vmem:[#allocation38_spill] sm:$0xff] %v10044_v12  ;;  %290 = vperm.xlu1 %8939, %v77_v45   ;;  %113 = vperm.xlu0 %8938, %v77_v45  }
 0x17a   :  { %7807 = vmatpush1.bf16.msra.mxu0 %v9997_v30  ;;  %7839 = vmatpush1.bf16.msra.mxu1 %v10000_v55  ;;  %v109_v57 = vpop.permute.xlu0 %108 }
 0x17b   :  { %7809 = vmatprep.subr.bf16.mxu0 %v10005_v37  ;;  %7841 = vmatprep.subr.bf16.mxu1 %v10007_v23 }
 0x17c   :  { %8940 = vset.pattern.permute.xlu1 %v12346_v10  ;;  %118 = vperm.xlu0 %8938, %v78_v51  }
 0x17d   :  { %518 = vperm.xlu1 %8940, %v77_v45  }
 0x17e   :  { %7811 = vmatpush1.bf16.msra.mxu0 %v10009_v25  ;;  %7843 = vmatpush1.bf16.msra.mxu1 %v10012_v31  ;;  %v224_v25 = vmul.f32 %v9875_v47, %v109_v57 }
 0x17f   :  { %7813 = vmatprep.subr.bf16.mxu0 %v10017_v7  ;;  %7845 = vmatprep.subr.bf16.mxu1 %v10019_v22 }
 0x180   :  { %8942 = vset.pattern.permute.xlu0 %v12347_v62 }
 0x181   :  { %8941 = vset.pattern.permute.xlu1 %v12348_v28  ;;  %746 = vperm.xlu0 %8942, %v77_v45   ;;  %v217_v45 = vmul.f32 %v9775_v6, %v104_v1 }
 0x182   :  { %7815 = vmatpush1.bf16.msra.mxu0 %v10021_v0  ;;  %7847 = vmatpush1.bf16.msra.mxu1 %v10024_v2  ;;  %v220_v2 = vmul.f32 %v9875_v47, %v104_v1 }
 0x183   :  { %7817 = vmatprep.subr.bf16.mxu0 %v10028_v19  ;;  %7849 = vmatprep.subr.bf16.mxu1 %v10031_v9  ;;  %v739_v9 = vpop.permute.xlu0 %738 }
 0x184   :  { %294 = vperm.xlu1 %8941, %v78_v51  }
 0x186   :  { %7819 = vmatpush1.bf16.msra.mxu0 %v10033_v17  ;;  %7851 = vmatpush1.bf16.msra.mxu1 %v10036_v59  ;;  %v222_v59 = vmul.f32 %v9765_v63, %v109_v57 }
 0x187   :  { %7821 = vmatprep.subr.bf16.mxu0 %v10039_v61  ;;  %7853 = vmatprep.subr.bf16.mxu1 %v10041_v50 }
 0x188   :  { %8943 = vset.pattern.permute.xlu1 %v12346_v10 }
 0x189   :  { %522 = vperm.xlu1 %8943, %v78_v51  }
 0x18a   :  { %7823 = vmatpush1.bf16.msra.mxu0 %v10044_v12  ;;  %7855 = vmatpush1.bf16.msra.mxu1 %v10048_v27 }
 0x18b   :  { %7857 = vmatprep.subr.bf16.mxu0 %v9957_v40  ;;  %7889 = vmatprep.subr.bf16.mxu1 %v9959_v46  ;;  %v12349_v40 = vmov 0   ;;  %v283_v46 = vpop.permute.xlu1 %282 }
 0x18c   :  { %8945 = vset.pattern.permute.xlu0 %v12349_v40  ;;  %v381_v3 = vmul.f32 %v9779_v8, %v283_v46  ;;  %v382_v27 = vmul.f32 %v9770_v4, %v283_v46  ;;  %v218_v40 = vmul.f32 %v9765_v63, %v104_v1  ;;  %v384_v19 = vmul.f32 %v9878_v48, %v283_v46 }
 0x18d   :  { %8944 = vset.pattern.permute.xlu1 %v12347_v62 }
 0x18e   :  { %750 = vperm.xlu1 %8944, %v78_v51   ;;  %v445_v12 = vadd.f32 %v381_v3, %v217_v45  ;;  %v221_v51 = vmul.f32 %v9775_v6, %v109_v57  ;;  %v446_v50 = vadd.f32 %v382_v27, %v218_v40  ;;  %v837_v3 = vmul.f32 %v9821_v29, %v739_v9 }
 0x18f   :  { %v511_v54 = vpop.permute.xlu1 %510  ;;  %v838_v27 = vmul.f32 %v9808_v21, %v739_v9  ;;  %v448_v7 = vadd.f32 %v384_v19, %v220_v2 }
 0x190   :  { %v609_v62 = vmul.f32 %v9798_v16, %v511_v54  ;;  %v610_v61 = vmul.f32 %v9791_v13, %v511_v54  ;;  %v612_v31 = vmul.f32 %v9884_v56, %v511_v54 }
 0x192   :  { %8946 = vset.pattern.permute.xlu1 %v12348_v28  ;;  %v673_v6 = vadd.f32 %v609_v62, %v445_v12  ;;  %v674_v63 = vadd.f32 %v610_v61, %v446_v50  ;;  %v223_v50 = vmul.f32 %v9869_v33, %v109_v57  ;;  %v840_v61 = vmul.f32 %v9905_v14, %v739_v9 }
 0x193   :  { %v287_v43 = vpop.permute.xlu1 %286  ;;  %v676_v47 = vadd.f32 %v612_v31, %v448_v7 }
 0x194   :  { %v385_v28 = vmul.f32 %v9779_v8, %v287_v43  ;;  %v386_v17 = vmul.f32 %v9770_v4, %v287_v43  ;;  %v383_v4 = vmul.f32 %v9872_v34, %v283_v46  ;;  %v387_v2 = vmul.f32 %v9872_v34, %v287_v43 }
 0x196   :  { %v449_v0 = vadd.f32 %v385_v28, %v221_v51  ;;  %v450_v22 = vadd.f32 %v386_v17, %v222_v59  ;;  %v388_v28 = vmul.f32 %v9878_v48, %v287_v43  ;;  %v219_v51 = vmul.f32 %v9869_v33, %v104_v1 }
 0x197   :  { %v515_v10 = vpop.permute.xlu1 %514  ;;  %v901_v59 = vadd.f32 %v837_v3, %v673_v6  ;;  %v611_v1 = vmul.f32 %v9881_v41, %v511_v54  ;;  %v451_v57 = vadd.f32 %v387_v2, %v223_v50  ;;  %v839_v43 = vmul.f32 %v9902_v11, %v739_v9 }
 0x198   :  { %v613_v45 = vmul.f32 %v9798_v16, %v515_v10  ;;  %v614_v40 = vmul.f32 %v9791_v13, %v515_v10  ;;  %v902_v13 = vadd.f32 %v838_v27, %v674_v63  ;;  %v452_v19 = vadd.f32 %v388_v28, %v224_v25 }
 0x199   :  { %v616_v46 = vmul.f32 %v9884_v56, %v515_v10  ;;  %v447_v48 = vadd.f32 %v383_v4, %v219_v51  ;;  %v987_v6 = vadd.f32 %v9850_v60, %v901_v59  ;;  %v904_v4 = vadd.f32 %v840_v61, %v676_v47 }
 0x19a   :  { %v677_v17 = vadd.f32 %v613_v45, %v449_v0  ;;  %v678_v16 = vadd.f32 %v614_v40, %v450_v22  ;;  %v988_v63 = vadd.f32 %v9844_v49, %v902_v13  ;;  %v615_v54 = vmul.f32 %v9881_v41, %v515_v10 }
 0x19b   :  { %v743_v8 = vpop.permute.xlu1 %742  ;;  %v680_v7 = vadd.f32 %v616_v46, %v452_v19 }
 0x19c   :  { %v841_v12 = vmul.f32 %v9821_v29, %v743_v8  ;;  %v842_v62 = vmul.f32 %v9808_v21, %v743_v8  ;;  %v844_v28 = vmul.f32 %v9905_v14, %v743_v8  ;;  %v843_v10 = vmul.f32 %v9902_v11, %v743_v8 }
 0x19d   :  { %v679_v46 = vadd.f32 %v615_v54, %v451_v57 }
 0x19e   :  { %v905_v0 = vadd.f32 %v841_v12, %v677_v17  ;;  %v906_v22 = vadd.f32 %v842_v62, %v678_v16  ;;  %v675_v12 = vadd.f32 %v611_v1, %v447_v48  ;;  %v908_v19 = vadd.f32 %v844_v28, %v680_v7 }
 0x1a0   :  { %v991_v59 = vadd.f32 %v9850_v60, %v905_v0  ;;  %v992_v62 = vadd.f32 %v9844_v49, %v906_v22  ;;  %v903_v61 = vadd.f32 %v839_v43, %v675_v12  ;;  %v907_v22 = vadd.f32 %v843_v10, %v679_v46 }
 0x1a2   :  { %v993_v28 = vadd.f32 %v9927_v35, %v907_v22 }
 0x23f   :  { %v1530_v3 = vpop.f32.mrb[0].mxu0  ;;  %v1607_v45 = vpop.f32.mrb[8].mxu1 }
 0x240   :  { %v1618_v25 = vadd.f32 %v1530_v3, %v987_v6  ;;  %v1532_v27 = vpop.f32.mrb[1].mxu0  ;;  %v1609_v40 = vpop.f32.mrb[9].mxu1  ;;  %v990_v6 = vadd.f32 %v9933_v39, %v904_v4  ;;  %v994_v3 = vadd.f32 %v9933_v39, %v908_v19 }
 0x241   :  { %v1619_v31 = vadd.f32 %v1532_v27, %v988_v63  ;;  %v989_v63 = vadd.f32 %v9927_v35, %v903_v61 }
 0x242   :  { %v7421_v51 = vmul.f32 -1.442695, %v1618_v25  ;;  %v1621_v1 = vadd.f32 %v1609_v40, %v990_v6 }
 0x243   :  { %v7423_v17 = vmul.f32 -1.442695, %v1619_v31  ;;  %v1536_v13 = vpop.f32.mrb[2].mxu0  ;;  %v1613_v16 = vpop.f32.mrb[10].mxu1  ;;  %v1620_v31 = vadd.f32 %v1607_v45, %v989_v63 }
 0x244   :  { %9012 = vpow2.f32 %v7421_v51  ;;  %v1622_v9 = vadd.f32 %v1536_v13, %v991_v59  ;;  %v1538_v50 = vpop.f32.mrb[3].mxu0  ;;  %v1615_v2 = vpop.f32.mrb[11].mxu1  ;;  %v7425_v25 = vmul.f32 -1.442695, %v1621_v1  ;;  %v1624_v40 = vadd.f32 %v1613_v16, %v993_v28 }
 0x245   :  { %9014 = vpow2.f32 %v7423_v17  ;;  %v1623_v47 = vadd.f32 %v1538_v50, %v992_v62  ;;  %v1625_v27 = vadd.f32 %v1615_v2, %v994_v3  ;;  %v12370_v28 = vmov 0  }
 0x246   :  { %v7422_v48 = vmul.f32 -1.442695, %v1622_v9 }
 0x247   :  { %v7424_v0 = vmul.f32 -1.442695, %v1623_v47  ;;  %v7426_v43 = vmul.f32 -1.442695, %v1625_v27  ;;  %v12367_v27 = vmov 2  }
 0x248   :  { %9016 = vpow2.f32 %v7422_v48 }
 0x249   :  { %9018 = vpow2.f32 %v7424_v0 }
 0x24a   :  { %9020 = vpow2.f32 %v7425_v25  ;;  %v12351_v25 = vmov 0.0  }
 0x24b   :  { %9022 = vtanh.f32 %v1620_v31  ;;  %v12368_v31 = vmov 3  }
 0x24e   :  { %v9013_v4 = vpop.eup %9012 }
 0x24f   :  { %v9015_v7 = vpop.eup %9014  ;;  %v1632_v8 = vadd.f32 1.0, %v9013_v4  ;;  %v12369_v4 = vmov 1  }
 0x250   :  { %v1644_v57 = vadd.f32 1.0, %v9015_v7  ;;  %v291_v7 = vpop.permute.xlu1 %290 }
 0x251   :  { %9024 = vrcp.f32 %v1632_v8 }
 0x252   :  { %v9017_v54 = vpop.eup %9016  ;;  %9026 = vrcp.f32 %v1644_v57 }
 0x253   :  { %v9019_v51 = vpop.eup %9018  ;;  %v1633_v12 = vadd.f32 1.0, %v9017_v54  ;;  %9028 = vpow2.f32 %v7426_v43  ;;  %v114_v43 = vpop.permute.xlu0 %113  ;;  %v12371_v54 = vld [vmem:[#allocation18_spill] sm:$0xff] }
 0x254   :  { %9030 = vtanh.f32 %v1624_v40  ;;  %v1645_v59 = vadd.f32 1.0, %v9019_v51  ;;  %v9021_v45 = vpop.eup %9020  ;;  %v519_v8 = vpop.permute.xlu1 %518  ;;  %v389_v51 = vmul.f32 %v12371_v54, %v291_v7 }
 0x255   :  { %9032 = vrcp.f32 %v1633_v12  ;;  %v9023_v17 = vpop.eup %9022  ;;  %v1658_v50 = vadd.f32 1.0, %v9021_v45  ;;  %v12372_v12 = vld [vmem:[#allocation17_spill] sm:$0xff]  ;;  %v12373_v45 = vld [vmem:[#allocation16_spill] sm:$0xff] }
 0x256   :  { %9034 = vrcp.f32 %v1645_v59  ;;  %v225_v59 = vmul.f32 %v12372_v12, %v114_v43 }
 0x257   :  { %9036 = vrcp.f32 %v1658_v50  ;;  %v119_v40 = vpop.permute.xlu0 %118 }
 0x258   :  { %v295_v57 = vpop.permute.xlu1 %294  ;;  %v453_v50 = vadd.f32 %v389_v51, %v225_v59  ;;  %v227_v51 = vmul.f32 %v9869_v33, %v114_v43 }
 0x25b   :  { %v9025_v13 = vpop.eup %9024 }
 0x25c   :  { %v9027_v62 = vpop.eup %9026  ;;  %v1666_v9 = vmul.f32 %v9025_v13, %v9023_v17  ;;  %v390_v17 = vmul.f32 %v12373_v45, %v291_v7  ;;  %v12374_v13 = vld [vmem:[#allocation15_spill] sm:$0xff] }
 0x25d   :  { %v9029_v2 = vpop.eup %9028  ;;  %v1664_v6 = vmul.f32 %v9027_v62, %v9939_v36  ;;  %v226_v62 = vmul.f32 %v12374_v13, %v114_v43 }
 0x25e   :  { %v9031_v16 = vpop.eup %9030  ;;  %v1659_v48 = vadd.f32 1.0, %v9029_v2  ;;  %v12375_v2 = vld [vmem:[#allocation21_spill] sm:$0xff] }
 0x25f   :  { %v9033_v47 = vpop.eup %9032  ;;  %v10109_v19 = vadd.f32 %v1666_v9, %v1664_v6  ;;  %v523_v9 = vpop.permute.xlu1 %522  ;;  %v617_v6 = vmul.f32 %v12375_v2, %v519_v8 }
 0x260   :  { %v9035_v10 = vpop.eup %9034  ;;  %v1667_v61 = vmul.f32 %v9033_v47, %v9031_v16  ;;  %v229_v16 = vmul.f32 %v12372_v12, %v119_v40  ;;  %v393_v47 = vmul.f32 %v12371_v54, %v295_v57 }
 0x261   :  { %9038 = vtanh.f32 %v10109_v19  ;;  %v1665_v46 = vmul.f32 %v9035_v10, %v9942_v44  ;;  %v9037_v0 = vpop.eup %9036  ;;  %v454_v10 = vadd.f32 %v390_v17, %v226_v62 }
 0x262   :  { %9040 = vrcp.f32 %v1659_v48 }
 0x263   :  { %v10113_v1 = vadd.f32 %v1667_v61, %v1665_v46  ;;  %v12376_v61 = vld [vmem:[#allocation20_spill] sm:$0xff]  ;;  %v230_v46 = vmul.f32 %v12374_v13, %v119_v40 }
 0x264   :  { %v618_v48 = vmul.f32 %v12376_v61, %v519_v8 }
 0x265   :  { %9042 = vtanh.f32 %v10113_v1 }
 0x26b   :  { %v9039_v3 = vpop.eup %9038 }
 0x26c   :  { %v10116_v36 = vmul.f32 %v9039_v3, %v9037_v0  ;;  %v9041_v63 = vpop.eup %9040  ;;  %v394_v0 = vmul.f32 %v12373_v45, %v295_v57  ;;  %v747_v3 = vpop.permute.xlu0 %746 }
 0x26e   :  { %12350 = vst [vmem:[#allocation40_spill] sm:$0xff] %v10116_v36  ;;  %1815 = vmatmul.mubr.f32.vlgmr.msra.gmra.mrb[4].mxu0 %v10116_v36  ;;  %1892 = vmatmul.mubr.f32.vlgmr.msra.gmra.mrb[12].mxu1 %v10116_v36 }
 0x26f   :  { %v9043_v22 = vpop.eup %9042  ;;  %1820 = vmatprep.mubr.f32.mxu0 %v12351_v25  ;;  %1897 = vmatprep.mubr.f32.mxu1 %v12351_v25 }
 0x270   :  { %v10122_v44 = vmul.f32 %v9043_v22, %v9041_v63  ;;  %7859 = vmatpush1.bf16.msra.mxu0 %v9961_v20  ;;  %7891 = vmatpush1.bf16.msra.mxu1 %v9964_v24  ;;  %v12353_v20 = vld [vmem:[#allocation26_spill] sm:$0xff]  ;;  %v12354_v24 = vld [vmem:[#allocation27_spill] sm:$0xff] }
 0x271   :  { %7861 = vmatprep.subr.bf16.mxu0 %v9969_v52  ;;  %7893 = vmatprep.subr.bf16.mxu1 %v9971_v32  ;;  %v12355_v52 = vld [vmem:[#allocation28_spill] sm:$0xff]  ;;  %v12356_v32 = vld [vmem:[#allocation29_spill] sm:$0xff]  ;;  %v12377_v63 = vld [vmem:[#allocation23_spill] sm:$0xff] }
 0x272   :  { %12352 = vst [vmem:[#allocation41_spill] sm:$0xff] %v10122_v44  ;;  %1821 = vmatmul.mubr.f32.gmra.mrb[6].mxu0 %v10122_v44  ;;  %1898 = vmatmul.mubr.f32.gmra.mrb[14].mxu1 %v10122_v44  ;;  %v392_v22 = vmul.f32 %v12377_v63, %v291_v7  ;;  %v2315_v44 = vld [vmem:[#allocation4 + $0x1c8] sm:$0xff] }
 0x273   :  { %2100 = vmatprep.mubr.f32.mxu0 %v12351_v25  ;;  %2177 = vmatprep.mubr.f32.mxu1 %v12351_v25 }
 0x274   :  { %7863 = vmatpush1.bf16.msra.mxu0 %v9973_v38  ;;  %7895 = vmatpush1.bf16.msra.mxu1 %v9976_v42  ;;  %v12357_v38 = vld [vmem:[#allocation30_spill] sm:$0xff]  ;;  %v12358_v42 = vld [vmem:[#allocation31_spill] sm:$0xff] }
 0x275   :  { %7865 = vmatprep.subr.bf16.mxu0 %v9981_v58  ;;  %7897 = vmatprep.subr.bf16.mxu1 %v9983_v15  ;;  %v12359_v58 = vld [vmem:[#allocation32_spill] sm:$0xff]  ;;  %v12360_v15 = vld [vmem:[#allocation33_spill] sm:$0xff] }
 0x278   :  { %7867 = vmatpush1.bf16.msra.mxu0 %v9985_v53  ;;  %7899 = vmatpush1.bf16.msra.mxu1 %v9988_v18  ;;  %v12361_v53 = vld [vmem:[#allocation34_spill] sm:$0xff]  ;;  %v12362_v18 = vld [vmem:[#allocation35_spill] sm:$0xff] }
 0x279   :  { %7869 = vmatprep.subr.bf16.mxu0 %v9993_v26  ;;  %7901 = vmatprep.subr.bf16.mxu1 %v9995_v5  ;;  %v12363_v26 = vld [vmem:[#allocation36_spill] sm:$0xff]  ;;  %v12364_v5 = vld [vmem:[#allocation37_spill] sm:$0xff] }
 0x27c   :  { %7871 = vmatpush1.bf16.msra.mxu0 %v9997_v30  ;;  %7903 = vmatpush1.bf16.msra.mxu1 %v10000_v55  ;;  %v12365_v30 = vld [vmem:[#allocation38_spill] sm:$0xff]  ;;  %v12366_v55 = vld [vmem:[#allocation39_spill] sm:$0xff] }
 0x27d   :  { %7873 = vmatprep.subr.bf16.mxu0 %v10005_v37  ;;  %7905 = vmatprep.subr.bf16.mxu1 %v10007_v23  ;;  %v79_v37 = vld [vmem:[%s12153_s0 + $0x30] sm:$0xff]  ;;  %v80_v23 = vld [vmem:[%s12153_s0 + $0x38] sm:$0xff] }
 0x27e   :  { %298 = vperm.xlu1 %8946, %v79_v37   ;;  %123 = vperm.xlu0 %8945, %v79_v37  }
 0x280   :  { %7875 = vmatpush1.bf16.msra.mxu0 %v12353_v20  ;;  %7907 = vmatpush1.bf16.msra.mxu1 %v12354_v24  ;;  %v12378_v20 = vld [vmem:[#allocation22_spill] sm:$0xff] }
 0x281   :  { %7877 = vmatprep.subr.bf16.mxu0 %v12355_v52  ;;  %7909 = vmatprep.subr.bf16.mxu1 %v12356_v32  ;;  %v228_v24 = vmul.f32 %v12378_v20, %v114_v43  ;;  %v457_v52 = vadd.f32 %v393_v47, %v229_v16  ;;  %v845_v32 = vmul.f32 %v9821_v29, %v747_v3 }
 0x282   :  { %8947 = vset.pattern.permute.xlu1 %v12367_v27  ;;  %128 = vperm.xlu0 %8945, %v80_v23   ;;  %v231_v47 = vmul.f32 %v9869_v33, %v119_v40  ;;  %v619_v43 = vmul.f32 %v9881_v41, %v519_v8 }
 0x283   :  { %526 = vperm.xlu1 %8947, %v79_v37  }
 0x284   :  { %7879 = vmatpush1.bf16.msra.mxu0 %v12357_v38  ;;  %7911 = vmatpush1.bf16.msra.mxu1 %v12358_v42  ;;  %v621_v38 = vmul.f32 %v12375_v2, %v523_v9  ;;  %v681_v42 = vadd.f32 %v617_v6, %v453_v50 }
 0x285   :  { %7881 = vmatprep.subr.bf16.mxu0 %v12359_v58  ;;  %7913 = vmatprep.subr.bf16.mxu1 %v12360_v15  ;;  %v458_v58 = vadd.f32 %v394_v0, %v230_v46  ;;  %v846_v15 = vmul.f32 %v9808_v21, %v747_v3  ;;  %v624_v46 = vmul.f32 %v9884_v56, %v523_v9 }
 0x286   :  { %8949 = vset.pattern.permute.xlu0 %v12368_v31  ;;  %v909_v17 = vadd.f32 %v845_v32, %v681_v42  ;;  %v685_v62 = vadd.f32 %v621_v38, %v457_v52 }
 0x287   :  { %8948 = vset.pattern.permute.xlu1 %v12369_v4  ;;  %754 = vperm.xlu0 %8949, %v79_v37   ;;  %v232_v37 = vmul.f32 %v12378_v20, %v119_v40 }
 0x288   :  { %7883 = vmatpush1.bf16.msra.mxu0 %v12361_v53  ;;  %7915 = vmatpush1.bf16.msra.mxu1 %v12362_v18  ;;  %v622_v53 = vmul.f32 %v12376_v61, %v523_v9  ;;  %v751_v18 = vpop.permute.xlu1 %750 }
 0x289   :  { %7885 = vmatprep.subr.bf16.mxu0 %v12363_v26  ;;  %7917 = vmatprep.subr.bf16.mxu1 %v12364_v5  ;;  %v682_v26 = vadd.f32 %v618_v48, %v454_v10  ;;  %v391_v5 = vmul.f32 %v9872_v34, %v291_v7  ;;  %v849_v59 = vmul.f32 %v9821_v29, %v751_v18 }
 0x28a   :  { %302 = vperm.xlu1 %8948, %v80_v23   ;;  %v850_v50 = vmul.f32 %v9808_v21, %v751_v18  ;;  %v686_v16 = vadd.f32 %v622_v53, %v458_v58  ;;  %v395_v7 = vmul.f32 %v9872_v34, %v295_v57  ;;  %v848_v48 = vmul.f32 %v9905_v14, %v747_v3 }
 0x28b   :  { %8952 = vset.pattern.permute.xlu0 %v12370_v28  ;;  %v910_v6 = vadd.f32 %v846_v15, %v682_v26  ;;  %v913_v52 = vadd.f32 %v849_v59, %v685_v62 }
 0x28c   :  { %7887 = vmatpush1.bf16.msra.mxu0 %v12365_v30  ;;  %7919 = vmatpush1.bf16.msra.mxu1 %v12366_v55  ;;  %v456_v30 = vadd.f32 %v392_v22, %v228_v24  ;;  %v620_v55 = vmul.f32 %v9884_v56, %v519_v8  ;;  %v455_v22 = vadd.f32 %v391_v5, %v227_v51 }
 0x28d   :  { %v995_v24 = vadd.f32 %v9850_v60, %v909_v17  ;;  %v996_v42 = vadd.f32 %v9844_v49, %v910_v6  ;;  %v914_v58 = vadd.f32 %v850_v50, %v686_v16  ;;  %v459_v40 = vadd.f32 %v395_v7, %v231_v47 }
 0x28e   :  { %8950 = vset.pattern.permute.xlu1 %v12367_v27  ;;  %v684_v0 = vadd.f32 %v620_v55, %v456_v30  ;;  %v623_v8 = vmul.f32 %v9881_v41, %v523_v9  ;;  %v683_v51 = vadd.f32 %v619_v43, %v455_v22  ;;  %v999_v59 = vadd.f32 %v9850_v60, %v913_v52 }
 0x28f   :  { %530 = vperm.xlu1 %8950, %v80_v23   ;;  %v1000_v6 = vadd.f32 %v9844_v49, %v914_v58  ;;  %v851_v9 = vmul.f32 %v9902_v11, %v751_v18 }
 0x290   :  { %v912_v5 = vadd.f32 %v848_v48, %v684_v0  ;;  %v687_v22 = vadd.f32 %v623_v8, %v459_v40 }
 0x292   :  { %v998_v7 = vadd.f32 %v9933_v39, %v912_v5 }
 0x293   :  { %8951 = vset.pattern.permute.xlu1 %v12368_v31 }
 0x294   :  { %758 = vperm.xlu1 %8951, %v80_v23   ;;  %v396_v23 = vmul.f32 %v12377_v63, %v295_v57  ;;  %v847_v57 = vmul.f32 %v9902_v11, %v747_v3 }
 0x296   :  { %v460_v10 = vadd.f32 %v396_v23, %v232_v37  ;;  %v852_v37 = vmul.f32 %v9905_v14, %v751_v18 }
 0x298   :  { %8953 = vset.pattern.permute.xlu1 %v12369_v4  ;;  %v688_v55 = vadd.f32 %v624_v46, %v460_v10  ;;  %v911_v46 = vadd.f32 %v847_v57, %v683_v51 }
 0x29a   :  { %v916_v10 = vadd.f32 %v852_v37, %v688_v55 }
 0x29c   :  { %v1002_v52 = vadd.f32 %v9933_v39, %v916_v10 }
 0x341   :  { %v1816_v32 = vpop.f32.mrb[4].mxu0  ;;  %v1893_v38 = vpop.f32.mrb[12].mxu1 }
 0x342   :  { %v1904_v15 = vadd.f32 %v1816_v32, %v995_v24  ;;  %v1818_v53 = vpop.f32.mrb[5].mxu0  ;;  %v1895_v26 = vpop.f32.mrb[13].mxu1  ;;  %v997_v32 = vadd.f32 %v9927_v35, %v911_v46 }
 0x343   :  { %v1905_v30 = vadd.f32 %v1818_v53, %v996_v42  ;;  %v1907_v43 = vadd.f32 %v1895_v26, %v998_v7  ;;  %v915_v42 = vadd.f32 %v851_v9, %v687_v22 }
 0x344   :  { %v7427_v23 = vmul.f32 -1.442695, %v1904_v15  ;;  %v1906_v53 = vadd.f32 %v1893_v38, %v997_v32 }
 0x345   :  { %v7429_v17 = vmul.f32 -1.442695, %v1905_v30  ;;  %v1822_v62 = vpop.f32.mrb[6].mxu0  ;;  %v1899_v50 = vpop.f32.mrb[14].mxu1  ;;  %v7431_v58 = vmul.f32 -1.442695, %v1907_v43  ;;  %v1001_v37 = vadd.f32 %v9927_v35, %v915_v42 }
 0x346   :  { %9044 = vpow2.f32 %v7427_v23  ;;  %v1908_v3 = vadd.f32 %v1822_v62, %v999_v59  ;;  %v1824_v16 = vpop.f32.mrb[7].mxu0  ;;  %v1901_v47 = vpop.f32.mrb[15].mxu1  ;;  %v2259_v42 = vld [vmem:[#allocation4 + $0x8] sm:$0xff] }
 0x347   :  { %9046 = vpow2.f32 %v7429_v17  ;;  %v1909_v48 = vadd.f32 %v1824_v16, %v1000_v6  ;;  %v1911_v15 = vadd.f32 %v1901_v47, %v1002_v52  ;;  %v1910_v26 = vadd.f32 %v1899_v50, %v1001_v37  ;;  %v2258_v37 = vld [vmem:[#allocation4] sm:$0xff] }
 0x348   :  { %v7428_v0 = vmul.f32 -1.442695, %v1908_v3 }
 0x349   :  { %v7430_v24 = vmul.f32 -1.442695, %v1909_v48  ;;  %v7432_v57 = vmul.f32 -1.442695, %v1911_v15  ;;  %v2261_v15 = vld [vmem:[#allocation4 + $0x18] sm:$0xff] }
 0x34a   :  { %9048 = vpow2.f32 %v7428_v0 }
 0x34b   :  { %9050 = vpow2.f32 %v7430_v24 }
 0x34c   :  { %9052 = vpow2.f32 %v7431_v58  ;;  %v2263_v58 = vld [vmem:[#allocation4 + $0x28] sm:$0xff] }
 0x34d   :  { %9054 = vtanh.f32 %v1906_v53  ;;  %v10231_v53 = vpack.c.bf16 %v2263_v58, %v2259_v42  ;;  %v2276_v42 = vld [vmem:[#allocation4 + $0x90] sm:$0xff] }
 0x34e   :  { %v2280_v58 = vld [vmem:[#allocation4 + $0xb0] sm:$0xff] }
 0x34f   :  { %7921 = vmatprep.subr.bf16.mxu0 %v10231_v53 }
 0x350   :  { %v9045_v30 = vpop.eup %9044 }
 0x351   :  { %v9047_v5 = vpop.eup %9046  ;;  %v1918_v18 = vadd.f32 1.0, %v9045_v30  ;;  %v2265_v30 = vld [vmem:[#allocation4 + $0x38] sm:$0xff] }
 0x352   :  { %v1930_v40 = vadd.f32 1.0, %v9047_v5  ;;  %v2262_v5 = vld [vmem:[#allocation4 + $0x20] sm:$0xff] }
 0x353   :  { %9056 = vrcp.f32 %v1918_v18  ;;  %v10233_v18 = vpack.c.bf16 %v2265_v30, %v2261_v15  ;;  %v10262_v15 = vpack.c.bf16 %v2280_v58, %v2276_v42  ;;  %v2283_v30 = vld [vmem:[#allocation4 + $0xc8] sm:$0xff] }
 0x354   :  { %v9049_v55 = vpop.eup %9048  ;;  %9058 = vrcp.f32 %v1930_v40  ;;  %v2260_v40 = vld [vmem:[#allocation4 + $0x10] sm:$0xff] }
 0x355   :  { %v9051_v8 = vpop.eup %9050  ;;  %v1919_v23 = vadd.f32 1.0, %v9049_v55  ;;  %9060 = vpow2.f32 %v7432_v57  ;;  %v10235_v57 = vpack.c.bf16 %v2262_v5, %v2258_v37  ;;  %7953 = vmatprep.subr.bf16.mxu1 %v10233_v18  ;;  %v2287_v37 = vld [vmem:[#allocation4 + $0xe8] sm:$0xff]  ;;  %v2285_v5 = vld [vmem:[#allocation4 + $0xd8] sm:$0xff] }
 0x356   :  { %9062 = vtanh.f32 %v1910_v26  ;;  %v1931_v51 = vadd.f32 1.0, %v9051_v8  ;;  %v9053_v38 = vpop.eup %9052  ;;  %v2264_v26 = vld [vmem:[#allocation4 + $0x30] sm:$0xff]  ;;  %v2267_v8 = vld [vmem:[#allocation4 + $0x48] sm:$0xff] }
 0x357   :  { %9064 = vrcp.f32 %v1919_v23  ;;  %v9055_v59 = vpop.eup %9054  ;;  %v1944_v3 = vadd.f32 1.0, %v9053_v38  ;;  %v10238_v55 = vpack.c.bf16 %v2264_v26, %v2260_v40  ;;  %v2271_v23 = vld [vmem:[#allocation4 + $0x68] sm:$0xff]  ;;  %v10267_v40 = vpack.c.bf16 %v2287_v37, %v2283_v30  ;;  %v2289_v26 = vld [vmem:[#allocation4 + $0xf8] sm:$0xff]  ;;  %v2292_v30 = vld [vmem:[#allocation4 + $0x110] sm:$0xff] }
 0x358   :  { %9066 = vrcp.f32 %v1931_v51  ;;  %v2269_v51 = vld [vmem:[#allocation4 + $0x58] sm:$0xff]  ;;  %v10243_v38 = vpack.c.bf16 %v2271_v23, %v2267_v8  ;;  %v2282_v8 = vld [vmem:[#allocation4 + $0xc0] sm:$0xff]  ;;  %v2296_v37 = vld [vmem:[#allocation4 + $0x130] sm:$0xff] }
 0x359   :  { %9068 = vrcp.f32 %v1944_v3  ;;  %v2286_v23 = vld [vmem:[#allocation4 + $0xe0] sm:$0xff] }
 0x35d   :  { %v9057_v17 = vpop.eup %9056 }
 0x35e   :  { %v9059_v62 = vpop.eup %9058  ;;  %v1952_v6 = vmul.f32 %v9057_v17, %v9055_v59  ;;  %v2273_v59 = vld [vmem:[#allocation4 + $0x78] sm:$0xff]  ;;  %v2266_v17 = vld [vmem:[#allocation4 + $0x40] sm:$0xff] }
 0x35f   :  { %v9061_v16 = vpop.eup %9060  ;;  %v1950_v47 = vmul.f32 %v9059_v62, %v10109_v19  ;;  %v2270_v62 = vld [vmem:[#allocation4 + $0x60] sm:$0xff] }
 0x360   :  { %v9063_v50 = vpop.eup %9062  ;;  %v1945_v46 = vadd.f32 1.0, %v9061_v16  ;;  %v10247_v3 = vpack.c.bf16 %v2270_v62, %v2266_v17  ;;  %v2268_v16 = vld [vmem:[#allocation4 + $0x50] sm:$0xff] }
 0x361   :  { %v9065_v7 = vpop.eup %9064  ;;  %v10212_v48 = vadd.f32 %v1952_v6, %v1950_v47  ;;  %v10245_v6 = vpack.c.bf16 %v2273_v59, %v2269_v51  ;;  %v2272_v47 = vld [vmem:[#allocation4 + $0x70] sm:$0xff]  ;;  %v10269_v51 = vpack.c.bf16 %v2289_v26, %v2285_v5  ;;  %v10271_v59 = vpack.c.bf16 %v2286_v23, %v2282_v8  ;;  %v2299_v26 = vld [vmem:[#allocation4 + $0x148] sm:$0xff]  ;;  %v2301_v23 = vld [vmem:[#allocation4 + $0x158] sm:$0xff] }
 0x362   :  { %v9067_v10 = vpop.eup %9066  ;;  %v1953_v9 = vmul.f32 %v9065_v7, %v9063_v50  ;;  %v10250_v50 = vpack.c.bf16 %v2272_v47, %v2268_v16  ;;  %v2275_v7 = vld [vmem:[#allocation4 + $0x88] sm:$0xff]  ;;  %v2284_v17 = vld [vmem:[#allocation4 + $0xd0] sm:$0xff]  ;;  %v10286_v5 = vpack.c.bf16 %v2296_v37, %v2292_v30 }
 0x363   :  { %9070 = vtanh.f32 %v10212_v48  ;;  %v1951_v0 = vmul.f32 %v9067_v10, %v10113_v1  ;;  %v9069_v43 = vpop.eup %9068  ;;  %v2279_v10 = vld [vmem:[#allocation4 + $0xa8] sm:$0xff]  ;;  %v2288_v62 = vld [vmem:[#allocation4 + $0xf0] sm:$0xff] }
 0x364   :  { %9072 = vrcp.f32 %v1945_v46  ;;  %v10255_v46 = vpack.c.bf16 %v2279_v10, %v2275_v7  ;;  %v10274_v16 = vpack.c.bf16 %v2288_v62, %v2284_v17  ;;  %v2291_v47 = vld [vmem:[#allocation4 + $0x108] sm:$0xff]  ;;  %v2293_v10 = vld [vmem:[#allocation4 + $0x118] sm:$0xff]  ;;  %12383 = vst [vmem:[#allocation30_spill] sm:$0xff] %v10286_v5 }
 0x365   :  { %v10216_v22 = vadd.f32 %v1953_v9, %v1951_v0  ;;  %v2277_v9 = vld [vmem:[#allocation4 + $0x98] sm:$0xff]  ;;  %v2295_v7 = vld [vmem:[#allocation4 + $0x128] sm:$0xff] }
 0x366   :  { %v2281_v0 = vld [vmem:[#allocation4 + $0xb8] sm:$0xff]  ;;  %v2303_v8 = vld [vmem:[#allocation4 + $0x168] sm:$0xff] }
 0x367   :  { %9074 = vtanh.f32 %v10216_v22  ;;  %v10291_v17 = vpack.c.bf16 %v2303_v8, %v2299_v26  ;;  %v2305_v62 = vld [vmem:[#allocation4 + $0x178] sm:$0xff]  ;;  %v2307_v37 = vld [vmem:[#allocation4 + $0x188] sm:$0xff] }
 0x368   :  { %v2313_v8 = vld [vmem:[#allocation4 + $0x1b8] sm:$0xff] }
 0x369   :  { %12384 = vst [vmem:[#allocation31_spill] sm:$0xff] %v10291_v17 }
 0x36d   :  { %v9071_v24 = vpop.eup %9070 }
 0x36e   :  { %v10219_v19 = vmul.f32 %v9071_v24, %v9069_v43  ;;  %v9073_v52 = vpop.eup %9072  ;;  %v2274_v43 = vld [vmem:[#allocation4 + $0x80] sm:$0xff] }
 0x36f   :  { %v2278_v24 = vld [vmem:[#allocation4 + $0xa0] sm:$0xff] }
 0x370   :  { %12379 = vst [vmem:[#allocation26_spill] sm:$0xff] %v10219_v19  ;;  %2101 = vmatmul.mubr.f32.vlgmr.msra.gmra.mrb[8].mxu0 %v10219_v19  ;;  %2178 = vmatmul.mubr.f32.vlgmr.msra.gmra.mrb[16].mxu1 %v10219_v19  ;;  %v2309_v19 = vld [vmem:[#allocation4 + $0x198] sm:$0xff] }
 0x371   :  { %v9075_v32 = vpop.eup %9074  ;;  %2106 = vmatprep.mubr.f32.mxu0 %v12351_v25  ;;  %2183 = vmatprep.mubr.f32.mxu1 %v12351_v25 }
 0x372   :  { %v10225_v1 = vmul.f32 %v9075_v32, %v9073_v52  ;;  %7923 = vmatpush1.bf16.msra.mxu0 %v10235_v57  ;;  %7955 = vmatpush1.bf16.msra.mxu1 %v10238_v55  ;;  %v10257_v52 = vpack.c.bf16 %v2281_v0, %v2277_v9  ;;  %v10259_v32 = vpack.c.bf16 %v2278_v24, %v2274_v43  ;;  %v2297_v0 = vld [vmem:[#allocation4 + $0x138] sm:$0xff]  ;;  %v2290_v43 = vld [vmem:[#allocation4 + $0x100] sm:$0xff] }
 0x373   :  { %7925 = vmatprep.subr.bf16.mxu0 %v10243_v38  ;;  %7957 = vmatprep.subr.bf16.mxu1 %v10245_v6  ;;  %v10279_v9 = vpack.c.bf16 %v2295_v7, %v2291_v47  ;;  %v2294_v24 = vld [vmem:[#allocation4 + $0x120] sm:$0xff]  ;;  %v10281_v42 = vpack.c.bf16 %v2297_v0, %v2293_v10  ;;  %v10293_v10 = vpack.c.bf16 %v2305_v62, %v2301_v23 }
 0x374   :  { %12380 = vst [vmem:[#allocation27_spill] sm:$0xff] %v10225_v1  ;;  %2107 = vmatmul.mubr.f32.gmra.mrb[10].mxu0 %v10225_v1  ;;  %2184 = vmatmul.mubr.f32.gmra.mrb[18].mxu1 %v10225_v1  ;;  %v10283_v58 = vpack.c.bf16 %v2294_v24, %v2290_v43  ;;  %v2298_v47 = vld [vmem:[#allocation4 + $0x140] sm:$0xff]  ;;  %v2300_v43 = vld [vmem:[#allocation4 + $0x150] sm:$0xff]  ;;  %v2311_v1 = vld [vmem:[#allocation4 + $0x1a8] sm:$0xff] }
 0x375   :  { %2386 = vmatprep.mubr.f32.mxu0 %v12351_v25  ;;  %2463 = vmatprep.mubr.f32.mxu1 %v12351_v25  ;;  %12381 = vst [vmem:[#allocation28_spill] sm:$0xff] %v10281_v42  ;;  %v2302_v7 = vld [vmem:[#allocation4 + $0x160] sm:$0xff]  ;;  %12385 = vst [vmem:[#allocation32_spill] sm:$0xff] %v10293_v10  ;;  %v2304_v24 = vld [vmem:[#allocation4 + $0x170] sm:$0xff]  ;;  %v10302_v26 = vpack.c.bf16 %v2311_v1, %v2307_v37 }
 0x376   :  { %7927 = vmatpush1.bf16.msra.mxu0 %v10247_v3  ;;  %7959 = vmatpush1.bf16.msra.mxu1 %v10250_v50  ;;  %12382 = vst [vmem:[#allocation29_spill] sm:$0xff] %v10283_v58  ;;  %v10295_v0 = vpack.c.bf16 %v2302_v7, %v2298_v47  ;;  %v10298_v30 = vpack.c.bf16 %v2304_v24, %v2300_v43  ;;  %v2306_v23 = vld [vmem:[#allocation4 + $0x180] sm:$0xff]  ;;  %v2308_v43 = vld [vmem:[#allocation4 + $0x190] sm:$0xff]  ;;  %v2321_v1 = vld [vmem:[#allocation4 + $0x1f8] sm:$0xff] }
 0x377   :  { %7929 = vmatprep.subr.bf16.mxu0 %v10255_v46  ;;  %7961 = vmatprep.subr.bf16.mxu1 %v10257_v52  ;;  %12388 = vst [vmem:[#allocation35_spill] sm:$0xff] %v10302_v26  ;;  %v2310_v62 = vld [vmem:[#allocation4 + $0x1a0] sm:$0xff]  ;;  %v10305_v47 = vpack.c.bf16 %v2313_v8, %v2309_v19  ;;  %v2312_v24 = vld [vmem:[#allocation4 + $0x1b0] sm:$0xff] }
 0x378   :  { %12386 = vst [vmem:[#allocation33_spill] sm:$0xff] %v10295_v0  ;;  %12387 = vst [vmem:[#allocation34_spill] sm:$0xff] %v10298_v30  ;;  %v10307_v7 = vpack.c.bf16 %v2310_v62, %v2306_v23  ;;  %v10310_v36 = vpack.c.bf16 %v2312_v24, %v2308_v43  ;;  %v2314_v19 = vld [vmem:[#allocation4 + $0x1c0] sm:$0xff]  ;;  %v2316_v23 = vld [vmem:[#allocation4 + $0x1d0] sm:$0xff] }
 0x379   :  { %12389 = vst [vmem:[#allocation36_spill] sm:$0xff] %v10305_v47  ;;  %v2318_v8 = vld [vmem:[#allocation4 + $0x1e0] sm:$0xff] }
 0x37a   :  { %7931 = vmatpush1.bf16.msra.mxu0 %v10259_v32  ;;  %7963 = vmatpush1.bf16.msra.mxu1 %v10262_v15  ;;  %12390 = vst [vmem:[#allocation37_spill] sm:$0xff] %v10307_v7  ;;  %12391 = vst [vmem:[#allocation38_spill] sm:$0xff] %v10310_v36  ;;  %v10318_v62 = vpack.c.bf16 %v2318_v8, %v2314_v19 }
 0x37b   :  { %7933 = vmatprep.subr.bf16.mxu0 %v10267_v40  ;;  %7965 = vmatprep.subr.bf16.mxu1 %v10269_v51 }
 0x37c   :  { %12394 = vst [vmem:[#allocation43_spill] sm:$0xff] %v10318_v62 }
 0x37e   :  { %7935 = vmatpush1.bf16.msra.mxu0 %v10271_v59  ;;  %7967 = vmatpush1.bf16.msra.mxu1 %v10274_v16 }
 0x37f   :  { %7937 = vmatprep.subr.bf16.mxu0 %v10279_v9  ;;  %7969 = vmatprep.subr.bf16.mxu1 %v10281_v42 }
 0x382   :  { %7939 = vmatpush1.bf16.msra.mxu0 %v10283_v58  ;;  %7971 = vmatpush1.bf16.msra.mxu1 %v10286_v5 }
 0x383   :  { %7941 = vmatprep.subr.bf16.mxu0 %v10291_v17  ;;  %7973 = vmatprep.subr.bf16.mxu1 %v10293_v10  ;;  %v2319_v10 = vld [vmem:[#allocation4 + $0x1e8] sm:$0xff] }
 0x384   :  { %v10313_v37 = vpack.c.bf16 %v2319_v10, %v2315_v44  ;;  %v81_v44 = vld [vmem:[%s12153_s0 + $0x40] sm:$0xff]  ;;  %v82_v10 = vld [vmem:[%s12153_s0 + $0x48] sm:$0xff] }
 0x385   :  { %306 = vperm.xlu1 %8953, %v81_v44   ;;  %133 = vperm.xlu0 %8952, %v81_v44  }
 0x386   :  { %7943 = vmatpush1.bf16.msra.mxu0 %v10295_v0  ;;  %7975 = vmatpush1.bf16.msra.mxu1 %v10298_v30  ;;  %v2317_v0 = vld [vmem:[#allocation4 + $0x1d8] sm:$0xff]  ;;  %12392 = vst [vmem:[#allocation39_spill] sm:$0xff] %v10313_v37  ;;  %v2320_v30 = vld [vmem:[#allocation4 + $0x1f0] sm:$0xff] }
 0x387   :  { %7945 = vmatprep.subr.bf16.mxu0 %v10302_v26  ;;  %7977 = vmatprep.subr.bf16.mxu1 %v10305_v47  ;;  %v10315_v17 = vpack.c.bf16 %v2321_v1, %v2317_v0  ;;  %v10322_v43 = vpack.c.bf16 %v2320_v30, %v2316_v23  ;;  %v124_v0 = vpop.permute.xlu0 %123 }
 0x388   :  { %v233_v19 = vmul.f32 %v12372_v12, %v124_v0  ;;  %v234_v23 = vmul.f32 %v12374_v13, %v124_v0 }
 0x389   :  { %12393 = vst [vmem:[#allocation42_spill] sm:$0xff] %v10315_v17  ;;  %12395 = vst [vmem:[#allocation44_spill] sm:$0xff] %v10322_v43  ;;  %8954 = vset.pattern.permute.xlu1 %v12367_v27  ;;  %138 = vperm.xlu0 %8952, %v82_v10  }
 0x38a   :  { %7947 = vmatpush1.bf16.msra.mxu0 %v10307_v7  ;;  %7979 = vmatpush1.bf16.msra.mxu1 %v10310_v36  ;;  %v236_v7 = vmul.f32 %v12378_v20, %v124_v0 }
 0x38b   :  { %7949 = vmatprep.subr.bf16.mxu0 %v10313_v37  ;;  %7981 = vmatprep.subr.bf16.mxu1 %v10315_v17  ;;  %v129_v24 = vpop.permute.xlu0 %128 }
 0x38c   :  { %534 = vperm.xlu1 %8954, %v81_v44   ;;  %v240_v42 = vmul.f32 %v12378_v20, %v129_v24 }
 0x38d   :  { %8956 = vset.pattern.permute.xlu0 %v12368_v31 }
 0x38e   :  { %7951 = vmatpush1.bf16.msra.mxu0 %v10318_v62  ;;  %7983 = vmatpush1.bf16.msra.mxu1 %v10322_v43  ;;  %v238_v62 = vmul.f32 %v12374_v13, %v129_v24 }
 0x38f   :  { %7985 = vmatprep.subr.bf16.mxu0 %v10231_v53  ;;  %8017 = vmatprep.subr.bf16.mxu1 %v10233_v18  ;;  %v299_v53 = vpop.permute.xlu1 %298  ;;  %v755_v37 = vpop.permute.xlu0 %754 }
 0x390   :  { %8955 = vset.pattern.permute.xlu1 %v12369_v4  ;;  %762 = vperm.xlu0 %8956, %v81_v44   ;;  %v397_v1 = vmul.f32 %v12371_v54, %v299_v53  ;;  %v398_v8 = vmul.f32 %v12373_v45, %v299_v53  ;;  %v400_v36 = vmul.f32 %v12377_v63, %v299_v53 }
 0x391   :  { %310 = vperm.xlu1 %8955, %v82_v10  }
 0x392   :  { %v464_v5 = vadd.f32 %v400_v36, %v236_v7 }
 0x393   :  { %v527_v18 = vpop.permute.xlu1 %526 }
 0x394   :  { %8959 = vset.pattern.permute.xlu0 %v12370_v28  ;;  %v461_v28 = vadd.f32 %v397_v1, %v233_v19  ;;  %v626_v43 = vmul.f32 %v12376_v61, %v527_v18  ;;  %v853_v1 = vmul.f32 %v9821_v29, %v755_v37  ;;  %v628_v58 = vmul.f32 %v9884_v56, %v527_v18 }
 0x395   :  { %8957 = vset.pattern.permute.xlu1 %v12367_v27  ;;  %v462_v27 = vadd.f32 %v398_v8, %v234_v23  ;;  %v854_v8 = vmul.f32 %v9808_v21, %v755_v37 }
 0x396   :  { %538 = vperm.xlu1 %8957, %v82_v10   ;;  %v692_v20 = vadd.f32 %v628_v58, %v464_v5 }
 0x397   :  { %v303_v30 = vpop.permute.xlu1 %302  ;;  %v690_v13 = vadd.f32 %v626_v43, %v462_v27  ;;  %v239_v27 = vmul.f32 %v9869_v33, %v129_v24  ;;  %v856_v43 = vmul.f32 %v9905_v14, %v755_v37 }
 0x398   :  { %v402_v17 = vmul.f32 %v12373_v45, %v303_v30  ;;  %v399_v45 = vmul.f32 %v9872_v34, %v299_v53  ;;  %v403_v36 = vmul.f32 %v9872_v34, %v303_v30 }
 0x39a   :  { %8958 = vset.pattern.permute.xlu1 %v12368_v31  ;;  %v625_v31 = vmul.f32 %v12375_v2, %v527_v18  ;;  %v466_v26 = vadd.f32 %v402_v17, %v238_v62 }
 0x39b   :  { %766 = vperm.xlu1 %8958, %v82_v10   ;;  %v531_v44 = vpop.permute.xlu1 %530  ;;  %v237_v10 = vmul.f32 %v12372_v12, %v129_v24  ;;  %v467_v24 = vadd.f32 %v403_v36, %v239_v27 }
 0x39c   :  { %v629_v19 = vmul.f32 %v12375_v2, %v531_v44  ;;  %v689_v12 = vadd.f32 %v625_v31, %v461_v28  ;;  %v630_v23 = vmul.f32 %v12376_v61, %v531_v44  ;;  %v918_v61 = vadd.f32 %v854_v8, %v690_v13 }
 0x39d   :  { %v632_v53 = vmul.f32 %v9884_v56, %v531_v44 }
 0x39e   :  { %v917_v28 = vadd.f32 %v853_v1, %v689_v12  ;;  %v694_v2 = vadd.f32 %v630_v23, %v466_v26  ;;  %v1004_v13 = vadd.f32 %v9844_v49, %v918_v61 }
 0x39f   :  { %8960 = vset.pattern.permute.xlu1 %v12369_v4  ;;  %v401_v4 = vmul.f32 %v12371_v54, %v303_v30  ;;  %v759_v54 = vpop.permute.xlu1 %758 }
 0x3a0   :  { %v857_v31 = vmul.f32 %v9821_v29, %v759_v54  ;;  %v858_v62 = vmul.f32 %v9808_v21, %v759_v54  ;;  %v1003_v12 = vadd.f32 %v9850_v60, %v917_v28 }
 0x3a1   :  { %v465_v47 = vadd.f32 %v401_v4, %v237_v10  ;;  %v404_v4 = vmul.f32 %v12377_v63, %v303_v30  ;;  %v235_v10 = vmul.f32 %v9869_v33, %v124_v0  ;;  %v627_v0 = vmul.f32 %v9881_v41, %v527_v18 }
 0x3a2   :  { %v922_v26 = vadd.f32 %v858_v62, %v694_v2  ;;  %v855_v30 = vmul.f32 %v9902_v11, %v755_v37  ;;  %v631_v18 = vmul.f32 %v9881_v41, %v531_v44  ;;  %v859_v44 = vmul.f32 %v9902_v11, %v759_v54 }
 0x3a3   :  { %v693_v17 = vadd.f32 %v629_v19, %v465_v47  ;;  %v468_v7 = vadd.f32 %v404_v4, %v240_v42  ;;  %v463_v63 = vadd.f32 %v399_v45, %v235_v10  ;;  %v860_v4 = vmul.f32 %v9905_v14, %v759_v54 }
 0x3a4   :  { %v920_v45 = vadd.f32 %v856_v43, %v692_v20  ;;  %v1008_v62 = vadd.f32 %v9844_v49, %v922_v26 }
 0x3a5   :  { %v921_v47 = vadd.f32 %v857_v31, %v693_v17  ;;  %v696_v5 = vadd.f32 %v632_v53, %v468_v7  ;;  %v691_v31 = vadd.f32 %v627_v0, %v463_v63  ;;  %v695_v53 = vadd.f32 %v631_v18, %v467_v24 }
 0x3a7   :  { %v1007_v28 = vadd.f32 %v9850_v60, %v921_v47  ;;  %v924_v7 = vadd.f32 %v860_v4, %v696_v5  ;;  %v919_v43 = vadd.f32 %v855_v30, %v691_v31  ;;  %v923_v26 = vadd.f32 %v859_v44, %v695_v53 }
 0x3a9   :  { %v1009_v4 = vadd.f32 %v9927_v35, %v923_v26 }
 0x443   :  { %v2102_v1 = vpop.f32.mrb[8].mxu0  ;;  %v2179_v19 = vpop.f32.mrb[16].mxu1 }
 0x444   :  { %v2190_v42 = vadd.f32 %v2102_v1, %v1003_v12  ;;  %v2104_v8 = vpop.f32.mrb[9].mxu0  ;;  %v2181_v23 = vpop.f32.mrb[17].mxu1  ;;  %v1006_v12 = vadd.f32 %v9933_v39, %v920_v45  ;;  %v1010_v1 = vadd.f32 %v9933_v39, %v924_v7 }
 0x445   :  { %v2191_v58 = vadd.f32 %v2104_v8, %v1004_v13  ;;  %v1005_v13 = vadd.f32 %v9927_v35, %v919_v43 }
 0x446   :  { %v7433_v10 = vmul.f32 -1.442695, %v2190_v42  ;;  %v2193_v0 = vadd.f32 %v2181_v23, %v1006_v12 }
 0x447   :  { %v7435_v17 = vmul.f32 -1.442695, %v2191_v58  ;;  %v2108_v61 = vpop.f32.mrb[10].mxu0  ;;  %v2185_v2 = vpop.f32.mrb[18].mxu1  ;;  %v2192_v58 = vadd.f32 %v2179_v19, %v1005_v13 }
 0x448   :  { %9076 = vpow2.f32 %v7433_v10  ;;  %v2194_v37 = vadd.f32 %v2108_v61, %v1007_v28  ;;  %v2110_v27 = vpop.f32.mrb[11].mxu0  ;;  %v2187_v36 = vpop.f32.mrb[19].mxu1  ;;  %v7437_v42 = vmul.f32 -1.442695, %v2193_v0  ;;  %v2196_v23 = vadd.f32 %v2185_v2, %v1009_v4 }
 0x449   :  { %9078 = vpow2.f32 %v7435_v17  ;;  %v2195_v20 = vadd.f32 %v2110_v27, %v1008_v62  ;;  %v2197_v8 = vadd.f32 %v2187_v36, %v1010_v1  ;;  %v12415_v4 = vmov 1  }
 0x44a   :  { %v7434_v63 = vmul.f32 -1.442695, %v2194_v37 }
 0x44b   :  { %v7436_v47 = vmul.f32 -1.442695, %v2195_v20  ;;  %v7438_v30 = vmul.f32 -1.442695, %v2197_v8  ;;  %v84_v8 = vld [vmem:[%s12153_s0 + $0x58] sm:$0xff] }
 0x44c   :  { %9080 = vpow2.f32 %v7434_v63 }
 0x44d   :  { %9082 = vpow2.f32 %v7436_v47 }
 0x44e   :  { %9084 = vpow2.f32 %v7437_v42  ;;  %v83_v42 = vld [vmem:[%s12153_s0 + $0x50] sm:$0xff] }
 0x44f   :  { %9086 = vtanh.f32 %v2192_v58  ;;  %314 = vperm.xlu1 %8960, %v83_v42   ;;  %143 = vperm.xlu0 %8959, %v83_v42   ;;  %v12413_v58 = vmov 2  }
 0x452   :  { %v9077_v45 = vpop.eup %9076 }
 0x453   :  { %v9079_v5 = vpop.eup %9078  ;;  %v2204_v54 = vadd.f32 1.0, %v9077_v45  ;;  %8961 = vset.pattern.permute.xlu1 %v12413_v58  ;;  %148 = vperm.xlu0 %8959, %v84_v8   ;;  %v12414_v45 = vmov 3  }
 0x454   :  { %v2216_v24 = vadd.f32 1.0, %v9079_v5  ;;  %542 = vperm.xlu1 %8961, %v83_v42   ;;  %v12416_v5 = vmov 0  }
 0x455   :  { %9088 = vrcp.f32 %v2204_v54  ;;  %v307_v54 = vpop.permute.xlu1 %306 }
 0x456   :  { %v9081_v18 = vpop.eup %9080  ;;  %9090 = vrcp.f32 %v2216_v24  ;;  %v134_v24 = vpop.permute.xlu0 %133 }
 0x457   :  { %v9083_v10 = vpop.eup %9082  ;;  %v2205_v31 = vadd.f32 1.0, %v9081_v18  ;;  %9092 = vpow2.f32 %v7438_v30  ;;  %8963 = vset.pattern.permute.xlu0 %v12414_v45 }
 0x458   :  { %9094 = vtanh.f32 %v2196_v23  ;;  %v2217_v28 = vadd.f32 1.0, %v9083_v10  ;;  %v9085_v19 = vpop.eup %9084  ;;  %8962 = vset.pattern.permute.xlu1 %v12415_v4  ;;  %770 = vperm.xlu0 %8963, %v83_v42   ;;  %v12417_v10 = vld [vmem:[#allocation18_spill] sm:$0xff] }
 0x459   :  { %9096 = vrcp.f32 %v2205_v31  ;;  %v9087_v17 = vpop.eup %9086  ;;  %v2230_v27 = vadd.f32 1.0, %v9085_v19  ;;  %318 = vperm.xlu1 %8962, %v84_v8   ;;  %v535_v30 = vpop.permute.xlu1 %534  ;;  %v405_v31 = vmul.f32 %v12417_v10, %v307_v54 }
 0x45a   :  { %9098 = vrcp.f32 %v2217_v28  ;;  %v139_v18 = vpop.permute.xlu0 %138  ;;  %v12418_v28 = vld [vmem:[#allocation17_spill] sm:$0xff] }
 0x45b   :  { %9100 = vrcp.f32 %v2230_v27  ;;  %v241_v19 = vmul.f32 %v12418_v28, %v134_v24 }
 0x45c   :  { %8966 = vset.pattern.permute.xlu0 %v12416_v5 }
 0x45d   :  { %8964 = vset.pattern.permute.xlu1 %v12413_v58  ;;  %v311_v23 = vpop.permute.xlu1 %310 }
 0x45e   :  { %546 = vperm.xlu1 %8964, %v84_v8  }
 0x45f   :  { %v9089_v61 = vpop.eup %9088 }
 0x460   :  { %v9091_v62 = vpop.eup %9090  ;;  %v2238_v37 = vmul.f32 %v9089_v61, %v9087_v17  ;;  %v12419_v17 = vld [vmem:[#allocation16_spill] sm:$0xff] }
 0x461   :  { %v9093_v36 = vpop.eup %9092  ;;  %v2236_v12 = vmul.f32 %v9091_v62, %v10212_v48  ;;  %v406_v61 = vmul.f32 %v12419_v17, %v307_v54  ;;  %v12420_v62 = vld [vmem:[#allocation15_spill] sm:$0xff]  ;;  %v539_v27 = vpop.permute.xlu1 %538 }
 0x462   :  { %v9095_v2 = vpop.eup %9094  ;;  %v2231_v63 = vadd.f32 1.0, %v9093_v36  ;;  %8965 = vset.pattern.permute.xlu1 %v12414_v45  ;;  %v469_v36 = vadd.f32 %v405_v31, %v241_v19  ;;  %v243_v31 = vmul.f32 %v9869_v33, %v134_v24 }
 0x463   :  { %v9097_v20 = vpop.eup %9096  ;;  %v10383_v7 = vadd.f32 %v2238_v37, %v2236_v12  ;;  %774 = vperm.xlu1 %8965, %v84_v8   ;;  %v242_v37 = vmul.f32 %v12420_v62, %v134_v24  ;;  %v12421_v12 = vld [vmem:[#allocation21_spill] sm:$0xff] }
 0x464   :  { %v9099_v44 = vpop.eup %9098  ;;  %v2239_v43 = vmul.f32 %v9097_v20, %v9095_v2  ;;  %v633_v2 = vmul.f32 %v12421_v12, %v535_v30  ;;  %v245_v20 = vmul.f32 %v12418_v28, %v139_v18 }
 0x465   :  { %9102 = vtanh.f32 %v10383_v7  ;;  %v2237_v53 = vmul.f32 %v9099_v44, %v10216_v22  ;;  %v9101_v47 = vpop.eup %9100  ;;  %v409_v44 = vmul.f32 %v12417_v10, %v311_v23 }
 0x466   :  { %9104 = vrcp.f32 %v2231_v63  ;;  %v12422_v63 = vld [vmem:[#allocation20_spill] sm:$0xff] }
 0x467   :  { %v10387_v0 = vadd.f32 %v2239_v43, %v2237_v53  ;;  %8967 = vset.pattern.permute.xlu1 %v12415_v4  ;;  %v470_v43 = vadd.f32 %v406_v61, %v242_v37  ;;  %v634_v53 = vmul.f32 %v12422_v63, %v535_v30 }
 0x469   :  { %9106 = vtanh.f32 %v10387_v0 }
 0x46f   :  { %v9103_v1 = vpop.eup %9102 }
 0x470   :  { %v10390_v48 = vmul.f32 %v9103_v1, %v9101_v47  ;;  %v9105_v13 = vpop.eup %9104  ;;  %v246_v47 = vmul.f32 %v12420_v62, %v139_v18  ;;  %v410_v1 = vmul.f32 %v12419_v17, %v311_v23 }
 0x472   :  { %12396 = vst [vmem:[#allocation45_spill] sm:$0xff] %v10390_v48  ;;  %2387 = vmatmul.mubr.f32.vlgmr.msra.gmra.mrb[12].mxu0 %v10390_v48  ;;  %2464 = vmatmul.mubr.f32.vlgmr.msra.gmra.mrb[20].mxu1 %v10390_v48 }
 0x473   :  { %v9107_v26 = vpop.eup %9106  ;;  %2392 = vmatprep.mubr.f32.mxu0 %v12351_v25  ;;  %2469 = vmatprep.mubr.f32.mxu1 %v12351_v25 }
 0x474   :  { %v10396_v22 = vmul.f32 %v9107_v26, %v9105_v13  ;;  %7987 = vmatpush1.bf16.msra.mxu0 %v10235_v57  ;;  %8019 = vmatpush1.bf16.msra.mxu1 %v10238_v55  ;;  %v12398_v57 = vld [vmem:[#allocation28_spill] sm:$0xff]  ;;  %v12399_v55 = vld [vmem:[#allocation29_spill] sm:$0xff]  ;;  %v763_v13 = vpop.permute.xlu0 %762  ;;  %v12423_v26 = vld [vmem:[#allocation23_spill] sm:$0xff] }
 0x475   :  { %7989 = vmatprep.subr.bf16.mxu0 %v10243_v38  ;;  %8021 = vmatprep.subr.bf16.mxu1 %v10245_v6  ;;  %v12400_v38 = vld [vmem:[#allocation30_spill] sm:$0xff]  ;;  %v12401_v6 = vld [vmem:[#allocation31_spill] sm:$0xff]  ;;  %v412_v8 = vmul.f32 %v12423_v26, %v311_v23 }
 0x476   :  { %12397 = vst [vmem:[#allocation46_spill] sm:$0xff] %v10396_v22  ;;  %2393 = vmatmul.mubr.f32.gmra.mrb[14].mxu0 %v10396_v22  ;;  %2470 = vmatmul.mubr.f32.gmra.mrb[22].mxu1 %v10396_v22  ;;  %v2887_v22 = vld [vmem:[#allocation4 + $0x1c8] sm:$0xff] }
 0x477   :  { %2672 = vmatprep.mubr.f32.mxu0 %v12351_v25  ;;  %2749 = vmatprep.mubr.f32.mxu1 %v12351_v25 }
 0x478   :  { %7991 = vmatpush1.bf16.msra.mxu0 %v10247_v3  ;;  %8023 = vmatpush1.bf16.msra.mxu1 %v10250_v50  ;;  %v12402_v3 = vld [vmem:[#allocation32_spill] sm:$0xff]  ;;  %v12403_v50 = vld [vmem:[#allocation33_spill] sm:$0xff] }
 0x479   :  { %7993 = vmatprep.subr.bf16.mxu0 %v10255_v46  ;;  %8025 = vmatprep.subr.bf16.mxu1 %v10257_v52  ;;  %v12404_v46 = vld [vmem:[#allocation34_spill] sm:$0xff]  ;;  %v12405_v52 = vld [vmem:[#allocation35_spill] sm:$0xff] }
 0x47c   :  { %7995 = vmatpush1.bf16.msra.mxu0 %v10259_v32  ;;  %8027 = vmatpush1.bf16.msra.mxu1 %v10262_v15  ;;  %v12406_v32 = vld [vmem:[#allocation36_spill] sm:$0xff]  ;;  %v12407_v15 = vld [vmem:[#allocation37_spill] sm:$0xff] }
 0x47d   :  { %7997 = vmatprep.subr.bf16.mxu0 %v10267_v40  ;;  %8029 = vmatprep.subr.bf16.mxu1 %v10269_v51  ;;  %v12408_v40 = vld [vmem:[#allocation38_spill] sm:$0xff]  ;;  %v12409_v51 = vld [vmem:[#allocation39_spill] sm:$0xff] }
 0x480   :  { %7999 = vmatpush1.bf16.msra.mxu0 %v10271_v59  ;;  %8031 = vmatpush1.bf16.msra.mxu1 %v10274_v16  ;;  %v12410_v59 = vld [vmem:[#allocation42_spill] sm:$0xff]  ;;  %v12411_v16 = vld [vmem:[#allocation43_spill] sm:$0xff] }
 0x481   :  { %8001 = vmatprep.subr.bf16.mxu0 %v10279_v9  ;;  %8033 = vmatprep.subr.bf16.mxu1 %v12398_v57  ;;  %v12412_v9 = vld [vmem:[#allocation44_spill] sm:$0xff]  ;;  %v408_v57 = vmul.f32 %v12423_v26, %v307_v54 }
 0x484   :  { %8003 = vmatpush1.bf16.msra.mxu0 %v12399_v55  ;;  %8035 = vmatpush1.bf16.msra.mxu1 %v12400_v38  ;;  %v12424_v55 = vld [vmem:[#allocation22_spill] sm:$0xff] }
 0x485   :  { %8005 = vmatprep.subr.bf16.mxu0 %v12401_v6  ;;  %8037 = vmatprep.subr.bf16.mxu1 %v12402_v3  ;;  %v244_v38 = vmul.f32 %v12424_v55, %v134_v24  ;;  %v473_v6 = vadd.f32 %v409_v44, %v245_v20  ;;  %v861_v3 = vmul.f32 %v9821_v29, %v763_v13 }
 0x486   :  { %v248_v42 = vmul.f32 %v12424_v55, %v139_v18  ;;  %v247_v44 = vmul.f32 %v9869_v33, %v139_v18  ;;  %v635_v24 = vmul.f32 %v9881_v41, %v535_v30 }
 0x488   :  { %8007 = vmatpush1.bf16.msra.mxu0 %v12403_v50  ;;  %8039 = vmatpush1.bf16.msra.mxu1 %v12404_v46  ;;  %v637_v50 = vmul.f32 %v12421_v12, %v539_v27  ;;  %v697_v46 = vadd.f32 %v633_v2, %v469_v36 }
 0x489   :  { %8009 = vmatprep.subr.bf16.mxu0 %v12405_v52  ;;  %8041 = vmatprep.subr.bf16.mxu1 %v12406_v32  ;;  %v474_v52 = vadd.f32 %v410_v1, %v246_v47  ;;  %v862_v32 = vmul.f32 %v9808_v21, %v763_v13  ;;  %v640_v47 = vmul.f32 %v9884_v56, %v539_v27 }
 0x48a   :  { %v925_v61 = vadd.f32 %v861_v3, %v697_v46  ;;  %v701_v37 = vadd.f32 %v637_v50, %v473_v6 }
 0x48c   :  { %8011 = vmatpush1.bf16.msra.mxu0 %v12407_v15  ;;  %8043 = vmatpush1.bf16.msra.mxu1 %v12408_v40  ;;  %v638_v15 = vmul.f32 %v12422_v63, %v539_v27  ;;  %v767_v40 = vpop.permute.xlu1 %766 }
 0x48d   :  { %8013 = vmatprep.subr.bf16.mxu0 %v12409_v51  ;;  %8045 = vmatprep.subr.bf16.mxu1 %v12410_v59  ;;  %v698_v51 = vadd.f32 %v634_v53, %v470_v43  ;;  %v407_v59 = vmul.f32 %v9872_v34, %v307_v54  ;;  %v865_v19 = vmul.f32 %v9821_v29, %v767_v40 }
 0x48e   :  { %v866_v36 = vmul.f32 %v9808_v21, %v767_v40  ;;  %v702_v20 = vadd.f32 %v638_v15, %v474_v52  ;;  %v411_v54 = vmul.f32 %v9872_v34, %v311_v23  ;;  %v476_v43 = vadd.f32 %v412_v8, %v248_v42 }
 0x48f   :  { %v926_v2 = vadd.f32 %v862_v32, %v698_v51  ;;  %v864_v53 = vmul.f32 %v9905_v14, %v763_v13  ;;  %v929_v6 = vadd.f32 %v865_v19, %v701_v37  ;;  %v863_v23 = vmul.f32 %v9902_v11, %v763_v13 }
 0x490   :  { %8015 = vmatpush1.bf16.msra.mxu0 %v12411_v16  ;;  %8047 = vmatpush1.bf16.msra.mxu1 %v12412_v9  ;;  %v472_v16 = vadd.f32 %v408_v57, %v244_v38  ;;  %v636_v9 = vmul.f32 %v9884_v56, %v535_v30  ;;  %v471_v57 = vadd.f32 %v407_v59, %v243_v31 }
 0x491   :  { %v1011_v38 = vadd.f32 %v9850_v60, %v925_v61  ;;  %v1012_v46 = vadd.f32 %v9844_v49, %v926_v2  ;;  %v930_v52 = vadd.f32 %v866_v36, %v702_v20  ;;  %v475_v18 = vadd.f32 %v411_v54, %v247_v44 }
 0x492   :  { %v700_v1 = vadd.f32 %v636_v9, %v472_v16  ;;  %v868_v42 = vmul.f32 %v9905_v14, %v767_v40  ;;  %v704_v9 = vadd.f32 %v640_v47, %v476_v43  ;;  %v639_v30 = vmul.f32 %v9881_v41, %v539_v27 }
 0x493   :  { %v699_v31 = vadd.f32 %v635_v24, %v471_v57  ;;  %v1015_v19 = vadd.f32 %v9850_v60, %v929_v6  ;;  %v1016_v2 = vadd.f32 %v9844_v49, %v930_v52  ;;  %v867_v27 = vmul.f32 %v9902_v11, %v767_v40 }
 0x494   :  { %v928_v59 = vadd.f32 %v864_v53, %v700_v1  ;;  %v932_v43 = vadd.f32 %v868_v42, %v704_v9  ;;  %v703_v57 = vadd.f32 %v639_v30, %v475_v18 }
 0x495   :  { %v927_v47 = vadd.f32 %v863_v23, %v699_v31 }
 0x496   :  { %v1014_v54 = vadd.f32 %v9933_v39, %v928_v59  ;;  %v1018_v6 = vadd.f32 %v9933_v39, %v932_v43 }
 0x545   :  { %v2388_v3 = vpop.f32.mrb[12].mxu0  ;;  %v2465_v50 = vpop.f32.mrb[20].mxu1 }
 0x546   :  { %v2476_v32 = vadd.f32 %v2388_v3, %v1011_v38  ;;  %v2390_v15 = vpop.f32.mrb[13].mxu0  ;;  %v2467_v51 = vpop.f32.mrb[21].mxu1  ;;  %v1013_v3 = vadd.f32 %v9927_v35, %v927_v47 }
 0x547   :  { %v2477_v16 = vadd.f32 %v2390_v15, %v1012_v46  ;;  %v2479_v24 = vadd.f32 %v2467_v51, %v1014_v54  ;;  %v931_v46 = vadd.f32 %v867_v27, %v703_v57 }
 0x548   :  { %v7439_v8 = vmul.f32 -1.442695, %v2476_v32  ;;  %v2478_v15 = vadd.f32 %v2465_v50, %v1013_v3 }
 0x549   :  { %v7441_v61 = vmul.f32 -1.442695, %v2477_v16  ;;  %v2394_v37 = vpop.f32.mrb[14].mxu0  ;;  %v2471_v36 = vpop.f32.mrb[22].mxu1  ;;  %v7443_v52 = vmul.f32 -1.442695, %v2479_v24  ;;  %v1017_v42 = vadd.f32 %v9927_v35, %v931_v46 }
 0x54a   :  { %9108 = vpow2.f32 %v7439_v8  ;;  %v2480_v13 = vadd.f32 %v2394_v37, %v1015_v19  ;;  %v2396_v20 = vpop.f32.mrb[15].mxu0  ;;  %v2473_v44 = vpop.f32.mrb[23].mxu1  ;;  %v2831_v46 = vld [vmem:[#allocation4 + $0x8] sm:$0xff] }
 0x54b   :  { %9110 = vpow2.f32 %v7441_v61  ;;  %v2481_v53 = vadd.f32 %v2396_v20, %v1016_v2  ;;  %v2483_v32 = vadd.f32 %v2473_v44, %v1018_v6  ;;  %v2482_v51 = vadd.f32 %v2471_v36, %v1017_v42  ;;  %v2830_v42 = vld [vmem:[#allocation4] sm:$0xff] }
 0x54c   :  { %v7440_v1 = vmul.f32 -1.442695, %v2480_v13 }
 0x54d   :  { %v7442_v38 = vmul.f32 -1.442695, %v2481_v53  ;;  %v7444_v23 = vmul.f32 -1.442695, %v2483_v32  ;;  %v2833_v32 = vld [vmem:[#allocation4 + $0x18] sm:$0xff] }
 0x54e   :  { %9112 = vpow2.f32 %v7440_v1 }
 0x54f   :  { %9114 = vpow2.f32 %v7442_v38 }
 0x550   :  { %9116 = vpow2.f32 %v7443_v52  ;;  %v2835_v52 = vld [vmem:[#allocation4 + $0x28] sm:$0xff] }
 0x551   :  { %9118 = vtanh.f32 %v2478_v15  ;;  %v10505_v15 = vpack.c.bf16 %v2835_v52, %v2831_v46  ;;  %v2848_v46 = vld [vmem:[#allocation4 + $0x90] sm:$0xff] }
 0x552   :  { %v2852_v52 = vld [vmem:[#allocation4 + $0xb0] sm:$0xff] }
 0x553   :  { %8049 = vmatprep.subr.bf16.mxu0 %v10505_v15 }
 0x554   :  { %v9109_v16 = vpop.eup %9108 }
 0x555   :  { %v9111_v59 = vpop.eup %9110  ;;  %v2490_v40 = vadd.f32 1.0, %v9109_v16  ;;  %v2837_v16 = vld [vmem:[#allocation4 + $0x38] sm:$0xff] }
 0x556   :  { %v2502_v18 = vadd.f32 1.0, %v9111_v59  ;;  %v2834_v59 = vld [vmem:[#allocation4 + $0x20] sm:$0xff] }
 0x557   :  { %9120 = vrcp.f32 %v2490_v40  ;;  %v10507_v40 = vpack.c.bf16 %v2837_v16, %v2833_v32  ;;  %v10536_v32 = vpack.c.bf16 %v2852_v52, %v2848_v46  ;;  %v2855_v16 = vld [vmem:[#allocation4 + $0xc8] sm:$0xff] }
 0x558   :  { %v9113_v9 = vpop.eup %9112  ;;  %9122 = vrcp.f32 %v2502_v18  ;;  %v2832_v18 = vld [vmem:[#allocation4 + $0x10] sm:$0xff] }
 0x559   :  { %v9115_v30 = vpop.eup %9114  ;;  %v2491_v8 = vadd.f32 1.0, %v9113_v9  ;;  %9124 = vpow2.f32 %v7444_v23  ;;  %v10509_v23 = vpack.c.bf16 %v2834_v59, %v2830_v42  ;;  %8081 = vmatprep.subr.bf16.mxu1 %v10507_v40  ;;  %v2859_v42 = vld [vmem:[#allocation4 + $0xe8] sm:$0xff]  ;;  %v2857_v59 = vld [vmem:[#allocation4 + $0xd8] sm:$0xff] }
 0x55a   :  { %9126 = vtanh.f32 %v2482_v51  ;;  %v2503_v31 = vadd.f32 1.0, %v9115_v30  ;;  %v9117_v50 = vpop.eup %9116  ;;  %v2836_v51 = vld [vmem:[#allocation4 + $0x30] sm:$0xff]  ;;  %v2839_v30 = vld [vmem:[#allocation4 + $0x48] sm:$0xff] }
 0x55b   :  { %9128 = vrcp.f32 %v2491_v8  ;;  %v9119_v19 = vpop.eup %9118  ;;  %v2516_v13 = vadd.f32 1.0, %v9117_v50  ;;  %v10512_v9 = vpack.c.bf16 %v2836_v51, %v2832_v18  ;;  %v2843_v8 = vld [vmem:[#allocation4 + $0x68] sm:$0xff]  ;;  %v10541_v18 = vpack.c.bf16 %v2859_v42, %v2855_v16  ;;  %v2861_v51 = vld [vmem:[#allocation4 + $0xf8] sm:$0xff]  ;;  %v2864_v16 = vld [vmem:[#allocation4 + $0x110] sm:$0xff] }
 0x55c   :  { %9130 = vrcp.f32 %v2503_v31  ;;  %v2841_v31 = vld [vmem:[#allocation4 + $0x58] sm:$0xff]  ;;  %v10517_v50 = vpack.c.bf16 %v2843_v8, %v2839_v30  ;;  %v2854_v30 = vld [vmem:[#allocation4 + $0xc0] sm:$0xff]  ;;  %v2868_v42 = vld [vmem:[#allocation4 + $0x130] sm:$0xff] }
 0x55d   :  { %9132 = vrcp.f32 %v2516_v13  ;;  %v2858_v8 = vld [vmem:[#allocation4 + $0xe0] sm:$0xff] }
 0x561   :  { %v9121_v61 = vpop.eup %9120 }
 0x562   :  { %v9123_v37 = vpop.eup %9122  ;;  %v2524_v2 = vmul.f32 %v9121_v61, %v9119_v19  ;;  %v2845_v19 = vld [vmem:[#allocation4 + $0x78] sm:$0xff]  ;;  %v2838_v61 = vld [vmem:[#allocation4 + $0x40] sm:$0xff] }
 0x563   :  { %v9125_v20 = vpop.eup %9124  ;;  %v2522_v44 = vmul.f32 %v9123_v37, %v10383_v7  ;;  %v2842_v37 = vld [vmem:[#allocation4 + $0x60] sm:$0xff] }
 0x564   :  { %v9127_v36 = vpop.eup %9126  ;;  %v2517_v47 = vadd.f32 1.0, %v9125_v20  ;;  %v10521_v13 = vpack.c.bf16 %v2842_v37, %v2838_v61  ;;  %v2840_v20 = vld [vmem:[#allocation4 + $0x50] sm:$0xff] }
 0x565   :  { %v9129_v54 = vpop.eup %9128  ;;  %v10486_v53 = vadd.f32 %v2524_v2, %v2522_v44  ;;  %v10519_v2 = vpack.c.bf16 %v2845_v19, %v2841_v31  ;;  %v2844_v44 = vld [vmem:[#allocation4 + $0x70] sm:$0xff]  ;;  %v10543_v31 = vpack.c.bf16 %v2861_v51, %v2857_v59  ;;  %v10545_v19 = vpack.c.bf16 %v2858_v8, %v2854_v30  ;;  %v2871_v51 = vld [vmem:[#allocation4 + $0x148] sm:$0xff]  ;;  %v2873_v8 = vld [vmem:[#allocation4 + $0x158] sm:$0xff] }
 0x566   :  { %v9131_v43 = vpop.eup %9130  ;;  %v2525_v27 = vmul.f32 %v9129_v54, %v9127_v36  ;;  %v10524_v36 = vpack.c.bf16 %v2844_v44, %v2840_v20  ;;  %v2847_v54 = vld [vmem:[#allocation4 + $0x88] sm:$0xff]  ;;  %v2856_v61 = vld [vmem:[#allocation4 + $0xd0] sm:$0xff]  ;;  %v10560_v59 = vpack.c.bf16 %v2868_v42, %v2864_v16 }
 0x567   :  { %9134 = vtanh.f32 %v10486_v53  ;;  %v2523_v1 = vmul.f32 %v9131_v43, %v10387_v0  ;;  %v9133_v24 = vpop.eup %9132  ;;  %v2851_v43 = vld [vmem:[#allocation4 + $0xa8] sm:$0xff]  ;;  %v2860_v37 = vld [vmem:[#allocation4 + $0xf0] sm:$0xff] }
 0x568   :  { %9136 = vrcp.f32 %v2517_v47  ;;  %v10529_v47 = vpack.c.bf16 %v2851_v43, %v2847_v54  ;;  %v10548_v20 = vpack.c.bf16 %v2860_v37, %v2856_v61  ;;  %v2863_v44 = vld [vmem:[#allocation4 + $0x108] sm:$0xff]  ;;  %v2865_v43 = vld [vmem:[#allocation4 + $0x118] sm:$0xff]  ;;  %12429 = vst [vmem:[#allocation32_spill] sm:$0xff] %v10560_v59 }
 0x569   :  { %v10490_v57 = vadd.f32 %v2525_v27, %v2523_v1  ;;  %v2849_v27 = vld [vmem:[#allocation4 + $0x98] sm:$0xff]  ;;  %v2867_v54 = vld [vmem:[#allocation4 + $0x128] sm:$0xff] }
 0x56a   :  { %v2853_v1 = vld [vmem:[#allocation4 + $0xb8] sm:$0xff]  ;;  %v2875_v30 = vld [vmem:[#allocation4 + $0x168] sm:$0xff] }
 0x56b   :  { %9138 = vtanh.f32 %v10490_v57  ;;  %v10565_v61 = vpack.c.bf16 %v2875_v30, %v2871_v51  ;;  %v2877_v37 = vld [vmem:[#allocation4 + $0x178] sm:$0xff]  ;;  %v2879_v42 = vld [vmem:[#allocation4 + $0x188] sm:$0xff] }
 0x56c   :  { %v2885_v30 = vld [vmem:[#allocation4 + $0x1b8] sm:$0xff] }
 0x56d   :  { %12430 = vst [vmem:[#allocation33_spill] sm:$0xff] %v10565_v61 }
 0x571   :  { %v9135_v38 = vpop.eup %9134 }
 0x572   :  { %v10493_v7 = vmul.f32 %v9135_v38, %v9133_v24  ;;  %v9137_v6 = vpop.eup %9136  ;;  %v2846_v24 = vld [vmem:[#allocation4 + $0x80] sm:$0xff] }
 0x573   :  { %v2850_v38 = vld [vmem:[#allocation4 + $0xa0] sm:$0xff] }
 0x574   :  { %12425 = vst [vmem:[#allocation28_spill] sm:$0xff] %v10493_v7  ;;  %2673 = vmatmul.mubr.f32.vlgmr.msra.gmra.mrb[16].mxu0 %v10493_v7  ;;  %2750 = vmatmul.mubr.f32.vlgmr.msra.gmra.mrb[24].mxu1 %v10493_v7  ;;  %v2881_v7 = vld [vmem:[#allocation4 + $0x198] sm:$0xff] }
 0x575   :  { %v9139_v3 = vpop.eup %9138  ;;  %2678 = vmatprep.mubr.f32.mxu0 %v12351_v25  ;;  %2755 = vmatprep.mubr.f32.mxu1 %v12351_v25 }
 0x576   :  { %v10499_v0 = vmul.f32 %v9139_v3, %v9137_v6  ;;  %8051 = vmatpush1.bf16.msra.mxu0 %v10509_v23  ;;  %8083 = vmatpush1.bf16.msra.mxu1 %v10512_v9  ;;  %v10531_v6 = vpack.c.bf16 %v2853_v1, %v2849_v27  ;;  %v10533_v3 = vpack.c.bf16 %v2850_v38, %v2846_v24  ;;  %v2869_v1 = vld [vmem:[#allocation4 + $0x138] sm:$0xff]  ;;  %v2862_v24 = vld [vmem:[#allocation4 + $0x100] sm:$0xff] }
 0x577   :  { %8053 = vmatprep.subr.bf16.mxu0 %v10517_v50  ;;  %8085 = vmatprep.subr.bf16.mxu1 %v10519_v2  ;;  %v10553_v27 = vpack.c.bf16 %v2867_v54, %v2863_v44  ;;  %v2866_v38 = vld [vmem:[#allocation4 + $0x120] sm:$0xff]  ;;  %v10555_v46 = vpack.c.bf16 %v2869_v1, %v2865_v43  ;;  %v10567_v43 = vpack.c.bf16 %v2877_v37, %v2873_v8 }
 0x578   :  { %12426 = vst [vmem:[#allocation29_spill] sm:$0xff] %v10499_v0  ;;  %2679 = vmatmul.mubr.f32.gmra.mrb[18].mxu0 %v10499_v0  ;;  %2756 = vmatmul.mubr.f32.gmra.mrb[26].mxu1 %v10499_v0  ;;  %v10557_v52 = vpack.c.bf16 %v2866_v38, %v2862_v24  ;;  %v2870_v44 = vld [vmem:[#allocation4 + $0x140] sm:$0xff]  ;;  %v2872_v24 = vld [vmem:[#allocation4 + $0x150] sm:$0xff]  ;;  %v2883_v0 = vld [vmem:[#allocation4 + $0x1a8] sm:$0xff] }
 0x579   :  { %2958 = vmatprep.mubr.f32.mxu0 %v12351_v25  ;;  %3035 = vmatprep.mubr.f32.mxu1 %v12351_v25  ;;  %12427 = vst [vmem:[#allocation30_spill] sm:$0xff] %v10555_v46  ;;  %v2874_v54 = vld [vmem:[#allocation4 + $0x160] sm:$0xff]  ;;  %12431 = vst [vmem:[#allocation34_spill] sm:$0xff] %v10567_v43  ;;  %v2876_v38 = vld [vmem:[#allocation4 + $0x170] sm:$0xff]  ;;  %v10576_v51 = vpack.c.bf16 %v2883_v0, %v2879_v42 }
 0x57a   :  { %8055 = vmatpush1.bf16.msra.mxu0 %v10521_v13  ;;  %8087 = vmatpush1.bf16.msra.mxu1 %v10524_v36  ;;  %12428 = vst [vmem:[#allocation31_spill] sm:$0xff] %v10557_v52  ;;  %v10569_v1 = vpack.c.bf16 %v2874_v54, %v2870_v44  ;;  %v10572_v16 = vpack.c.bf16 %v2876_v38, %v2872_v24  ;;  %v2878_v8 = vld [vmem:[#allocation4 + $0x180] sm:$0xff]  ;;  %v2880_v24 = vld [vmem:[#allocation4 + $0x190] sm:$0xff]  ;;  %v2893_v0 = vld [vmem:[#allocation4 + $0x1f8] sm:$0xff] }
 0x57b   :  { %8057 = vmatprep.subr.bf16.mxu0 %v10529_v47  ;;  %8089 = vmatprep.subr.bf16.mxu1 %v10531_v6  ;;  %12434 = vst [vmem:[#allocation37_spill] sm:$0xff] %v10576_v51  ;;  %v2882_v37 = vld [vmem:[#allocation4 + $0x1a0] sm:$0xff]  ;;  %v10579_v44 = vpack.c.bf16 %v2885_v30, %v2881_v7  ;;  %v2884_v38 = vld [vmem:[#allocation4 + $0x1b0] sm:$0xff] }
 0x57c   :  { %12432 = vst [vmem:[#allocation35_spill] sm:$0xff] %v10569_v1  ;;  %12433 = vst [vmem:[#allocation36_spill] sm:$0xff] %v10572_v16  ;;  %v10581_v54 = vpack.c.bf16 %v2882_v37, %v2878_v8  ;;  %v10584_v48 = vpack.c.bf16 %v2884_v38, %v2880_v24  ;;  %v2886_v7 = vld [vmem:[#allocation4 + $0x1c0] sm:$0xff]  ;;  %v2888_v8 = vld [vmem:[#allocation4 + $0x1d0] sm:$0xff] }
 0x57d   :  { %12435 = vst [vmem:[#allocation38_spill] sm:$0xff] %v10579_v44  ;;  %v2890_v30 = vld [vmem:[#allocation4 + $0x1e0] sm:$0xff] }
 0x57e   :  { %8059 = vmatpush1.bf16.msra.mxu0 %v10533_v3  ;;  %8091 = vmatpush1.bf16.msra.mxu1 %v10536_v32  ;;  %12436 = vst [vmem:[#allocation39_spill] sm:$0xff] %v10581_v54  ;;  %12437 = vst [vmem:[#allocation42_spill] sm:$0xff] %v10584_v48  ;;  %v10592_v37 = vpack.c.bf16 %v2890_v30, %v2886_v7 }
 0x57f   :  { %8061 = vmatprep.subr.bf16.mxu0 %v10541_v18  ;;  %8093 = vmatprep.subr.bf16.mxu1 %v10543_v31 }
 0x580   :  { %12440 = vst [vmem:[#allocation47_spill] sm:$0xff] %v10592_v37 }
 0x582   :  { %8063 = vmatpush1.bf16.msra.mxu0 %v10545_v19  ;;  %8095 = vmatpush1.bf16.msra.mxu1 %v10548_v20 }
 0x583   :  { %8065 = vmatprep.subr.bf16.mxu0 %v10553_v27  ;;  %8097 = vmatprep.subr.bf16.mxu1 %v10555_v46 }
 0x586   :  { %8067 = vmatpush1.bf16.msra.mxu0 %v10557_v52  ;;  %8099 = vmatpush1.bf16.msra.mxu1 %v10560_v59 }
 0x587   :  { %8069 = vmatprep.subr.bf16.mxu0 %v10565_v61  ;;  %8101 = vmatprep.subr.bf16.mxu1 %v10567_v43  ;;  %v2891_v43 = vld [vmem:[#allocation4 + $0x1e8] sm:$0xff] }
 0x588   :  { %v10587_v42 = vpack.c.bf16 %v2891_v43, %v2887_v22  ;;  %v85_v22 = vld [vmem:[%s12153_s0 + $0x60] sm:$0xff]  ;;  %v86_v43 = vld [vmem:[%s12153_s0 + $0x68] sm:$0xff] }
 0x589   :  { %322 = vperm.xlu1 %8967, %v85_v22   ;;  %153 = vperm.xlu0 %8966, %v85_v22  }
 0x58a   :  { %8071 = vmatpush1.bf16.msra.mxu0 %v10569_v1  ;;  %8103 = vmatpush1.bf16.msra.mxu1 %v10572_v16  ;;  %v2889_v1 = vld [vmem:[#allocation4 + $0x1d8] sm:$0xff]  ;;  %12438 = vst [vmem:[#allocation43_spill] sm:$0xff] %v10587_v42  ;;  %v2892_v16 = vld [vmem:[#allocation4 + $0x1f0] sm:$0xff] }
 0x58b   :  { %8073 = vmatprep.subr.bf16.mxu0 %v10576_v51  ;;  %8105 = vmatprep.subr.bf16.mxu1 %v10579_v44  ;;  %v10589_v61 = vpack.c.bf16 %v2893_v0, %v2889_v1  ;;  %v10596_v24 = vpack.c.bf16 %v2892_v16, %v2888_v8  ;;  %v144_v1 = vpop.permute.xlu0 %143 }
 0x58c   :  { %v249_v7 = vmul.f32 %v12418_v28, %v144_v1 }
 0x58d   :  { %12439 = vst [vmem:[#allocation44_spill] sm:$0xff] %v10589_v61  ;;  %12441 = vst [vmem:[#allocation48_spill] sm:$0xff] %v10596_v24  ;;  %8968 = vset.pattern.permute.xlu1 %v12413_v58  ;;  %158 = vperm.xlu0 %8966, %v86_v43  }
 0x58e   :  { %8075 = vmatpush1.bf16.msra.mxu0 %v10581_v54  ;;  %8107 = vmatpush1.bf16.msra.mxu1 %v10584_v48  ;;  %v252_v54 = vmul.f32 %v12424_v55, %v144_v1 }
 0x58f   :  { %8077 = vmatprep.subr.bf16.mxu0 %v10587_v42  ;;  %8109 = vmatprep.subr.bf16.mxu1 %v10589_v61  ;;  %v149_v38 = vpop.permute.xlu0 %148 }
 0x590   :  { %550 = vperm.xlu1 %8968, %v85_v22   ;;  %v256_v46 = vmul.f32 %v12424_v55, %v149_v38 }
 0x591   :  { %8970 = vset.pattern.permute.xlu0 %v12414_v45 }
 0x592   :  { %8079 = vmatpush1.bf16.msra.mxu0 %v10592_v37  ;;  %8111 = vmatpush1.bf16.msra.mxu1 %v10596_v24  ;;  %v254_v37 = vmul.f32 %v12420_v62, %v149_v38 }
 0x593   :  { %8113 = vmatprep.subr.bf16.mxu0 %v10505_v15  ;;  %8145 = vmatprep.subr.bf16.mxu1 %v10507_v40  ;;  %v315_v15 = vpop.permute.xlu1 %314  ;;  %v771_v42 = vpop.permute.xlu0 %770 }
 0x594   :  { %8969 = vset.pattern.permute.xlu1 %v12415_v4  ;;  %778 = vperm.xlu0 %8970, %v85_v22   ;;  %v413_v0 = vmul.f32 %v12417_v10, %v315_v15  ;;  %v414_v30 = vmul.f32 %v12419_v17, %v315_v15  ;;  %v416_v48 = vmul.f32 %v12423_v26, %v315_v15 }
 0x595   :  { %326 = vperm.xlu1 %8969, %v86_v43  }
 0x596   :  { %v477_v22 = vadd.f32 %v413_v0, %v249_v7  ;;  %v869_v0 = vmul.f32 %v9821_v29, %v771_v42  ;;  %v480_v59 = vadd.f32 %v416_v48, %v252_v54 }
 0x597   :  { %v543_v40 = vpop.permute.xlu1 %542 }
 0x598   :  { %8973 = vset.pattern.permute.xlu0 %v12416_v5  ;;  %v250_v5 = vmul.f32 %v12420_v62, %v144_v1  ;;  %v642_v24 = vmul.f32 %v12422_v63, %v543_v40  ;;  %v644_v52 = vmul.f32 %v9884_v56, %v543_v40 }
 0x599   :  { %8971 = vset.pattern.permute.xlu1 %v12413_v58 }
 0x59a   :  { %554 = vperm.xlu1 %8971, %v86_v43   ;;  %v478_v58 = vadd.f32 %v414_v30, %v250_v5  ;;  %v870_v30 = vmul.f32 %v9808_v21, %v771_v42  ;;  %v708_v55 = vadd.f32 %v644_v52, %v480_v59 }
 0x59b   :  { %v319_v16 = vpop.permute.xlu1 %318 }
 0x59c   :  { %v418_v61 = vmul.f32 %v12419_v17, %v319_v16  ;;  %v706_v62 = vadd.f32 %v642_v24, %v478_v58  ;;  %v415_v17 = vmul.f32 %v9872_v34, %v315_v15  ;;  %v255_v58 = vmul.f32 %v9869_v33, %v149_v38 }
 0x59d   :  { %v419_v48 = vmul.f32 %v9872_v34, %v319_v16  ;;  %v872_v24 = vmul.f32 %v9905_v14, %v771_v42 }
 0x59e   :  { %8972 = vset.pattern.permute.xlu1 %v12414_v45  ;;  %v641_v45 = vmul.f32 %v12421_v12, %v543_v40  ;;  %v482_v51 = vadd.f32 %v418_v61, %v254_v37 }
 0x59f   :  { %782 = vperm.xlu1 %8972, %v86_v43   ;;  %v547_v8 = vpop.permute.xlu1 %546  ;;  %v253_v43 = vmul.f32 %v12418_v28, %v149_v38  ;;  %v483_v38 = vadd.f32 %v419_v48, %v255_v58 }
 0x5a0   :  { %v645_v7 = vmul.f32 %v12421_v12, %v547_v8  ;;  %v705_v28 = vadd.f32 %v641_v45, %v477_v22  ;;  %v646_v5 = vmul.f32 %v12422_v63, %v547_v8  ;;  %v934_v63 = vadd.f32 %v870_v30, %v706_v62 }
 0x5a1   :  { %v648_v15 = vmul.f32 %v9884_v56, %v547_v8 }
 0x5a2   :  { %v933_v61 = vadd.f32 %v869_v0, %v705_v28  ;;  %v710_v12 = vadd.f32 %v646_v5, %v482_v51  ;;  %v1020_v62 = vadd.f32 %v9844_v49, %v934_v63 }
 0x5a3   :  { %8974 = vset.pattern.permute.xlu1 %v12415_v4  ;;  %v417_v4 = vmul.f32 %v12417_v10, %v319_v16  ;;  %v775_v10 = vpop.permute.xlu1 %774 }
 0x5a4   :  { %v873_v45 = vmul.f32 %v9821_v29, %v775_v10  ;;  %v874_v22 = vmul.f32 %v9808_v21, %v775_v10  ;;  %v1019_v28 = vadd.f32 %v9850_v60, %v933_v61 }
 0x5a5   :  { %v481_v44 = vadd.f32 %v417_v4, %v253_v43  ;;  %v420_v4 = vmul.f32 %v12423_v26, %v319_v16  ;;  %v251_v43 = vmul.f32 %v9869_v33, %v144_v1  ;;  %v643_v1 = vmul.f32 %v9881_v41, %v543_v40 }
 0x5a6   :  { %v938_v51 = vadd.f32 %v874_v22, %v710_v12  ;;  %v871_v16 = vmul.f32 %v9902_v11, %v771_v42  ;;  %v647_v40 = vmul.f32 %v9881_v41, %v547_v8  ;;  %v875_v8 = vmul.f32 %v9902_v11, %v775_v10 }
 0x5a7   :  { %v709_v37 = vadd.f32 %v645_v7, %v481_v44  ;;  %v484_v54 = vadd.f32 %v420_v4, %v256_v46  ;;  %v479_v26 = vadd.f32 %v415_v17, %v251_v43  ;;  %v876_v4 = vmul.f32 %v9905_v14, %v775_v10 }
 0x5a8   :  { %v936_v17 = vadd.f32 %v872_v24, %v708_v55  ;;  %v1024_v22 = vadd.f32 %v9844_v49, %v938_v51 }
 0x5a9   :  { %v937_v44 = vadd.f32 %v873_v45, %v709_v37  ;;  %v712_v59 = vadd.f32 %v648_v15, %v484_v54  ;;  %v707_v45 = vadd.f32 %v643_v1, %v479_v26  ;;  %v711_v15 = vadd.f32 %v647_v40, %v483_v38 }
 0x5ab   :  { %v1023_v61 = vadd.f32 %v9850_v60, %v937_v44  ;;  %v940_v54 = vadd.f32 %v876_v4, %v712_v59  ;;  %v935_v24 = vadd.f32 %v871_v16, %v707_v45  ;;  %v939_v51 = vadd.f32 %v875_v8, %v711_v15 }
 0x5ad   :  { %v1025_v4 = vadd.f32 %v9927_v35, %v939_v51 }
 0x647   :  { %v2674_v0 = vpop.f32.mrb[16].mxu0  ;;  %v2751_v7 = vpop.f32.mrb[24].mxu1 }
 0x648   :  { %v2762_v46 = vadd.f32 %v2674_v0, %v1019_v28  ;;  %v2676_v30 = vpop.f32.mrb[17].mxu0  ;;  %v2753_v5 = vpop.f32.mrb[25].mxu1  ;;  %v1022_v28 = vadd.f32 %v9933_v39, %v936_v17  ;;  %v1026_v0 = vadd.f32 %v9933_v39, %v940_v54 }
 0x649   :  { %v2763_v52 = vadd.f32 %v2676_v30, %v1020_v62  ;;  %v1021_v62 = vadd.f32 %v9927_v35, %v935_v24 }
 0x64a   :  { %v7445_v43 = vmul.f32 -1.442695, %v2762_v46  ;;  %v2765_v1 = vadd.f32 %v2753_v5, %v1022_v28 }
 0x64b   :  { %v7447_v37 = vmul.f32 -1.442695, %v2763_v52  ;;  %v2680_v63 = vpop.f32.mrb[18].mxu0  ;;  %v2757_v12 = vpop.f32.mrb[26].mxu1  ;;  %v2764_v52 = vadd.f32 %v2751_v7, %v1021_v62 }
 0x64c   :  { %9140 = vpow2.f32 %v7445_v43  ;;  %v2766_v42 = vadd.f32 %v2680_v63, %v1023_v61  ;;  %v2682_v58 = vpop.f32.mrb[19].mxu0  ;;  %v2759_v48 = vpop.f32.mrb[27].mxu1  ;;  %v7449_v46 = vmul.f32 -1.442695, %v2765_v1  ;;  %v2768_v5 = vadd.f32 %v2757_v12, %v1025_v4  ;;  %v3416_v4 = vld [vmem:[#allocation6 + $0x38] sm:$0xff] }
 0x64d   :  { %9142 = vpow2.f32 %v7447_v37  ;;  %v2767_v55 = vadd.f32 %v2682_v58, %v1024_v22  ;;  %v2769_v30 = vadd.f32 %v2759_v48, %v1026_v0 }
 0x64e   :  { %v7446_v26 = vmul.f32 -1.442695, %v2766_v42 }
 0x64f   :  { %v7448_v44 = vmul.f32 -1.442695, %v2767_v55  ;;  %v7450_v16 = vmul.f32 -1.442695, %v2769_v30  ;;  %v3414_v30 = vld [vmem:[#allocation6 + $0x28] sm:$0xff] }
 0x650   :  { %9144 = vpow2.f32 %v7446_v26 }
 0x651   :  { %9146 = vpow2.f32 %v7448_v44 }
 0x652   :  { %9148 = vpow2.f32 %v7449_v46  ;;  %v3410_v46 = vld [vmem:[#allocation6 + $0x8] sm:$0xff] }
 0x653   :  { %9150 = vtanh.f32 %v2764_v52  ;;  %v3412_v52 = vld [vmem:[#allocation6 + $0x18] sm:$0xff] }
 0x656   :  { %v9141_v17 = vpop.eup %9140 }
 0x657   :  { %v9143_v59 = vpop.eup %9142  ;;  %v2776_v10 = vadd.f32 1.0, %v9141_v17  ;;  %v8176_v17 = vpack.c.bf16 %v3414_v30, %v3410_v46 }
 0x658   :  { %v2788_v38 = vadd.f32 1.0, %v9143_v59  ;;  %v8208_v59 = vpack.c.bf16 %v3416_v4, %v3412_v52 }
 0x659   :  { %9152 = vrcp.f32 %v2776_v10  ;;  %v323_v10 = vpop.permute.xlu1 %322 }
 0x65a   :  { %v9145_v40 = vpop.eup %9144  ;;  %9154 = vrcp.f32 %v2788_v38  ;;  %v423_v52 = vmul.f32 %v9872_v34, %v323_v10 }
 0x65b   :  { %v9147_v43 = vpop.eup %9146  ;;  %v2777_v45 = vadd.f32 1.0, %v9145_v40  ;;  %9156 = vpow2.f32 %v7450_v16  ;;  %v87_v16 = vld [vmem:[%s12153_s0 + $0x70] sm:$0xff]  ;;  %v12457_v40 = vmov 2  }
 0x65c   :  { %9158 = vtanh.f32 %v2768_v5  ;;  %v2789_v61 = vadd.f32 1.0, %v9147_v43  ;;  %v9149_v7 = vpop.eup %9148  ;;  %330 = vperm.xlu1 %8974, %v87_v16   ;;  %163 = vperm.xlu0 %8973, %v87_v16   ;;  %v154_v5 = vpop.permute.xlu0 %153  ;;  %v88_v43 = vld [vmem:[%s12153_s0 + $0x78] sm:$0xff] }
 0x65d   :  { %9160 = vrcp.f32 %v2777_v45  ;;  %v9151_v37 = vpop.eup %9150  ;;  %v2802_v58 = vadd.f32 1.0, %v9149_v7  ;;  %v551_v38 = vpop.permute.xlu1 %550 }
 0x65e   :  { %9162 = vrcp.f32 %v2789_v61  ;;  %v12458_v61 = vmov 1   ;;  %v652_v4 = vmul.f32 %v9884_v56, %v551_v38 }
 0x65f   :  { %9164 = vrcp.f32 %v2802_v58  ;;  %v12461_v58 = vld [vmem:[#allocation16_spill] sm:$0xff] }
 0x660   :  { %8975 = vset.pattern.permute.xlu1 %v12457_v40  ;;  %168 = vperm.xlu0 %8973, %v88_v43   ;;  %v159_v7 = vpop.permute.xlu0 %158 }
 0x661   :  { %558 = vperm.xlu1 %8975, %v87_v16   ;;  %v327_v45 = vpop.permute.xlu1 %326 }
 0x663   :  { %v9153_v63 = vpop.eup %9152 }
 0x664   :  { %v9155_v22 = vpop.eup %9154  ;;  %v2810_v42 = vmul.f32 %v9153_v63, %v9151_v37  ;;  %v12459_v37 = vld [vmem:[#allocation18_spill] sm:$0xff] }
 0x665   :  { %v9157_v48 = vpop.eup %9156  ;;  %v2808_v28 = vmul.f32 %v9155_v22, %v10486_v53  ;;  %8976 = vset.pattern.permute.xlu1 %v12458_v61  ;;  %v421_v63 = vmul.f32 %v12459_v37, %v323_v10  ;;  %v12460_v22 = vld [vmem:[#allocation17_spill] sm:$0xff] }
 0x666   :  { %v9159_v12 = vpop.eup %9158  ;;  %v2803_v26 = vadd.f32 1.0, %v9157_v48  ;;  %334 = vperm.xlu1 %8976, %v88_v43   ;;  %v422_v48 = vmul.f32 %v12461_v58, %v323_v10 }
 0x667   :  { %v9161_v55 = vpop.eup %9160  ;;  %v10657_v54 = vadd.f32 %v2810_v42, %v2808_v28  ;;  %v257_v42 = vmul.f32 %v12460_v22, %v154_v5  ;;  %v12462_v28 = vld [vmem:[#allocation15_spill] sm:$0xff] }
 0x668   :  { %v9163_v8 = vpop.eup %9162  ;;  %v2811_v24 = vmul.f32 %v9161_v55, %v9159_v12  ;;  %v258_v12 = vmul.f32 %v12462_v28, %v154_v5  ;;  %v12463_v55 = vmov 3  }
 0x669   :  { %9166 = vtanh.f32 %v10657_v54  ;;  %v2809_v15 = vmul.f32 %v9163_v8, %v10490_v57  ;;  %v9165_v44 = vpop.eup %9164  ;;  %8977 = vset.pattern.permute.xlu0 %v12463_v55  ;;  %v555_v8 = vpop.permute.xlu1 %554 }
 0x66a   :  { %9168 = vrcp.f32 %v2803_v26  ;;  %786 = vperm.xlu0 %8977, %v87_v16   ;;  %8978 = vset.pattern.permute.xlu1 %v12457_v40  ;;  %v12464_v26 = vld [vmem:[#allocation21_spill] sm:$0xff]  ;;  %v259_v40 = vmul.f32 %v9869_v33, %v154_v5 }
 0x66b   :  { %v10661_v1 = vadd.f32 %v2811_v24, %v2809_v15  ;;  %v485_v24 = vadd.f32 %v421_v63, %v257_v42  ;;  %v649_v15 = vmul.f32 %v12464_v26, %v551_v38  ;;  %562 = vperm.xlu1 %8978, %v88_v43  }
 0x66d   :  { %9170 = vtanh.f32 %v10661_v1  ;;  %v783_v46 = vpop.permute.xlu1 %782 }
 0x66e   :  { %v881_v61 = vmul.f32 %v9821_v29, %v783_v46 }
 0x66f   :  { %8979 = vset.pattern.permute.xlu1 %v12463_v55 }
 0x670   :  { %790 = vperm.xlu1 %8979, %v88_v43   ;;  %v263_v43 = vmul.f32 %v9869_v33, %v159_v7 }
 0x673   :  { %v9167_v0 = vpop.eup %9166 }
 0x674   :  { %v10664_v53 = vmul.f32 %v9167_v0, %v9165_v44  ;;  %v9169_v62 = vpop.eup %9168  ;;  %v261_v44 = vmul.f32 %v12460_v22, %v159_v7  ;;  %v425_v0 = vmul.f32 %v12459_v37, %v327_v45 }
 0x676   :  { %2959 = vmatmul.mubr.f32.vlgmr.msra.gmra.mrb[20].mxu0 %v10664_v53  ;;  %3036 = vmatmul.mubr.f32.vlgmr.msra.gmra.mrb[28].mxu1 %v10664_v53 }
 0x677   :  { %v9171_v51 = vpop.eup %9170  ;;  %2964 = vmatprep.mubr.f32.mxu0 %v12351_v25  ;;  %3041 = vmatprep.mubr.f32.mxu1 %v12351_v25 }
 0x678   :  { %v10670_v57 = vmul.f32 %v9171_v51, %v9169_v62  ;;  %8115 = vmatpush1.bf16.msra.mxu0 %v10509_v23  ;;  %8147 = vmatpush1.bf16.msra.mxu1 %v10512_v9  ;;  %v12442_v23 = vld [vmem:[#allocation30_spill] sm:$0xff]  ;;  %v12443_v9 = vld [vmem:[#allocation31_spill] sm:$0xff]  ;;  %v486_v62 = vadd.f32 %v422_v48, %v258_v12  ;;  %v12465_v51 = vld [vmem:[#allocation20_spill] sm:$0xff]  ;;  %v882_v48 = vmul.f32 %v9808_v21, %v783_v46 }
 0x679   :  { %8117 = vmatprep.subr.bf16.mxu0 %v10517_v50  ;;  %8149 = vmatprep.subr.bf16.mxu1 %v10519_v2  ;;  %v12444_v50 = vld [vmem:[#allocation32_spill] sm:$0xff]  ;;  %v12445_v2 = vld [vmem:[#allocation33_spill] sm:$0xff] }
 0x67a   :  { %2965 = vmatmul.mubr.f32.gmra.mrb[22].mxu0 %v10670_v57  ;;  %3042 = vmatmul.mubr.f32.gmra.mrb[30].mxu1 %v10670_v57 }
 0x67b   :  { %3244 = vmatprep.mubr.f32.mxu0 %v12351_v25  ;;  %3321 = vmatprep.mubr.f32.mxu1 %v12351_v25 }
 0x67c   :  { %8119 = vmatpush1.bf16.msra.mxu0 %v10521_v13  ;;  %8151 = vmatpush1.bf16.msra.mxu1 %v10524_v36  ;;  %v12446_v13 = vld [vmem:[#allocation34_spill] sm:$0xff]  ;;  %v12447_v36 = vld [vmem:[#allocation35_spill] sm:$0xff] }
 0x67d   :  { %8121 = vmatprep.subr.bf16.mxu0 %v10529_v47  ;;  %8153 = vmatprep.subr.bf16.mxu1 %v10531_v6  ;;  %v12448_v47 = vld [vmem:[#allocation36_spill] sm:$0xff]  ;;  %v12449_v6 = vld [vmem:[#allocation37_spill] sm:$0xff] }
 0x680   :  { %8123 = vmatpush1.bf16.msra.mxu0 %v10533_v3  ;;  %8155 = vmatpush1.bf16.msra.mxu1 %v10536_v32  ;;  %v12450_v3 = vld [vmem:[#allocation38_spill] sm:$0xff]  ;;  %v12451_v32 = vld [vmem:[#allocation39_spill] sm:$0xff] }
 0x681   :  { %8125 = vmatprep.subr.bf16.mxu0 %v10541_v18  ;;  %8157 = vmatprep.subr.bf16.mxu1 %v10543_v31  ;;  %v12452_v18 = vld [vmem:[#allocation42_spill] sm:$0xff]  ;;  %v12453_v31 = vld [vmem:[#allocation43_spill] sm:$0xff] }
 0x684   :  { %8127 = vmatpush1.bf16.msra.mxu0 %v10545_v19  ;;  %8159 = vmatpush1.bf16.msra.mxu1 %v10548_v20  ;;  %v12454_v19 = vld [vmem:[#allocation44_spill] sm:$0xff]  ;;  %v12455_v20 = vld [vmem:[#allocation47_spill] sm:$0xff] }
 0x685   :  { %8129 = vmatprep.subr.bf16.mxu0 %v10553_v27  ;;  %8161 = vmatprep.subr.bf16.mxu1 %v12442_v23  ;;  %v12456_v27 = vld [vmem:[#allocation48_spill] sm:$0xff]  ;;  %v650_v23 = vmul.f32 %v12465_v51, %v551_v38 }
 0x687   :  { %v714_v30 = vadd.f32 %v650_v23, %v486_v62  ;;  %v487_v62 = vadd.f32 %v423_v52, %v259_v40 }
 0x688   :  { %8131 = vmatpush1.bf16.msra.mxu0 %v12443_v9  ;;  %8163 = vmatpush1.bf16.msra.mxu1 %v12444_v50  ;;  %v262_v9 = vmul.f32 %v12462_v28, %v159_v7  ;;  %v426_v50 = vmul.f32 %v12461_v58, %v327_v45 }
 0x689   :  { %8133 = vmatprep.subr.bf16.mxu0 %v12445_v2  ;;  %8165 = vmatprep.subr.bf16.mxu1 %v12446_v13  ;;  %v779_v2 = vpop.permute.xlu0 %778  ;;  %v12466_v13 = vld [vmem:[#allocation23_spill] sm:$0xff] }
 0x68a   :  { %v428_v16 = vmul.f32 %v12466_v13, %v327_v45 }
 0x68c   :  { %8135 = vmatpush1.bf16.msra.mxu0 %v12447_v36  ;;  %8167 = vmatpush1.bf16.msra.mxu1 %v12448_v47  ;;  %v424_v36 = vmul.f32 %v12466_v13, %v323_v10  ;;  %v12467_v47 = vld [vmem:[#allocation22_spill] sm:$0xff]  ;;  %v427_v10 = vmul.f32 %v9872_v34, %v327_v45  ;;  %v879_v45 = vmul.f32 %v9902_v11, %v779_v2 }
 0x68d   :  { %8137 = vmatprep.subr.bf16.mxu0 %v12449_v6  ;;  %8169 = vmatprep.subr.bf16.mxu1 %v12450_v3  ;;  %v260_v6 = vmul.f32 %v12467_v47, %v154_v5  ;;  %v489_v3 = vadd.f32 %v425_v0, %v261_v44  ;;  %v656_v44 = vmul.f32 %v9884_v56, %v555_v8 }
 0x68e   :  { %v651_v5 = vmul.f32 %v9881_v41, %v551_v38  ;;  %v655_v38 = vmul.f32 %v9881_v41, %v555_v8 }
 0x690   :  { %8139 = vmatpush1.bf16.msra.mxu0 %v12451_v32  ;;  %8171 = vmatpush1.bf16.msra.mxu1 %v12452_v18  ;;  %v877_v32 = vmul.f32 %v9821_v29, %v779_v2  ;;  %v653_v18 = vmul.f32 %v12464_v26, %v555_v8 }
 0x691   :  { %8141 = vmatprep.subr.bf16.mxu0 %v12453_v31  ;;  %8173 = vmatprep.subr.bf16.mxu1 %v12454_v19  ;;  %v713_v31 = vadd.f32 %v649_v15, %v485_v24  ;;  %v490_v19 = vadd.f32 %v426_v50, %v262_v9  ;;  %v880_v15 = vmul.f32 %v9905_v14, %v779_v2 }
 0x692   :  { %v717_v42 = vadd.f32 %v653_v18, %v489_v3 }
 0x693   :  { %v941_v63 = vadd.f32 %v877_v32, %v713_v31 }
 0x694   :  { %8143 = vmatpush1.bf16.msra.mxu0 %v12455_v20  ;;  %8175 = vmatpush1.bf16.msra.mxu1 %v12456_v27  ;;  %v878_v20 = vmul.f32 %v9808_v21, %v779_v2  ;;  %v654_v27 = vmul.f32 %v12465_v51, %v555_v8  ;;  %v945_v9 = vadd.f32 %v881_v61, %v717_v42 }
 0x695   :  { %8177 = vmatprep.subr.bf16.mxu0 %v8176_v17  ;;  %8209 = vmatprep.subr.bf16.mxu1 %v8208_v59  ;;  %v488_v17 = vadd.f32 %v424_v36, %v260_v6  ;;  %v264_v59 = vmul.f32 %v12467_v47, %v159_v7  ;;  %v1027_v23 = vadd.f32 %v9850_v60, %v941_v63 }
 0x696   :  { %v942_v12 = vadd.f32 %v878_v20, %v714_v30  ;;  %v718_v55 = vadd.f32 %v654_v27, %v490_v19  ;;  %v491_v7 = vadd.f32 %v427_v10, %v263_v43  ;;  %v884_v19 = vmul.f32 %v9905_v14, %v783_v46 }
 0x697   :  { %v492_v24 = vadd.f32 %v428_v16, %v264_v59  ;;  %v716_v0 = vadd.f32 %v652_v4, %v488_v17  ;;  %v715_v17 = vadd.f32 %v651_v5, %v487_v62  ;;  %v1031_v4 = vadd.f32 %v9850_v60, %v945_v9 }
 0x698   :  { %v1028_v6 = vadd.f32 %v9844_v49, %v942_v12  ;;  %v946_v3 = vadd.f32 %v882_v48, %v718_v55  ;;  %v883_v8 = vmul.f32 %v9902_v11, %v783_v46 }
 0x699   :  { %v944_v27 = vadd.f32 %v880_v15, %v716_v0  ;;  %v720_v30 = vadd.f32 %v656_v44, %v492_v24  ;;  %v943_v43 = vadd.f32 %v879_v45, %v715_v17  ;;  %v719_v24 = vadd.f32 %v655_v38, %v491_v7 }
 0x69a   :  { %v1032_v61 = vadd.f32 %v9844_v49, %v946_v3 }
 0x69b   :  { %v1030_v48 = vadd.f32 %v9933_v39, %v944_v27  ;;  %v948_v55 = vadd.f32 %v884_v19, %v720_v30  ;;  %v1029_v62 = vadd.f32 %v9927_v35, %v943_v43  ;;  %v947_v5 = vadd.f32 %v883_v8, %v719_v24  ;;  %v3409_v8 = vld [vmem:[#allocation6] sm:$0xff]  ;;  %v3418_v24 = vld [vmem:[#allocation6 + $0x48] sm:$0xff] }
 0x69c   :  { %v3413_v43 = vld [vmem:[#allocation6 + $0x20] sm:$0xff] }
 0x69d   :  { %v1034_v0 = vadd.f32 %v9933_v39, %v948_v55  ;;  %v1033_v3 = vadd.f32 %v9927_v35, %v947_v5 }
 0x749   :  { %v2960_v50 = vpop.f32.mrb[20].mxu0  ;;  %v3037_v36 = vpop.f32.mrb[28].mxu1 }
 0x74a   :  { %v3048_v32 = vadd.f32 %v2960_v50, %v1027_v23  ;;  %v2962_v18 = vpop.f32.mrb[21].mxu0  ;;  %v3039_v31 = vpop.f32.mrb[29].mxu1  ;;  %v3050_v50 = vadd.f32 %v3037_v36, %v1029_v62  ;;  %v3424_v62 = vld [vmem:[#allocation6 + $0x78] sm:$0xff] }
 0x74b   :  { %v3049_v20 = vadd.f32 %v2962_v18, %v1028_v6  ;;  %v3051_v15 = vadd.f32 %v3039_v31, %v1030_v48 }
 0x74c   :  { %v7451_v52 = vmul.f32 -1.442695, %v3048_v32 }
 0x74d   :  { %v7453_v59 = vmul.f32 -1.442695, %v3049_v20  ;;  %v2966_v16 = vpop.f32.mrb[22].mxu0  ;;  %v3043_v40 = vpop.f32.mrb[30].mxu1  ;;  %v7455_v23 = vmul.f32 -1.442695, %v3051_v15 }
 0x74e   :  { %9172 = vpow2.f32 %v7451_v52  ;;  %v3052_v2 = vadd.f32 %v2966_v16, %v1031_v4  ;;  %v2968_v63 = vpop.f32.mrb[23].mxu0  ;;  %v3045_v42 = vpop.f32.mrb[31].mxu1  ;;  %v3054_v18 = vadd.f32 %v3043_v40, %v1033_v3  ;;  %v3419_v3 = vld [vmem:[#allocation6 + $0x50] sm:$0xff] }
 0x74f   :  { %9174 = vpow2.f32 %v7453_v59  ;;  %v3053_v12 = vadd.f32 %v2968_v63, %v1032_v61  ;;  %v3055_v9 = vadd.f32 %v3045_v42, %v1034_v0  ;;  %v3420_v0 = vld [vmem:[#allocation6 + $0x58] sm:$0xff] }
 0x750   :  { %v7452_v10 = vmul.f32 -1.442695, %v3052_v2 }
 0x751   :  { %v7454_v44 = vmul.f32 -1.442695, %v3053_v12  ;;  %v7456_v45 = vmul.f32 -1.442695, %v3055_v9 }
 0x752   :  { %9176 = vpow2.f32 %v7452_v10  ;;  %v3415_v10 = vld [vmem:[#allocation6 + $0x30] sm:$0xff] }
 0x753   :  { %9178 = vpow2.f32 %v7454_v44  ;;  %v3422_v44 = vld [vmem:[#allocation6 + $0x68] sm:$0xff] }
 0x754   :  { %9180 = vpow2.f32 %v7455_v23  ;;  %v8178_v23 = vpack.c.bf16 %v3413_v43, %v3409_v8  ;;  %v3433_v43 = vld [vmem:[#allocation6 + $0xc0] sm:$0xff] }
 0x755   :  { %9182 = vtanh.f32 %v3050_v50  ;;  %v3417_v50 = vld [vmem:[#allocation6 + $0x40] sm:$0xff] }
 0x758   :  { %v9173_v6 = vpop.eup %9172 }
 0x759   :  { %v9175_v32 = vpop.eup %9174  ;;  %v3062_v46 = vadd.f32 1.0, %v9173_v6  ;;  %v3421_v6 = vld [vmem:[#allocation6 + $0x60] sm:$0xff] }
 0x75a   :  { %v3074_v7 = vadd.f32 1.0, %v9175_v32  ;;  %v3423_v32 = vld [vmem:[#allocation6 + $0x70] sm:$0xff] }
 0x75b   :  { %9184 = vrcp.f32 %v3062_v46  ;;  %v3426_v46 = vld [vmem:[#allocation6 + $0x88] sm:$0xff] }
 0x75c   :  { %v9177_v31 = vpop.eup %9176  ;;  %9186 = vrcp.f32 %v3074_v7  ;;  %v8212_v7 = vpack.c.bf16 %v3424_v62, %v3420_v0  ;;  %v3442_v0 = vld [vmem:[#allocation6 + $0x108] sm:$0xff] }
 0x75d   :  { %v9179_v19 = vpop.eup %9178  ;;  %v3063_v20 = vadd.f32 1.0, %v9177_v31  ;;  %9188 = vpow2.f32 %v7456_v45  ;;  %v8180_v45 = vpack.c.bf16 %v3422_v44, %v3418_v24  ;;  %v3428_v31 = vld [vmem:[#allocation6 + $0x98] sm:$0xff]  ;;  %v3439_v44 = vld [vmem:[#allocation6 + $0xf0] sm:$0xff]  ;;  %v3446_v62 = vld [vmem:[#allocation6 + $0x128] sm:$0xff] }
 0x75e   :  { %9190 = vtanh.f32 %v3054_v18  ;;  %v3075_v27 = vadd.f32 1.0, %v9179_v19  ;;  %v9181_v36 = vpop.eup %9180  ;;  %v3430_v18 = vld [vmem:[#allocation6 + $0xa8] sm:$0xff]  ;;  %v3432_v19 = vld [vmem:[#allocation6 + $0xb8] sm:$0xff] }
 0x75f   :  { %9192 = vrcp.f32 %v3063_v20  ;;  %v9183_v30 = vpop.eup %9182  ;;  %v3088_v4 = vadd.f32 1.0, %v9181_v36  ;;  %v8182_v36 = vpack.c.bf16 %v3421_v6, %v3417_v50  ;;  %v3441_v6 = vld [vmem:[#allocation6 + $0x100] sm:$0xff] }
 0x760   :  { %9194 = vrcp.f32 %v3075_v27 }
 0x761   :  { %9196 = vrcp.f32 %v3088_v4  ;;  %v8184_v4 = vpack.c.bf16 %v3430_v18, %v3426_v46  ;;  %v3450_v18 = vld [vmem:[#allocation6 + $0x148] sm:$0xff] }
 0x765   :  { %v9185_v38 = vpop.eup %9184 }
 0x766   :  { %v9187_v52 = vpop.eup %9186  ;;  %v3096_v17 = vmul.f32 %v9185_v38, %v9183_v30  ;;  %v8214_v30 = vpack.c.bf16 %v3423_v32, %v3419_v3  ;;  %v3425_v38 = vld [vmem:[#allocation6 + $0x80] sm:$0xff]  ;;  %v8192_v32 = vpack.c.bf16 %v3446_v62, %v3442_v0  ;;  %v3470_v0 = vld [vmem:[#allocation6 + $0x1e8] sm:$0xff]  ;;  %v3468_v62 = vld [vmem:[#allocation6 + $0x1d8] sm:$0xff] }
 0x767   :  { %v9189_v59 = vpop.eup %9188  ;;  %v3094_v16 = vmul.f32 %v9187_v52, %v10657_v54  ;;  %v3411_v54 = vld [vmem:[#allocation6 + $0x10] sm:$0xff]  ;;  %v3429_v52 = vld [vmem:[#allocation6 + $0xa0] sm:$0xff] }
 0x768   :  { %v9191_v40 = vpop.eup %9190  ;;  %v3089_v48 = vadd.f32 1.0, %v9189_v59  ;;  %v8210_v9 = vpack.c.bf16 %v3415_v10, %v3411_v54  ;;  %v8216_v59 = vpack.c.bf16 %v3432_v19, %v3428_v31  ;;  %v3437_v54 = vld [vmem:[#allocation6 + $0xe0] sm:$0xff]  ;;  %v3454_v31 = vld [vmem:[#allocation6 + $0x168] sm:$0xff]  ;;  %v3452_v19 = vld [vmem:[#allocation6 + $0x158] sm:$0xff] }
 0x769   :  { %v9193_v61 = vpop.eup %9192  ;;  %v10758_v2 = vadd.f32 %v3096_v17, %v3094_v16  ;;  %v3427_v16 = vld [vmem:[#allocation6 + $0x90] sm:$0xff]  ;;  %v3445_v3 = vld [vmem:[#allocation6 + $0x120] sm:$0xff] }
 0x76a   :  { %v9195_v63 = vpop.eup %9194  ;;  %v3097_v42 = vmul.f32 %v9193_v61, %v9191_v40  ;;  %v3431_v40 = vld [vmem:[#allocation6 + $0xb0] sm:$0xff]  ;;  %v3434_v61 = vld [vmem:[#allocation6 + $0xc8] sm:$0xff] }
 0x76b   :  { %9198 = vtanh.f32 %v10758_v2  ;;  %v3095_v12 = vmul.f32 %v9195_v63, %v10661_v1  ;;  %v9197_v15 = vpop.eup %9196  ;;  %v3438_v63 = vld [vmem:[#allocation6 + $0xe8] sm:$0xff]  ;;  %v8218_v8 = vpack.c.bf16 %v3431_v40, %v3427_v16  ;;  %v3455_v16 = vld [vmem:[#allocation6 + $0x170] sm:$0xff] }
 0x76c   :  { %9200 = vrcp.f32 %v3089_v48  ;;  %v3440_v48 = vld [vmem:[#allocation6 + $0xf8] sm:$0xff]  ;;  %v8188_v10 = vpack.c.bf16 %v3438_v63, %v3434_v61  ;;  %v3458_v40 = vld [vmem:[#allocation6 + $0x188] sm:$0xff] }
 0x76d   :  { %v10762_v55 = vadd.f32 %v3097_v42, %v3095_v12  ;;  %v3436_v42 = vld [vmem:[#allocation6 + $0xd8] sm:$0xff]  ;;  %v8186_v12 = vpack.c.bf16 %v3429_v52, %v3425_v38  ;;  %v3453_v38 = vld [vmem:[#allocation6 + $0x160] sm:$0xff]  ;;  %v8196_v52 = vpack.c.bf16 %v3454_v31, %v3450_v18  ;;  %v3462_v61 = vld [vmem:[#allocation6 + $0x1a8] sm:$0xff] }
 0x76e   :  { %v8220_v24 = vpack.c.bf16 %v3440_v48, %v3436_v42  ;;  %v3460_v63 = vld [vmem:[#allocation6 + $0x198] sm:$0xff]  ;;  %v3894_v18 = vld [vmem:[#allocation8 + $0x28] sm:$0xff] }
 0x76f   :  { %9202 = vtanh.f32 %v10762_v55  ;;  %v3464_v42 = vld [vmem:[#allocation6 + $0x1b8] sm:$0xff] }
 0x775   :  { %v9199_v5 = vpop.eup %9198 }
 0x776   :  { %v10765_v1 = vmul.f32 %v9199_v5, %v9197_v15  ;;  %v9201_v20 = vpop.eup %9200  ;;  %v3435_v15 = vld [vmem:[#allocation6 + $0xd0] sm:$0xff]  ;;  %v3444_v5 = vld [vmem:[#allocation6 + $0x118] sm:$0xff] }
 0x777   :  { %v8222_v50 = vpack.c.bf16 %v3439_v44, %v3435_v15  ;;  %v3463_v15 = vld [vmem:[#allocation6 + $0x1b0] sm:$0xff]  ;;  %v3466_v44 = vld [vmem:[#allocation6 + $0x1c8] sm:$0xff] }
 0x778   :  { %3245 = vmatmul.mubr.f32.vlgmr.msra.gmra.mrb[24].mxu0 %v10765_v1  ;;  %3322 = vmatmul.mubr.f32.vlgmr.msra.gmra.mrb[32].mxu1 %v10765_v1 }
 0x779   :  { %v9203_v27 = vpop.eup %9202  ;;  %8179 = vmatpush1.bf16.msra.mxu0 %v8178_v23  ;;  %8211 = vmatpush1.bf16.msra.mxu1 %v8210_v9  ;;  %v3448_v23 = vld [vmem:[#allocation6 + $0x138] sm:$0xff]  ;;  %v8190_v9 = vpack.c.bf16 %v3437_v54, %v3433_v43  ;;  %v3461_v43 = vld [vmem:[#allocation6 + $0x1a0] sm:$0xff]  ;;  %v8200_v54 = vpack.c.bf16 %v3462_v61, %v3458_v40  ;;  %v12469_v40 = vld [vmem:[#allocation24_spill] sm:$0xff] }
 0x77a   :  { %3250 = vmatprep.mubr.f32.mxu0 %v12351_v25  ;;  %3327 = vmatprep.mubr.f32.mxu1 %v12351_v25  ;;  %v10771_v17 = vmul.f32 %v9203_v27, %v9201_v20  ;;  %v8224_v46 = vpack.c.bf16 %v3448_v23, %v3444_v5  ;;  %v3456_v20 = vld [vmem:[#allocation6 + $0x178] sm:$0xff]  ;;  %v8194_v27 = vpack.c.bf16 %v3445_v3, %v3441_v6 }
 0x77b   :  { %8181 = vmatprep.subr.bf16.mxu0 %v8180_v45  ;;  %8213 = vmatprep.subr.bf16.mxu1 %v8212_v7  ;;  %v3443_v45 = vld [vmem:[#allocation6 + $0x110] sm:$0xff]  ;;  %v3472_v5 = vld [vmem:[#allocation6 + $0x1f8] sm:$0xff]  ;;  %v8204_v6 = vpack.c.bf16 %v3470_v0, %v3466_v44 }
 0x77c   :  { %3251 = vmatmul.mubr.f32.gmra.mrb[26].mxu0 %v10771_v17  ;;  %3328 = vmatmul.mubr.f32.gmra.mrb[34].mxu1 %v10771_v17  ;;  %v3447_v7 = vld [vmem:[#allocation6 + $0x130] sm:$0xff]  ;;  %v8236_v3 = vpack.c.bf16 %v3472_v5, %v3468_v62  ;;  %v3904_v5 = vld [vmem:[#allocation8 + $0x78] sm:$0xff] }
 0x77d   :  { %8183 = vmatpush1.bf16.msra.mxu0 %v8182_v36  ;;  %8215 = vmatpush1.bf16.msra.mxu1 %v8214_v30  ;;  %v8226_v36 = vpack.c.bf16 %v3447_v7, %v3443_v45  ;;  %v3449_v30 = vld [vmem:[#allocation6 + $0x140] sm:$0xff]  ;;  %v3471_v45 = vld [vmem:[#allocation6 + $0x1f0] sm:$0xff]  ;;  %v3890_v7 = vld [vmem:[#allocation8 + $0x8] sm:$0xff] }
 0x77e   :  { %8185 = vmatprep.subr.bf16.mxu0 %v8184_v4  ;;  %8217 = vmatprep.subr.bf16.mxu1 %v8216_v59  ;;  %v8228_v4 = vpack.c.bf16 %v3456_v20, %v3452_v19  ;;  %v3451_v59 = vld [vmem:[#allocation6 + $0x150] sm:$0xff]  ;;  %v8198_v48 = vpack.c.bf16 %v3453_v38, %v3449_v30  ;;  %v10777_v20 = vpack.c.bf16 %v3894_v18, %v3890_v7  ;;  %v3898_v30 = vld [vmem:[#allocation8 + $0x48] sm:$0xff]  ;;  %v3909_v7 = vld [vmem:[#allocation8 + $0xa0] sm:$0xff] }
 0x77f   :  { %3559 = vmatprep.mubr.f32.mxu0 %v12351_v25  ;;  %3720 = vmatprep.mubr.f32.mxu1 %v12351_v25  ;;  %v3902_v38 = vld [vmem:[#allocation8 + $0x68] sm:$0xff]  ;;  %v3891_v44 = vld [vmem:[#allocation8 + $0x10] sm:$0xff]  ;;  %v3912_v18 = vld [vmem:[#allocation8 + $0xb8] sm:$0xff] }
 0x780   :  { %12468 = vst [vmem:[#allocation30_spill] sm:$0xff] %v10777_v20  ;;  %v3895_v0 = vld [vmem:[#allocation8 + $0x30] sm:$0xff] }
 0x781   :  { %8187 = vmatpush1.bf16.msra.mxu0 %v8186_v12  ;;  %8219 = vmatpush1.bf16.msra.mxu1 %v8218_v8  ;;  %v8230_v12 = vpack.c.bf16 %v3455_v16, %v3451_v59  ;;  %v3457_v8 = vld [vmem:[#allocation6 + $0x180] sm:$0xff]  ;;  %v10847_v62 = vpack.c.bf16 %v3895_v0, %v3891_v44 }
 0x782   :  { %8189 = vmatprep.subr.bf16.mxu0 %v8188_v10  ;;  %8221 = vmatprep.subr.bf16.mxu1 %v8220_v24  ;;  %v8232_v10 = vpack.c.bf16 %v3464_v42, %v3460_v63  ;;  %v3459_v24 = vld [vmem:[#allocation6 + $0x190] sm:$0xff]  ;;  %v8202_v23 = vpack.c.bf16 %v3461_v43, %v3457_v8  ;;  %v3897_v59 = vld [vmem:[#allocation8 + $0x40] sm:$0xff]  ;;  %v12471_v42 = vld [vmem:[#allocation40_spill] sm:$0xff] }
 0x783   :  { %v3901_v16 = vld [vmem:[#allocation8 + $0x60] sm:$0xff]  ;;  %v12470_v63 = vld [vmem:[#allocation25_spill] sm:$0xff] }
 0x784   :  { %v10789_v61 = vpack.c.bf16 %v3901_v16, %v3897_v59  ;;  %v12474_v8 = vld [vmem:[#allocation27_spill] sm:$0xff]  ;;  %v12475_v43 = vld [vmem:[#allocation45_spill] sm:$0xff]  ;;  %v3918_v59 = vld [vmem:[#allocation8 + $0xe8] sm:$0xff] }
 0x785   :  { %8191 = vmatpush1.bf16.msra.mxu0 %v8190_v9  ;;  %8223 = vmatpush1.bf16.msra.mxu1 %v8222_v50  ;;  %v8234_v9 = vpack.c.bf16 %v3463_v15, %v3459_v24  ;;  %v3465_v50 = vld [vmem:[#allocation6 + $0x1c0] sm:$0xff]  ;;  %v12478_v24 = vld [vmem:[#allocation29_spill] sm:$0xff]  ;;  %v3916_v16 = vld [vmem:[#allocation8 + $0xd8] sm:$0xff] }
 0x786   :  { %8193 = vmatprep.subr.bf16.mxu0 %v8192_v32  ;;  %8225 = vmatprep.subr.bf16.mxu1 %v8224_v46  ;;  %v3469_v32 = vld [vmem:[#allocation6 + $0x1e0] sm:$0xff]  ;;  %v3467_v46 = vld [vmem:[#allocation6 + $0x1d0] sm:$0xff] }
 0x787   :  { %v8206_v31 = vpack.c.bf16 %v3469_v32, %v3465_v50  ;;  %v8238_v19 = vpack.c.bf16 %v3471_v45, %v3467_v46  ;;  %v3908_v32 = vld [vmem:[#allocation8 + $0x98] sm:$0xff]  ;;  %v3905_v45 = vld [vmem:[#allocation8 + $0x80] sm:$0xff] }
 0x789   :  { %8195 = vmatpush1.bf16.msra.mxu0 %v8194_v27  ;;  %8227 = vmatpush1.bf16.msra.mxu1 %v8226_v36  ;;  %v3889_v27 = vld [vmem:[#allocation8] sm:$0xff] }
 0x78a   :  { %8197 = vmatprep.subr.bf16.mxu0 %v8196_v52  ;;  %8229 = vmatprep.subr.bf16.mxu1 %v8228_v4  ;;  %v3893_v36 = vld [vmem:[#allocation8 + $0x20] sm:$0xff]  ;;  %v10782_v4 = vpack.c.bf16 %v3902_v38, %v3898_v30  ;;  %v3914_v38 = vld [vmem:[#allocation8 + $0xc8] sm:$0xff] }
 0x78b   :  { %v10780_v52 = vpack.c.bf16 %v3893_v36, %v3889_v27  ;;  %v3907_v27 = vld [vmem:[#allocation8 + $0x90] sm:$0xff] }
 0x78c   :  { %v3911_v36 = vld [vmem:[#allocation8 + $0xb0] sm:$0xff] }
 0x78d   :  { %8199 = vmatpush1.bf16.msra.mxu0 %v8198_v48  ;;  %8231 = vmatpush1.bf16.msra.mxu1 %v8230_v12  ;;  %v12472_v48 = vld [vmem:[#allocation41_spill] sm:$0xff]  ;;  %v12473_v12 = vld [vmem:[#allocation26_spill] sm:$0xff]  ;;  %v10864_v30 = vpack.c.bf16 %v3911_v36, %v3907_v27  ;;  %v3942_v27 = vld [vmem:[#allocation8 + $0x1a8] sm:$0xff] }
 0x78e   :  { %8201 = vmatprep.subr.bf16.mxu0 %v8200_v54  ;;  %8233 = vmatprep.subr.bf16.mxu1 %v8232_v10  ;;  %v12476_v54 = vld [vmem:[#allocation46_spill] sm:$0xff]  ;;  %v12477_v10 = vld [vmem:[#allocation28_spill] sm:$0xff]  ;;  %v3923_v36 = vld [vmem:[#allocation8 + $0x110] sm:$0xff] }
 0x791   :  { %8203 = vmatpush1.bf16.msra.mxu0 %v8202_v23  ;;  %8235 = vmatpush1.bf16.msra.mxu1 %v8234_v9  ;;  %v3903_v9 = vld [vmem:[#allocation8 + $0x70] sm:$0xff] }
 0x792   :  { %8205 = vmatprep.subr.bf16.mxu0 %v8204_v6  ;;  %8237 = vmatprep.subr.bf16.mxu1 %v8236_v3  ;;  %v3906_v6 = vld [vmem:[#allocation8 + $0x88] sm:$0xff] }
 0x793   :  { %v3910_v3 = vld [vmem:[#allocation8 + $0xa8] sm:$0xff] }
 0x794   :  { %v10857_v46 = vpack.c.bf16 %v3910_v3, %v3906_v6  ;;  %v3933_v3 = vld [vmem:[#allocation8 + $0x160] sm:$0xff] }
 0x795   :  { %8207 = vmatpush1.bf16.msra.mxu0 %v8206_v31  ;;  %8239 = vmatpush1.bf16.msra.mxu1 %v8238_v19  ;;  %v10859_v31 = vpack.c.bf16 %v3909_v7, %v3905_v45  ;;  %v10861_v19 = vpack.c.bf16 %v3912_v18, %v3908_v32  ;;  %v3924_v32 = vld [vmem:[#allocation8 + $0x118] sm:$0xff]  ;;  %v3938_v18 = vld [vmem:[#allocation8 + $0x188] sm:$0xff] }
 0x796   :  { %8241 = vmatprep.subr.bf16.mxu0 %v10777_v20  ;;  %v3928_v45 = vld [vmem:[#allocation8 + $0x138] sm:$0xff] }
 0x797   :  { %v10887_v7 = vpack.c.bf16 %v3928_v45, %v3924_v32  ;;  %v3944_v32 = vld [vmem:[#allocation8 + $0x1b8] sm:$0xff] }
 0x798   :  { %3560 = vmatmul.mubr.f32.vlgmr.msra.gmra.mrb[28].mxu0 %v12469_v40  ;;  %3721 = vmatmul.mubr.f32.vlgmr.msra.gmra.mrb[36].mxu1 %v12469_v40  ;;  %v10868_v40 = vpack.c.bf16 %v3918_v59, %v3914_v38  ;;  %v3927_v38 = vld [vmem:[#allocation8 + $0x130] sm:$0xff] }
 0x799   :  { %3565 = vmatprep.mubr.f32.mxu0 %v12351_v25  ;;  %3726 = vmatprep.mubr.f32.mxu1 %v12351_v25  ;;  %12482 = vst [vmem:[#allocation34_spill] sm:$0xff] %v10887_v7 }
 0x79a   :  { %8243 = vmatpush1.bf16.msra.mxu0 %v10780_v52 }
 0x79b   :  { %8245 = vmatprep.subr.bf16.mxu0 %v10782_v4 }
 0x79c   :  { %3566 = vmatmul.mubr.f32.gmra.mrb[30].mxu0 %v12470_v63  ;;  %3727 = vmatmul.mubr.f32.gmra.mrb[38].mxu1 %v12470_v63  ;;  %v3913_v63 = vld [vmem:[#allocation8 + $0xc0] sm:$0xff] }
 0x79d   :  { %3571 = vmatprep.mubr.f32.mxu0 %v12351_v25  ;;  %3732 = vmatprep.mubr.f32.mxu1 %v12351_v25 }
 0x79e   :  { %8247 = vmatpush1.bf16.msra.mxu0 %v10789_v61 }
 0x79f   :  { %8249 = vmatprep.subr.bf16.mxu0 %v10857_v46 }
 0x7a0   :  { %3572 = vmatmul.mubr.f32.gmra.mrb[32].mxu0 %v12471_v42  ;;  %3733 = vmatmul.mubr.f32.gmra.mrb[40].mxu1 %v12471_v42  ;;  %v3917_v42 = vld [vmem:[#allocation8 + $0xe0] sm:$0xff] }
 0x7a1   :  { %3577 = vmatprep.mubr.f32.mxu0 %v12351_v25  ;;  %3738 = vmatprep.mubr.f32.mxu1 %v12351_v25 }
 0x7a2   :  { %8251 = vmatpush1.bf16.msra.mxu0 %v10859_v31 }
 0x7a3   :  { %8253 = vmatprep.subr.bf16.mxu0 %v10868_v40 }
 0x7a4   :  { %3578 = vmatmul.mubr.f32.gmra.mrb[34].mxu0 %v12472_v48  ;;  %3739 = vmatmul.mubr.f32.gmra.mrb[42].mxu1 %v12472_v48  ;;  %v3922_v48 = vld [vmem:[#allocation8 + $0x108] sm:$0xff] }
 0x7a5   :  { %3583 = vmatprep.mubr.f32.mxu0 %v12351_v25  ;;  %3744 = vmatprep.mubr.f32.mxu1 %v12351_v25 }
 0x7a8   :  { %3584 = vmatmul.mubr.f32.gmra.mrb[36].mxu0 %v12473_v12  ;;  %3745 = vmatmul.mubr.f32.gmra.mrb[44].mxu1 %v12473_v12  ;;  %v10871_v12 = vpack.c.bf16 %v3917_v42, %v3913_v63  ;;  %v3932_v63 = vld [vmem:[#allocation8 + $0x158] sm:$0xff] }
 0x7a9   :  { %3589 = vmatprep.mubr.f32.mxu0 %v12351_v25  ;;  %3750 = vmatprep.mubr.f32.mxu1 %v12351_v25  ;;  %v3936_v42 = vld [vmem:[#allocation8 + $0x178] sm:$0xff] }
 0x7aa   :  { %8255 = vmatpush1.bf16.msra.mxu0 %v10871_v12 }
 0x7ac   :  { %3590 = vmatmul.mubr.f32.gmra.mrb[38].mxu0 %v12474_v8  ;;  %3751 = vmatmul.mubr.f32.gmra.mrb[46].mxu1 %v12474_v8  ;;  %v3926_v8 = vld [vmem:[#allocation8 + $0x128] sm:$0xff] }
 0x7ad   :  { %3595 = vmatprep.mubr.f32.mxu0 %v12351_v25  ;;  %3756 = vmatprep.mubr.f32.mxu1 %v12351_v25 }
 0x7b0   :  { %3596 = vmatmul.mubr.f32.gmra.mrb[40].mxu0 %v12475_v43  ;;  %3757 = vmatmul.mubr.f32.gmra.mrb[48].mxu1 %v12475_v43  ;;  %v3921_v43 = vld [vmem:[#allocation8 + $0x100] sm:$0xff] }
 0x7b1   :  { %3601 = vmatprep.mubr.f32.mxu0 %v12351_v25  ;;  %3762 = vmatprep.mubr.f32.mxu1 %v12351_v25 }
 0x7b4   :  { %3602 = vmatmul.mubr.f32.gmra.mrb[42].mxu0 %v12476_v54  ;;  %3763 = vmatmul.mubr.f32.gmra.mrb[50].mxu1 %v12476_v54  ;;  %v3925_v54 = vld [vmem:[#allocation8 + $0x120] sm:$0xff] }
 0x7b5   :  { %3607 = vmatprep.mubr.f32.mxu0 %v12351_v25  ;;  %3768 = vmatprep.mubr.f32.mxu1 %v12351_v25  ;;  %v10877_v44 = vpack.c.bf16 %v3925_v54, %v3921_v43  ;;  %v3937_v43 = vld [vmem:[#allocation8 + $0x180] sm:$0xff] }
 0x7b6   :  { %v3941_v54 = vld [vmem:[#allocation8 + $0x1a0] sm:$0xff] }
 0x7b7   :  { %12480 = vst [vmem:[#allocation32_spill] sm:$0xff] %v10877_v44 }
 0x7b8   :  { %3608 = vmatmul.mubr.f32.gmra.mrb[44].mxu0 %v12477_v10  ;;  %3769 = vmatmul.mubr.f32.gmra.mrb[52].mxu1 %v12477_v10  ;;  %v10874_v10 = vpack.c.bf16 %v3926_v8, %v3922_v48  ;;  %v3931_v48 = vld [vmem:[#allocation8 + $0x150] sm:$0xff]  ;;  %v10897_v8 = vpack.c.bf16 %v3942_v27, %v3938_v18 }
 0x7b9   :  { %3613 = vmatprep.mubr.f32.mxu0 %v12351_v25  ;;  %3774 = vmatprep.mubr.f32.mxu1 %v12351_v25  ;;  %v3939_v27 = vld [vmem:[#allocation8 + $0x190] sm:$0xff] }
 0x7ba   :  { %8257 = vmatprep.subr.bf16.mxu0 %v10874_v10  ;;  %12485 = vst [vmem:[#allocation37_spill] sm:$0xff] %v10897_v8 }
 0x7bb   :  { %8259 = vmatpush1.bf16.msra.mxu0 %v10877_v44 }
 0x7bc   :  { %3614 = vmatmul.mubr.f32.gmra.mrb[46].mxu0 %v12478_v24  ;;  %3775 = vmatmul.mubr.f32.gmra.mrb[54].mxu1 %v12478_v24  ;;  %v3920_v24 = vld [vmem:[#allocation8 + $0xf8] sm:$0xff] }
 0x7bd   :  { %3619 = vmatprep.mubr.f32.mxu0 %v12351_v25  ;;  %3780 = vmatprep.mubr.f32.mxu1 %v12351_v25  ;;  %v10879_v0 = vpack.c.bf16 %v3920_v24, %v3916_v16  ;;  %v10894_v16 = vpack.c.bf16 %v3927_v38, %v3923_v36  ;;  %v10899_v24 = vpack.c.bf16 %v3936_v42, %v3932_v63  ;;  %v3943_v36 = vld [vmem:[#allocation8 + $0x1b0] sm:$0xff]  ;;  %v3945_v38 = vld [vmem:[#allocation8 + $0x1c0] sm:$0xff] }
 0x7be   :  { %v3949_v63 = vld [vmem:[#allocation8 + $0x1e0] sm:$0xff]  ;;  %v10914_v42 = vpack.c.bf16 %v3943_v36, %v3939_v27  ;;  %v164_v36 = vpop.permute.xlu0 %163 }
 0x7bf   :  { %12484 = vst [vmem:[#allocation36_spill] sm:$0xff] %v10894_v16  ;;  %12486 = vst [vmem:[#allocation38_spill] sm:$0xff] %v10899_v24 }
 0x7c0   :  { %3620 = vmatmul.mubr.f32.gmra.mrb[48].mxu0 %v10664_v53  ;;  %3781 = vmatmul.mubr.f32.gmra.mrb[56].mxu1 %v10664_v53  ;;  %v3892_v53 = vld [vmem:[#allocation8 + $0x18] sm:$0xff]  ;;  %12491 = vst [vmem:[#allocation47_spill] sm:$0xff] %v10914_v42 }
 0x7c1   :  { %3625 = vmatprep.mubr.f32.mxu0 %v12351_v25  ;;  %3786 = vmatprep.mubr.f32.mxu1 %v12351_v25 }
 0x7c4   :  { %3626 = vmatmul.mubr.f32.gmra.mrb[50].mxu0 %v10670_v57  ;;  %3787 = vmatmul.mubr.f32.gmra.mrb[58].mxu1 %v10670_v57  ;;  %v3896_v57 = vld [vmem:[#allocation8 + $0x38] sm:$0xff] }
 0x7c5   :  { %3631 = vmatprep.mubr.f32.mxu0 %v12351_v25  ;;  %3792 = vmatprep.mubr.f32.mxu1 %v12351_v25  ;;  %v10845_v15 = vpack.c.bf16 %v3896_v57, %v3892_v53  ;;  %v3930_v53 = vld [vmem:[#allocation8 + $0x148] sm:$0xff] }
 0x7c6   :  { %v3934_v57 = vld [vmem:[#allocation8 + $0x168] sm:$0xff] }
 0x7c7   :  { %12479 = vst [vmem:[#allocation31_spill] sm:$0xff] %v10845_v15  ;;  %8273 = vmatprep.subr.bf16.mxu1 %v10845_v15 }
 0x7c8   :  { %3632 = vmatmul.mubr.f32.gmra.mrb[52].mxu0 %v10765_v1  ;;  %3793 = vmatmul.mubr.f32.gmra.mrb[60].mxu1 %v10765_v1  ;;  %v3900_v1 = vld [vmem:[#allocation8 + $0x58] sm:$0xff] }
 0x7c9   :  { %3637 = vmatprep.mubr.f32.mxu0 %v12351_v25  ;;  %3798 = vmatprep.mubr.f32.mxu1 %v12351_v25  ;;  %v10851_v23 = vpack.c.bf16 %v3904_v5, %v3900_v1  ;;  %v3915_v1 = vld [vmem:[#allocation8 + $0xd0] sm:$0xff] }
 0x7ca   :  { %8275 = vmatpush1.bf16.msra.mxu1 %v10847_v62  ;;  %v3919_v5 = vld [vmem:[#allocation8 + $0xf0] sm:$0xff] }
 0x7cb   :  { %8277 = vmatprep.subr.bf16.mxu1 %v10851_v23  ;;  %v10884_v6 = vpack.c.bf16 %v3919_v5, %v3915_v1  ;;  %v3950_v1 = vld [vmem:[#allocation8 + $0x1e8] sm:$0xff] }
 0x7cc   :  { %3638 = vmatmul.mubr.f32.gmra.mrb[54].mxu0 %v10771_v17  ;;  %3799 = vmatmul.mubr.f32.gmra.mrb[62].mxu1 %v10771_v17  ;;  %v3899_v17 = vld [vmem:[#allocation8 + $0x50] sm:$0xff] }
 0x7cd   :  { %3643 = vmatprep.mubr.f32.mxu0 %v12351_v25  ;;  %3804 = vmatprep.mubr.f32.mxu1 %v12351_v25  ;;  %v10853_v50 = vpack.c.bf16 %v3903_v9, %v3899_v17  ;;  %v3929_v17 = vld [vmem:[#allocation8 + $0x140] sm:$0xff]  ;;  %v10882_v9 = vpack.c.bf16 %v3934_v57, %v3930_v53  ;;  %v3935_v53 = vld [vmem:[#allocation8 + $0x170] sm:$0xff]  ;;  %v3946_v57 = vld [vmem:[#allocation8 + $0x1c8] sm:$0xff] }
 0x7ce   :  { %v10891_v59 = vpack.c.bf16 %v3933_v3, %v3929_v17  ;;  %v10902_v5 = vpack.c.bf16 %v3935_v53, %v3931_v48  ;;  %v10905_v17 = vpack.c.bf16 %v3941_v54, %v3937_v43  ;;  %v3940_v3 = vld [vmem:[#allocation8 + $0x198] sm:$0xff]  ;;  %v10909_v45 = vpack.c.bf16 %v3950_v1, %v3946_v57  ;;  %v3947_v57 = vld [vmem:[#allocation8 + $0x1d0] sm:$0xff] }
 0x7cf   :  { %8279 = vmatpush1.bf16.msra.mxu1 %v10853_v50  ;;  %12481 = vst [vmem:[#allocation33_spill] sm:$0xff] %v10882_v9  ;;  %8261 = vmatprep.subr.bf16.mxu0 %v10882_v9  ;;  %v10911_v18 = vpack.c.bf16 %v3944_v32, %v3940_v3  ;;  %v10917_v48 = vpack.c.bf16 %v3949_v63, %v3945_v38  ;;  %v3948_v43 = vld [vmem:[#allocation8 + $0x1d8] sm:$0xff]  ;;  %v3951_v1 = vld [vmem:[#allocation8 + $0x1f0] sm:$0xff]  ;;  %v331_v32 = vpop.permute.xlu1 %330  ;;  %v169_v63 = vpop.permute.xlu0 %168 }
 0x7d0   :  { %8281 = vmatprep.subr.bf16.mxu1 %v10861_v19  ;;  %12483 = vst [vmem:[#allocation35_spill] sm:$0xff] %v10891_v59  ;;  %12487 = vst [vmem:[#allocation39_spill] sm:$0xff] %v10902_v5  ;;  %8263 = vmatpush1.bf16.msra.mxu0 %v10891_v59  ;;  %v3952_v54 = vld [vmem:[#allocation8 + $0x1f8] sm:$0xff]  ;;  %v10924_v3 = vpack.c.bf16 %v3951_v1, %v3947_v57  ;;  %v430_v57 = vmul.f32 %v12461_v58, %v331_v32 }
 0x7d1   :  { %12488 = vst [vmem:[#allocation42_spill] sm:$0xff] %v10905_v17  ;;  %8265 = vmatprep.subr.bf16.mxu0 %v10897_v8  ;;  %12489 = vst [vmem:[#allocation43_spill] sm:$0xff] %v10909_v45  ;;  %v10921_v53 = vpack.c.bf16 %v3952_v54, %v3948_v43  ;;  %v429_v43 = vmul.f32 %v12459_v37, %v331_v32  ;;  %v265_v54 = vmul.f32 %v12460_v22, %v164_v36 }
 0x7d2   :  { %12490 = vst [vmem:[#allocation44_spill] sm:$0xff] %v10911_v18  ;;  %12492 = vst [vmem:[#allocation48_spill] sm:$0xff] %v10917_v48  ;;  %v266_v1 = vmul.f32 %v12462_v28, %v164_v36  ;;  %v268_v59 = vmul.f32 %v12467_v47, %v164_v36 }
 0x7d3   :  { %8283 = vmatpush1.bf16.msra.mxu1 %v10864_v30  ;;  %12493 = vst [vmem:[#allocation18_spill] sm:$0xff] %v10921_v53  ;;  %12494 = vst [vmem:[#allocation17_spill] sm:$0xff] %v10924_v3  ;;  %v559_v27 = vpop.permute.xlu1 %558  ;;  %v787_v8 = vpop.permute.xlu0 %786 }
 0x7d4   :  { %8285 = vmatprep.subr.bf16.mxu1 %v10879_v0  ;;  %8267 = vmatpush1.bf16.msra.mxu0 %v10905_v17  ;;  %v270_v17 = vmul.f32 %v12462_v28, %v169_v63  ;;  %v660_v44 = vmul.f32 %v9884_v56, %v559_v27 }
 0x7d5   :  { %8269 = vmatprep.subr.bf16.mxu0 %v10909_v45  ;;  %v494_v45 = vadd.f32 %v430_v57, %v266_v1 }
 0x7d7   :  { %8287 = vmatpush1.bf16.msra.mxu1 %v10884_v6  ;;  %v335_v38 = vpop.permute.xlu1 %334 }
 0x7d8   :  { %8289 = vmatprep.subr.bf16.mxu1 %v10887_v7  ;;  %8271 = vmatpush1.bf16.msra.mxu0 %v10917_v48  ;;  %v272_v7 = vmul.f32 %v12467_v47, %v169_v63 }
 0x7d9   :  { %8305 = vmatprep.subr.bf16.mxu0 %v10777_v20  ;;  %v657_v20 = vmul.f32 %v12464_v26, %v559_v27 }
 0x7db   :  { %8291 = vmatpush1.bf16.msra.mxu1 %v10894_v16  ;;  %v563_v48 = vpop.permute.xlu1 %562 }
 0x7dc   :  { %8293 = vmatprep.subr.bf16.mxu1 %v10899_v24  ;;  %v662_v57 = vmul.f32 %v12465_v51, %v563_v48  ;;  %v664_v47 = vmul.f32 %v9884_v56, %v563_v48 }
 0x7df   :  { %8295 = vmatpush1.bf16.msra.mxu1 %v10902_v5  ;;  %v432_v5 = vmul.f32 %v12466_v13, %v331_v32  ;;  %v791_v1 = vpop.permute.xlu1 %790 }
 0x7e0   :  { %8297 = vmatprep.subr.bf16.mxu1 %v10911_v18  ;;  %v434_v18 = vmul.f32 %v12461_v58, %v335_v38  ;;  %v431_v58 = vmul.f32 %v9872_v34, %v331_v32  ;;  %v892_v56 = vmul.f32 %v9905_v14, %v791_v1 }
 0x7e1   :  { %v496_v16 = vadd.f32 %v432_v5, %v268_v59  ;;  %v435_v59 = vmul.f32 %v9872_v34, %v335_v38  ;;  %v887_v34 = vmul.f32 %v9902_v11, %v787_v8 }
 0x7e2   :  { %v498_v9 = vadd.f32 %v434_v18, %v270_v17  ;;  %v890_v18 = vmul.f32 %v9808_v21, %v791_v1 }
 0x7e3   :  { %8299 = vmatpush1.bf16.msra.mxu1 %v10914_v42  ;;  %v658_v42 = vmul.f32 %v12465_v51, %v559_v27 }
 0x7e4   :  { %8301 = vmatprep.subr.bf16.mxu1 %v10921_v53  ;;  %v493_v53 = vadd.f32 %v429_v43, %v265_v54  ;;  %v885_v43 = vmul.f32 %v9821_v29, %v787_v8  ;;  %v661_v54 = vmul.f32 %v12464_v26, %v563_v48  ;;  %v889_v26 = vmul.f32 %v9821_v29, %v791_v1 }
 0x7e5   :  { %v722_v28 = vadd.f32 %v658_v42, %v494_v45  ;;  %v271_v45 = vmul.f32 %v9869_v33, %v169_v63  ;;  %v888_v42 = vmul.f32 %v9905_v14, %v787_v8 }
 0x7e7   :  { %8303 = vmatpush1.bf16.msra.mxu1 %v10924_v3  ;;  %v269_v3 = vmul.f32 %v12460_v22, %v169_v63  ;;  %v721_v22 = vadd.f32 %v657_v20, %v493_v53  ;;  %v726_v53 = vadd.f32 %v662_v57, %v498_v9 }
 0x7e8   :  { %8337 = vmatprep.subr.bf16.mxu1 %v10845_v15  ;;  %v433_v15 = vmul.f32 %v12459_v37, %v335_v38  ;;  %v886_v37 = vmul.f32 %v9808_v21, %v787_v8 }
 0x7e9   :  { %v949_v20 = vadd.f32 %v885_v43, %v721_v22 }
 0x7ea   :  { %v497_v24 = vadd.f32 %v433_v15, %v269_v3  ;;  %v436_v15 = vmul.f32 %v12466_v13, %v335_v38  ;;  %v267_v3 = vmul.f32 %v9869_v33, %v164_v36  ;;  %v950_v51 = vadd.f32 %v886_v37, %v722_v28 }
 0x7eb   :  { %v724_v13 = vadd.f32 %v660_v44, %v496_v16  ;;  %v659_v36 = vmul.f32 %v9881_v41, %v559_v27  ;;  %v1035_v29 = vadd.f32 %v9850_v60, %v949_v20  ;;  %v499_v33 = vadd.f32 %v435_v59, %v271_v45 }
 0x7ec   :  { %v725_v17 = vadd.f32 %v661_v54, %v497_v24  ;;  %v500_v5 = vadd.f32 %v436_v15, %v272_v7  ;;  %v495_v32 = vadd.f32 %v431_v58, %v267_v3  ;;  %v1036_v9 = vadd.f32 %v9844_v49, %v950_v51 }
 0x7ed   :  { %v954_v54 = vadd.f32 %v890_v18, %v726_v53  ;;  %v952_v16 = vadd.f32 %v888_v42, %v724_v13  ;;  %v663_v27 = vmul.f32 %v9881_v41, %v563_v48  ;;  %v891_v41 = vmul.f32 %v9902_v11, %v791_v1 }
 0x7ee   :  { %v953_v24 = vadd.f32 %v889_v26, %v725_v17  ;;  %v728_v22 = vadd.f32 %v664_v47, %v500_v5  ;;  %v723_v57 = vadd.f32 %v659_v36, %v495_v32 }
 0x7ef   :  { %v1040_v26 = vadd.f32 %v9844_v49, %v954_v54  ;;  %v1038_v14 = vadd.f32 %v9933_v39, %v952_v16  ;;  %v727_v45 = vadd.f32 %v663_v27, %v499_v33 }
 0x7f0   :  { %v1039_v28 = vadd.f32 %v9850_v60, %v953_v24  ;;  %v956_v51 = vadd.f32 %v892_v56, %v728_v22  ;;  %v951_v48 = vadd.f32 %v887_v34, %v723_v57 }
 0x7f1   :  { %v955_v42 = vadd.f32 %v891_v41, %v727_v45  ;;  %v12498_v41 = vld [vmem:[#allocation33_spill] sm:$0xff]  ;;  %v12501_v45 = vld [vmem:[#allocation39_spill] sm:$0xff] }
 0x7f2   :  { %v1042_v49 = vadd.f32 %v9933_v39, %v956_v51  ;;  %v1037_v5 = vadd.f32 %v9927_v35, %v951_v48  ;;  %v12497_v51 = vld [vmem:[#allocation36_spill] sm:$0xff]  ;;  %v12499_v48 = vld [vmem:[#allocation38_spill] sm:$0xff] }
 0x84b   :  { %v3246_v43 = vpop.f32.mrb[24].mxu0  ;;  %v3323_v21 = vpop.f32.mrb[32].mxu1 }
 0x84c   :  { %v3334_v7 = vadd.f32 %v3246_v43, %v1035_v29  ;;  %v3248_v38 = vpop.f32.mrb[25].mxu0  ;;  %v3325_v63 = vpop.f32.mrb[33].mxu1  ;;  %v3336_v32 = vadd.f32 %v3323_v21, %v1037_v5  ;;  %v1041_v29 = vadd.f32 %v9927_v35, %v955_v42  ;;  %v12505_v5 = vld [vmem:[#allocation47_spill] sm:$0xff] }
 0x84d   :  { %v3335_v44 = vadd.f32 %v3248_v38, %v1036_v9  ;;  %v3337_v60 = vadd.f32 %v3325_v63, %v1038_v14  ;;  %v12506_v42 = vld [vmem:[#allocation43_spill] sm:$0xff] }
 0x84e   :  { %v7457_v37 = vmul.f32 -1.442695, %v3334_v7 }
 0x84f   :  { %v7459_v58 = vmul.f32 -1.442695, %v3335_v44  ;;  %v3252_v15 = vpop.f32.mrb[26].mxu0  ;;  %v3329_v3 = vpop.f32.mrb[34].mxu1  ;;  %v7461_v47 = vmul.f32 -1.442695, %v3337_v60 }
 0x850   :  { %9204 = vpow2.f32 %v7457_v37  ;;  %v3338_v8 = vadd.f32 %v3252_v15, %v1039_v28  ;;  %v3254_v20 = vpop.f32.mrb[27].mxu0  ;;  %v3331_v17 = vpop.f32.mrb[35].mxu1  ;;  %v3340_v9 = vadd.f32 %v3329_v3, %v1041_v29  ;;  %v12502_v60 = vld [vmem:[#allocation37_spill] sm:$0xff]  ;;  %v12511_v29 = vld [vmem:[#allocation31_spill] sm:$0xff] }
 0x851   :  { %9206 = vpow2.f32 %v7459_v58  ;;  %v3339_v18 = vadd.f32 %v3254_v20, %v1040_v26  ;;  %v3341_v13 = vadd.f32 %v3331_v17, %v1042_v49  ;;  %v12504_v49 = vld [vmem:[#allocation42_spill] sm:$0xff] }
 0x852   :  { %v7458_v53 = vmul.f32 -1.442695, %v3338_v8 }
 0x853   :  { %v7460_v59 = vmul.f32 -1.442695, %v3339_v18  ;;  %v7462_v1 = vmul.f32 -1.442695, %v3341_v13  ;;  %v12496_v18 = vld [vmem:[#allocation32_spill] sm:$0xff] }
 0x854   :  { %9208 = vpow2.f32 %v7458_v53  ;;  %v12500_v53 = vld [vmem:[#allocation35_spill] sm:$0xff]  ;;  %v12508_v13 = vld [vmem:[#allocation48_spill] sm:$0xff] }
 0x855   :  { %9210 = vpow2.f32 %v7460_v59  ;;  %v12503_v59 = vld [vmem:[#allocation44_spill] sm:$0xff] }
 0x856   :  { %9212 = vpow2.f32 %v7461_v47  ;;  %v12507_v47 = vld [vmem:[#allocation18_spill] sm:$0xff] }
 0x857   :  { %9214 = vtanh.f32 %v3336_v32  ;;  %v12509_v32 = vld [vmem:[#allocation17_spill] sm:$0xff] }
 0x85a   :  { %v9205_v36 = vpop.eup %9204 }
 0x85b   :  { %v9207_v24 = vpop.eup %9206  ;;  %v3348_v11 = vadd.f32 1.0, %v9205_v36  ;;  %v12510_v36 = vld [vmem:[#allocation30_spill] sm:$0xff] }
 0x85c   :  { %v3360_v43 = vadd.f32 1.0, %v9207_v24  ;;  %v3473_v24 = vld [vmem:[%s12159_s6] sm:$0xf] }
 0x85d   :  { %9216 = vrcp.f32 %v3348_v11  ;;  %v12512_v11 = vld [vmem:[#allocation12_spill] sm:$0xff] }
 0x85e   :  { %v9209_v54 = vpop.eup %9208  ;;  %9218 = vrcp.f32 %v3360_v43  ;;  %v12513_v43 = vld [vmem:[#allocation13_spill] sm:$0xff] }
 0x85f   :  { %v9211_v39 = vpop.eup %9210  ;;  %v3349_v33 = vadd.f32 1.0, %v9209_v54  ;;  %9220 = vpow2.f32 %v7462_v1  ;;  %v11021_v1 = vrot.slane %v3473_v24, %v12512_v11 }
 0x860   :  { %9222 = vtanh.f32 %v3340_v9  ;;  %v3361_v34 = vadd.f32 1.0, %v9211_v39  ;;  %v9213_v21 = vpop.eup %9212  ;;  %v11024_v9 = vrot.slane %v3473_v24, %v12513_v43 }
 0x861   :  { %9224 = vrcp.f32 %v3349_v33  ;;  %v9215_v7 = vpop.eup %9214  ;;  %v3374_v56 = vadd.f32 1.0, %v9213_v21 }
 0x862   :  { %9226 = vrcp.f32 %v3361_v34 }
 0x863   :  { %9228 = vrcp.f32 %v3374_v56 }
 0x867   :  { %v9217_v35 = vpop.eup %9216 }
 0x868   :  { %v9219_v38 = vpop.eup %9218  ;;  %v3382_v63 = vmul.f32 %v9217_v35, %v9215_v7 }
 0x869   :  { %v9221_v44 = vpop.eup %9220  ;;  %v3380_v16 = vmul.f32 %v9219_v38, %v10758_v2 }
 0x86a   :  { %v9223_v22 = vpop.eup %9222  ;;  %v3375_v58 = vadd.f32 1.0, %v9221_v44 }
 0x86b   :  { %v9225_v27 = vpop.eup %9224  ;;  %v3384_v37 = vadd.f32 %v3382_v63, %v3380_v16  ;;  %v12514_v63 = vld [vmem:[#allocation19_spill] sm:$0xff] }
 0x86c   :  { %v9227_v57 = vpop.eup %9226  ;;  %v3383_v28 = vmul.f32 %v9225_v27, %v9223_v22  ;;  %v11029_v56 = vrot.slane %v3473_v24, %v12514_v63 }
 0x86d   :  { %v3381_v15 = vmul.f32 %v9227_v57, %v10762_v55  ;;  %9230 = vtanh.f32 %v3384_v37  ;;  %v9229_v26 = vpop.eup %9228  ;;  %v12495_v55 = vld [vmem:[#allocation34_spill] sm:$0xff] }
 0x86e   :  { %9232 = vrcp.f32 %v3375_v58 }
 0x86f   :  { %v3385_v3 = vadd.f32 %v3383_v28, %v3381_v15 }
 0x871   :  { %9234 = vtanh.f32 %v3385_v3  ;;  %v12515_v3 = vld [vmem:[#allocation14_spill] sm:$0xff] }
 0x877   :  { %v9231_v8 = vpop.eup %9230 }
 0x878   :  { %v3388_v20 = vmul.f32 %v9231_v8, %v9229_v26  ;;  %v9233_v17 = vpop.eup %9232  ;;  %v11035_v26 = vrot.slane %v3473_v24, %v12515_v3 }
 0x87a   :  { %3644 = vmatmul.mubr.f32.gmra.mrb[56].mxu0 %v3388_v20  ;;  %3805 = vmatmul.mubr.f32.gmra.mrb[64].mxu1 %v3388_v20 }
 0x87b   :  { %v9235_v2 = vpop.eup %9234  ;;  %3649 = vmatprep.mubr.f32.mxu0 %v12351_v25  ;;  %3810 = vmatprep.mubr.f32.mxu1 %v12351_v25 }
 0x87c   :  { %v3389_v14 = vmul.f32 %v9235_v2, %v9233_v17 }
 0x87e   :  { %3650 = vmatmul.mubr.f32.gmra.mrb[58].mxu0 %v3389_v14  ;;  %3811 = vmatmul.mubr.f32.gmra.mrb[66].mxu1 %v3389_v14 }
 0x87f   :  { %4017 = vmatprep.mubr.f32.mxu0 %v12351_v25  ;;  %4094 = vmatprep.mubr.f32.mxu1 %v12351_v25 }
 0x882   :  { %4018 = vmatmul.mubr.f32.vlgmr.msra.gmra.mrb[28].mxu0 %v12351_v25  ;;  %4095 = vmatmul.mubr.f32.vlgmr.msra.gmra.mrb[36].mxu1 %v12351_v25 }
 0x883   :  { %4023 = vmatprep.mubr.f32.mxu0 %v12351_v25  ;;  %4100 = vmatprep.mubr.f32.mxu1 %v12351_v25 }
 0x884   :  { %8307 = vmatpush1.bf16.msra.mxu0 %v10780_v52  ;;  %8339 = vmatpush1.bf16.msra.mxu1 %v10847_v62 }
 0x885   :  { %8309 = vmatprep.subr.bf16.mxu0 %v10782_v4  ;;  %8341 = vmatprep.subr.bf16.mxu1 %v10851_v23 }
 0x886   :  { %4024 = vmatmul.mubr.f32.gmra.mrb[30].mxu0 %v12351_v25  ;;  %4101 = vmatmul.mubr.f32.gmra.mrb[38].mxu1 %v12351_v25 }
 0x887   :  { %4301 = vmatprep.mubr.f32.mxu0 %v12351_v25  ;;  %4378 = vmatprep.mubr.f32.mxu1 %v12351_v25 }
 0x888   :  { %8311 = vmatpush1.bf16.msra.mxu0 %v10789_v61  ;;  %8343 = vmatpush1.bf16.msra.mxu1 %v10853_v50 }
 0x889   :  { %8313 = vmatprep.subr.bf16.mxu0 %v10857_v46  ;;  %8345 = vmatprep.subr.bf16.mxu1 %v10861_v19 }
 0x88c   :  { %8315 = vmatpush1.bf16.msra.mxu0 %v10859_v31  ;;  %8347 = vmatpush1.bf16.msra.mxu1 %v10864_v30 }
 0x88d   :  { %8317 = vmatprep.subr.bf16.mxu0 %v10868_v40  ;;  %8349 = vmatprep.subr.bf16.mxu1 %v10879_v0 }
 0x890   :  { %8319 = vmatpush1.bf16.msra.mxu0 %v10871_v12  ;;  %8351 = vmatpush1.bf16.msra.mxu1 %v10884_v6 }
 0x891   :  { %8321 = vmatprep.subr.bf16.mxu0 %v10874_v10  ;;  %8353 = vmatprep.subr.bf16.mxu1 %v12495_v55 }
 0x894   :  { %8323 = vmatpush1.bf16.msra.mxu0 %v12496_v18  ;;  %8355 = vmatpush1.bf16.msra.mxu1 %v12497_v51 }
 0x895   :  { %8325 = vmatprep.subr.bf16.mxu0 %v12498_v41  ;;  %8357 = vmatprep.subr.bf16.mxu1 %v12499_v48 }
 0x898   :  { %8327 = vmatpush1.bf16.msra.mxu0 %v12500_v53  ;;  %8359 = vmatpush1.bf16.msra.mxu1 %v12501_v45 }
 0x899   :  { %8329 = vmatprep.subr.bf16.mxu0 %v12502_v60  ;;  %8361 = vmatprep.subr.bf16.mxu1 %v12503_v59 }
 0x89c   :  { %8331 = vmatpush1.bf16.msra.mxu0 %v12504_v49  ;;  %8363 = vmatpush1.bf16.msra.mxu1 %v12505_v5 }
 0x89d   :  { %8333 = vmatprep.subr.bf16.mxu0 %v12506_v42  ;;  %8365 = vmatprep.subr.bf16.mxu1 %v12507_v47 }
 0x8a0   :  { %8335 = vmatpush1.bf16.msra.mxu0 %v12508_v13  ;;  %8367 = vmatpush1.bf16.msra.mxu1 %v12509_v32 }
 0x8a1   :  { %8369 = vmatprep.subr.bf16.mxu0 %v12510_v36  ;;  %8401 = vmatprep.subr.bf16.mxu1 %v12511_v29 }
 0x955   :  { %v4019_v54 = vpop.f32.mrb[28].mxu0  ;;  %v4096_v39 = vpop.f32.mrb[36].mxu1 }
 0x956   :  { %v8784_v33 = vadd.f32 %v4019_v54, %v11021_v1  ;;  %v4021_v34 = vpop.f32.mrb[29].mxu0  ;;  %v4098_v21 = vpop.f32.mrb[37].mxu1  ;;  %v8816_v17 = vadd.f32 %v4096_v39, %v11035_v26 }
 0x957   :  { %v8785_v7 = vadd.f32 %v4021_v34, %v11024_v9  ;;  %v8817_v58 = vadd.f32 %v4098_v21, %v11029_v56 }
 0x958   :  { %v7463_v35 = vmul.f32 -1.442695, %v8784_v33 }
 0x959   :  { %v7465_v38 = vmul.f32 -1.442695, %v8785_v7  ;;  %v4025_v44 = vpop.f32.mrb[30].mxu0  ;;  %v4102_v16 = vpop.f32.mrb[38].mxu1  ;;  %v7467_v8 = vmul.f32 -1.442695, %v8817_v58 }
 0x95a   :  { %9236 = vpow2.f32 %v7463_v35  ;;  %v8786_v22 = vadd.f32 %v4025_v44, %v11021_v1  ;;  %v4027_v27 = vpop.f32.mrb[31].mxu0  ;;  %v4104_v37 = vpop.f32.mrb[39].mxu1  ;;  %v8818_v43 = vadd.f32 %v4102_v16, %v11035_v26 }
 0x95b   :  { %9238 = vpow2.f32 %v7465_v38  ;;  %v8787_v57 = vadd.f32 %v4027_v27, %v11024_v9  ;;  %v8819_v20 = vadd.f32 %v4104_v37, %v11029_v56 }
 0x95c   :  { %v7464_v28 = vmul.f32 -1.442695, %v8786_v22 }
 0x95d   :  { %v7466_v15 = vmul.f32 -1.442695, %v8787_v57  ;;  %v7468_v29 = vmul.f32 -1.442695, %v8819_v20 }
 0x95e   :  { %9240 = vpow2.f32 %v7464_v28 }
 0x95f   :  { %9242 = vpow2.f32 %v7466_v15 }
 0x960   :  { %9244 = vpow2.f32 %v7467_v8 }
 0x961   :  { %9246 = vtanh.f32 %v8816_v17 }
 0x964   :  { %v9237_v2 = vpop.eup %9236 }
 0x965   :  { %v9239_v14 = vpop.eup %9238  ;;  %v4121_v36 = vadd.f32 1.0, %v9237_v2 }
 0x966   :  { %v4133_v11 = vadd.f32 1.0, %v9239_v14 }
 0x967   :  { %9248 = vrcp.f32 %v4121_v36 }
 0x968   :  { %v9241_v54 = vpop.eup %9240  ;;  %9250 = vrcp.f32 %v4133_v11 }
 0x969   :  { %v9243_v24 = vpop.eup %9242  ;;  %v4122_v33 = vadd.f32 1.0, %v9241_v54  ;;  %9252 = vpow2.f32 %v7468_v29 }
 0x96a   :  { %9254 = vtanh.f32 %v8818_v43  ;;  %v4134_v34 = vadd.f32 1.0, %v9243_v24  ;;  %v9245_v39 = vpop.eup %9244 }
 0x96b   :  { %9256 = vrcp.f32 %v4122_v33  ;;  %v9247_v21 = vpop.eup %9246  ;;  %v4147_v63 = vadd.f32 1.0, %v9245_v39 }
 0x96c   :  { %9258 = vrcp.f32 %v4134_v34 }
 0x96d   :  { %9260 = vrcp.f32 %v4147_v63 }
 0x971   :  { %v9249_v7 = vpop.eup %9248 }
 0x972   :  { %v9251_v35 = vpop.eup %9250  ;;  %v4155_v38 = vmul.f32 %v9249_v7, %v9247_v21 }
 0x973   :  { %v9253_v44 = vpop.eup %9252  ;;  %v4153_v22 = vmul.f32 0.0, %v9251_v35 }
 0x974   :  { %v9255_v27 = vpop.eup %9254  ;;  %v4148_v58 = vadd.f32 1.0, %v9253_v44 }
 0x975   :  { %v9257_v16 = vpop.eup %9256  ;;  %v11040_v37 = vadd.f32 %v4155_v38, %v4153_v22 }
 0x976   :  { %v9259_v57 = vpop.eup %9258  ;;  %v4156_v28 = vmul.f32 %v9257_v16, %v9255_v27 }
 0x977   :  { %9262 = vtanh.f32 %v11040_v37  ;;  %v4154_v15 = vmul.f32 0.0, %v9259_v57  ;;  %v9261_v8 = vpop.eup %9260 }
 0x978   :  { %9264 = vrcp.f32 %v4148_v58 }
 0x979   :  { %v11043_v3 = vadd.f32 %v4156_v28, %v4154_v15 }
 0x97b   :  { %9266 = vtanh.f32 %v11043_v3 }
 0x981   :  { %v9263_v20 = vpop.eup %9262 }
 0x982   :  { %v11046_v17 = vmul.f32 %v9263_v20, %v9261_v8  ;;  %v9265_v2 = vpop.eup %9264  ;;  %v4746_v8 = vld [vmem:[#allocation8 + $0x28] sm:$0xff]  ;;  %v4744_v20 = vld [vmem:[#allocation8 + $0x18] sm:$0xff] }
 0x984   :  { %4302 = vmatmul.mubr.f32.vlgmr.msra.gmra.mrb[32].mxu0 %v11046_v17  ;;  %4379 = vmatmul.mubr.f32.vlgmr.msra.gmra.mrb[40].mxu1 %v11046_v17 }
 0x985   :  { %v9267_v14 = vpop.eup %9266  ;;  %4307 = vmatprep.mubr.f32.mxu0 %v12351_v25  ;;  %4384 = vmatprep.mubr.f32.mxu1 %v12351_v25 }
 0x986   :  { %v11052_v36 = vmul.f32 %v9267_v14, %v9265_v2  ;;  %8371 = vmatpush1.bf16.msra.mxu0 %v10780_v52  ;;  %8403 = vmatpush1.bf16.msra.mxu1 %v10847_v62  ;;  %v4748_v14 = vld [vmem:[#allocation8 + $0x38] sm:$0xff] }
 0x987   :  { %8373 = vmatprep.subr.bf16.mxu0 %v10782_v4  ;;  %8405 = vmatprep.subr.bf16.mxu1 %v10851_v23 }
 0x988   :  { %4308 = vmatmul.mubr.f32.gmra.mrb[34].mxu0 %v11052_v36  ;;  %4385 = vmatmul.mubr.f32.gmra.mrb[42].mxu1 %v11052_v36 }
 0x989   :  { %4585 = vmatprep.mubr.f32.mxu0 %v12351_v25  ;;  %4662 = vmatprep.mubr.f32.mxu1 %v12351_v25 }
 0x98a   :  { %8375 = vmatpush1.bf16.msra.mxu0 %v10789_v61  ;;  %8407 = vmatpush1.bf16.msra.mxu1 %v10853_v50 }
 0x98b   :  { %8377 = vmatprep.subr.bf16.mxu0 %v10857_v46  ;;  %8409 = vmatprep.subr.bf16.mxu1 %v10861_v19 }
 0x98e   :  { %8379 = vmatpush1.bf16.msra.mxu0 %v10859_v31  ;;  %8411 = vmatpush1.bf16.msra.mxu1 %v10864_v30 }
 0x98f   :  { %8381 = vmatprep.subr.bf16.mxu0 %v10868_v40  ;;  %8413 = vmatprep.subr.bf16.mxu1 %v10879_v0 }
 0x992   :  { %8383 = vmatpush1.bf16.msra.mxu0 %v10871_v12  ;;  %8415 = vmatpush1.bf16.msra.mxu1 %v10884_v6 }
 0x993   :  { %8385 = vmatprep.subr.bf16.mxu0 %v10874_v10  ;;  %8417 = vmatprep.subr.bf16.mxu1 %v12495_v55 }
 0x996   :  { %8387 = vmatpush1.bf16.msra.mxu0 %v12496_v18  ;;  %8419 = vmatpush1.bf16.msra.mxu1 %v12497_v51 }
 0x997   :  { %8389 = vmatprep.subr.bf16.mxu0 %v12498_v41  ;;  %8421 = vmatprep.subr.bf16.mxu1 %v12499_v48 }
 0x99a   :  { %8391 = vmatpush1.bf16.msra.mxu0 %v12500_v53  ;;  %8423 = vmatpush1.bf16.msra.mxu1 %v12501_v45 }
 0x99b   :  { %8393 = vmatprep.subr.bf16.mxu0 %v12502_v60  ;;  %8425 = vmatprep.subr.bf16.mxu1 %v12503_v59 }
 0x99e   :  { %8395 = vmatpush1.bf16.msra.mxu0 %v12504_v49  ;;  %8427 = vmatpush1.bf16.msra.mxu1 %v12505_v5 }
 0x99f   :  { %8397 = vmatprep.subr.bf16.mxu0 %v12506_v42  ;;  %8429 = vmatprep.subr.bf16.mxu1 %v12507_v47 }
 0x9a2   :  { %8399 = vmatpush1.bf16.msra.mxu0 %v12508_v13  ;;  %8431 = vmatpush1.bf16.msra.mxu1 %v12509_v32 }
 0xa57   :  { %v4303_v52 = vpop.f32.mrb[32].mxu0  ;;  %v4380_v4 = vpop.f32.mrb[40].mxu1 }
 0xa58   :  { %v8788_v61 = vadd.f32 %v4303_v52, %v11021_v1  ;;  %v4305_v62 = vpop.f32.mrb[33].mxu0  ;;  %v4382_v23 = vpop.f32.mrb[41].mxu1  ;;  %v8820_v48 = vadd.f32 %v4380_v4, %v11035_v26  ;;  %v4741_v52 = vld [vmem:[#allocation8] sm:$0xff] }
 0xa59   :  { %v8789_v50 = vadd.f32 %v4305_v62, %v11024_v9  ;;  %v8821_v55 = vadd.f32 %v4382_v23, %v11029_v56  ;;  %v4745_v4 = vld [vmem:[#allocation8 + $0x20] sm:$0xff]  ;;  %v4743_v23 = vld [vmem:[#allocation8 + $0x10] sm:$0xff] }
 0xa5a   :  { %v7469_v46 = vmul.f32 -1.442695, %v8788_v61  ;;  %v11118_v61 = vpack.c.bf16 %v4748_v14, %v4744_v20  ;;  %v11120_v62 = vpack.c.bf16 %v4745_v4, %v4741_v52  ;;  %v4775_v52 = vld [vmem:[#allocation8 + $0x110] sm:$0xff] }
 0xa5b   :  { %v7471_v31 = vmul.f32 -1.442695, %v8789_v50  ;;  %v4309_v19 = vpop.f32.mrb[34].mxu0  ;;  %v4386_v30 = vpop.f32.mrb[42].mxu1  ;;  %v7473_v51 = vmul.f32 -1.442695, %v8821_v55 }
 0xa5c   :  { %9268 = vpow2.f32 %v7469_v46  ;;  %v8790_v40 = vadd.f32 %v4309_v19, %v11021_v1  ;;  %v4311_v12 = vpop.f32.mrb[35].mxu0  ;;  %v4388_v10 = vpop.f32.mrb[43].mxu1  ;;  %v8822_v5 = vadd.f32 %v4386_v30, %v11035_v26  ;;  %v4747_v50 = vld [vmem:[#allocation8 + $0x30] sm:$0xff]  ;;  %8465 = vmatprep.subr.bf16.mxu1 %v11118_v61  ;;  %v4754_v19 = vld [vmem:[#allocation8 + $0x68] sm:$0xff]  ;;  %v4752_v30 = vld [vmem:[#allocation8 + $0x58] sm:$0xff] }
 0xa5d   :  { %9270 = vpow2.f32 %v7471_v31  ;;  %v8791_v0 = vadd.f32 %v4311_v12, %v11024_v9  ;;  %v8823_v41 = vadd.f32 %v4388_v10, %v11029_v56  ;;  %v11123_v46 = vpack.c.bf16 %v4747_v50, %v4743_v23  ;;  %v4750_v31 = vld [vmem:[#allocation8 + $0x48] sm:$0xff]  ;;  %v4756_v12 = vld [vmem:[#allocation8 + $0x78] sm:$0xff]  ;;  %v4749_v10 = vld [vmem:[#allocation8 + $0x40] sm:$0xff] }
 0xa5e   :  { %v7470_v6 = vmul.f32 -1.442695, %v8790_v40  ;;  %v11128_v40 = vpack.c.bf16 %v4754_v19, %v4750_v31  ;;  %v4779_v4 = vld [vmem:[#allocation8 + $0x130] sm:$0xff]  ;;  %v4782_v50 = vld [vmem:[#allocation8 + $0x148] sm:$0xff]  ;;  %v4784_v19 = vld [vmem:[#allocation8 + $0x158] sm:$0xff] }
 0xa5f   :  { %v7472_v18 = vmul.f32 -1.442695, %v8791_v0  ;;  %v7474_v59 = vmul.f32 -1.442695, %v8823_v41  ;;  %v4753_v0 = vld [vmem:[#allocation8 + $0x60] sm:$0xff]  ;;  %v11171_v23 = vpack.c.bf16 %v4779_v4, %v4775_v52  ;;  %v4786_v31 = vld [vmem:[#allocation8 + $0x168] sm:$0xff] }
 0xa60   :  { %9272 = vpow2.f32 %v7470_v6  ;;  %v11130_v6 = vpack.c.bf16 %v4756_v12, %v4752_v30  ;;  %v11132_v55 = vpack.c.bf16 %v4753_v0, %v4749_v10  ;;  %v11176_v30 = vpack.c.bf16 %v4786_v31, %v4782_v50  ;;  %v4788_v12 = vld [vmem:[#allocation8 + $0x178] sm:$0xff]  ;;  %v4781_v10 = vld [vmem:[#allocation8 + $0x140] sm:$0xff]  ;;  %v4799_v4 = vld [vmem:[#allocation8 + $0x1d0] sm:$0xff] }
 0xa61   :  { %9274 = vpow2.f32 %v7472_v18  ;;  %v4751_v18 = vld [vmem:[#allocation8 + $0x50] sm:$0xff]  ;;  %v4785_v0 = vld [vmem:[#allocation8 + $0x160] sm:$0xff] }
 0xa62   :  { %9276 = vpow2.f32 %v7473_v51  ;;  %v4755_v51 = vld [vmem:[#allocation8 + $0x70] sm:$0xff]  ;;  %v4801_v52 = vld [vmem:[#allocation8 + $0x1e0] sm:$0xff] }
 0xa63   :  { %9278 = vtanh.f32 %v8820_v48  ;;  %v11135_v41 = vpack.c.bf16 %v4755_v51, %v4751_v18  ;;  %v4758_v48 = vld [vmem:[#allocation8 + $0x88] sm:$0xff]  ;;  %v11178_v18 = vpack.c.bf16 %v4788_v12, %v4784_v19  ;;  %v11180_v51 = vpack.c.bf16 %v4785_v0, %v4781_v10  ;;  %v4803_v50 = vld [vmem:[#allocation8 + $0x1f0] sm:$0xff] }
 0xa64   :  { %v11207_v19 = vpack.c.bf16 %v4803_v50, %v4799_v4 }
 0xa66   :  { %v9269_v53 = vpop.eup %9268 }
 0xa67   :  { %v9271_v45 = vpop.eup %9270  ;;  %v4405_v60 = vadd.f32 1.0, %v9269_v53  ;;  %v4762_v53 = vld [vmem:[#allocation8 + $0xa8] sm:$0xff] }
 0xa68   :  { %v4417_v49 = vadd.f32 1.0, %v9271_v45  ;;  %v4760_v45 = vld [vmem:[#allocation8 + $0x98] sm:$0xff] }
 0xa69   :  { %9280 = vrcp.f32 %v4405_v60  ;;  %v11140_v60 = vpack.c.bf16 %v4762_v53, %v4758_v48  ;;  %v4783_v48 = vld [vmem:[#allocation8 + $0x150] sm:$0xff] }
 0xa6a   :  { %v9273_v42 = vpop.eup %9272  ;;  %9282 = vrcp.f32 %v4417_v49  ;;  %v4757_v49 = vld [vmem:[#allocation8 + $0x80] sm:$0xff]  ;;  %v4787_v53 = vld [vmem:[#allocation8 + $0x170] sm:$0xff] }
 0xa6b   :  { %v9275_v47 = vpop.eup %9274  ;;  %v4406_v13 = vadd.f32 1.0, %v9273_v42  ;;  %9284 = vpow2.f32 %v7474_v59  ;;  %v4764_v59 = vld [vmem:[#allocation8 + $0xb8] sm:$0xff] }
 0xa6c   :  { %9286 = vtanh.f32 %v8822_v5  ;;  %v4418_v32 = vadd.f32 1.0, %v9275_v47  ;;  %v9277_v29 = vpop.eup %9276  ;;  %v4761_v5 = vld [vmem:[#allocation8 + $0xa0] sm:$0xff]  ;;  %v11142_v42 = vpack.c.bf16 %v4764_v59, %v4760_v45  ;;  %v4790_v45 = vld [vmem:[#allocation8 + $0x188] sm:$0xff]  ;;  %v11183_v59 = vpack.c.bf16 %v4787_v53, %v4783_v48 }
 0xa6d   :  { %9288 = vrcp.f32 %v4406_v13  ;;  %v9279_v11 = vpop.eup %9278  ;;  %v4431_v33 = vadd.f32 1.0, %v9277_v29  ;;  %v11144_v47 = vpack.c.bf16 %v4761_v5, %v4757_v49  ;;  %v4759_v13 = vld [vmem:[#allocation8 + $0x90] sm:$0xff]  ;;  %v4794_v49 = vld [vmem:[#allocation8 + $0x1a8] sm:$0xff]  ;;  %v4792_v5 = vld [vmem:[#allocation8 + $0x198] sm:$0xff] }
 0xa6e   :  { %9290 = vrcp.f32 %v4418_v32  ;;  %v4763_v32 = vld [vmem:[#allocation8 + $0xb0] sm:$0xff] }
 0xa6f   :  { %9292 = vrcp.f32 %v4431_v33  ;;  %v11147_v29 = vpack.c.bf16 %v4763_v32, %v4759_v13  ;;  %v4772_v33 = vld [vmem:[#allocation8 + $0xf8] sm:$0xff]  ;;  %v11187_v32 = vpack.c.bf16 %v4794_v49, %v4790_v45 }
 0xa70   :  { %v4796_v13 = vld [vmem:[#allocation8 + $0x1b8] sm:$0xff] }
 0xa73   :  { %v9281_v43 = vpop.eup %9280 }
 0xa74   :  { %v9283_v54 = vpop.eup %9282  ;;  %v4439_v24 = vmul.f32 %v9281_v43, %v9279_v11  ;;  %v4766_v11 = vld [vmem:[#allocation8 + $0xc8] sm:$0xff] }
 0xa75   :  { %v9285_v34 = vpop.eup %9284  ;;  %v4437_v39 = vmul.f32 %v9283_v54, %v11040_v37  ;;  %v4770_v43 = vld [vmem:[#allocation8 + $0xe8] sm:$0xff]  ;;  %v4768_v54 = vld [vmem:[#allocation8 + $0xd8] sm:$0xff] }
 0xa76   :  { %v9287_v21 = vpop.eup %9286  ;;  %v4432_v44 = vadd.f32 1.0, %v9285_v34  ;;  %v4765_v34 = vld [vmem:[#allocation8 + $0xc0] sm:$0xff] }
 0xa77   :  { %v9289_v7 = vpop.eup %9288  ;;  %v11097_v35 = vadd.f32 %v4439_v24, %v4437_v39  ;;  %v11152_v24 = vpack.c.bf16 %v4770_v43, %v4766_v11  ;;  %v4769_v39 = vld [vmem:[#allocation8 + $0xe0] sm:$0xff]  ;;  %v11189_v11 = vpack.c.bf16 %v4796_v13, %v4792_v5 }
 0xa78   :  { %v9291_v38 = vpop.eup %9290  ;;  %v4440_v63 = vmul.f32 %v9289_v7, %v9287_v21  ;;  %v11154_v21 = vpack.c.bf16 %v4772_v33, %v4768_v54  ;;  %v11156_v7 = vpack.c.bf16 %v4769_v39, %v4765_v34  ;;  %v4789_v43 = vld [vmem:[#allocation8 + $0x180] sm:$0xff]  ;;  %v4791_v33 = vld [vmem:[#allocation8 + $0x190] sm:$0xff] }
 0xa79   :  { %9294 = vtanh.f32 %v11097_v35  ;;  %v4438_v22 = vmul.f32 %v9291_v38, %v11043_v3  ;;  %v9293_v16 = vpop.eup %9292  ;;  %v4742_v3 = vld [vmem:[#allocation8 + $0x8] sm:$0xff]  ;;  %v4767_v38 = vld [vmem:[#allocation8 + $0xd0] sm:$0xff]  ;;  %v4793_v54 = vld [vmem:[#allocation8 + $0x1a0] sm:$0xff] }
 0xa7a   :  { %9296 = vrcp.f32 %v4432_v44  ;;  %v11116_v2 = vpack.c.bf16 %v4746_v8, %v4742_v3  ;;  %v4773_v3 = vld [vmem:[#allocation8 + $0x100] sm:$0xff]  ;;  %v11192_v34 = vpack.c.bf16 %v4793_v54, %v4789_v43  ;;  %v4795_v39 = vld [vmem:[#allocation8 + $0x1b0] sm:$0xff] }
 0xa7b   :  { %v11101_v27 = vadd.f32 %v4440_v63, %v4438_v22  ;;  %v4771_v63 = vld [vmem:[#allocation8 + $0xf0] sm:$0xff]  ;;  %v4774_v22 = vld [vmem:[#allocation8 + $0x108] sm:$0xff]  ;;  %v4777_v8 = vld [vmem:[#allocation8 + $0x120] sm:$0xff] }
 0xa7c   :  { %8433 = vmatprep.subr.bf16.mxu0 %v11116_v2  ;;  %v11159_v44 = vpack.c.bf16 %v4771_v63, %v4767_v38  ;;  %v11168_v14 = vpack.c.bf16 %v4777_v8, %v4773_v3  ;;  %v4798_v38 = vld [vmem:[#allocation8 + $0x1c8] sm:$0xff]  ;;  %v4797_v3 = vld [vmem:[#allocation8 + $0x1c0] sm:$0xff] }
 0xa7d   :  { %9298 = vtanh.f32 %v11101_v27  ;;  %v4802_v63 = vld [vmem:[#allocation8 + $0x1e8] sm:$0xff]  ;;  %v11203_v31 = vpack.c.bf16 %v4801_v52, %v4797_v3 }
 0xa83   :  { %v9295_v57 = vpop.eup %9294 }
 0xa84   :  { %v11104_v37 = vmul.f32 %v9295_v57, %v9293_v16  ;;  %v9297_v28 = vpop.eup %9296  ;;  %v4778_v16 = vld [vmem:[#allocation8 + $0x128] sm:$0xff]  ;;  %v4776_v57 = vld [vmem:[#allocation8 + $0x118] sm:$0xff] }
 0xa86   :  { %4586 = vmatmul.mubr.f32.vlgmr.msra.gmra.mrb[36].mxu0 %v11104_v37  ;;  %4663 = vmatmul.mubr.f32.vlgmr.msra.gmra.mrb[44].mxu1 %v11104_v37 }
 0xa87   :  { %v9299_v58 = vpop.eup %9298  ;;  %4591 = vmatprep.mubr.f32.mxu0 %v12351_v25  ;;  %4668 = vmatprep.mubr.f32.mxu1 %v12351_v25 }
 0xa88   :  { %v11110_v15 = vmul.f32 %v9299_v58, %v9297_v28  ;;  %8435 = vmatpush1.bf16.msra.mxu0 %v11120_v62  ;;  %8467 = vmatpush1.bf16.msra.mxu1 %v11123_v46  ;;  %v11164_v28 = vpack.c.bf16 %v4778_v16, %v4774_v22  ;;  %v4780_v58 = vld [vmem:[#allocation8 + $0x138] sm:$0xff]  ;;  %v11196_v22 = vpack.c.bf16 %v4795_v39, %v4791_v33 }
 0xa89   :  { %8437 = vmatprep.subr.bf16.mxu0 %v11128_v40  ;;  %8469 = vmatprep.subr.bf16.mxu1 %v11130_v6  ;;  %v11166_v20 = vpack.c.bf16 %v4780_v58, %v4776_v57  ;;  %v11198_v16 = vpack.c.bf16 %v4802_v63, %v4798_v38  ;;  %v4800_v57 = vld [vmem:[#allocation8 + $0x1d8] sm:$0xff] }
 0xa8a   :  { %4592 = vmatmul.mubr.f32.gmra.mrb[38].mxu0 %v11110_v15  ;;  %4669 = vmatmul.mubr.f32.gmra.mrb[46].mxu1 %v11110_v15  ;;  %v4804_v58 = vld [vmem:[#allocation8 + $0x1f8] sm:$0xff] }
 0xa8b   :  { %4869 = vmatprep.mubr.f32.mxu0 %v12351_v25  ;;  %4946 = vmatprep.mubr.f32.mxu1 %v12351_v25  ;;  %v11200_v8 = vpack.c.bf16 %v4804_v58, %v4800_v57 }
 0xa8c   :  { %8439 = vmatpush1.bf16.msra.mxu0 %v11132_v55  ;;  %8471 = vmatpush1.bf16.msra.mxu1 %v11135_v41 }
 0xa8d   :  { %8441 = vmatprep.subr.bf16.mxu0 %v11140_v60  ;;  %8473 = vmatprep.subr.bf16.mxu1 %v11142_v42 }
 0xa90   :  { %8443 = vmatpush1.bf16.msra.mxu0 %v11144_v47  ;;  %8475 = vmatpush1.bf16.msra.mxu1 %v11147_v29 }
 0xa91   :  { %8445 = vmatprep.subr.bf16.mxu0 %v11152_v24  ;;  %8477 = vmatprep.subr.bf16.mxu1 %v11154_v21 }
 0xa94   :  { %8447 = vmatpush1.bf16.msra.mxu0 %v11156_v7  ;;  %8479 = vmatpush1.bf16.msra.mxu1 %v11159_v44 }
 0xa95   :  { %8449 = vmatprep.subr.bf16.mxu0 %v11164_v28  ;;  %8481 = vmatprep.subr.bf16.mxu1 %v11166_v20 }
 0xa98   :  { %8451 = vmatpush1.bf16.msra.mxu0 %v11168_v14  ;;  %8483 = vmatpush1.bf16.msra.mxu1 %v11171_v23 }
 0xa99   :  { %8453 = vmatprep.subr.bf16.mxu0 %v11176_v30  ;;  %8485 = vmatprep.subr.bf16.mxu1 %v11178_v18 }
 0xa9c   :  { %8455 = vmatpush1.bf16.msra.mxu0 %v11180_v51  ;;  %8487 = vmatpush1.bf16.msra.mxu1 %v11183_v59 }
 0xa9d   :  { %8457 = vmatprep.subr.bf16.mxu0 %v11187_v32  ;;  %8489 = vmatprep.subr.bf16.mxu1 %v11189_v11 }
 0xaa0   :  { %8459 = vmatpush1.bf16.msra.mxu0 %v11192_v34  ;;  %8491 = vmatpush1.bf16.msra.mxu1 %v11196_v22 }
 0xaa1   :  { %8461 = vmatprep.subr.bf16.mxu0 %v11198_v16  ;;  %8493 = vmatprep.subr.bf16.mxu1 %v11200_v8 }
 0xaa4   :  { %8463 = vmatpush1.bf16.msra.mxu0 %v11203_v31  ;;  %8495 = vmatpush1.bf16.msra.mxu1 %v11207_v19 }
 0xaa5   :  { %8497 = vmatprep.subr.bf16.mxu0 %v11116_v2  ;;  %8529 = vmatprep.subr.bf16.mxu1 %v11118_v61 }
 0xb59   :  { %v4587_v12 = vpop.f32.mrb[36].mxu0  ;;  %v4664_v10 = vpop.f32.mrb[44].mxu1 }
 0xb5a   :  { %v8792_v0 = vadd.f32 %v4587_v12, %v11021_v1  ;;  %v4589_v48 = vpop.f32.mrb[37].mxu0  ;;  %v4666_v53 = vpop.f32.mrb[45].mxu1  ;;  %v8824_v4 = vadd.f32 %v4664_v10, %v11035_v26 }
 0xb5b   :  { %v8793_v45 = vadd.f32 %v4589_v48, %v11024_v9  ;;  %v8825_v57 = vadd.f32 %v4666_v53, %v11029_v56 }
 0xb5c   :  { %v7475_v49 = vmul.f32 -1.442695, %v8792_v0 }
 0xb5d   :  { %v7477_v5 = vmul.f32 -1.442695, %v8793_v45  ;;  %v4593_v13 = vpop.f32.mrb[38].mxu0  ;;  %v4670_v43 = vpop.f32.mrb[46].mxu1  ;;  %v7479_v3 = vmul.f32 -1.442695, %v8825_v57 }
 0xb5e   :  { %9300 = vpow2.f32 %v7475_v49  ;;  %v8794_v54 = vadd.f32 %v4593_v13, %v11021_v1  ;;  %v4595_v33 = vpop.f32.mrb[39].mxu0  ;;  %v4672_v39 = vpop.f32.mrb[47].mxu1  ;;  %v8826_v49 = vadd.f32 %v4670_v43, %v11035_v26 }
 0xb5f   :  { %9302 = vpow2.f32 %v7477_v5  ;;  %v8795_v38 = vadd.f32 %v4595_v33, %v11024_v9  ;;  %v8827_v52 = vadd.f32 %v4672_v39, %v11029_v56 }
 0xb60   :  { %v7476_v63 = vmul.f32 -1.442695, %v8794_v54 }
 0xb61   :  { %v7478_v58 = vmul.f32 -1.442695, %v8795_v38  ;;  %v7480_v48 = vmul.f32 -1.442695, %v8827_v52 }
 0xb62   :  { %9304 = vpow2.f32 %v7476_v63 }
 0xb63   :  { %9306 = vpow2.f32 %v7478_v58 }
 0xb64   :  { %9308 = vpow2.f32 %v7479_v3 }
 0xb65   :  { %9310 = vtanh.f32 %v8824_v4 }
 0xb68   :  { %v9301_v50 = vpop.eup %9300 }
 0xb69   :  { %v9303_v12 = vpop.eup %9302  ;;  %v4689_v0 = vadd.f32 1.0, %v9301_v50 }
 0xb6a   :  { %v4701_v45 = vadd.f32 1.0, %v9303_v12 }
 0xb6b   :  { %9312 = vrcp.f32 %v4689_v0 }
 0xb6c   :  { %v9305_v5 = vpop.eup %9304  ;;  %9314 = vrcp.f32 %v4701_v45 }
 0xb6d   :  { %v9307_v53 = vpop.eup %9306  ;;  %v4690_v13 = vadd.f32 1.0, %v9305_v5  ;;  %9316 = vpow2.f32 %v7480_v48 }
 0xb6e   :  { %9318 = vtanh.f32 %v8826_v49  ;;  %v4702_v54 = vadd.f32 1.0, %v9307_v53  ;;  %v9309_v10 = vpop.eup %9308 }
 0xb6f   :  { %9320 = vrcp.f32 %v4690_v13  ;;  %v9311_v33 = vpop.eup %9310  ;;  %v4715_v57 = vadd.f32 1.0, %v9309_v10 }
 0xb70   :  { %9322 = vrcp.f32 %v4702_v54 }
 0xb71   :  { %9324 = vrcp.f32 %v4715_v57 }
 0xb75   :  { %v9313_v39 = vpop.eup %9312 }
 0xb76   :  { %v9315_v38 = vpop.eup %9314  ;;  %v4723_v63 = vmul.f32 %v9313_v39, %v9311_v33 }
 0xb77   :  { %v9317_v58 = vpop.eup %9316  ;;  %v4721_v3 = vmul.f32 %v9315_v38, %v11097_v35 }
 0xb78   :  { %v9319_v43 = vpop.eup %9318  ;;  %v4716_v0 = vadd.f32 1.0, %v9317_v58 }
 0xb79   :  { %v9321_v52 = vpop.eup %9320  ;;  %v11223_v4 = vadd.f32 %v4723_v63, %v4721_v3 }
 0xb7a   :  { %v9323_v50 = vpop.eup %9322  ;;  %v4724_v12 = vmul.f32 %v9321_v52, %v9319_v43 }
 0xb7b   :  { %9326 = vtanh.f32 %v11223_v4  ;;  %v4722_v48 = vmul.f32 %v9323_v50, %v11101_v27  ;;  %v9325_v49 = vpop.eup %9324 }
 0xb7c   :  { %9328 = vrcp.f32 %v4716_v0 }
 0xb7d   :  { %v11227_v45 = vadd.f32 %v4724_v12, %v4722_v48 }
 0xb7f   :  { %9330 = vtanh.f32 %v11227_v45 }
 0xb85   :  { %v9327_v5 = vpop.eup %9326 }
 0xb86   :  { %v11230_v35 = vmul.f32 %v9327_v5, %v9325_v49  ;;  %v9329_v53 = vpop.eup %9328 }
 0xb88   :  { %4870 = vmatmul.mubr.f32.vlgmr.msra.gmra.mrb[40].mxu0 %v11230_v35  ;;  %4947 = vmatmul.mubr.f32.vlgmr.msra.gmra.mrb[48].mxu1 %v11230_v35 }
 0xb89   :  { %v9331_v13 = vpop.eup %9330  ;;  %4875 = vmatprep.mubr.f32.mxu0 %v12351_v25  ;;  %4952 = vmatprep.mubr.f32.mxu1 %v12351_v25 }
 0xb8a   :  { %v11236_v27 = vmul.f32 %v9331_v13, %v9329_v53  ;;  %8499 = vmatpush1.bf16.msra.mxu0 %v11120_v62  ;;  %8531 = vmatpush1.bf16.msra.mxu1 %v11123_v46 }
 0xb8b   :  { %8501 = vmatprep.subr.bf16.mxu0 %v11128_v40  ;;  %8533 = vmatprep.subr.bf16.mxu1 %v11130_v6 }
 0xb8c   :  { %4876 = vmatmul.mubr.f32.gmra.mrb[42].mxu0 %v11236_v27  ;;  %4953 = vmatmul.mubr.f32.gmra.mrb[50].mxu1 %v11236_v27 }
 0xb8d   :  { %5153 = vmatprep.mubr.f32.mxu0 %v12351_v25  ;;  %5230 = vmatprep.mubr.f32.mxu1 %v12351_v25 }
 0xb8e   :  { %8503 = vmatpush1.bf16.msra.mxu0 %v11132_v55  ;;  %8535 = vmatpush1.bf16.msra.mxu1 %v11135_v41 }
 0xb8f   :  { %8505 = vmatprep.subr.bf16.mxu0 %v11140_v60  ;;  %8537 = vmatprep.subr.bf16.mxu1 %v11142_v42 }
 0xb92   :  { %8507 = vmatpush1.bf16.msra.mxu0 %v11144_v47  ;;  %8539 = vmatpush1.bf16.msra.mxu1 %v11147_v29 }
 0xb93   :  { %8509 = vmatprep.subr.bf16.mxu0 %v11152_v24  ;;  %8541 = vmatprep.subr.bf16.mxu1 %v11154_v21 }
 0xb96   :  { %8511 = vmatpush1.bf16.msra.mxu0 %v11156_v7  ;;  %8543 = vmatpush1.bf16.msra.mxu1 %v11159_v44 }
 0xb97   :  { %8513 = vmatprep.subr.bf16.mxu0 %v11164_v28  ;;  %8545 = vmatprep.subr.bf16.mxu1 %v11166_v20 }
 0xb9a   :  { %8515 = vmatpush1.bf16.msra.mxu0 %v11168_v14  ;;  %8547 = vmatpush1.bf16.msra.mxu1 %v11171_v23 }
 0xb9b   :  { %8517 = vmatprep.subr.bf16.mxu0 %v11176_v30  ;;  %8549 = vmatprep.subr.bf16.mxu1 %v11178_v18 }
 0xb9e   :  { %8519 = vmatpush1.bf16.msra.mxu0 %v11180_v51  ;;  %8551 = vmatpush1.bf16.msra.mxu1 %v11183_v59 }
 0xb9f   :  { %8521 = vmatprep.subr.bf16.mxu0 %v11187_v32  ;;  %8553 = vmatprep.subr.bf16.mxu1 %v11189_v11 }
 0xba2   :  { %8523 = vmatpush1.bf16.msra.mxu0 %v11192_v34  ;;  %8555 = vmatpush1.bf16.msra.mxu1 %v11196_v22 }
 0xba3   :  { %8525 = vmatprep.subr.bf16.mxu0 %v11198_v16  ;;  %8557 = vmatprep.subr.bf16.mxu1 %v11200_v8 }
 0xba6   :  { %8527 = vmatpush1.bf16.msra.mxu0 %v11203_v31  ;;  %8559 = vmatpush1.bf16.msra.mxu1 %v11207_v19 }
 0xba7   :  { %8561 = vmatprep.subr.bf16.mxu0 %v11116_v2  ;;  %8593 = vmatprep.subr.bf16.mxu1 %v11118_v61 }
 0xc5b   :  { %v4871_v54 = vpop.f32.mrb[40].mxu0  ;;  %v4948_v10 = vpop.f32.mrb[48].mxu1 }
 0xc5c   :  { %v8796_v33 = vadd.f32 %v4871_v54, %v11021_v1  ;;  %v4873_v39 = vpop.f32.mrb[41].mxu0  ;;  %v4950_v38 = vpop.f32.mrb[49].mxu1  ;;  %v8828_v53 = vadd.f32 %v4948_v10, %v11035_v26 }
 0xc5d   :  { %v8797_v63 = vadd.f32 %v4873_v39, %v11024_v9  ;;  %v8829_v0 = vadd.f32 %v4950_v38, %v11029_v56 }
 0xc5e   :  { %v7481_v57 = vmul.f32 -1.442695, %v8796_v33 }
 0xc5f   :  { %v7483_v58 = vmul.f32 -1.442695, %v8797_v63  ;;  %v4877_v3 = vpop.f32.mrb[42].mxu0  ;;  %v4954_v43 = vpop.f32.mrb[50].mxu1  ;;  %v7485_v49 = vmul.f32 -1.442695, %v8829_v0 }
 0xc60   :  { %9332 = vpow2.f32 %v7481_v57  ;;  %v8798_v52 = vadd.f32 %v4877_v3, %v11021_v1  ;;  %v4879_v50 = vpop.f32.mrb[43].mxu0  ;;  %v4956_v12 = vpop.f32.mrb[51].mxu1  ;;  %v8830_v57 = vadd.f32 %v4954_v43, %v11035_v26 }
 0xc61   :  { %9334 = vpow2.f32 %v7483_v58  ;;  %v8799_v2 = vadd.f32 %v4879_v50, %v11024_v9  ;;  %v8831_v5 = vadd.f32 %v4956_v12, %v11029_v56 }
 0xc62   :  { %v7482_v61 = vmul.f32 -1.442695, %v8798_v52 }
 0xc63   :  { %v7484_v48 = vmul.f32 -1.442695, %v8799_v2  ;;  %v7486_v39 = vmul.f32 -1.442695, %v8831_v5 }
 0xc64   :  { %9336 = vpow2.f32 %v7482_v61 }
 0xc65   :  { %9338 = vpow2.f32 %v7484_v48 }
 0xc66   :  { %9340 = vpow2.f32 %v7485_v49 }
 0xc67   :  { %9342 = vtanh.f32 %v8828_v53 }
 0xc6a   :  { %v9333_v13 = vpop.eup %9332 }
 0xc6b   :  { %v9335_v54 = vpop.eup %9334  ;;  %v4973_v33 = vadd.f32 1.0, %v9333_v13 }
 0xc6c   :  { %v4985_v63 = vadd.f32 1.0, %v9335_v54 }
 0xc6d   :  { %9344 = vrcp.f32 %v4973_v33 }
 0xc6e   :  { %v9337_v58 = vpop.eup %9336  ;;  %9346 = vrcp.f32 %v4985_v63 }
 0xc6f   :  { %v9339_v38 = vpop.eup %9338  ;;  %v4974_v3 = vadd.f32 1.0, %v9337_v58  ;;  %9348 = vpow2.f32 %v7486_v39 }
 0xc70   :  { %9350 = vtanh.f32 %v8830_v57  ;;  %v4986_v52 = vadd.f32 1.0, %v9339_v38  ;;  %v9341_v10 = vpop.eup %9340 }
 0xc71   :  { %9352 = vrcp.f32 %v4974_v3  ;;  %v9343_v50 = vpop.eup %9342  ;;  %v4999_v0 = vadd.f32 1.0, %v9341_v10 }
 0xc72   :  { %9354 = vrcp.f32 %v4986_v52 }
 0xc73   :  { %9356 = vrcp.f32 %v4999_v0 }
 0xc77   :  { %v9345_v12 = vpop.eup %9344 }
 0xc78   :  { %v9347_v2 = vpop.eup %9346  ;;  %v5007_v61 = vmul.f32 %v9345_v12, %v9343_v50 }
 0xc79   :  { %v9349_v48 = vpop.eup %9348  ;;  %v5005_v49 = vmul.f32 %v9347_v2, %v11223_v4 }
 0xc7a   :  { %v9351_v43 = vpop.eup %9350  ;;  %v5000_v33 = vadd.f32 1.0, %v9349_v48 }
 0xc7b   :  { %v9353_v5 = vpop.eup %9352  ;;  %v11283_v53 = vadd.f32 %v5007_v61, %v5005_v49 }
 0xc7c   :  { %v9355_v13 = vpop.eup %9354  ;;  %v5008_v54 = vmul.f32 %v9353_v5, %v9351_v43 }
 0xc7d   :  { %9358 = vtanh.f32 %v11283_v53  ;;  %v5006_v39 = vmul.f32 %v9355_v13, %v11227_v45  ;;  %v9357_v57 = vpop.eup %9356 }
 0xc7e   :  { %9360 = vrcp.f32 %v5000_v33 }
 0xc7f   :  { %v11287_v63 = vadd.f32 %v5008_v54, %v5006_v39 }
 0xc81   :  { %9362 = vtanh.f32 %v11287_v63 }
 0xc87   :  { %v9359_v58 = vpop.eup %9358 }
 0xc88   :  { %v11290_v4 = vmul.f32 %v9359_v58, %v9357_v57  ;;  %v9361_v38 = vpop.eup %9360 }
 0xc8a   :  { %5154 = vmatmul.mubr.f32.vlgmr.msra.gmra.mrb[44].mxu0 %v11290_v4  ;;  %5231 = vmatmul.mubr.f32.vlgmr.msra.gmra.mrb[52].mxu1 %v11290_v4 }
 0xc8b   :  { %v9363_v3 = vpop.eup %9362  ;;  %5159 = vmatprep.mubr.f32.mxu0 %v12351_v25  ;;  %5236 = vmatprep.mubr.f32.mxu1 %v12351_v25 }
 0xc8c   :  { %v11296_v45 = vmul.f32 %v9363_v3, %v9361_v38  ;;  %8563 = vmatpush1.bf16.msra.mxu0 %v11120_v62  ;;  %8595 = vmatpush1.bf16.msra.mxu1 %v11123_v46 }
 0xc8d   :  { %8565 = vmatprep.subr.bf16.mxu0 %v11128_v40  ;;  %8597 = vmatprep.subr.bf16.mxu1 %v11130_v6 }
 0xc8e   :  { %5160 = vmatmul.mubr.f32.gmra.mrb[46].mxu0 %v11296_v45  ;;  %5237 = vmatmul.mubr.f32.gmra.mrb[54].mxu1 %v11296_v45 }
 0xc8f   :  { %5437 = vmatprep.mubr.f32.mxu0 %v12351_v25  ;;  %5514 = vmatprep.mubr.f32.mxu1 %v12351_v25 }
 0xc90   :  { %8567 = vmatpush1.bf16.msra.mxu0 %v11132_v55  ;;  %8599 = vmatpush1.bf16.msra.mxu1 %v11135_v41 }
 0xc91   :  { %8569 = vmatprep.subr.bf16.mxu0 %v11140_v60  ;;  %8601 = vmatprep.subr.bf16.mxu1 %v11142_v42 }
 0xc94   :  { %8571 = vmatpush1.bf16.msra.mxu0 %v11144_v47  ;;  %8603 = vmatpush1.bf16.msra.mxu1 %v11147_v29 }
 0xc95   :  { %8573 = vmatprep.subr.bf16.mxu0 %v11152_v24  ;;  %8605 = vmatprep.subr.bf16.mxu1 %v11154_v21 }
 0xc98   :  { %8575 = vmatpush1.bf16.msra.mxu0 %v11156_v7  ;;  %8607 = vmatpush1.bf16.msra.mxu1 %v11159_v44 }
 0xc99   :  { %8577 = vmatprep.subr.bf16.mxu0 %v11164_v28  ;;  %8609 = vmatprep.subr.bf16.mxu1 %v11166_v20 }
 0xc9c   :  { %8579 = vmatpush1.bf16.msra.mxu0 %v11168_v14  ;;  %8611 = vmatpush1.bf16.msra.mxu1 %v11171_v23 }
 0xc9d   :  { %8581 = vmatprep.subr.bf16.mxu0 %v11176_v30  ;;  %8613 = vmatprep.subr.bf16.mxu1 %v11178_v18 }
 0xca0   :  { %8583 = vmatpush1.bf16.msra.mxu0 %v11180_v51  ;;  %8615 = vmatpush1.bf16.msra.mxu1 %v11183_v59 }
 0xca1   :  { %8585 = vmatprep.subr.bf16.mxu0 %v11187_v32  ;;  %8617 = vmatprep.subr.bf16.mxu1 %v11189_v11 }
 0xca4   :  { %8587 = vmatpush1.bf16.msra.mxu0 %v11192_v34  ;;  %8619 = vmatpush1.bf16.msra.mxu1 %v11196_v22 }
 0xca5   :  { %8589 = vmatprep.subr.bf16.mxu0 %v11198_v16  ;;  %8621 = vmatprep.subr.bf16.mxu1 %v11200_v8 }
 0xca8   :  { %8591 = vmatpush1.bf16.msra.mxu0 %v11203_v31  ;;  %8623 = vmatpush1.bf16.msra.mxu1 %v11207_v19 }
 0xd5d   :  { %v5155_v62 = vpop.f32.mrb[44].mxu0  ;;  %v5232_v46 = vpop.f32.mrb[52].mxu1 }
 0xd5e   :  { %v8800_v40 = vadd.f32 %v5155_v62, %v11021_v1  ;;  %v5157_v6 = vpop.f32.mrb[45].mxu0  ;;  %v5234_v55 = vpop.f32.mrb[53].mxu1  ;;  %v8832_v18 = vadd.f32 %v5232_v46, %v11035_v26  ;;  %v5594_v46 = vld [vmem:[#allocation8 + $0x8] sm:$0xff] }
 0xd5f   :  { %v8801_v41 = vadd.f32 %v5157_v6, %v11024_v9  ;;  %v8833_v20 = vadd.f32 %v5234_v55, %v11029_v56  ;;  %v5596_v6 = vld [vmem:[#allocation8 + $0x18] sm:$0xff] }
 0xd60   :  { %v7487_v60 = vmul.f32 -1.442695, %v8800_v40  ;;  %v5598_v40 = vld [vmem:[#allocation8 + $0x28] sm:$0xff] }
 0xd61   :  { %v7489_v42 = vmul.f32 -1.442695, %v8801_v41  ;;  %v5161_v47 = vpop.f32.mrb[46].mxu0  ;;  %v5238_v29 = vpop.f32.mrb[54].mxu1  ;;  %v7491_v23 = vmul.f32 -1.442695, %v8833_v20  ;;  %v11360_v55 = vpack.c.bf16 %v5598_v40, %v5594_v46 }
 0xd62   :  { %9364 = vpow2.f32 %v7487_v60  ;;  %v8802_v24 = vadd.f32 %v5161_v47, %v11021_v1  ;;  %v5163_v21 = vpop.f32.mrb[47].mxu0  ;;  %v5240_v7 = vpop.f32.mrb[55].mxu1  ;;  %v8834_v22 = vadd.f32 %v5238_v29, %v11035_v26  ;;  %v5600_v41 = vld [vmem:[#allocation8 + $0x38] sm:$0xff]  ;;  %v5593_v60 = vld [vmem:[#allocation8] sm:$0xff]  ;;  %v5626_v40 = vld [vmem:[#allocation8 + $0x108] sm:$0xff] }
 0xd63   :  { %9366 = vpow2.f32 %v7489_v42  ;;  %v8803_v44 = vadd.f32 %v5163_v21, %v11024_v9  ;;  %v8835_v30 = vadd.f32 %v5240_v7, %v11029_v56  ;;  %v5597_v42 = vld [vmem:[#allocation8 + $0x20] sm:$0xff]  ;;  %v11362_v47 = vpack.c.bf16 %v5600_v41, %v5596_v6  ;;  %v5599_v21 = vld [vmem:[#allocation8 + $0x30] sm:$0xff]  ;;  %8625 = vmatprep.subr.bf16.mxu0 %v11360_v55  ;;  %v5604_v20 = vld [vmem:[#allocation8 + $0x58] sm:$0xff] }
 0xd64   :  { %v7488_v28 = vmul.f32 -1.442695, %v8802_v24  ;;  %v11364_v29 = vpack.c.bf16 %v5597_v42, %v5593_v60  ;;  %v5595_v24 = vld [vmem:[#allocation8 + $0x10] sm:$0xff]  ;;  %v5630_v6 = vld [vmem:[#allocation8 + $0x128] sm:$0xff]  ;;  %v5628_v41 = vld [vmem:[#allocation8 + $0x118] sm:$0xff] }
 0xd65   :  { %v7490_v14 = vmul.f32 -1.442695, %v8803_v44  ;;  %v7492_v11 = vmul.f32 -1.442695, %v8835_v30  ;;  %v11367_v7 = vpack.c.bf16 %v5599_v21, %v5595_v24  ;;  %8657 = vmatprep.subr.bf16.mxu1 %v11362_v47  ;;  %v5602_v44 = vld [vmem:[#allocation8 + $0x48] sm:$0xff]  ;;  %v5601_v30 = vld [vmem:[#allocation8 + $0x40] sm:$0xff]  ;;  %v11408_v60 = vpack.c.bf16 %v5630_v6, %v5626_v40 }
 0xd66   :  { %9368 = vpow2.f32 %v7488_v28  ;;  %v5606_v28 = vld [vmem:[#allocation8 + $0x68] sm:$0xff]  ;;  %v5632_v42 = vld [vmem:[#allocation8 + $0x138] sm:$0xff]  ;;  %v5625_v24 = vld [vmem:[#allocation8 + $0x100] sm:$0xff] }
 0xd67   :  { %9370 = vpow2.f32 %v7490_v14  ;;  %v11372_v14 = vpack.c.bf16 %v5606_v28, %v5602_v44  ;;  %v5629_v21 = vld [vmem:[#allocation8 + $0x120] sm:$0xff]  ;;  %v11410_v44 = vpack.c.bf16 %v5632_v42, %v5628_v41  ;;  %v5643_v6 = vld [vmem:[#allocation8 + $0x190] sm:$0xff] }
 0xd68   :  { %9372 = vpow2.f32 %v7491_v23  ;;  %v5608_v23 = vld [vmem:[#allocation8 + $0x78] sm:$0xff]  ;;  %v11412_v28 = vpack.c.bf16 %v5629_v21, %v5625_v24  ;;  %v5645_v40 = vld [vmem:[#allocation8 + $0x1a0] sm:$0xff]  ;;  %v5647_v42 = vld [vmem:[#allocation8 + $0x1b0] sm:$0xff] }
 0xd69   :  { %9374 = vtanh.f32 %v8832_v18  ;;  %v5605_v18 = vld [vmem:[#allocation8 + $0x60] sm:$0xff]  ;;  %v5650_v24 = vld [vmem:[#allocation8 + $0x1c8] sm:$0xff] }
 0xd6a   :  { %v5654_v21 = vld [vmem:[#allocation8 + $0x1e8] sm:$0xff] }
 0xd6c   :  { %v9365_v51 = vpop.eup %9364 }
 0xd6d   :  { %v9367_v59 = vpop.eup %9366  ;;  %v5257_v32 = vadd.f32 1.0, %v9365_v51  ;;  %v11374_v51 = vpack.c.bf16 %v5608_v23, %v5604_v20  ;;  %v5627_v20 = vld [vmem:[#allocation8 + $0x110] sm:$0xff] }
 0xd6e   :  { %v5269_v34 = vadd.f32 1.0, %v9367_v59  ;;  %v11376_v59 = vpack.c.bf16 %v5605_v18, %v5601_v30  ;;  %v5631_v23 = vld [vmem:[#allocation8 + $0x130] sm:$0xff]  ;;  %v5634_v18 = vld [vmem:[#allocation8 + $0x148] sm:$0xff] }
 0xd6f   :  { %9376 = vrcp.f32 %v5257_v32  ;;  %v5603_v32 = vld [vmem:[#allocation8 + $0x50] sm:$0xff]  ;;  %v11415_v30 = vpack.c.bf16 %v5631_v23, %v5627_v20  ;;  %v11440_v20 = vpack.c.bf16 %v5647_v42, %v5643_v6  ;;  %v11442_v23 = vpack.c.bf16 %v5654_v21, %v5650_v24 }
 0xd70   :  { %v9369_v16 = vpop.eup %9368  ;;  %9378 = vrcp.f32 %v5269_v34 }
 0xd71   :  { %v9371_v8 = vpop.eup %9370  ;;  %v5258_v31 = vadd.f32 1.0, %v9369_v16  ;;  %9380 = vpow2.f32 %v7492_v11  ;;  %v5607_v11 = vld [vmem:[#allocation8 + $0x70] sm:$0xff]  ;;  %v5614_v16 = vld [vmem:[#allocation8 + $0xa8] sm:$0xff] }
 0xd72   :  { %9382 = vtanh.f32 %v8834_v22  ;;  %v5270_v19 = vadd.f32 1.0, %v9371_v8  ;;  %v9373_v52 = vpop.eup %9372  ;;  %v11379_v34 = vpack.c.bf16 %v5607_v11, %v5603_v32  ;;  %v5610_v22 = vld [vmem:[#allocation8 + $0x88] sm:$0xff]  ;;  %v5612_v8 = vld [vmem:[#allocation8 + $0x98] sm:$0xff] }
 0xd73   :  { %9384 = vrcp.f32 %v5258_v31  ;;  %v9375_v10 = vpop.eup %9374  ;;  %v5283_v61 = vadd.f32 1.0, %v9373_v52  ;;  %v11384_v31 = vpack.c.bf16 %v5614_v16, %v5610_v22  ;;  %v5609_v52 = vld [vmem:[#allocation8 + $0x80] sm:$0xff]  ;;  %v5638_v32 = vld [vmem:[#allocation8 + $0x168] sm:$0xff]  ;;  %v5636_v11 = vld [vmem:[#allocation8 + $0x158] sm:$0xff] }
 0xd74   :  { %9386 = vrcp.f32 %v5270_v19  ;;  %v5616_v19 = vld [vmem:[#allocation8 + $0xb8] sm:$0xff]  ;;  %v11420_v22 = vpack.c.bf16 %v5638_v32, %v5634_v18 }
 0xd75   :  { %9388 = vrcp.f32 %v5283_v61  ;;  %v5615_v61 = vld [vmem:[#allocation8 + $0xb0] sm:$0xff]  ;;  %v5640_v16 = vld [vmem:[#allocation8 + $0x178] sm:$0xff] }
 0xd76   :  { %v5652_v18 = vld [vmem:[#allocation8 + $0x1d8] sm:$0xff] }
 0xd77   :  { %v5656_v32 = vld [vmem:[#allocation8 + $0x1f8] sm:$0xff] }
 0xd79   :  { %v9377_v50 = vpop.eup %9376 }
 0xd7a   :  { %v9379_v12 = vpop.eup %9378  ;;  %v5291_v2 = vmul.f32 %v9377_v50, %v9375_v10  ;;  %v5613_v10 = vld [vmem:[#allocation8 + $0xa0] sm:$0xff]  ;;  %v11386_v50 = vpack.c.bf16 %v5616_v19, %v5612_v8 }
 0xd7b   :  { %v9381_v0 = vpop.eup %9380  ;;  %v5289_v48 = vmul.f32 %v9379_v12, %v11283_v53  ;;  %v11388_v12 = vpack.c.bf16 %v5613_v10, %v5609_v52  ;;  %v5633_v8 = vld [vmem:[#allocation8 + $0x140] sm:$0xff]  ;;  %v11422_v52 = vpack.c.bf16 %v5640_v16, %v5636_v11  ;;  %v11444_v16 = vpack.c.bf16 %v5656_v32, %v5652_v18 }
 0xd7c   :  { %v9383_v49 = vpop.eup %9382  ;;  %v5284_v33 = vadd.f32 1.0, %v9381_v0  ;;  %v5637_v19 = vld [vmem:[#allocation8 + $0x160] sm:$0xff] }
 0xd7d   :  { %v9385_v43 = vpop.eup %9384  ;;  %v11341_v5 = vadd.f32 %v5291_v2, %v5289_v48  ;;  %v5611_v2 = vld [vmem:[#allocation8 + $0x90] sm:$0xff]  ;;  %v5618_v48 = vld [vmem:[#allocation8 + $0xc8] sm:$0xff]  ;;  %v11424_v10 = vpack.c.bf16 %v5637_v19, %v5633_v8  ;;  %v5649_v11 = vld [vmem:[#allocation8 + $0x1c0] sm:$0xff] }
 0xd7e   :  { %v9387_v13 = vpop.eup %9386  ;;  %v5292_v54 = vmul.f32 %v9385_v43, %v9383_v49  ;;  %v11391_v0 = vpack.c.bf16 %v5615_v61, %v5611_v2  ;;  %v5622_v49 = vld [vmem:[#allocation8 + $0xe8] sm:$0xff]  ;;  %v5620_v43 = vld [vmem:[#allocation8 + $0xd8] sm:$0xff]  ;;  %v5635_v2 = vld [vmem:[#allocation8 + $0x150] sm:$0xff] }
 0xd7f   :  { %9390 = vtanh.f32 %v11341_v5  ;;  %v5290_v39 = vmul.f32 %v9387_v13, %v11287_v63  ;;  %v9389_v58 = vpop.eup %9388  ;;  %v11396_v13 = vpack.c.bf16 %v5622_v49, %v5618_v48  ;;  %v5639_v61 = vld [vmem:[#allocation8 + $0x170] sm:$0xff]  ;;  %v5642_v48 = vld [vmem:[#allocation8 + $0x188] sm:$0xff]  ;;  %v5653_v8 = vld [vmem:[#allocation8 + $0x1e0] sm:$0xff] }
 0xd80   :  { %9392 = vrcp.f32 %v5284_v33  ;;  %v5617_v33 = vld [vmem:[#allocation8 + $0xc0] sm:$0xff]  ;;  %v11427_v49 = vpack.c.bf16 %v5639_v61, %v5635_v2  ;;  %v5651_v19 = vld [vmem:[#allocation8 + $0x1d0] sm:$0xff]  ;;  %v11447_v61 = vpack.c.bf16 %v5653_v8, %v5649_v11 }
 0xd81   :  { %v11345_v57 = vadd.f32 %v5292_v54, %v5290_v39  ;;  %v5624_v54 = vld [vmem:[#allocation8 + $0xf8] sm:$0xff]  ;;  %v5621_v39 = vld [vmem:[#allocation8 + $0xe0] sm:$0xff]  ;;  %v5655_v2 = vld [vmem:[#allocation8 + $0x1f0] sm:$0xff] }
 0xd83   :  { %9394 = vtanh.f32 %v11345_v57 }
 0xd89   :  { %v9391_v38 = vpop.eup %9390 }
 0xd8a   :  { %v11348_v53 = vmul.f32 %v9391_v38, %v9389_v58  ;;  %v9393_v3 = vpop.eup %9392  ;;  %v11398_v58 = vpack.c.bf16 %v5624_v54, %v5620_v43  ;;  %v11400_v38 = vpack.c.bf16 %v5621_v39, %v5617_v33  ;;  %v5646_v43 = vld [vmem:[#allocation8 + $0x1a8] sm:$0xff]  ;;  %v5644_v54 = vld [vmem:[#allocation8 + $0x198] sm:$0xff] }
 0xd8b   :  { %v5648_v33 = vld [vmem:[#allocation8 + $0x1b8] sm:$0xff]  ;;  %v11431_v39 = vpack.c.bf16 %v5646_v43, %v5642_v48  ;;  %v11451_v48 = vpack.c.bf16 %v5655_v2, %v5651_v19 }
 0xd8c   :  { %5438 = vmatmul.mubr.f32.vlgmr.msra.gmra.mrb[48].mxu0 %v11348_v53  ;;  %5515 = vmatmul.mubr.f32.vlgmr.msra.gmra.mrb[56].mxu1 %v11348_v53 }
 0xd8d   :  { %v9395_v62 = vpop.eup %9394  ;;  %5443 = vmatprep.mubr.f32.mxu0 %v12351_v25  ;;  %5520 = vmatprep.mubr.f32.mxu1 %v12351_v25 }
 0xd8e   :  { %v11354_v63 = vmul.f32 %v9395_v62, %v9393_v3  ;;  %8627 = vmatpush1.bf16.msra.mxu0 %v11364_v29  ;;  %8659 = vmatpush1.bf16.msra.mxu1 %v11367_v7  ;;  %v5619_v3 = vld [vmem:[#allocation8 + $0xd0] sm:$0xff] }
 0xd8f   :  { %8629 = vmatprep.subr.bf16.mxu0 %v11372_v14  ;;  %8661 = vmatprep.subr.bf16.mxu1 %v11374_v51  ;;  %v5623_v62 = vld [vmem:[#allocation8 + $0xf0] sm:$0xff] }
 0xd90   :  { %12516 = vst [vmem:[#allocation16_spill] sm:$0xff] %v11354_v63  ;;  %5444 = vmatmul.mubr.f32.gmra.mrb[50].mxu0 %v11354_v63  ;;  %5521 = vmatmul.mubr.f32.gmra.mrb[58].mxu1 %v11354_v63  ;;  %v11403_v46 = vpack.c.bf16 %v5623_v62, %v5619_v3  ;;  %v11433_v3 = vpack.c.bf16 %v5648_v33, %v5644_v54  ;;  %v5641_v62 = vld [vmem:[#allocation8 + $0x180] sm:$0xff] }
 0xd91   :  { %5721 = vmatprep.mubr.f32.mxu0 %v12351_v25  ;;  %5798 = vmatprep.mubr.f32.mxu1 %v12351_v25  ;;  %v11436_v41 = vpack.c.bf16 %v5645_v40, %v5641_v62 }
 0xd92   :  { %8631 = vmatpush1.bf16.msra.mxu0 %v11376_v59  ;;  %8663 = vmatpush1.bf16.msra.mxu1 %v11379_v34 }
 0xd93   :  { %8633 = vmatprep.subr.bf16.mxu0 %v11384_v31  ;;  %8665 = vmatprep.subr.bf16.mxu1 %v11386_v50 }
 0xd96   :  { %8635 = vmatpush1.bf16.msra.mxu0 %v11388_v12  ;;  %8667 = vmatpush1.bf16.msra.mxu1 %v11391_v0 }
 0xd97   :  { %8637 = vmatprep.subr.bf16.mxu0 %v11396_v13  ;;  %8669 = vmatprep.subr.bf16.mxu1 %v11398_v58 }
 0xd9a   :  { %8639 = vmatpush1.bf16.msra.mxu0 %v11400_v38  ;;  %8671 = vmatpush1.bf16.msra.mxu1 %v11403_v46 }
 0xd9b   :  { %8641 = vmatprep.subr.bf16.mxu0 %v11408_v60  ;;  %8673 = vmatprep.subr.bf16.mxu1 %v11410_v44 }
 0xd9e   :  { %8643 = vmatpush1.bf16.msra.mxu0 %v11412_v28  ;;  %8675 = vmatpush1.bf16.msra.mxu1 %v11415_v30 }
 0xd9f   :  { %8645 = vmatprep.subr.bf16.mxu0 %v11420_v22  ;;  %8677 = vmatprep.subr.bf16.mxu1 %v11422_v52 }
 0xda2   :  { %8647 = vmatpush1.bf16.msra.mxu0 %v11424_v10  ;;  %8679 = vmatpush1.bf16.msra.mxu1 %v11427_v49 }
 0xda3   :  { %8649 = vmatprep.subr.bf16.mxu0 %v11431_v39  ;;  %8681 = vmatprep.subr.bf16.mxu1 %v11433_v3 }
 0xda6   :  { %8651 = vmatpush1.bf16.msra.mxu0 %v11436_v41  ;;  %8683 = vmatpush1.bf16.msra.mxu1 %v11440_v20 }
 0xda7   :  { %8653 = vmatprep.subr.bf16.mxu0 %v11442_v23  ;;  %8685 = vmatprep.subr.bf16.mxu1 %v11444_v16 }
 0xdaa   :  { %8655 = vmatpush1.bf16.msra.mxu0 %v11447_v61  ;;  %8687 = vmatpush1.bf16.msra.mxu1 %v11451_v48 }
 0xdab   :  { %8689 = vmatprep.subr.bf16.mxu0 %v11360_v55  ;;  %8721 = vmatprep.subr.bf16.mxu1 %v11362_v47 }
 0xe5f   :  { %v5439_v43 = vpop.f32.mrb[48].mxu0  ;;  %v5516_v54 = vpop.f32.mrb[56].mxu1 }
 0xe60   :  { %v8804_v33 = vadd.f32 %v5439_v43, %v11021_v1  ;;  %v5441_v62 = vpop.f32.mrb[49].mxu0  ;;  %v5518_v40 = vpop.f32.mrb[57].mxu1 }
 0xe61   :  { %v8805_v6 = vadd.f32 %v5441_v62, %v11024_v9  ;;  %v8837_v19 = vadd.f32 %v5518_v40, %v11029_v56  ;;  %v8836_v62 = vadd.f32 %v5516_v54, %v11035_v26 }
 0xe62   :  { %v7493_v42 = vmul.f32 -1.442695, %v8804_v33 }
 0xe63   :  { %v7495_v24 = vmul.f32 -1.442695, %v8805_v6  ;;  %v5445_v21 = vpop.f32.mrb[50].mxu0  ;;  %v5522_v18 = vpop.f32.mrb[58].mxu1  ;;  %v7497_v43 = vmul.f32 -1.442695, %v8837_v19 }
 0xe64   :  { %9396 = vpow2.f32 %v7493_v42  ;;  %v8806_v32 = vadd.f32 %v5445_v21, %v11021_v1  ;;  %v5447_v11 = vpop.f32.mrb[51].mxu0  ;;  %v5524_v8 = vpop.f32.mrb[59].mxu1 }
 0xe65   :  { %9398 = vpow2.f32 %v7495_v24  ;;  %v8807_v55 = vadd.f32 %v5447_v11, %v11024_v9  ;;  %v8839_v33 = vadd.f32 %v5524_v8, %v11029_v56  ;;  %v8838_v11 = vadd.f32 %v5522_v18, %v11035_v26 }
 0xe66   :  { %v7494_v47 = vmul.f32 -1.442695, %v8806_v32 }
 0xe67   :  { %v7496_v2 = vmul.f32 -1.442695, %v8807_v55  ;;  %v7498_v21 = vmul.f32 -1.442695, %v8839_v33 }
 0xe68   :  { %9400 = vpow2.f32 %v7494_v47 }
 0xe69   :  { %9402 = vpow2.f32 %v7496_v2 }
 0xe6a   :  { %9404 = vpow2.f32 %v7497_v43 }
 0xe6b   :  { %9406 = vtanh.f32 %v8836_v62 }
 0xe6e   :  { %v9397_v6 = vpop.eup %9396 }
 0xe6f   :  { %v9399_v42 = vpop.eup %9398  ;;  %v5541_v63 = vadd.f32 1.0, %v9397_v6 }
 0xe70   :  { %v5553_v24 = vadd.f32 1.0, %v9399_v42 }
 0xe71   :  { %9408 = vrcp.f32 %v5541_v63 }
 0xe72   :  { %v9401_v32 = vpop.eup %9400  ;;  %9410 = vrcp.f32 %v5553_v24 }
 0xe73   :  { %v9403_v40 = vpop.eup %9402  ;;  %v5542_v55 = vadd.f32 1.0, %v9401_v32  ;;  %9412 = vpow2.f32 %v7498_v21 }
 0xe74   :  { %9414 = vtanh.f32 %v8838_v11  ;;  %v5554_v47 = vadd.f32 1.0, %v9403_v40  ;;  %v9405_v54 = vpop.eup %9404 }
 0xe75   :  { %9416 = vrcp.f32 %v5542_v55  ;;  %v9407_v8 = vpop.eup %9406  ;;  %v5567_v33 = vadd.f32 1.0, %v9405_v54 }
 0xe76   :  { %9418 = vrcp.f32 %v5554_v47 }
 0xe77   :  { %9420 = vrcp.f32 %v5567_v33 }
 0xe7b   :  { %v9409_v19 = vpop.eup %9408 }
 0xe7c   :  { %v9411_v2 = vpop.eup %9410  ;;  %v5575_v43 = vmul.f32 %v9409_v19, %v9407_v8 }
 0xe7d   :  { %v9413_v62 = vpop.eup %9412  ;;  %v5573_v6 = vmul.f32 %v9411_v2, %v11341_v5 }
 0xe7e   :  { %v9415_v18 = vpop.eup %9414  ;;  %v5568_v11 = vadd.f32 1.0, %v9413_v62 }
 0xe7f   :  { %v9417_v63 = vpop.eup %9416  ;;  %v11467_v42 = vadd.f32 %v5575_v43, %v5573_v6 }
 0xe80   :  { %v9419_v24 = vpop.eup %9418  ;;  %v5576_v21 = vmul.f32 %v9417_v63, %v9415_v18 }
 0xe81   :  { %9422 = vtanh.f32 %v11467_v42  ;;  %v5574_v32 = vmul.f32 %v9419_v24, %v11345_v57  ;;  %v9421_v55 = vpop.eup %9420 }
 0xe82   :  { %9424 = vrcp.f32 %v5568_v11 }
 0xe83   :  { %v11471_v40 = vadd.f32 %v5576_v21, %v5574_v32 }
 0xe85   :  { %9426 = vtanh.f32 %v11471_v40 }
 0xe8b   :  { %v9423_v47 = vpop.eup %9422 }
 0xe8c   :  { %v11474_v5 = vmul.f32 %v9423_v47, %v9421_v55  ;;  %v9425_v54 = vpop.eup %9424 }
 0xe8e   :  { %5722 = vmatmul.mubr.f32.vlgmr.msra.gmra.mrb[52].mxu0 %v11474_v5  ;;  %5799 = vmatmul.mubr.f32.vlgmr.msra.gmra.mrb[60].mxu1 %v11474_v5 }
 0xe8f   :  { %v9427_v8 = vpop.eup %9426  ;;  %5727 = vmatprep.mubr.f32.mxu0 %v12351_v25  ;;  %5804 = vmatprep.mubr.f32.mxu1 %v12351_v25 }
 0xe90   :  { %v11480_v57 = vmul.f32 %v9427_v8, %v9425_v54  ;;  %8691 = vmatpush1.bf16.msra.mxu0 %v11364_v29  ;;  %8723 = vmatpush1.bf16.msra.mxu1 %v11367_v7  ;;  %v6185_v29 = vld [vmem:[%s12160_s7] sm:$0xff]  ;;  %v6186_v7 = vld [vmem:[%s12160_s7 + $0x8] sm:$0xff] }
 0xe91   :  { %8693 = vmatprep.subr.bf16.mxu0 %v11372_v14  ;;  %8725 = vmatprep.subr.bf16.mxu1 %v11374_v51  ;;  %v11522_v14 = vpack.c.bf16 %v6186_v7, %v6185_v29 }
 0xe92   :  { %5728 = vmatmul.mubr.f32.gmra.mrb[54].mxu0 %v11480_v57  ;;  %5805 = vmatmul.mubr.f32.gmra.mrb[62].mxu1 %v11480_v57 }
 0xe93   :  { %6005 = vmatprep.mubr.f32.mxu0 %v12351_v25  ;;  %6082 = vmatprep.mubr.f32.mxu1 %v12351_v25 }
 0xe94   :  { %8695 = vmatpush1.bf16.msra.mxu0 %v11376_v59  ;;  %8727 = vmatpush1.bf16.msra.mxu1 %v11379_v34 }
 0xe95   :  { %8697 = vmatprep.subr.bf16.mxu0 %v11384_v31  ;;  %8729 = vmatprep.subr.bf16.mxu1 %v11386_v50 }
 0xe98   :  { %8699 = vmatpush1.bf16.msra.mxu0 %v11388_v12  ;;  %8731 = vmatpush1.bf16.msra.mxu1 %v11391_v0 }
 0xe99   :  { %8701 = vmatprep.subr.bf16.mxu0 %v11396_v13  ;;  %8733 = vmatprep.subr.bf16.mxu1 %v11398_v58 }
 0xe9c   :  { %8703 = vmatpush1.bf16.msra.mxu0 %v11400_v38  ;;  %8735 = vmatpush1.bf16.msra.mxu1 %v11403_v46 }
 0xe9d   :  { %8705 = vmatprep.subr.bf16.mxu0 %v11408_v60  ;;  %8737 = vmatprep.subr.bf16.mxu1 %v11410_v44 }
 0xea0   :  { %8707 = vmatpush1.bf16.msra.mxu0 %v11412_v28  ;;  %8739 = vmatpush1.bf16.msra.mxu1 %v11415_v30 }
 0xea1   :  { %8709 = vmatprep.subr.bf16.mxu0 %v11420_v22  ;;  %8741 = vmatprep.subr.bf16.mxu1 %v11422_v52 }
 0xea4   :  { %8711 = vmatpush1.bf16.msra.mxu0 %v11424_v10  ;;  %8743 = vmatpush1.bf16.msra.mxu1 %v11427_v49 }
 0xea5   :  { %8713 = vmatprep.subr.bf16.mxu0 %v11431_v39  ;;  %8745 = vmatprep.subr.bf16.mxu1 %v11433_v3 }
 0xea8   :  { %8715 = vmatpush1.bf16.msra.mxu0 %v11436_v41  ;;  %8747 = vmatpush1.bf16.msra.mxu1 %v11440_v20 }
 0xea9   :  { %8717 = vmatprep.subr.bf16.mxu0 %v11442_v23  ;;  %8749 = vmatprep.subr.bf16.mxu1 %v11444_v16 }
 0xeac   :  { %8719 = vmatpush1.bf16.msra.mxu0 %v11447_v61  ;;  %8751 = vmatpush1.bf16.msra.mxu1 %v11451_v48 }
 0xead   :  { %8753 = vmatprep.subr.bf16.mxu0 %v11522_v14 }
 0xf61   :  { %v5723_v51 = vpop.f32.mrb[52].mxu0  ;;  %v5800_v59 = vpop.f32.mrb[60].mxu1 }
 0xf62   :  { %v8808_v34 = vadd.f32 %v5723_v51, %v11021_v1  ;;  %v5725_v31 = vpop.f32.mrb[53].mxu0  ;;  %v5802_v50 = vpop.f32.mrb[61].mxu1  ;;  %v8840_v39 = vadd.f32 %v5800_v59, %v11035_v26  ;;  %v6188_v59 = vld [vmem:[%s12160_s7 + $0x18] sm:$0xff] }
 0xf63   :  { %v8809_v12 = vadd.f32 %v5725_v31, %v11024_v9  ;;  %v8841_v22 = vadd.f32 %v5802_v50, %v11029_v56 }
 0xf64   :  { %v7499_v0 = vmul.f32 -1.442695, %v8808_v34 }
 0xf65   :  { %v7501_v13 = vmul.f32 -1.442695, %v8809_v12  ;;  %v5729_v58 = vpop.f32.mrb[54].mxu0  ;;  %v5806_v38 = vpop.f32.mrb[62].mxu1  ;;  %v7503_v10 = vmul.f32 -1.442695, %v8841_v22 }
 0xf66   :  { %9428 = vpow2.f32 %v7499_v0  ;;  %v8810_v46 = vadd.f32 %v5729_v58, %v11021_v1  ;;  %v5731_v60 = vpop.f32.mrb[55].mxu0  ;;  %v5808_v44 = vpop.f32.mrb[63].mxu1  ;;  %v8842_v61 = vadd.f32 %v5806_v38, %v11035_v26  ;;  %v6190_v0 = vld [vmem:[%s12160_s7 + $0x28] sm:$0xff]  ;;  %v6195_v22 = vld [vmem:[%s12160_s7 + $0x50] sm:$0xff] }
 0xf67   :  { %9430 = vpow2.f32 %v7501_v13  ;;  %v8811_v28 = vadd.f32 %v5731_v60, %v11024_v9  ;;  %v8843_v49 = vadd.f32 %v5808_v44, %v11029_v56  ;;  %v6169_v60 = vmax.f32 %v11046_v17, 0.0  ;;  %v6191_v44 = vld [vmem:[%s12160_s7 + $0x30] sm:$0xff]  ;;  %v6194_v17 = vld [vmem:[%s12160_s7 + $0x48] sm:$0xff] }
 0xf68   :  { %v7500_v30 = vmul.f32 -1.442695, %v8810_v46 }
 0xf69   :  { %v7502_v52 = vmul.f32 -1.442695, %v8811_v28  ;;  %v7504_v23 = vmul.f32 -1.442695, %v8843_v49  ;;  %v6192_v28 = vld [vmem:[%s12160_s7 + $0x38] sm:$0xff]  ;;  %v6197_v49 = vld [vmem:[%s12160_s7 + $0x60] sm:$0xff] }
 0xf6a   :  { %9432 = vpow2.f32 %v7500_v30 }
 0xf6b   :  { %9434 = vpow2.f32 %v7502_v52  ;;  %v6196_v52 = vld [vmem:[%s12160_s7 + $0x58] sm:$0xff] }
 0xf6c   :  { %9436 = vpow2.f32 %v7503_v10  ;;  %v8772_v10 = vpack.c.bf16 %v6196_v52, %v6195_v22 }
 0xf6d   :  { %9438 = vtanh.f32 %v8840_v39  ;;  %v6198_v39 = vld [vmem:[%s12160_s7 + $0x68] sm:$0xff] }
 0xf70   :  { %v9429_v3 = vpop.eup %9428 }
 0xf71   :  { %v9431_v41 = vpop.eup %9430  ;;  %v5825_v20 = vadd.f32 1.0, %v9429_v3  ;;  %v8776_v3 = vpack.c.bf16 %v6198_v39, %v6197_v49 }
 0xf72   :  { %v5837_v16 = vadd.f32 1.0, %v9431_v41  ;;  %v6199_v41 = vld [vmem:[%s12160_s7 + $0x70] sm:$0xff] }
 0xf73   :  { %9440 = vrcp.f32 %v5825_v20  ;;  %v6200_v20 = vld [vmem:[%s12160_s7 + $0x78] sm:$0xff] }
 0xf74   :  { %v9433_v48 = vpop.eup %9432  ;;  %9442 = vrcp.f32 %v5837_v16  ;;  %v6170_v16 = vmax.f32 %v11052_v36, 0.0  ;;  %v6177_v36 = vmax.f32 %v11348_v53, 0.0 }
 0xf75   :  { %v9435_v19 = vpop.eup %9434  ;;  %v5826_v2 = vadd.f32 1.0, %v9433_v48  ;;  %9444 = vpow2.f32 %v7504_v23  ;;  %v8780_v23 = vpack.c.bf16 %v6200_v20, %v6199_v41  ;;  %v6172_v48 = vmax.f32 %v11110_v15, 0.0 }
 0xf76   :  { %9446 = vtanh.f32 %v8842_v61  ;;  %v5838_v43 = vadd.f32 1.0, %v9435_v19  ;;  %v9437_v33 = vpop.eup %9436  ;;  %v6171_v61 = vmax.f32 %v11104_v37, 0.0  ;;  %v6173_v19 = vmax.f32 %v11230_v35, 0.0  ;;  %v12517_v37 = vld [vmem:[#allocation16_spill] sm:$0xff] }
 0xf77   :  { %9448 = vrcp.f32 %v5826_v2  ;;  %v9439_v62 = vpop.eup %9438  ;;  %v5851_v24 = vadd.f32 1.0, %v9437_v33  ;;  %v6174_v2 = vmax.f32 %v11236_v27, 0.0  ;;  %v6176_v33 = vmax.f32 %v11296_v45, 0.0 }
 0xf78   :  { %9450 = vrcp.f32 %v5838_v43  ;;  %v6175_v43 = vmax.f32 %v11290_v4, 0.0  ;;  %v6179_v15 = vmax.f32 %v11474_v5, 0.0  ;;  %v6180_v35 = vmax.f32 %v11480_v57, 0.0 }
 0xf79   :  { %9452 = vrcp.f32 %v5851_v24 }
 0xf7d   :  { %v9441_v6 = vpop.eup %9440 }
 0xf7e   :  { %v9443_v18 = vpop.eup %9442  ;;  %v5859_v63 = vmul.f32 %v9441_v6, %v9439_v62  ;;  %v6178_v62 = vmax.f32 %v12517_v37, 0.0 }
 0xf7f   :  { %v9445_v21 = vpop.eup %9444  ;;  %v5857_v11 = vmul.f32 %v9443_v18, %v11467_v42  ;;  %v6187_v42 = vld [vmem:[%s12160_s7 + $0x10] sm:$0xff] }
 0xf80   :  { %v9447_v32 = vpop.eup %9446  ;;  %v5852_v29 = vadd.f32 1.0, %v9445_v21  ;;  %v8756_v12 = vpack.c.bf16 %v6188_v59, %v6187_v42 }
 0xf81   :  { %v9449_v55 = vpop.eup %9448  ;;  %v11534_v47 = vadd.f32 %v5859_v63, %v5857_v11 }
 0xf82   :  { %v9451_v54 = vpop.eup %9450  ;;  %v5860_v8 = vmul.f32 %v9449_v55, %v9447_v32 }
 0xf83   :  { %9454 = vtanh.f32 %v11534_v47  ;;  %v5858_v7 = vmul.f32 %v9451_v54, %v11471_v40  ;;  %v9453_v34 = vpop.eup %9452  ;;  %v6189_v40 = vld [vmem:[%s12160_s7 + $0x20] sm:$0xff] }
 0xf84   :  { %9456 = vrcp.f32 %v5852_v29  ;;  %v8760_v46 = vpack.c.bf16 %v6190_v0, %v6189_v40 }
 0xf85   :  { %v11538_v51 = vadd.f32 %v5860_v8, %v5858_v7 }
 0xf87   :  { %9458 = vtanh.f32 %v11538_v51 }
 0xf8d   :  { %v9455_v31 = vpop.eup %9454 }
 0xf8e   :  { %v11547_v50 = vmul.f32 %v9455_v31, %v9453_v34  ;;  %v9457_v13 = vpop.eup %9456 }
 0xf90   :  { %6006 = vmatmul.mubr.f32.vlgmr.msra.gmra.mrb[56].mxu0 %v11547_v50  ;;  %6083 = vmatmul.mubr.f32.vlgmr.msra.gmra.mrb[64].mxu1 %v11547_v50  ;;  %v6181_v27 = vmax.f32 %v11547_v50, 0.0 }
 0xf91   :  { %v9459_v58 = vpop.eup %9458  ;;  %8755 = vmatpush3.bf16.msra.mxu0 %v11522_v14  ;;  %6011 = vmatprep.mubr.f32.mxu0 %v12351_v25  ;;  %v8764_v14 = vpack.c.bf16 %v6192_v28, %v6191_v44 }
 0xf92   :  { %6088 = vmatprep.mubr.f32.mxu1 %v12351_v25  ;;  %8757 = vmatprep.subr.bf16.mxu0 %v8756_v12  ;;  %v5866_v38 = vmul.f32 %v9459_v58, %v9457_v13  ;;  %v6193_v25 = vld [vmem:[%s12160_s7 + $0x40] sm:$0xff] }
 0xf93   :  { %v8768_v30 = vpack.c.bf16 %v6194_v17, %v6193_v25 }
 0xf94   :  { %6012 = vmatmul.mubr.f32.gmra.mrb[58].mxu0 %v5866_v38  ;;  %6089 = vmatmul.mubr.f32.gmra.mrb[66].mxu1 %v5866_v38  ;;  %v6182_v4 = vmax.f32 %v5866_v38, 0.0 }
 0xf95   :  { %8759 = vmatpush3.bf16.msra.mxu0 %v8756_v12  ;;  %7640 = vmatprep.mubr.f32.mxu0 %v6169_v60 }
 0xf96   :  { %8761 = vmatprep.subr.bf16.mxu0 %v8760_v46 }
 0xf99   :  { %8763 = vmatpush3.bf16.msra.mxu0 %v8760_v46  ;;  %v9572_v46 = vmov 1966171168  }
 0xf9a   :  { %8765 = vmatprep.subr.bf16.mxu0 %v8764_v14  ;;  %v6357_v60 = vunpack.c.l.s4 %v9572_v46 }
 0xf9c   :  { %v6358_v25 = vunpack.c.0.s8 %v6357_v60 }
 0xf9d   :  { %8767 = vmatpush3.bf16.msra.mxu0 %v8764_v14 }
 0xf9e   :  { %8769 = vmatprep.subr.bf16.mxu0 %v8768_v30 }
 0xfa1   :  { %8771 = vmatpush3.bf16.msra.mxu0 %v8768_v30 }
 0xfa2   :  { %8773 = vmatprep.subr.bf16.mxu0 %v8772_v10 }
 0xfa5   :  { %8775 = vmatpush3.bf16.msra.mxu0 %v8772_v10  ;;  %v11615_v10 = vld [vmem:[%s12161_s8] ss:$0 sm:$0xff] }
 0xfa6   :  { %8777 = vmatprep.subr.bf16.mxu0 %v8776_v3 }
 0xfa9   :  { %8779 = vmatpush3.bf16.msra.mxu0 %v8776_v3  ;;  %v12518_v3 = vld [vmem:[#allocation11_spill] sm:$0xff] }
 0xfaa   :  { %8781 = vmatprep.subr.bf16.mxu0 %v8780_v23  ;;  %v11618_v41 = vsub.s32 %v6358_v25, %v12518_v3 }
 0xfad   :  { %8783 = vmatpush3.bf16.msra.mxu0 %v8780_v23 }
 0xfb0   :  { %7641 = vmatmul.mubr.f32.vlgmr.msra.gmra.mrb[60].mxu0 %v6170_v16 }
 0xfb1   :  { %7643 = vmatprep.mubr.f32.mxu0 %v6171_v61 }
 0xfb4   :  { %7644 = vmatmul.mubr.f32.gmra.mrb[62].mxu0 %v6172_v48 }
 0xfb5   :  { %7646 = vmatprep.mubr.f32.mxu0 %v6173_v19 }
 0xfb8   :  { %7647 = vmatmul.mubr.f32.gmra.mrb[64].mxu0 %v6174_v2 }
 0xfb9   :  { %7649 = vmatprep.mubr.f32.mxu0 %v6175_v43 }
 0xfbc   :  { %7650 = vmatmul.mubr.f32.gmra.mrb[66].mxu0 %v6176_v33 }
 0xfbd   :  { %7652 = vmatprep.mubr.f32.mxu0 %v6177_v36 }
 0xfc0   :  { %7653 = vmatmul.mubr.f32.gmra.mrb[68].mxu0 %v6178_v62 }
 0xfc1   :  { %7655 = vmatprep.mubr.f32.mxu0 %v6179_v15 }
 0xfc4   :  { %7656 = vmatmul.mubr.f32.gmra.mrb[70].mxu0 %v6180_v35 }
 0xfc5   :  { %7658 = vmatprep.mubr.f32.mxu0 %v6181_v27 }
 0xfc8   :  { %7659 = vmatmul.mubr.f32.gmra.mrb[72].mxu0 %v6182_v4 }
0x1063   :  { %v6007_v6 = vpop.f32.mrb[56].mxu0  ;;  %v6084_v45 = vpop.f32.mrb[64].mxu1 }
0x1064   :  { %v8812_v53 = vadd.f32 %v6007_v6, %v11021_v1  ;;  %v6009_v18 = vpop.f32.mrb[57].mxu0  ;;  %v6086_v63 = vpop.f32.mrb[65].mxu1  ;;  %v8844_v34 = vadd.f32 %v6084_v45, %v11035_v26 }
0x1065   :  { %v8813_v24 = vadd.f32 %v6009_v18, %v11024_v9  ;;  %v8845_v7 = vadd.f32 %v6086_v63, %v11029_v56 }
0x1066   :  { %v7505_v21 = vmul.f32 -1.442695, %v8812_v53 }
0x1067   :  { %v7507_v5 = vmul.f32 -1.442695, %v8813_v24  ;;  %v6013_v11 = vpop.f32.mrb[58].mxu0  ;;  %v6090_v32 = vpop.f32.mrb[66].mxu1  ;;  %v7509_v31 = vmul.f32 -1.442695, %v8845_v7 }
0x1068   :  { %9460 = vpow2.f32 %v7505_v21  ;;  %v8814_v57 = vadd.f32 %v6013_v11, %v11021_v1  ;;  %v6015_v55 = vpop.f32.mrb[59].mxu0  ;;  %v6092_v54 = vpop.f32.mrb[67].mxu1 }
0x1069   :  { %9462 = vpow2.f32 %v7507_v5  ;;  %v8815_v8 = vadd.f32 %v6015_v55, %v11024_v9  ;;  %v8847_v59 = vadd.f32 %v6092_v54, %v11029_v56  ;;  %v8846_v9 = vadd.f32 %v6090_v32, %v11035_v26 }
0x106a   :  { %v7506_v29 = vmul.f32 -1.442695, %v8814_v57 }
0x106b   :  { %v7508_v42 = vmul.f32 -1.442695, %v8815_v8  ;;  %v7510_v50 = vmul.f32 -1.442695, %v8847_v59 }
0x106c   :  { %9464 = vpow2.f32 %v7506_v29 }
0x106d   :  { %9466 = vpow2.f32 %v7508_v42 }
0x106e   :  { %9468 = vtanh.f32 %v8844_v34 }
0x106f   :  { %9470 = vpow2.f32 %v7509_v31 }
0x1070   :  { %9472 = vpow2.f32 %v7510_v50 }
0x1072   :  { %v9461_v12 = vpop.eup %9460 }
0x1073   :  { %v9463_v1 = vpop.eup %9462  ;;  %v6109_v40 = vadd.f32 1.0, %v9461_v12 }
0x1074   :  { %v6121_v0 = vadd.f32 1.0, %v9463_v1 }
0x1075   :  { %9474 = vrcp.f32 %v6109_v40 }
0x1076   :  { %v9465_v13 = vpop.eup %9464  ;;  %9476 = vrcp.f32 %v6121_v0 }
0x1077   :  { %v9467_v58 = vpop.eup %9466  ;;  %v6110_v38 = vadd.f32 1.0, %v9465_v13  ;;  %9478 = vtanh.f32 %v8846_v9 }
0x1078   :  { %v6122_v56 = vadd.f32 1.0, %v9467_v58  ;;  %v9469_v44 = vpop.eup %9468 }
0x1079   :  { %9480 = vrcp.f32 %v6110_v38  ;;  %v9471_v28 = vpop.eup %9470 }
0x107a   :  { %9482 = vrcp.f32 %v6122_v56  ;;  %v9473_v14 = vpop.eup %9472  ;;  %v6135_v52 = vadd.f32 1.0, %v9471_v28 }
0x107b   :  { %v6136_v39 = vadd.f32 1.0, %v9473_v14 }
0x107c   :  { %9484 = vrcp.f32 %v6135_v52 }
0x107d   :  { %9486 = vrcp.f32 %v6136_v39 }
0x107f   :  { %v9475_v17 = vpop.eup %9474 }
0x1080   :  { %v9477_v30 = vpop.eup %9476  ;;  %v6143_v22 = vmul.f32 %v9475_v17, %v9469_v44 }
0x1081   :  { %v6141_v26 = vmul.f32 %v9477_v30, %v11534_v47  ;;  %v9479_v49 = vpop.eup %9478 }
0x1083   :  { %v9481_v20 = vpop.eup %9480  ;;  %v7642_v23 = vpop.f32.mrb[60].mxu0  ;;  %v6145_v16 = vadd.f32 %v6143_v22, %v6141_v26 }
0x1084   :  { %v9483_v61 = vpop.eup %9482  ;;  %v6144_v48 = vmul.f32 %v9481_v20, %v9479_v49  ;;  %v6280_v19 = vadd.f32 %v7642_v23, %v11615_v10  ;;  %v6274_v2 = vpop.f32.mrb[61].mxu0 }
0x1085   :  { %v6142_v47 = vmul.f32 %v9483_v61, %v11538_v51  ;;  %v6275_v43 = vadd.f32 %v11615_v10, %v6274_v2  ;;  %9488 = vtanh.f32 %v6145_v16 }
0x1086   :  { %v6404_v33 = vcombine.high %v6280_v19, %v6280_v19  ;;  %v6411_v36 = vrot.slane %v6280_v19, %v11618_v41  ;;  %v11680_v38 = vpop.eup %9484 }
0x1087   :  { %v6355_v37 = vcombine.high %v6275_v43, %v6275_v43  ;;  %v6362_v62 = vrot.slane %v6275_v43, %v11618_v41  ;;  %v7645_v15 = vpop.f32.mrb[62].mxu0  ;;  %v11625_v35 = vadd.f32 %v6144_v48, %v6142_v47  ;;  %v11693_v14 = vpop.eup %9486 }
0x1088   :  { %v6418_v27 = vrot.slane %v6404_v33, %v11618_v41  ;;  %v6419_v4 = vcombine.high %v6411_v36, %v6411_v36  ;;  %v6427_v6 = vrot.slane %v6411_v36, %v11618_v41  ;;  %7516 = vst.sshfl [vmem:[%s12162_s9 + $0x40] sm:$0x1 pattern:$0x73625140] %v6411_v36  ;;  %v6290_v51 = vadd.f32 %v7645_v15, %v11615_v10  ;;  %v6284_v45 = vpop.f32.mrb[63].mxu0 }
0x1089   :  { %v6369_v53 = vrot.slane %v6355_v37, %v11618_v41  ;;  %v6370_v18 = vcombine.high %v6362_v62, %v6362_v62  ;;  %v6378_v63 = vrot.slane %v6362_v62, %v11618_v41  ;;  %7512 = vst.sshfl [vmem:[%s12162_s9] sm:$0x1 pattern:$0x73625140] %v6362_v62  ;;  %v6285_v24 = vadd.f32 %v11615_v10, %v6284_v45 }
0x108a   :  { %v6420_v21 = vcombine.high %v6418_v27, %v6418_v27  ;;  %v6434_v5 = vrot.slane %v6418_v27, %v11618_v41  ;;  %v6441_v11 = vrot.slane %v6419_v4, %v11618_v41  ;;  %v6449_v32 = vcombine.high %v6427_v6, %v6427_v6  ;;  %7517 = vst.sshfl [vmem:[%s12162_s9 + $0x48] sm:$0x1 pattern:$0x73625140] %v6419_v4 }
0x108b   :  { %7518 = vst.sshfl [vmem:[%s12162_s9 + $0x60] sm:$0x1 pattern:$0x73625140] %v6418_v27  ;;  %v6371_v57 = vcombine.high %v6369_v53, %v6369_v53  ;;  %v6385_v55 = vrot.slane %v6369_v53, %v11618_v41  ;;  %v6392_v54 = vrot.slane %v6370_v18, %v11618_v41  ;;  %v6400_v8 = vcombine.high %v6378_v63, %v6378_v63  ;;  %v7648_v29 = vpop.f32.mrb[64].mxu0 }
0x108c   :  { %7513 = vst.sshfl [vmem:[%s12162_s9 + $0x8] sm:$0x1 pattern:$0x73625140] %v6370_v18  ;;  %v6448_v7 = vrot.slane %v6420_v21, %v11618_v41  ;;  %v6450_v42 = vcombine.high %v6434_v5, %v6434_v5  ;;  %v6451_v59 = vcombine.high %v6441_v11, %v6441_v11  ;;  %6479 = vst [vmem:[%s12162_s9 + $0x50] sm:$0x1] %v6449_v32  ;;  %9490 = vtanh.f32 %v11625_v35 }
0x108d   :  { %7514 = vst.sshfl [vmem:[%s12162_s9 + $0x20] sm:$0x1 pattern:$0x73625140] %v6369_v53  ;;  %v6536_v34 = vcombine.high %v6290_v51, %v6290_v51  ;;  %v11662_v31 = vpop.f32.mrb[65].mxu0  ;;  %v6399_v50 = vrot.slane %v6371_v57, %v11618_v41  ;;  %v6401_v12 = vcombine.high %v6385_v55, %v6385_v55  ;;  %v6402_v1 = vcombine.high %v6392_v54, %v6392_v54 }
0x108e   :  { %7519 = vst.sshfl [vmem:[%s12162_s9 + $0x68] sm:$0x1 pattern:$0x73625140] %v6420_v21  ;;  %6471 = vst [vmem:[%s12162_s9 + $0x10] sm:$0x1] %v6400_v8  ;;  %v6543_v40 = vrot.slane %v6290_v51, %v11618_v41  ;;  %v6452_v0 = vcombine.high %v6448_v7, %v6448_v7  ;;  %v6487_v13 = vcombine.high %v6285_v24, %v6285_v24 }
0x108f   :  { %7515 = vst.sshfl [vmem:[%s12162_s9 + $0x28] sm:$0x1 pattern:$0x73625140] %v6371_v57  ;;  %6480 = vst [vmem:[%s12162_s9 + $0x58] sm:$0x1] %v6451_v59  ;;  %v6550_v9 = vrot.slane %v6536_v34, %v11618_v41  ;;  %v6494_v58 = vrot.slane %v6285_v24, %v11618_v41  ;;  %v6403_v56 = vcombine.high %v6399_v50, %v6399_v50  ;;  %v11708_v52 = vpop.eup %9488 }
0x1090   :  { %6483 = vst [vmem:[%s12162_s9 + $0x70] sm:$0x1] %v6450_v42  ;;  %6472 = vst [vmem:[%s12162_s9 + $0x18] sm:$0x1] %v6402_v1  ;;  %v6551_v46 = vcombine.high %v6543_v40, %v6543_v40  ;;  %v6559_v60 = vrot.slane %v6543_v40, %v11618_v41  ;;  %v6300_v44 = vadd.f32 %v7648_v29, %v11615_v10  ;;  %v7651_v28 = vpop.f32.mrb[66].mxu0 }
0x1091   :  { %6475 = vst [vmem:[%s12162_s9 + $0x30] sm:$0x1] %v6401_v12  ;;  %7524 = vst.sshfl [vmem:[%s12162_s9 + $0x41] sm:$0x1 pattern:$0x73625140] %v6543_v40  ;;  %v6552_v25 = vcombine.high %v6550_v9, %v6550_v9  ;;  %v6566_v17 = vrot.slane %v6550_v9, %v11618_v41  ;;  %v6501_v30 = vrot.slane %v6487_v13, %v11618_v41 }
0x1092   :  { %6484 = vst [vmem:[%s12162_s9 + $0x78] sm:$0x1] %v6452_v0  ;;  %7526 = vst.sshfl [vmem:[%s12162_s9 + $0x61] sm:$0x1 pattern:$0x73625140] %v6550_v9  ;;  %v6502_v22 = vcombine.high %v6494_v58, %v6494_v58  ;;  %v6573_v49 = vrot.slane %v6551_v46, %v11618_v41  ;;  %v6581_v39 = vcombine.high %v6559_v60, %v6559_v60 }
0x1093   :  { %7520 = vst.sshfl [vmem:[%s12162_s9 + $0x1] sm:$0x1 pattern:$0x73625140] %v6494_v58  ;;  %v11706_v26 = vpop.f32.mrb[67].mxu0  ;;  %v6510_v3 = vrot.slane %v6494_v58, %v11618_v41  ;;  %v6668_v20 = vcombine.high %v6300_v44, %v6300_v44  ;;  %v6580_v23 = vrot.slane %v6552_v25, %v11618_v41  ;;  %v6582_v16 = vcombine.high %v6566_v17, %v6566_v17 }
0x1094   :  { %6476 = vst [vmem:[%s12162_s9 + $0x38] sm:$0x1] %v6403_v56  ;;  %7525 = vst.sshfl [vmem:[%s12162_s9 + $0x49] sm:$0x1 pattern:$0x73625140] %v6551_v46  ;;  %v6503_v61 = vcombine.high %v6501_v30, %v6501_v30  ;;  %v6517_v48 = vrot.slane %v6501_v30, %v11618_v41  ;;  %v6583_v19 = vcombine.high %v6573_v49, %v6573_v49 }
0x1095   :  { %7527 = vst.sshfl [vmem:[%s12162_s9 + $0x69] sm:$0x1 pattern:$0x73625140] %v6552_v25  ;;  %6611 = vst [vmem:[%s12162_s9 + $0x51] sm:$0x1] %v6581_v39  ;;  %v6524_v2 = vrot.slane %v6502_v22, %v11618_v41  ;;  %v6532_v47 = vcombine.high %v6510_v3, %v6510_v3  ;;  %v6675_v43 = vrot.slane %v6300_v44, %v11618_v41 }
0x1096   :  { %7521 = vst.sshfl [vmem:[%s12162_s9 + $0x9] sm:$0x1 pattern:$0x73625140] %v6502_v22  ;;  %v11734_v33 = vpop.f32.mrb[68].mxu0  ;;  %v6584_v36 = vcombine.high %v6580_v23, %v6580_v23  ;;  %v6531_v37 = vrot.slane %v6503_v61, %v11618_v41  ;;  %v6533_v62 = vcombine.high %v6517_v48, %v6517_v48  ;;  %v6682_v15 = vrot.slane %v6668_v20, %v11618_v41 }
0x1097   :  { %7522 = vst.sshfl [vmem:[%s12162_s9 + $0x21] sm:$0x1 pattern:$0x73625140] %v6501_v30  ;;  %6615 = vst [vmem:[%s12162_s9 + $0x71] sm:$0x1] %v6582_v16  ;;  %v6534_v4 = vcombine.high %v6524_v2, %v6524_v2  ;;  %v6683_v6 = vcombine.high %v6675_v43, %v6675_v43  ;;  %v6691_v51 = vrot.slane %v6675_v43, %v11618_v41 }
0x1098   :  { %7523 = vst.sshfl [vmem:[%s12162_s9 + $0x29] sm:$0x1 pattern:$0x73625140] %v6503_v61  ;;  %v11744_v27 = vpop.f32.mrb[69].mxu0  ;;  %v6295_v45 = vadd.f32 %v11615_v10, %v11662_v31  ;;  %v6535_v53 = vcombine.high %v6531_v37, %v6531_v37  ;;  %v6684_v18 = vcombine.high %v6682_v15, %v6682_v15  ;;  %v6698_v63 = vrot.slane %v6682_v15, %v11618_v41 }
0x1099   :  { %6612 = vst [vmem:[%s12162_s9 + $0x59] sm:$0x1] %v6583_v19  ;;  %6603 = vst [vmem:[%s12162_s9 + $0x11] sm:$0x1] %v6532_v47  ;;  %v6310_v24 = vadd.f32 %v7651_v28, %v11615_v10  ;;  %v6705_v21 = vrot.slane %v6683_v6, %v11618_v41  ;;  %v6713_v5 = vcombine.high %v6691_v51, %v6691_v51  ;;  %v11777_v57 = vpop.f32.mrb[70].mxu0 }
0x109a   :  { %7532 = vst.sshfl [vmem:[%s12162_s9 + $0x42] sm:$0x1 pattern:$0x73625140] %v6675_v43  ;;  %6616 = vst [vmem:[%s12162_s9 + $0x79] sm:$0x1] %v6584_v36  ;;  %v6619_v11 = vcombine.high %v6295_v45, %v6295_v45  ;;  %v6626_v32 = vrot.slane %v6295_v45, %v11618_v41  ;;  %v6712_v55 = vrot.slane %v6684_v18, %v11618_v41 }
0x109b   :  { %6607 = vst [vmem:[%s12162_s9 + $0x31] sm:$0x1] %v6533_v62  ;;  %7534 = vst.sshfl [vmem:[%s12162_s9 + $0x62] sm:$0x1 pattern:$0x73625140] %v6682_v15  ;;  %v6714_v54 = vcombine.high %v6698_v63, %v6698_v63  ;;  %v6800_v8 = vcombine.high %v6310_v24, %v6310_v24  ;;  %v6807_v29 = vrot.slane %v6310_v24, %v11618_v41 }
0x109c   :  { %6604 = vst [vmem:[%s12162_s9 + $0x19] sm:$0x1] %v6534_v4  ;;  %7533 = vst.sshfl [vmem:[%s12162_s9 + $0x4a] sm:$0x1 pattern:$0x73625140] %v6683_v6  ;;  %v6715_v42 = vcombine.high %v6705_v21, %v6705_v21  ;;  %v6633_v59 = vrot.slane %v6619_v11, %v11618_v41  ;;  %v6634_v34 = vcombine.high %v6626_v32, %v6626_v32 }
0x109d   :  { %6608 = vst [vmem:[%s12162_s9 + $0x39] sm:$0x1] %v6535_v53  ;;  %7535 = vst.sshfl [vmem:[%s12162_s9 + $0x6a] sm:$0x1 pattern:$0x73625140] %v6684_v18  ;;  %v6642_v31 = vrot.slane %v6626_v32, %v11618_v41  ;;  %v6716_v50 = vcombine.high %v6712_v55, %v6712_v55  ;;  %v6814_v12 = vrot.slane %v6800_v8, %v11618_v41 }
0x109e   :  { %v11787_v7 = vpop.f32.mrb[71].mxu0  ;;  %6743 = vst [vmem:[%s12162_s9 + $0x52] sm:$0x1] %v6713_v5  ;;  %6747 = vst [vmem:[%s12162_s9 + $0x72] sm:$0x1] %v6714_v54  ;;  %v6815_v1 = vcombine.high %v6807_v29, %v6807_v29  ;;  %v6823_v40 = vrot.slane %v6807_v29, %v11618_v41  ;;  %v6635_v0 = vcombine.high %v6633_v59, %v6633_v59 }
0x109f   :  { %7528 = vst.sshfl [vmem:[%s12162_s9 + $0x2] sm:$0x1 pattern:$0x73625140] %v6626_v32  ;;  %6744 = vst [vmem:[%s12162_s9 + $0x5a] sm:$0x1] %v6715_v42  ;;  %v6649_v9 = vrot.slane %v6633_v59, %v11618_v41  ;;  %v6656_v13 = vrot.slane %v6634_v34, %v11618_v41  ;;  %v6664_v58 = vcombine.high %v6642_v31, %v6642_v31 }
0x10a0   :  { %7540 = vst.sshfl [vmem:[%s12162_s9 + $0x43] sm:$0x1 pattern:$0x73625140] %v6807_v29  ;;  %v11816_v56 = vpop.f32.mrb[72].mxu0  ;;  %v6816_v46 = vcombine.high %v6814_v12, %v6814_v12  ;;  %v6830_v60 = vrot.slane %v6814_v12, %v11618_v41  ;;  %v6837_v44 = vrot.slane %v6815_v1, %v11618_v41  ;;  %v6845_v28 = vcombine.high %v6823_v40, %v6823_v40 }
0x10a1   :  { %7529 = vst.sshfl [vmem:[%s12162_s9 + $0xa] sm:$0x1 pattern:$0x73625140] %v6634_v34  ;;  %6748 = vst [vmem:[%s12162_s9 + $0x7a] sm:$0x1] %v6716_v50  ;;  %v6663_v17 = vrot.slane %v6635_v0, %v11618_v41  ;;  %v6665_v30 = vcombine.high %v6649_v9, %v6649_v9  ;;  %v6666_v22 = vcombine.high %v6656_v13, %v6656_v13 }
0x10a2   :  { %7530 = vst.sshfl [vmem:[%s12162_s9 + $0x22] sm:$0x1 pattern:$0x73625140] %v6633_v59  ;;  %v11829_v25 = vpop.f32.mrb[73].mxu0  ;;  %v6305_v49 = vadd.f32 %v11615_v10, %v11706_v26  ;;  %v6844_v39 = vrot.slane %v6816_v46, %v11618_v41  ;;  %v6846_v3 = vcombine.high %v6830_v60, %v6830_v60  ;;  %v6847_v20 = vcombine.high %v6837_v44, %v6837_v44 }
0x10a3   :  { %7541 = vst.sshfl [vmem:[%s12162_s9 + $0x4b] sm:$0x1 pattern:$0x73625140] %v6815_v1  ;;  %6735 = vst [vmem:[%s12162_s9 + $0x12] sm:$0x1] %v6664_v58  ;;  %v6320_v23 = vadd.f32 %v11734_v33, %v11615_v10  ;;  %v6667_v16 = vcombine.high %v6663_v17, %v6663_v17  ;;  %v6315_v48 = vadd.f32 %v11615_v10, %v11744_v27 }
0x10a4   :  { %7542 = vst.sshfl [vmem:[%s12162_s9 + $0x63] sm:$0x1 pattern:$0x73625140] %v6814_v12  ;;  %6875 = vst [vmem:[%s12162_s9 + $0x53] sm:$0x1] %v6845_v28  ;;  %v6751_v26 = vcombine.high %v6305_v49, %v6305_v49  ;;  %v6758_v61 = vrot.slane %v6305_v49, %v11618_v41  ;;  %v6848_v19 = vcombine.high %v6844_v39, %v6844_v39 }
0x10a5   :  { %7531 = vst.sshfl [vmem:[%s12162_s9 + $0x2a] sm:$0x1 pattern:$0x73625140] %v6635_v0  ;;  %6736 = vst [vmem:[%s12162_s9 + $0x1a] sm:$0x1] %v6666_v22  ;;  %v6932_v2 = vcombine.high %v6320_v23, %v6320_v23  ;;  %v6939_v47 = vrot.slane %v6320_v23, %v11618_v41  ;;  %v6149_v43 = vmul.f32 %v11708_v52, %v11680_v38 }
0x10a6   :  { %7543 = vst.sshfl [vmem:[%s12162_s9 + $0x6b] sm:$0x1 pattern:$0x73625140] %v6816_v46  ;;  %6739 = vst [vmem:[%s12162_s9 + $0x32] sm:$0x1] %v6665_v30  ;;  %v6765_v33 = vrot.slane %v6751_v26, %v11618_v41  ;;  %v6766_v36 = vcombine.high %v6758_v61, %v6758_v61  ;;  %v6774_v37 = vrot.slane %v6758_v61, %v11618_v41 }
0x10a7   :  { %6876 = vst [vmem:[%s12162_s9 + $0x5b] sm:$0x1] %v6847_v20  ;;  %6879 = vst [vmem:[%s12162_s9 + $0x73] sm:$0x1] %v6846_v3  ;;  %v6883_v62 = vcombine.high %v6315_v48, %v6315_v48  ;;  %v6946_v38 = vrot.slane %v6932_v2, %v11618_v41  ;;  %v6947_v52 = vcombine.high %v6939_v47, %v6939_v47  ;;  %v6183_v1 = vmax.f32 %v6149_v43, 0.0 }
0x10a8   :  { %6740 = vst [vmem:[%s12162_s9 + $0x3a] sm:$0x1] %v6667_v16  ;;  %7536 = vst.sshfl [vmem:[%s12162_s9 + $0x3] sm:$0x1 pattern:$0x73625140] %v6758_v61  ;;  %v6955_v15 = vrot.slane %v6939_v47, %v11618_v41  ;;  %v6890_v27 = vrot.slane %v6315_v48, %v11618_v41  ;;  %v6767_v4 = vcombine.high %v6765_v33, %v6765_v33 }
0x10a9   :  { %6880 = vst [vmem:[%s12162_s9 + $0x7b] sm:$0x1] %v6848_v19  ;;  %7548 = vst.sshfl [vmem:[%s12162_s9 + $0x44] sm:$0x1 pattern:$0x73625140] %v6939_v47  ;;  %v6781_v6 = vrot.slane %v6765_v33, %v11618_v41  ;;  %v6788_v51 = vrot.slane %v6766_v36, %v11618_v41  ;;  %v6796_v45 = vcombine.high %v6774_v37, %v6774_v37  ;;  %7661 = vmatprep.mubr.f32.mxu0 %v6183_v1 }
0x10aa   :  { %7537 = vst.sshfl [vmem:[%s12162_s9 + $0xb] sm:$0x1 pattern:$0x73625140] %v6766_v36  ;;  %v6948_v53 = vcombine.high %v6946_v38, %v6946_v38  ;;  %v6962_v18 = vrot.slane %v6946_v38, %v11618_v41  ;;  %v6969_v63 = vrot.slane %v6947_v52, %v11618_v41  ;;  %v6977_v24 = vcombine.high %v6955_v15, %v6955_v15 }
0x10ab   :  { %7538 = vst.sshfl [vmem:[%s12162_s9 + $0x23] sm:$0x1 pattern:$0x73625140] %v6765_v33  ;;  %v6795_v21 = vrot.slane %v6767_v4, %v11618_v41  ;;  %v6797_v5 = vcombine.high %v6781_v6, %v6781_v6  ;;  %v6798_v11 = vcombine.high %v6788_v51, %v6788_v51  ;;  %6867 = vst [vmem:[%s12162_s9 + $0x13] sm:$0x1] %v6796_v45 }
0x10ac   :  { %7549 = vst.sshfl [vmem:[%s12162_s9 + $0x4c] sm:$0x1 pattern:$0x73625140] %v6947_v52  ;;  %v6897_v32 = vrot.slane %v6883_v62, %v11618_v41  ;;  %v6976_v55 = vrot.slane %v6948_v53, %v11618_v41  ;;  %v6978_v54 = vcombine.high %v6962_v18, %v6962_v18  ;;  %v6979_v8 = vcombine.high %v6969_v63, %v6969_v63  ;;  %v9491_v63 = vpop.eup %9490 }
0x10ad   :  { %7550 = vst.sshfl [vmem:[%s12162_s9 + $0x64] sm:$0x1 pattern:$0x73625140] %v6946_v38  ;;  %7007 = vst [vmem:[%s12162_s9 + $0x54] sm:$0x1] %v6977_v24  ;;  %v6898_v29 = vcombine.high %v6890_v27, %v6890_v27  ;;  %v6799_v42 = vcombine.high %v6795_v21, %v6795_v21  ;;  %v6906_v34 = vrot.slane %v6890_v27, %v11618_v41 }
0x10ae   :  { %7544 = vst.sshfl [vmem:[%s12162_s9 + $0x4] sm:$0x1 pattern:$0x73625140] %v6890_v27  ;;  %6868 = vst [vmem:[%s12162_s9 + $0x1b] sm:$0x1] %v6798_v11  ;;  %v6899_v59 = vcombine.high %v6897_v32, %v6897_v32  ;;  %v6913_v31 = vrot.slane %v6897_v32, %v11618_v41  ;;  %v6980_v50 = vcombine.high %v6976_v55, %v6976_v55 }
0x10af   :  { %7539 = vst.sshfl [vmem:[%s12162_s9 + $0x2b] sm:$0x1 pattern:$0x73625140] %v6767_v4  ;;  %6871 = vst [vmem:[%s12162_s9 + $0x33] sm:$0x1] %v6797_v5  ;;  %v6920_v12 = vrot.slane %v6898_v29, %v11618_v41  ;;  %v6330_v40 = vadd.f32 %v11777_v57, %v11615_v10  ;;  %v6928_v9 = vcombine.high %v6906_v34, %v6906_v34 }
0x10b0   :  { %7551 = vst.sshfl [vmem:[%s12162_s9 + $0x6c] sm:$0x1 pattern:$0x73625140] %v6948_v53  ;;  %7008 = vst [vmem:[%s12162_s9 + $0x5c] sm:$0x1] %v6979_v8  ;;  %v6927_v0 = vrot.slane %v6899_v59, %v11618_v41  ;;  %v6929_v13 = vcombine.high %v6913_v31, %v6913_v31  ;;  %v6325_v58 = vadd.f32 %v11615_v10, %v11787_v7 }
0x10b1   :  { %7546 = vst.sshfl [vmem:[%s12162_s9 + $0x24] sm:$0x1 pattern:$0x73625140] %v6897_v32  ;;  %7011 = vst [vmem:[%s12162_s9 + $0x74] sm:$0x1] %v6978_v54  ;;  %v6930_v57 = vcombine.high %v6920_v12, %v6920_v12  ;;  %v7064_v46 = vcombine.high %v6330_v40, %v6330_v40  ;;  %v7071_v60 = vrot.slane %v6330_v40, %v11618_v41 }
0x10b2   :  { %7545 = vst.sshfl [vmem:[%s12162_s9 + $0xc] sm:$0x1 pattern:$0x73625140] %v6898_v29  ;;  %6872 = vst [vmem:[%s12162_s9 + $0x3b] sm:$0x1] %v6799_v42  ;;  %v6931_v44 = vcombine.high %v6927_v0, %v6927_v0  ;;  %v7015_v7 = vcombine.high %v6325_v58, %v6325_v58  ;;  %v7022_v28 = vrot.slane %v6325_v58, %v11618_v41 }
0x10b3   :  { %7547 = vst.sshfl [vmem:[%s12162_s9 + $0x2c] sm:$0x1 pattern:$0x73625140] %v6899_v59  ;;  %7012 = vst [vmem:[%s12162_s9 + $0x7c] sm:$0x1] %v6980_v50  ;;  %v6340_v17 = vadd.f32 %v11816_v56, %v11615_v10  ;;  %v7078_v35 = vrot.slane %v7064_v46, %v11618_v41  ;;  %v7079_v30 = vcombine.high %v7071_v60, %v7071_v60 }
0x10b4   :  { %6999 = vst [vmem:[%s12162_s9 + $0x14] sm:$0x1] %v6928_v9  ;;  %7003 = vst [vmem:[%s12162_s9 + $0x34] sm:$0x1] %v6929_v13  ;;  %v7087_v22 = vrot.slane %v7071_v60, %v11618_v41  ;;  %v6335_v49 = vadd.f32 %v11615_v10, %v11829_v25  ;;  %v7029_v56 = vrot.slane %v7015_v7, %v11618_v41 }
0x10b5   :  { %7000 = vst [vmem:[%s12162_s9 + $0x1c] sm:$0x1] %v6930_v57  ;;  %7556 = vst.sshfl [vmem:[%s12162_s9 + $0x45] sm:$0x1 pattern:$0x73625140] %v7071_v60  ;;  %v7030_v39 = vcombine.high %v7022_v28, %v7022_v28  ;;  %v7038_v3 = vrot.slane %v7022_v28, %v11618_v41  ;;  %v7196_v20 = vcombine.high %v6340_v17, %v6340_v17 }
0x10b6   :  { %7004 = vst [vmem:[%s12162_s9 + $0x3c] sm:$0x1] %v6931_v44  ;;  %7552 = vst.sshfl [vmem:[%s12162_s9 + $0x5] sm:$0x1 pattern:$0x73625140] %v7022_v28  ;;  %v7080_v23 = vcombine.high %v7078_v35, %v7078_v35  ;;  %v7094_v16 = vrot.slane %v7078_v35, %v11618_v41  ;;  %v7101_v26 = vrot.slane %v7079_v30, %v11618_v41 }
0x10b7   :  { %v7109_v25 = vcombine.high %v7087_v22, %v7087_v22  ;;  %7557 = vst.sshfl [vmem:[%s12162_s9 + $0x4d] sm:$0x1 pattern:$0x73625140] %v7079_v30  ;;  %v7031_v61 = vcombine.high %v7029_v56, %v7029_v56  ;;  %v7045_v48 = vrot.slane %v7029_v56, %v11618_v41  ;;  %v7052_v19 = vrot.slane %v7030_v39, %v11618_v41 }
0x10b8   :  { %7558 = vst.sshfl [vmem:[%s12162_s9 + $0x65] sm:$0x1 pattern:$0x73625140] %v7078_v35  ;;  %v7060_v2 = vcombine.high %v7038_v3, %v7038_v3  ;;  %v7108_v47 = vrot.slane %v7080_v23, %v11618_v41  ;;  %v7110_v43 = vcombine.high %v7094_v16, %v7094_v16  ;;  %v7111_v33 = vcombine.high %v7101_v26, %v7101_v26 }
0x10b9   :  { %7553 = vst.sshfl [vmem:[%s12162_s9 + $0xd] sm:$0x1 pattern:$0x73625140] %v7030_v39  ;;  %7139 = vst [vmem:[%s12162_s9 + $0x55] sm:$0x1] %v7109_v25  ;;  %v7203_v36 = vrot.slane %v6340_v17, %v11618_v41  ;;  %v7059_v37 = vrot.slane %v7031_v61, %v11618_v41  ;;  %v7061_v62 = vcombine.high %v7045_v48, %v7045_v48 }
0x10ba   :  { %7554 = vst.sshfl [vmem:[%s12162_s9 + $0x25] sm:$0x1 pattern:$0x73625140] %v7029_v56  ;;  %v7062_v38 = vcombine.high %v7052_v19, %v7052_v19  ;;  %7131 = vst [vmem:[%s12162_s9 + $0x15] sm:$0x1] %v7060_v2  ;;  %v7210_v52 = vrot.slane %v7196_v20, %v11618_v41  ;;  %v7112_v15 = vcombine.high %v7108_v47, %v7108_v47 }
0x10bb   :  { %7559 = vst.sshfl [vmem:[%s12162_s9 + $0x6d] sm:$0x1 pattern:$0x73625140] %v7080_v23  ;;  %7140 = vst [vmem:[%s12162_s9 + $0x5d] sm:$0x1] %v7111_v33  ;;  %v7211_v27 = vcombine.high %v7203_v36, %v7203_v36  ;;  %v7219_v4 = vrot.slane %v7203_v36, %v11618_v41  ;;  %v7147_v6 = vcombine.high %v6335_v49, %v6335_v49 }
0x10bc   :  { %7555 = vst.sshfl [vmem:[%s12162_s9 + $0x2d] sm:$0x1 pattern:$0x73625140] %v7031_v61  ;;  %7143 = vst [vmem:[%s12162_s9 + $0x75] sm:$0x1] %v7110_v43  ;;  %v7063_v51 = vcombine.high %v7059_v37, %v7059_v37  ;;  %v7212_v45 = vcombine.high %v7210_v52, %v7210_v52  ;;  %v7226_v53 = vrot.slane %v7210_v52, %v11618_v41 }
0x10bd   :  { %7564 = vst.sshfl [vmem:[%s12162_s9 + $0x46] sm:$0x1 pattern:$0x73625140] %v7203_v36  ;;  %7132 = vst [vmem:[%s12162_s9 + $0x1d] sm:$0x1] %v7062_v38  ;;  %v7154_v18 = vrot.slane %v6335_v49, %v11618_v41  ;;  %v7233_v24 = vrot.slane %v7211_v27, %v11618_v41  ;;  %v7241_v21 = vcombine.high %v7219_v4, %v7219_v4 }
0x10be   :  { %7135 = vst [vmem:[%s12162_s9 + $0x35] sm:$0x1] %v7061_v62  ;;  %7566 = vst.sshfl [vmem:[%s12162_s9 + $0x66] sm:$0x1 pattern:$0x73625140] %v7210_v52  ;;  %v7161_v5 = vrot.slane %v7147_v6, %v11618_v41  ;;  %v6150_v11 = vmul.f32 %v9491_v63, %v11693_v14  ;;  %v7240_v32 = vrot.slane %v7212_v45, %v11618_v41 }
0x10bf   :  { %7144 = vst [vmem:[%s12162_s9 + $0x7d] sm:$0x1] %v7112_v15  ;;  %7565 = vst.sshfl [vmem:[%s12162_s9 + $0x4e] sm:$0x1 pattern:$0x73625140] %v7211_v27  ;;  %v7242_v55 = vcombine.high %v7226_v53, %v7226_v53  ;;  %v7162_v54 = vcombine.high %v7154_v18, %v7154_v18  ;;  %v7243_v8 = vcombine.high %v7233_v24, %v7233_v24 }
0x10c0   :  { %7136 = vst [vmem:[%s12162_s9 + $0x3d] sm:$0x1] %v7063_v51  ;;  %7567 = vst.sshfl [vmem:[%s12162_s9 + $0x6e] sm:$0x1 pattern:$0x73625140] %v7212_v45  ;;  %v7163_v29 = vcombine.high %v7161_v5, %v7161_v5  ;;  %v7170_v14 = vrot.slane %v7154_v18, %v11618_v41  ;;  %v7177_v42 = vrot.slane %v7161_v5, %v11618_v41 }
0x10c1   :  { %7560 = vst.sshfl [vmem:[%s12162_s9 + $0x6] sm:$0x1 pattern:$0x73625140] %v7154_v18  ;;  %7271 = vst [vmem:[%s12162_s9 + $0x56] sm:$0x1] %v7241_v21  ;;  %v7244_v34 = vcombine.high %v7240_v32, %v7240_v32  ;;  %v7184_v31 = vrot.slane %v7162_v54, %v11618_v41 }
0x10c2   :  { %7562 = vst.sshfl [vmem:[%s12162_s9 + $0x26] sm:$0x1 pattern:$0x73625140] %v7161_v5  ;;  %v6184_v59 = vmax.f32 %v6150_v11, 0.0  ;;  %v7191_v50 = vrot.slane %v7163_v29, %v11618_v41  ;;  %v7192_v12 = vcombine.high %v7170_v14, %v7170_v14  ;;  %v7193_v1 = vcombine.high %v7177_v42, %v7177_v42 }
0x10c3   :  { %7275 = vst [vmem:[%s12162_s9 + $0x76] sm:$0x1] %v7242_v55  ;;  %7561 = vst.sshfl [vmem:[%s12162_s9 + $0xe] sm:$0x1 pattern:$0x73625140] %v7162_v54  ;;  %v7194_v40 = vcombine.high %v7184_v31, %v7184_v31 }
0x10c4   :  { %7272 = vst [vmem:[%s12162_s9 + $0x5e] sm:$0x1] %v7243_v8  ;;  %7563 = vst.sshfl [vmem:[%s12162_s9 + $0x2e] sm:$0x1 pattern:$0x73625140] %v7163_v29  ;;  %7662 = vmatmul.mubr.f32.gmra.mrb[74].mxu0 %v6184_v59  ;;  %v7195_v0 = vcombine.high %v7191_v50, %v7191_v50 }
0x10c5   :  { %7276 = vst [vmem:[%s12162_s9 + $0x7e] sm:$0x1] %v7244_v34  ;;  %7263 = vst [vmem:[%s12162_s9 + $0x16] sm:$0x1] %v7192_v12 }
0x10c6   :  { %7267 = vst [vmem:[%s12162_s9 + $0x36] sm:$0x1] %v7193_v1  ;;  %7264 = vst [vmem:[%s12162_s9 + $0x1e] sm:$0x1] %v7194_v40 }
0x10c7   :  { %7268 = vst [vmem:[%s12162_s9 + $0x3e] sm:$0x1] %v7195_v0 }
0x1197   :  { %v7663_v9 = vpop.f32.mrb[74].mxu0 }
0x1198   :  { %v6350_v13 = vadd.f32 %v7663_v9, %v11615_v10  ;;  %v6344_v58 = vpop.f32.mrb[75].mxu0 }
0x1199   :  { %v6345_v57 = vadd.f32 %v11615_v10, %v6344_v58 }
0x119a   :  { %v7328_v46 = vcombine.high %v6350_v13, %v6350_v13  ;;  %v7335_v60 = vrot.slane %v6350_v13, %v11618_v41 }
0x119b   :  { %v7279_v44 = vcombine.high %v6345_v57, %v6345_v57  ;;  %v7286_v7 = vrot.slane %v6345_v57, %v11618_v41 }
0x119c   :  { %v7342_v28 = vrot.slane %v7328_v46, %v11618_v41  ;;  %v7343_v17 = vcombine.high %v7335_v60, %v7335_v60  ;;  %v7351_v35 = vrot.slane %v7335_v60, %v11618_v41  ;;  %7572 = vst.sshfl [vmem:[%s12162_s9 + $0x47] sm:$0x1 pattern:$0x73625140] %v7335_v60 }
0x119d   :  { %v7293_v30 = vrot.slane %v7279_v44, %v11618_v41  ;;  %v7294_v22 = vcombine.high %v7286_v7, %v7286_v7  ;;  %v7302_v10 = vrot.slane %v7286_v7, %v11618_v41  ;;  %7568 = vst.sshfl [vmem:[%s12162_s9 + $0x7] sm:$0x1 pattern:$0x73625140] %v7286_v7 }
0x119e   :  { %v7344_v49 = vcombine.high %v7342_v28, %v7342_v28  ;;  %v7358_v56 = vrot.slane %v7342_v28, %v11618_v41  ;;  %v7365_v39 = vrot.slane %v7343_v17, %v11618_v41  ;;  %v7373_v3 = vcombine.high %v7351_v35, %v7351_v35  ;;  %7573 = vst.sshfl [vmem:[%s12162_s9 + $0x4f] sm:$0x1 pattern:$0x73625140] %v7343_v17 }
0x119f   :  { %7574 = vst.sshfl [vmem:[%s12162_s9 + $0x67] sm:$0x1 pattern:$0x73625140] %v7342_v28  ;;  %v7295_v20 = vcombine.high %v7293_v30, %v7293_v30  ;;  %v7309_v23 = vrot.slane %v7293_v30, %v11618_v41  ;;  %v7316_v16 = vrot.slane %v7294_v22, %v11618_v41  ;;  %v7324_v26 = vcombine.high %v7302_v10, %v7302_v10 }
0x11a0   :  { %7569 = vst.sshfl [vmem:[%s12162_s9 + $0xf] sm:$0x1 pattern:$0x73625140] %v7294_v22  ;;  %v7372_v25 = vrot.slane %v7344_v49, %v11618_v41  ;;  %v7374_v61 = vcombine.high %v7358_v56, %v7358_v56  ;;  %v7375_v48 = vcombine.high %v7365_v39, %v7365_v39  ;;  %7403 = vst [vmem:[%s12162_s9 + $0x57] sm:$0x1] %v7373_v3 }
0x11a1   :  { %7570 = vst.sshfl [vmem:[%s12162_s9 + $0x27] sm:$0x1 pattern:$0x73625140] %v7293_v30  ;;  %v7323_v19 = vrot.slane %v7295_v20, %v11618_v41  ;;  %v7325_v2 = vcombine.high %v7309_v23, %v7309_v23  ;;  %v7326_v47 = vcombine.high %v7316_v16, %v7316_v16  ;;  %7395 = vst [vmem:[%s12162_s9 + $0x17] sm:$0x1] %v7324_v26 }
0x11a2   :  { %7575 = vst.sshfl [vmem:[%s12162_s9 + $0x6f] sm:$0x1 pattern:$0x73625140] %v7344_v49  ;;  %v7376_v43 = vcombine.high %v7372_v25, %v7372_v25  ;;  %7404 = vst [vmem:[%s12162_s9 + $0x5f] sm:$0x1] %v7375_v48 }
0x11a3   :  { %7571 = vst.sshfl [vmem:[%s12162_s9 + $0x2f] sm:$0x1 pattern:$0x73625140] %v7295_v20  ;;  %7407 = vst [vmem:[%s12162_s9 + $0x77] sm:$0x1] %v7374_v61  ;;  %v7327_v41 = vcombine.high %v7323_v19, %v7323_v19 }
0x11a4   :  { %7396 = vst [vmem:[%s12162_s9 + $0x1f] sm:$0x1] %v7326_v47  ;;  %7399 = vst [vmem:[%s12162_s9 + $0x37] sm:$0x1] %v7325_v2 }
0x11a5   :  { %7408 = vst [vmem:[%s12162_s9 + $0x7f] sm:$0x1] %v7376_v43  ;;  %7400 = vst [vmem:[%s12162_s9 + $0x3f] sm:$0x1] %v7327_v41 }
0x11a6   :  { %7413 = vsyncpa [#allocation5], 1 }
0x11a7   :  { %7414 = vsyncpa [#allocation7], 1 }

</bundles_post_ra>
